<compile_context>
chip_gen: v7x
topology: tpu7x:2x2x1
jax: 0.10.0
libtpu: 0.0.40
codegen_flags: <defaults>
</compile_context>

<pallas_src>
import jax
import jax.numpy as jnp
from jax.experimental import pallas as pl
from jax.experimental.pallas import tpu as pltpu


# ----------------------------------------------------------------------------
# Kernel: fused 5-layer MLP on one batch tile. Weights already masked,
# transposed to [in, out] and lane-padded.
# ----------------------------------------------------------------------------
def mlp_kernel(x_ref, w1_ref, w2_ref, w3_ref, w4_ref, w5_ref, b5_ref, o_ref):
    h = x_ref[...]
    h = jnp.maximum(jnp.dot(h, w1_ref[...], preferred_element_type=jnp.float32), 0.0)
    h = jnp.maximum(jnp.dot(h, w2_ref[...], preferred_element_type=jnp.float32), 0.0)
    h = jnp.maximum(jnp.dot(h, w3_ref[...], preferred_element_type=jnp.float32), 0.0)
    h = jnp.maximum(jnp.dot(h, w4_ref[...], preferred_element_type=jnp.float32), 0.0)
    out = jnp.dot(h, w5_ref[...], preferred_element_type=jnp.float32)
    o_ref[...] = out + b5_ref[...]          # (1, out_pad) broadcasts over rows


# ----------------------------------------------------------------------------
# Param preparation: apply masks once, transpose to [in, out], pad to x128.
# ----------------------------------------------------------------------------
def _round_up(n, m):
    return ((n + m - 1) // m) * m


def _pad2d(a, rows, cols):
    return jnp.pad(a, ((0, rows - a.shape[0]), (0, cols - a.shape[1])))


def prepare_params(raw_params):
    """raw_params = (w1, m1, w2, m2, w3, m3, w4, m4, w5, b5)

    wK: PyTorch Linear layout [out, in] (float32); mK: bool mask, True=pruned.
    Returns kernel-ready tensors: masked, transposed to [in, out], zero-padded
    to multiples of 128 on both dims (exact — padded units contribute 0).
    """
    w1, m1, w2, m2, w3, m3, w4, m4, w5, b5 = raw_params

    prepped = []
    for w, m in ((w1, m1), (w2, m2), (w3, m3), (w4, m4)):
        w_eff = jnp.where(m, 0.0, w).T                       # [in, out]
        prepped.append(
            _pad2d(w_eff, _round_up(w_eff.shape[0], 128),
                   _round_up(w_eff.shape[1], 128)).astype(jnp.float32))

    w5_t = w5.T                                              # [200, out]
    prepped.append(
        _pad2d(w5_t, _round_up(w5_t.shape[0], 128),
               _round_up(w5_t.shape[1], 128)).astype(jnp.float32))
    out_size = b5.shape[-1]
    b5_p = jnp.pad(b5.reshape(1, -1),
                   ((0, 0), (0, _round_up(out_size, 128) - out_size)))
    prepped.append(b5_p.astype(jnp.float32))
    return tuple(prepped), out_size


# ----------------------------------------------------------------------------
# Wrapper: flatten, pad batch/features, run fused kernel, slice result.
# ----------------------------------------------------------------------------
def model_forward(x, prepped, output_size):
    w1p, w2p, w3p, w4p, w5p, b5p = prepped
    B = x.shape[0]
    x2d = x.reshape(B, -1).astype(jnp.float32)

    in_pad = w1p.shape[0]
    out_pad = b5p.shape[1]

    # Batch tiling: tile of up to 128 rows (min 8 for sublane alignment).
    TB = min(128, _round_up(B, 8))
    B_pad = _round_up(B, TB)
    x2d = jnp.pad(x2d, ((0, B_pad - B), (0, in_pad - x2d.shape[1])))
    grid = (B_pad // TB,)

    full = lambda shape: pl.BlockSpec(shape, lambda i: (0, 0))

    out_padded = pl.pallas_call(
        mlp_kernel,
        out_shape=jax.ShapeDtypeStruct((B_pad, out_pad), jnp.float32),
        grid=grid,
        in_specs=[
            pl.BlockSpec((TB, in_pad), lambda i: (i, 0)),   # x: batch-tiled
            full(w1p.shape), full(w2p.shape), full(w3p.shape),
            full(w4p.shape), full(w5p.shape), full(b5p.shape),
        ],
        out_specs=pl.BlockSpec((TB, out_pad), lambda i: (i, 0)),
        compiler_params=pltpu.CompilerParams(
            dimension_semantics=("parallel",),
            vmem_limit_bytes=32 * 1024 * 1024,
        ),
    )(x2d, w1p, w2p, w3p, w4p, w5p, b5p)

    return out_padded[:B, :output_size]


# ----------------------------------------------------------------------------
# Deterministic init mimicking PyTorch Linear (uniform +-1/sqrt(fan_in)).
# Masks get random booleans (~30% pruned) to exercise masked_fill semantics.
# ----------------------------------------------------------------------------
def init_raw_params(key, input_size, output_size):
    sizes = [(1000, input_size), (1000, 1000), (500, 1000), (200, 500)]
    params = []
    for shape in sizes:
        key, kw, km = jax.random.split(key, 3)
        bound = 1.0 / jnp.sqrt(jnp.float32(shape[1]))
        w = jax.random.uniform(kw, shape, jnp.float32, -bound, bound)
        m = jax.random.uniform(km, shape, jnp.float32) < 0.3   # bool mask
        params += [w, m]
    key, kw, kb = jax.random.split(key, 3)
    bound = 1.0 / jnp.sqrt(jnp.float32(200))
    w5 = jax.random.uniform(kw, (output_size, 200), jnp.float32, -bound, bound)
    b5 = jax.random.uniform(kb, (output_size,), jnp.float32, -bound, bound)
    params += [w5, b5]
    return tuple(params)


def reference_forward(x, raw_params):
    """Pure-JAX reference (exact PyTorch semantics) for correctness checking."""
    B = x.shape[0]
    h = x.reshape(B, -1).astype(jnp.float32)
    w1, m1, w2, m2, w3, m3, w4, m4, w5, b5 = raw_params
    for w, m in ((w1, m1), (w2, m2), (w3, m3), (w4, m4)):
        h = jnp.maximum(h @ jnp.where(m, 0.0, w).T, 0.0)
    return h @ w5.T + b5[None, :]


if __name__ == "__main__":
    key = jax.random.PRNGKey(0)
    key, kx, kp = jax.random.split(key, 3)

    # Small example input, NCHW-style; flatten(1) -> input_size = 4*8*8 = 256
    x = jax.random.normal(kx, (2, 4, 8, 8), jnp.float32)
    input_size = 4 * 8 * 8
    output_size = 10

    raw_params = init_raw_params(kp, input_size, output_size)
    prepped, out_size = prepare_params(raw_params)   # done once, cached

    out = model_forward(x, prepped, out_size)
    out = jax.block_until_ready(out)

    ref = reference_forward(x, raw_params)
    assert out.shape == (2, output_size)
    assert jnp.allclose(out, ref, atol=1e-3, rtol=1e-3), "mismatch vs reference"

    print("KERNEL_OK")
</pallas_src>

<mosaic_0001>
module attributes {stable_mosaic.version = 11 : i64} {
  func.func @mlp_kernel(%arg0: i32, %arg1: memref<8x256xf32, #tpu.memory_space<vmem>>, %arg2: memref<256x1024xf32, #tpu.memory_space<vmem>>, %arg3: memref<1024x1024xf32, #tpu.memory_space<vmem>>, %arg4: memref<1024x512xf32, #tpu.memory_space<vmem>>, %arg5: memref<512x256xf32, #tpu.memory_space<vmem>>, %arg6: memref<256x128xf32, #tpu.memory_space<vmem>>, %arg7: memref<1x128xf32, #tpu.memory_space<vmem>>, %arg8: memref<8x128xf32, #tpu.memory_space<vmem>>) attributes {dimension_semantics = [#tpu.dimension_semantics<parallel>], iteration_bounds = array<i64: 1>, scalar_prefetch = 0 : i64, scratch_operands = 0 : i64, tpu.core_type = #tpu.core_type<tc>, window_params = [{transform_indices = @transform_0, window_bounds = array<i64: 8, 256>}, {pipeline_mode = #tpu.pipeline_mode<synchronous>, transform_indices = @transform_1, window_bounds = array<i64: 256, 1024>}, {pipeline_mode = #tpu.pipeline_mode<synchronous>, transform_indices = @transform_2, window_bounds = array<i64: 1024, 1024>}, {pipeline_mode = #tpu.pipeline_mode<synchronous>, transform_indices = @transform_3, window_bounds = array<i64: 1024, 512>}, {pipeline_mode = #tpu.pipeline_mode<synchronous>, transform_indices = @transform_4, window_bounds = array<i64: 512, 256>}, {pipeline_mode = #tpu.pipeline_mode<synchronous>, transform_indices = @transform_5, window_bounds = array<i64: 256, 128>}, {pipeline_mode = #tpu.pipeline_mode<synchronous>, transform_indices = @transform_6, window_bounds = array<i64: 1, 128>}, {transform_indices = @transform_7, window_bounds = array<i64: 8, 128>}]} {
    %c0 = arith.constant 0 : index
    %c0_0 = arith.constant 0 : index
    %0 = vector.load %arg1[%c0, %c0_0] : memref<8x256xf32, #tpu.memory_space<vmem>>, vector<8x256xf32>
    %c0_1 = arith.constant 0 : index
    %c0_2 = arith.constant 0 : index
    %1 = vector.load %arg2[%c0_1, %c0_2] : memref<256x1024xf32, #tpu.memory_space<vmem>>, vector<256x1024xf32>
    %cst = arith.constant dense<0.000000e+00> : vector<8x1024xf32>
    %2 = tpu.matmul %0, %1, %cst {dimension_numbers = #tpu.dot_dimension_numbers<[1], [0], [0], [1], [0, 0, 1, 1], [], []>} : vector<8x256xf32>, vector<256x1024xf32>, vector<8x1024xf32> -> vector<8x1024xf32>
    %cst_3 = arith.constant 0.000000e+00 : f32
    %3 = vector.broadcast %cst_3 : f32 to vector<8x1024xf32>
    %4 = arith.maximumf %2, %3 : vector<8x1024xf32>
    %c0_4 = arith.constant 0 : index
    %c0_5 = arith.constant 0 : index
    %5 = vector.load %arg3[%c0_4, %c0_5] : memref<1024x1024xf32, #tpu.memory_space<vmem>>, vector<1024x1024xf32>
    %cst_6 = arith.constant dense<0.000000e+00> : vector<8x1024xf32>
    %6 = tpu.matmul %4, %5, %cst_6 {dimension_numbers = #tpu.dot_dimension_numbers<[1], [0], [0], [1], [0, 0, 1, 1], [], []>} : vector<8x1024xf32>, vector<1024x1024xf32>, vector<8x1024xf32> -> vector<8x1024xf32>
    %cst_7 = arith.constant 0.000000e+00 : f32
    %7 = vector.broadcast %cst_7 : f32 to vector<8x1024xf32>
    %8 = arith.maximumf %6, %7 : vector<8x1024xf32>
    %c0_8 = arith.constant 0 : index
    %c0_9 = arith.constant 0 : index
    %9 = vector.load %arg4[%c0_8, %c0_9] : memref<1024x512xf32, #tpu.memory_space<vmem>>, vector<1024x512xf32>
    %cst_10 = arith.constant dense<0.000000e+00> : vector<8x512xf32>
    %10 = tpu.matmul %8, %9, %cst_10 {dimension_numbers = #tpu.dot_dimension_numbers<[1], [0], [0], [1], [0, 0, 1, 1], [], []>} : vector<8x1024xf32>, vector<1024x512xf32>, vector<8x512xf32> -> vector<8x512xf32>
    %cst_11 = arith.constant 0.000000e+00 : f32
    %11 = vector.broadcast %cst_11 : f32 to vector<8x512xf32>
    %12 = arith.maximumf %10, %11 : vector<8x512xf32>
    %c0_12 = arith.constant 0 : index
    %c0_13 = arith.constant 0 : index
    %13 = vector.load %arg5[%c0_12, %c0_13] : memref<512x256xf32, #tpu.memory_space<vmem>>, vector<512x256xf32>
    %cst_14 = arith.constant dense<0.000000e+00> : vector<8x256xf32>
    %14 = tpu.matmul %12, %13, %cst_14 {dimension_numbers = #tpu.dot_dimension_numbers<[1], [0], [0], [1], [0, 0, 1, 1], [], []>} : vector<8x512xf32>, vector<512x256xf32>, vector<8x256xf32> -> vector<8x256xf32>
    %cst_15 = arith.constant 0.000000e+00 : f32
    %15 = vector.broadcast %cst_15 : f32 to vector<8x256xf32>
    %16 = arith.maximumf %14, %15 : vector<8x256xf32>
    %c0_16 = arith.constant 0 : index
    %c0_17 = arith.constant 0 : index
    %17 = vector.load %arg6[%c0_16, %c0_17] : memref<256x128xf32, #tpu.memory_space<vmem>>, vector<256x128xf32>
    %cst_18 = arith.constant dense<0.000000e+00> : vector<8x128xf32>
    %18 = tpu.matmul %16, %17, %cst_18 {dimension_numbers = #tpu.dot_dimension_numbers<[1], [0], [0], [1], [0, 0, 1, 1], [], []>} : vector<8x256xf32>, vector<256x128xf32>, vector<8x128xf32> -> vector<8x128xf32>
    %c0_19 = arith.constant 0 : index
    %c0_20 = arith.constant 0 : index
    %19 = vector.load %arg7[%c0_19, %c0_20] : memref<1x128xf32, #tpu.memory_space<vmem>>, vector<1x128xf32>
    %20 = vector.broadcast %19 : vector<1x128xf32> to vector<8x128xf32>
    %21 = arith.addf %18, %20 : vector<8x128xf32>
    %c0_21 = arith.constant 0 : index
    %c0_22 = arith.constant 0 : index
    %22 = vector.load %arg8[%c0_21, %c0_22] : memref<8x128xf32, #tpu.memory_space<vmem>>, vector<8x128xf32>
    tpu.vector_store %arg8[%c0_21, %c0_22], %21 {strides = array<i32>} : memref<8x128xf32, #tpu.memory_space<vmem>>, vector<8x128xf32>,
    return
  }
  func.func @transform_0(%arg0: i32) -> (i32, i32) {
    %c0_i32 = arith.constant 0 : i32
    %c0_i32_0 = arith.constant 0 : i32
    return %arg0, %c0_i32 : i32, i32
  }
  func.func @transform_1(%arg0: i32) -> (i32, i32) {
    %c0_i32 = arith.constant 0 : i32
    %c0_i32_0 = arith.constant 0 : i32
    %c0_i32_1 = arith.constant 0 : i32
    return %c0_i32, %c0_i32_0 : i32, i32
  }
  func.func @transform_2(%arg0: i32) -> (i32, i32) {
    %c0_i32 = arith.constant 0 : i32
    %c0_i32_0 = arith.constant 0 : i32
    %c0_i32_1 = arith.constant 0 : i32
    return %c0_i32, %c0_i32_0 : i32, i32
  }
  func.func @transform_3(%arg0: i32) -> (i32, i32) {
    %c0_i32 = arith.constant 0 : i32
    %c0_i32_0 = arith.constant 0 : i32
    %c0_i32_1 = arith.constant 0 : i32
    return %c0_i32, %c0_i32_0 : i32, i32
  }
  func.func @transform_4(%arg0: i32) -> (i32, i32) {
    %c0_i32 = arith.constant 0 : i32
    %c0_i32_0 = arith.constant 0 : i32
    %c0_i32_1 = arith.constant 0 : i32
    return %c0_i32, %c0_i32_0 : i32, i32
  }
  func.func @transform_5(%arg0: i32) -> (i32, i32) {
    %c0_i32 = arith.constant 0 : i32
    %c0_i32_0 = arith.constant 0 : i32
    %c0_i32_1 = arith.constant 0 : i32
    return %c0_i32, %c0_i32_0 : i32, i32
  }
  func.func @transform_6(%arg0: i32) -> (i32, i32) {
    %c0_i32 = arith.constant 0 : i32
    %c0_i32_0 = arith.constant 0 : i32
    %c0_i32_1 = arith.constant 0 : i32
    return %c0_i32, %c0_i32_0 : i32, i32
  }
  func.func @transform_7(%arg0: i32) -> (i32, i32) {
    %c0_i32 = arith.constant 0 : i32
    %c0_i32_0 = arith.constant 0 : i32
    return %arg0, %c0_i32 : i32, i32
  }
}

</mosaic_0001>

<bundles_post_ra>
// kernel: tpu_custom_call.1
= control target key start
LH: loop header
LB: loop body
LE: loop exit
PB: predicated region body
PF: predicated region fallthrough
CT: control target
= control target key end

     0   :  { %12 = vsyncpa [#allocation3], 0  ;;  %s6793_s0 = inlined_call_operand.hbm [shape: f32[8,256], index: 0, kind: input, shape index: {}]   ;;  %s6794_s1 = inlined_call_operand.hbm [shape: f32[256,1024], index: 1, kind: input, shape index: {}]   ;;  %s6795_s2 = inlined_call_operand.hbm [shape: f32[1024,1024], index: 2, kind: input, shape index: {}]   ;;  %s6796_s3 = inlined_call_operand.hbm [shape: f32[1024,512], index: 3, kind: input, shape index: {}]   ;;  %s6797_s4 = inlined_call_operand.hbm [shape: f32[512,256], index: 4, kind: input, shape index: {}]   ;;  %s6798_s5 = inlined_call_operand.hbm [shape: f32[256,128], index: 5, kind: input, shape index: {}]   ;;  %s6799_s6 = inlined_call_operand.hbm [shape: f32[1,128], index: 6, kind: input, shape index: {}]   ;;  %s6800_s7 = inlined_call_operand.hbm [shape: f32[8,128], index: 7, kind: output, shape index: {}]  }
   0x1   :  { %13 = vsyncpa [#allocation6], 0 }
   0x2   :  { %14 = vsyncpa [#allocation9], 0 }
   0x3   :  { %15 = vsyncpa [#allocation12], 0 }
   0x4   :  { %16 = vsyncpa [#allocation4], 0  ;;  %s6548_s24 = smov [#allocation5]   ;;  %s6362_s28 = scalar_lea.hbm %s6794_s1, 32768 }
   0x5   :  { %s32_s25 = sshll.u32 %s6548_s24, 4  ;;  %p6363_p0 = scmp.ne.s32.totalorder %s6794_s1, %s6362_s28  ;;  %s33_s25 = int_to_ptr.vmem [resolvable:$true] %s32_s25 }
   0x6   :  { %p6366_p1 = scmp.lt.u32.totalorder %s6362_s28, %s6794_s1 }
   0x8   :  { %p6368_p2 = pnand %p6366_p1, %p6363_p0 }
   0xa   :  { %6371 = shalt.err (!%p6368_p2)
}
   0xb   :  { %s6372_s10 = scalar_lea.vmem %s33_s25, 32768  ;;  %p6377_p4 = scmp.lt.s32.totalorder %s33_s25, %s33_s25 }
   0xc   :  { %p6373_p3 = scmp.ne.s32.totalorder %s33_s25, %s6372_s10  ;;  %p6378_p5 = scmp.lt.s32.totalorder %s6372_s10, %s6372_s10 }
   0xe   :  { %p6379_p6 = por %p6378_p5, %p6377_p4 }
  0x10   :  { %p6380_p7 = pnand %p6379_p6, %p6373_p3 }
  0x12   :  { %6383 = shalt.err (!%p6380_p7)
}
  0x13   :  { %s6549_s11 = smov 1024   ;;  %s6550_s12 = smov 64  }
  0x14   :  { %38 = dma.hbm_to_vmem [thread:$0]  %s6794_s1, 32768, %s33_s25, [#allocation6], %s6549_s11, %s6549_s11, %s6550_s12  }
  0x15   :  { %s6551_s15 = smov [#allocation8]   ;;  %s6384_s19 = scalar_lea.hbm %s6796_s3, 65536 }
  0x16   :  { %s56_s16 = sshll.u32 %s6551_s15, 4  ;;  %p6385_p8 = scmp.ne.s32.totalorder %s6796_s3, %s6384_s19  ;;  %s57_s16 = int_to_ptr.vmem [resolvable:$true] %s56_s16 }
  0x17   :  { %p6388_p9 = scmp.lt.u32.totalorder %s6384_s19, %s6796_s3 }
  0x19   :  { %p6390_p10 = pnand %p6388_p9, %p6385_p8 }
  0x1b   :  { %6393 = shalt.err (!%p6390_p10)
}
  0x1c   :  { %s6394_s24 = scalar_lea.vmem %s57_s16, 65536  ;;  %p6399_p12 = scmp.lt.s32.totalorder %s57_s16, %s57_s16 }
  0x1d   :  { %p6395_p11 = scmp.ne.s32.totalorder %s57_s16, %s6394_s24  ;;  %p6400_p13 = scmp.lt.s32.totalorder %s6394_s24, %s6394_s24 }
  0x1f   :  { %p6401_p0 = por %p6400_p13, %p6399_p12 }
  0x21   :  { %p6402_p1 = pnand %p6401_p0, %p6395_p11 }
  0x23   :  { %6405 = shalt.err (!%p6402_p1)
}
  0x24   :  { %s6552_s1 = smov 512   ;;  %s6553_s25 = smov 32  }
  0x25   :  { %62 = dma.hbm_to_vmem [thread:$0]  %s6796_s3, 65536, %s57_s16, [#allocation9], %s6552_s1, %s6552_s1, %s6553_s25  }
  0x26   :  { %s6554_s28 = smov [#allocation11]   ;;  %s6406_s9 = scalar_lea.hbm %s6798_s5, 4096 }
  0x27   :  { %s80_s29 = sshll.u32 %s6554_s28, 4  ;;  %p6407_p2 = scmp.ne.s32.totalorder %s6798_s5, %s6406_s9  ;;  %s81_s29 = int_to_ptr.vmem [resolvable:$true] %s80_s29 }
  0x28   :  { %p6410_p3 = scmp.lt.u32.totalorder %s6406_s9, %s6798_s5 }
  0x2a   :  { %p6412_p4 = pnand %p6410_p3, %p6407_p2 }
  0x2c   :  { %6415 = shalt.err (!%p6412_p4)
}
  0x2d   :  { %s6416_s17 = scalar_lea.vmem %s81_s29, 4096  ;;  %p6421_p6 = scmp.lt.s32.totalorder %s81_s29, %s81_s29 }
  0x2e   :  { %p6417_p5 = scmp.ne.s32.totalorder %s81_s29, %s6416_s17  ;;  %p6422_p7 = scmp.lt.s32.totalorder %s6416_s17, %s6416_s17 }
  0x30   :  { %p6423_p8 = por %p6422_p7, %p6421_p6 }
  0x32   :  { %p6424_p9 = pnand %p6423_p8, %p6417_p5 }
  0x34   :  { %6427 = shalt.err (!%p6424_p9)
}
  0x35   :  { %s6555_s3 = smov 128   ;;  %s6556_s16 = smov 8  }
  0x36   :  { %86 = dma.hbm_to_vmem [thread:$0]  %s6798_s5, 4096, %s81_s29, [#allocation12], %s6555_s3, %s6555_s3, %s6556_s16  }
  0x37   :  { %s6557_s20 = smov [#allocation2]   ;;  %s6558_s22 = smov [#allocation7]  }
  0x38   :  { %s23_s21 = sshll.u32 %s6557_s20, 4  ;;  %s44_s23 = sshll.u32 %s6558_s22, 4  ;;  %s24_s21 = int_to_ptr.vmem [resolvable:$true] %s23_s21  ;;  %s45_s23 = int_to_ptr.vmem [resolvable:$true] %s44_s23 }
  0x39   :  { %s6428_s25 = scalar_lea.hbm %s6793_s0, 256 }
  0x3a   :  { %p6429_p10 = scmp.ne.s32.totalorder %s6793_s0, %s6428_s25  ;;  %p6432_p11 = scmp.lt.u32.totalorder %s6428_s25, %s6793_s0 }
  0x3c   :  { %p6434_p12 = pnand %p6432_p11, %p6429_p10 }
  0x3e   :  { %6437 = shalt.err (!%p6434_p12)
}
  0x3f   :  { %s6438_s5 = scalar_lea.vmem %s24_s21, 256  ;;  %p6443_p0 = scmp.lt.s32.totalorder %s24_s21, %s24_s21 }
  0x40   :  { %p6439_p13 = scmp.ne.s32.totalorder %s24_s21, %s6438_s5  ;;  %p6444_p1 = scmp.lt.s32.totalorder %s6438_s5, %s6438_s5 }
  0x42   :  { %p6445_p2 = por %p6444_p1, %p6443_p0 }
  0x44   :  { %p6446_p3 = pnand %p6445_p2, %p6439_p13 }
  0x46   :  { %6449 = shalt.err (!%p6446_p3)
}
  0x47   :  { %26 = dma.hbm_to_vmem [thread:$0]  %s6793_s0, 256, %s24_s21, [#allocation3]  }
  0x48   :  { %s6450_s13 = scalar_lea.hbm %s6795_s2, 131072 }
  0x49   :  { %p6451_p4 = scmp.ne.s32.totalorder %s6795_s2, %s6450_s13  ;;  %p6454_p5 = scmp.lt.u32.totalorder %s6450_s13, %s6795_s2 }
  0x4b   :  { %p6456_p6 = pnand %p6454_p5, %p6451_p4 }
  0x4d   :  { %6459 = shalt.err (!%p6456_p6)
}
  0x4e   :  { %s6460_s16 = scalar_lea.vmem %s45_s23, 131072  ;;  %p6465_p8 = scmp.lt.s32.totalorder %s45_s23, %s45_s23 }
  0x4f   :  { %p6461_p7 = scmp.ne.s32.totalorder %s45_s23, %s6460_s16  ;;  %p6466_p9 = scmp.lt.s32.totalorder %s6460_s16, %s6460_s16 }
  0x51   :  { %p6467_p10 = por %p6466_p9, %p6465_p8 }
  0x53   :  { %p6468_p11 = pnand %p6467_p10, %p6461_p7 }
  0x55   :  { %6471 = shalt.err (!%p6468_p11)
}
  0x56   :  { %50 = dma.hbm_to_vmem [thread:$0]  %s6795_s2, 131072, %s45_s23, [#allocation6], %s6549_s11, %s6549_s11, %s6550_s12  }
  0x57   :  { %s6559_s19 = smov [#allocation10]   ;;  %s6472_s24 = scalar_lea.hbm %s6797_s4, 16384 }
  0x58   :  { %s68_s20 = sshll.u32 %s6559_s19, 4  ;;  %p6473_p12 = scmp.ne.s32.totalorder %s6797_s4, %s6472_s24  ;;  %s69_s20 = int_to_ptr.vmem [resolvable:$true] %s68_s20 }
  0x59   :  { %p6476_p13 = scmp.lt.u32.totalorder %s6472_s24, %s6797_s4 }
  0x5b   :  { %p6478_p0 = pnand %p6476_p13, %p6473_p12 }
  0x5d   :  { %6481 = shalt.err (!%p6478_p0)
}
  0x5e   :  { %s6482_s28 = scalar_lea.vmem %s69_s20, 16384  ;;  %p6487_p2 = scmp.lt.s32.totalorder %s69_s20, %s69_s20 }
  0x5f   :  { %p6483_p1 = scmp.ne.s32.totalorder %s69_s20, %s6482_s28  ;;  %p6488_p3 = scmp.lt.s32.totalorder %s6482_s28, %s6482_s28 }
  0x61   :  { %p6489_p4 = por %p6488_p3, %p6487_p2 }
  0x63   :  { %p6490_p5 = pnand %p6489_p4, %p6483_p1 }
  0x65   :  { %6493 = shalt.err (!%p6490_p5)
}
  0x66   :  { %s6560_s2 = smov 256   ;;  %s6561_s11 = smov 16  }
  0x67   :  { %74 = dma.hbm_to_vmem [thread:$0]  %s6797_s4, 16384, %s69_s20, [#allocation9], %s6560_s2, %s6560_s2, %s6561_s11  }
  0x68   :  { %s6562_s30 = smov [#allocation13]   ;;  %s6494_s9 = scalar_lea.hbm %s6799_s6, 16 }
  0x69   :  { %s93_s5 = sshll.u32 %s6562_s30, 4  ;;  %p6495_p6 = scmp.ne.s32.totalorder %s6799_s6, %s6494_s9  ;;  %s94_s5 = int_to_ptr.vmem [resolvable:$true] %s93_s5 }
  0x6a   :  { %p6498_p7 = scmp.lt.u32.totalorder %s6494_s9, %s6799_s6 }
  0x6c   :  { %p6500_p8 = pnand %p6498_p7, %p6495_p6 }
  0x6e   :  { %6503 = shalt.err (!%p6500_p8)
}
  0x6f   :  { %s6504_s17 = scalar_lea.vmem %s94_s5, 16  ;;  %s6508_s4 = scalar_lea.vmem %s94_s5, 32 }
  0x70   :  { %p6505_p9 = scmp.ne.s32.totalorder %s94_s5, %s6504_s17  ;;  %p6509_p10 = scmp.lt.s32.totalorder %s94_s5, %s94_s5 }
  0x71   :  { %p6510_p11 = scmp.lt.s32.totalorder %s6508_s4, %s6504_s17 }
  0x73   :  { %p6511_p12 = por %p6510_p11, %p6509_p10 }
  0x75   :  { %p6512_p13 = pnand %p6511_p12, %p6505_p9 }
  0x77   :  { %6515 = shalt.err (!%p6512_p13)
}
  0x78   :  { %96 = dma.hbm_to_vmem [thread:$0]  %s6799_s6, 16, %s94_s5, [#allocation12]  }
  0x79   :  { %6538 = dma.done.wait [#allocation3], 256  }
  0x7a   :  { %6539 = vsyncadd [#allocation3], 4294967040 }
  0x7b   :  { %6540 = dma.done.wait [#allocation6], 163840  }
  0x7c   :  { %6541 = vsyncadd [#allocation6], 4294803456 }
  0x7d   :  { %6542 = dma.done.wait [#allocation9], 81920  }
  0x7e   :  { %6543 = vsyncadd [#allocation9], 4294885376 }
  0x7f   :  { %6544 = dma.done.wait [#allocation12], 4112  }
  0x80   :  { %6545 = vsyncadd [#allocation12], 4294963184  ;;  %v121_v0 = vld [vmem:[#allocation5 + $0x8] sm:$0xff]  ;;  %v120_v2 = vld [vmem:[#allocation5] sm:$0xff]  ;;  %s6563_s6 = smov [#allocation14]  }
  0x81   :  { %v129_v1 = vld [vmem:[#allocation5 + $0x48] sm:$0xff]  ;;  %v128_v4 = vld [vmem:[#allocation5 + $0x40] sm:$0xff]  ;;  %v6694_v41 = vld [vmem:[#allocation2 + $0x8] sm:$0xff]  ;;  %s4308_s0 = sshll.u32 %s6563_s6, 4  ;;  %s4309_s0 = int_to_ptr.vmem [resolvable:$true] %s4308_s0 }
  0x82   :  { %v4356_v3 = vpack.c.bf16 %v129_v1, %v121_v0  ;;  %v137_v5 = vld [vmem:[#allocation5 + $0x88] sm:$0xff]  ;;  %v4358_v7 = vpack.c.bf16 %v128_v4, %v120_v2  ;;  %v136_v9 = vld [vmem:[#allocation5 + $0x80] sm:$0xff]  ;;  %440 = vmatprep.mubr.f32.mxu1 %v6694_v41  ;;  %582 = vmatprep.mubr.f32.mxu0 %v6694_v41  ;;  %s6516_s18 = scalar_lea.vmem %s4309_s0, 128  ;;  %p6521_p1 = scmp.lt.s32.totalorder %s4309_s0, %s4309_s0 }
  0x83   :  { %v145_v6 = vld [vmem:[#allocation5 + $0xc8] sm:$0xff]  ;;  %v144_v10 = vld [vmem:[#allocation5 + $0xc0] sm:$0xff]  ;;  %p6517_p0 = scmp.ne.s32.totalorder %s4309_s0, %s6516_s18  ;;  %p6522_p2 = scmp.lt.s32.totalorder %s6516_s18, %s6516_s18 }
  0x84   :  { %v4360_v8 = vpack.c.bf16 %v145_v6, %v137_v5  ;;  %v153_v11 = vld [vmem:[#allocation5 + $0x108] sm:$0xff]  ;;  %4357 = vmatprep.subr.bf16.mxu1 %v4356_v3  ;;  %v4362_v13 = vpack.c.bf16 %v144_v10, %v136_v9  ;;  %v152_v15 = vld [vmem:[#allocation5 + $0x100] sm:$0xff] }
  0x85   :  { %v161_v12 = vld [vmem:[#allocation5 + $0x148] sm:$0xff]  ;;  %4359 = vmatpush1.bf16.msra.mxu1 %v4358_v7  ;;  %v160_v16 = vld [vmem:[#allocation5 + $0x140] sm:$0xff]  ;;  %p6523_p3 = por %p6522_p2, %p6521_p1 }
  0x86   :  { %4361 = vmatprep.subr.bf16.mxu1 %v4360_v8  ;;  %v4364_v14 = vpack.c.bf16 %v161_v12, %v153_v11  ;;  %v169_v17 = vld [vmem:[#allocation5 + $0x188] sm:$0xff]  ;;  %v4366_v19 = vpack.c.bf16 %v160_v16, %v152_v15  ;;  %v168_v21 = vld [vmem:[#allocation5 + $0x180] sm:$0xff] }
  0x87   :  { %v177_v18 = vld [vmem:[#allocation5 + $0x1c8] sm:$0xff]  ;;  %v176_v22 = vld [vmem:[#allocation5 + $0x1c0] sm:$0xff]  ;;  %p6524_p4 = pnand %p6523_p3, %p6517_p0 }
  0x88   :  { %v4368_v20 = vpack.c.bf16 %v177_v18, %v169_v17  ;;  %v185_v23 = vld [vmem:[#allocation5 + $0x208] sm:$0xff]  ;;  %v4370_v25 = vpack.c.bf16 %v176_v22, %v168_v21  ;;  %v184_v27 = vld [vmem:[#allocation5 + $0x200] sm:$0xff] }
  0x89   :  { %4363 = vmatpush1.bf16.msra.mxu1 %v4362_v13  ;;  %v193_v24 = vld [vmem:[#allocation5 + $0x248] sm:$0xff]  ;;  %v192_v28 = vld [vmem:[#allocation5 + $0x240] sm:$0xff] }
  0x8a   :  { %4365 = vmatprep.subr.bf16.mxu1 %v4364_v14  ;;  %v4372_v26 = vpack.c.bf16 %v193_v24, %v185_v23  ;;  %v201_v29 = vld [vmem:[#allocation5 + $0x288] sm:$0xff]  ;;  %v4374_v31 = vpack.c.bf16 %v192_v28, %v184_v27  ;;  %v200_v33 = vld [vmem:[#allocation5 + $0x280] sm:$0xff] }
  0x8b   :  { %v209_v30 = vld [vmem:[#allocation5 + $0x2c8] sm:$0xff]  ;;  %v208_v34 = vld [vmem:[#allocation5 + $0x2c0] sm:$0xff] }
  0x8c   :  { %v4376_v32 = vpack.c.bf16 %v209_v30, %v201_v29  ;;  %v217_v35 = vld [vmem:[#allocation5 + $0x308] sm:$0xff]  ;;  %v4378_v37 = vpack.c.bf16 %v208_v34, %v200_v33  ;;  %v216_v39 = vld [vmem:[#allocation5 + $0x300] sm:$0xff] }
  0x8d   :  { %4367 = vmatpush1.bf16.msra.mxu1 %v4366_v19  ;;  %v225_v36 = vld [vmem:[#allocation5 + $0x348] sm:$0xff]  ;;  %v224_v40 = vld [vmem:[#allocation5 + $0x340] sm:$0xff] }
  0x8e   :  { %4369 = vmatprep.subr.bf16.mxu1 %v4368_v20  ;;  %v4380_v38 = vpack.c.bf16 %v225_v36, %v217_v35  ;;  %v233_v42 = vld [vmem:[#allocation5 + $0x388] sm:$0xff]  ;;  %v4382_v44 = vpack.c.bf16 %v224_v40, %v216_v39  ;;  %v232_v46 = vld [vmem:[#allocation5 + $0x380] sm:$0xff] }
  0x8f   :  { %v241_v43 = vld [vmem:[#allocation5 + $0x3c8] sm:$0xff]  ;;  %v240_v47 = vld [vmem:[#allocation5 + $0x3c0] sm:$0xff] }
  0x90   :  { %v4384_v45 = vpack.c.bf16 %v241_v43, %v233_v42  ;;  %v249_v48 = vld [vmem:[#allocation5 + $0x408] sm:$0xff]  ;;  %v4386_v50 = vpack.c.bf16 %v240_v47, %v232_v46  ;;  %v248_v52 = vld [vmem:[#allocation5 + $0x400] sm:$0xff] }
  0x91   :  { %4371 = vmatpush1.bf16.msra.mxu1 %v4370_v25  ;;  %v257_v49 = vld [vmem:[#allocation5 + $0x448] sm:$0xff]  ;;  %v256_v53 = vld [vmem:[#allocation5 + $0x440] sm:$0xff] }
  0x92   :  { %4373 = vmatprep.subr.bf16.mxu1 %v4372_v26  ;;  %v4388_v51 = vpack.c.bf16 %v257_v49, %v249_v48  ;;  %v265_v54 = vld [vmem:[#allocation5 + $0x488] sm:$0xff]  ;;  %v4390_v56 = vpack.c.bf16 %v256_v53, %v248_v52  ;;  %v264_v58 = vld [vmem:[#allocation5 + $0x480] sm:$0xff] }
  0x93   :  { %v273_v55 = vld [vmem:[#allocation5 + $0x4c8] sm:$0xff]  ;;  %v272_v59 = vld [vmem:[#allocation5 + $0x4c0] sm:$0xff] }
  0x94   :  { %v4392_v57 = vpack.c.bf16 %v273_v55, %v265_v54  ;;  %v281_v60 = vld [vmem:[#allocation5 + $0x508] sm:$0xff]  ;;  %v4394_v62 = vpack.c.bf16 %v272_v59, %v264_v58  ;;  %v280_v0 = vld [vmem:[#allocation5 + $0x500] sm:$0xff] }
  0x95   :  { %4375 = vmatpush1.bf16.msra.mxu1 %v4374_v31  ;;  %v289_v61 = vld [vmem:[#allocation5 + $0x548] sm:$0xff]  ;;  %v288_v1 = vld [vmem:[#allocation5 + $0x540] sm:$0xff] }
  0x96   :  { %4377 = vmatprep.subr.bf16.mxu1 %v4376_v32  ;;  %v4396_v63 = vpack.c.bf16 %v289_v61, %v281_v60  ;;  %v297_v2 = vld [vmem:[#allocation5 + $0x588] sm:$0xff]  ;;  %v4398_v4 = vpack.c.bf16 %v288_v1, %v280_v0  ;;  %v296_v6 = vld [vmem:[#allocation5 + $0x580] sm:$0xff]  ;;  %v123_v0 = vld [vmem:[#allocation5 + $0x18] sm:$0xff] }
  0x97   :  { %v305_v3 = vld [vmem:[#allocation5 + $0x5c8] sm:$0xff]  ;;  %v304_v7 = vld [vmem:[#allocation5 + $0x5c0] sm:$0xff]  ;;  %v131_v1 = vld [vmem:[#allocation5 + $0x58] sm:$0xff] }
  0x98   :  { %v4400_v5 = vpack.c.bf16 %v305_v3, %v297_v2  ;;  %v313_v8 = vld [vmem:[#allocation5 + $0x608] sm:$0xff]  ;;  %v312_v10 = vld [vmem:[#allocation5 + $0x600] sm:$0xff]  ;;  %v4402_v14 = vpack.c.bf16 %v304_v7, %v296_v6  ;;  %v4420_v7 = vpack.c.bf16 %v131_v1, %v123_v0 }
  0x99   :  { %4379 = vmatpush1.bf16.msra.mxu1 %v4378_v37  ;;  %v321_v9 = vld [vmem:[#allocation5 + $0x648] sm:$0xff]  ;;  %v320_v11 = vld [vmem:[#allocation5 + $0x640] sm:$0xff] }
  0x9a   :  { %4381 = vmatprep.subr.bf16.mxu1 %v4380_v38  ;;  %v125_v12 = vld [vmem:[#allocation5 + $0x28] sm:$0xff]  ;;  %v124_v17 = vld [vmem:[#allocation5 + $0x20] sm:$0xff]  ;;  %v4404_v20 = vpack.c.bf16 %v321_v9, %v313_v8  ;;  %v4406_v30 = vpack.c.bf16 %v320_v11, %v312_v10  ;;  %v122_v8 = vld [vmem:[#allocation5 + $0x10] sm:$0xff] }
  0x9b   :  { %v133_v13 = vld [vmem:[#allocation5 + $0x68] sm:$0xff]  ;;  %v132_v18 = vld [vmem:[#allocation5 + $0x60] sm:$0xff]  ;;  %v130_v9 = vld [vmem:[#allocation5 + $0x50] sm:$0xff] }
  0x9c   :  { %v329_v15 = vld [vmem:[#allocation5 + $0x688] sm:$0xff]  ;;  %v4484_v16 = vpack.c.bf16 %v133_v13, %v125_v12  ;;  %v4486_v21 = vpack.c.bf16 %v132_v18, %v124_v17  ;;  %v140_v23 = vld [vmem:[#allocation5 + $0xa0] sm:$0xff]  ;;  %v139_v10 = vld [vmem:[#allocation5 + $0x98] sm:$0xff] }
  0x9d   :  { %4383 = vmatpush1.bf16.msra.mxu1 %v4382_v44  ;;  %v141_v19 = vld [vmem:[#allocation5 + $0xa8] sm:$0xff]  ;;  %v148_v24 = vld [vmem:[#allocation5 + $0xe0] sm:$0xff]  ;;  %v147_v11 = vld [vmem:[#allocation5 + $0xd8] sm:$0xff] }
  0x9e   :  { %4385 = vmatprep.subr.bf16.mxu1 %v4384_v45  ;;  %v149_v22 = vld [vmem:[#allocation5 + $0xe8] sm:$0xff]  ;;  %4485 = vmatprep.subr.bf16.mxu0 %v4484_v16  ;;  %v4490_v29 = vpack.c.bf16 %v148_v24, %v140_v23  ;;  %v328_v31 = vld [vmem:[#allocation5 + $0x680] sm:$0xff]  ;;  %v4422_v16 = vpack.c.bf16 %v130_v9, %v122_v8  ;;  %v138_v17 = vld [vmem:[#allocation5 + $0x90] sm:$0xff] }
  0x9f   :  { %v337_v25 = vld [vmem:[#allocation5 + $0x6c8] sm:$0xff]  ;;  %v4488_v26 = vpack.c.bf16 %v149_v22, %v141_v19  ;;  %4487 = vmatpush1.bf16.msra.mxu0 %v4486_v21  ;;  %v156_v33 = vld [vmem:[#allocation5 + $0x120] sm:$0xff]  ;;  %v146_v21 = vld [vmem:[#allocation5 + $0xd0] sm:$0xff] }
  0xa0   :  { %v157_v27 = vld [vmem:[#allocation5 + $0x128] sm:$0xff]  ;;  %v164_v34 = vld [vmem:[#allocation5 + $0x160] sm:$0xff]  ;;  %v4408_v35 = vpack.c.bf16 %v337_v25, %v329_v15  ;;  %v155_v25 = vld [vmem:[#allocation5 + $0x118] sm:$0xff] }
  0xa1   :  { %4387 = vmatpush1.bf16.msra.mxu1 %v4386_v50  ;;  %v165_v28 = vld [vmem:[#allocation5 + $0x168] sm:$0xff]  ;;  %4489 = vmatprep.subr.bf16.mxu0 %v4488_v26  ;;  %v336_v36 = vld [vmem:[#allocation5 + $0x6c0] sm:$0xff]  ;;  %v4494_v42 = vpack.c.bf16 %v164_v34, %v156_v33  ;;  %v163_v26 = vld [vmem:[#allocation5 + $0x158] sm:$0xff] }
  0xa2   :  { %4389 = vmatprep.subr.bf16.mxu1 %v4388_v51  ;;  %v4492_v32 = vpack.c.bf16 %v165_v28, %v157_v27  ;;  %v173_v37 = vld [vmem:[#allocation5 + $0x1a8] sm:$0xff]  ;;  %v4410_v43 = vpack.c.bf16 %v336_v36, %v328_v31  ;;  %v344_v44 = vld [vmem:[#allocation5 + $0x700] sm:$0xff]  ;;  %v4426_v28 = vpack.c.bf16 %v146_v21, %v138_v17  ;;  %v4428_v33 = vpack.c.bf16 %v163_v26, %v155_v25  ;;  %v162_v34 = vld [vmem:[#allocation5 + $0x150] sm:$0xff] }
  0xa3   :  { %v181_v38 = vld [vmem:[#allocation5 + $0x1e8] sm:$0xff]  ;;  %4491 = vmatpush1.bf16.msra.mxu0 %v4490_v29  ;;  %v172_v46 = vld [vmem:[#allocation5 + $0x1a0] sm:$0xff]  ;;  %v154_v29 = vld [vmem:[#allocation5 + $0x110] sm:$0xff] }
  0xa4   :  { %v345_v39 = vld [vmem:[#allocation5 + $0x708] sm:$0xff]  ;;  %4493 = vmatprep.subr.bf16.mxu0 %v4492_v32  ;;  %v4496_v45 = vpack.c.bf16 %v181_v38, %v173_v37  ;;  %v180_v47 = vld [vmem:[#allocation5 + $0x1e0] sm:$0xff]  ;;  %v171_v37 = vld [vmem:[#allocation5 + $0x198] sm:$0xff] }
  0xa5   :  { %4391 = vmatpush1.bf16.msra.mxu1 %v4390_v56  ;;  %v353_v40 = vld [vmem:[#allocation5 + $0x748] sm:$0xff]  ;;  %v352_v49 = vld [vmem:[#allocation5 + $0x740] sm:$0xff]  ;;  %v4498_v54 = vpack.c.bf16 %v180_v47, %v172_v46  ;;  %v179_v38 = vld [vmem:[#allocation5 + $0x1d8] sm:$0xff] }
  0xa6   :  { %4393 = vmatprep.subr.bf16.mxu1 %v4392_v57  ;;  %v4412_v48 = vpack.c.bf16 %v353_v40, %v345_v39  ;;  %v189_v50 = vld [vmem:[#allocation5 + $0x228] sm:$0xff]  ;;  %v4414_v55 = vpack.c.bf16 %v352_v49, %v344_v44  ;;  %v360_v56 = vld [vmem:[#allocation5 + $0x780] sm:$0xff]  ;;  %v4430_v40 = vpack.c.bf16 %v162_v34, %v154_v29  ;;  %v4432_v46 = vpack.c.bf16 %v179_v38, %v171_v37  ;;  %v178_v47 = vld [vmem:[#allocation5 + $0x1d0] sm:$0xff] }
  0xa7   :  { %v197_v51 = vld [vmem:[#allocation5 + $0x268] sm:$0xff]  ;;  %4495 = vmatpush1.bf16.msra.mxu0 %v4494_v42  ;;  %v188_v58 = vld [vmem:[#allocation5 + $0x220] sm:$0xff]  ;;  %v170_v42 = vld [vmem:[#allocation5 + $0x190] sm:$0xff] }
  0xa8   :  { %v361_v52 = vld [vmem:[#allocation5 + $0x788] sm:$0xff]  ;;  %4497 = vmatprep.subr.bf16.mxu0 %v4496_v45  ;;  %v4500_v57 = vpack.c.bf16 %v197_v51, %v189_v50  ;;  %v196_v59 = vld [vmem:[#allocation5 + $0x260] sm:$0xff]  ;;  %v187_v50 = vld [vmem:[#allocation5 + $0x218] sm:$0xff] }
  0xa9   :  { %4395 = vmatpush1.bf16.msra.mxu1 %v4394_v62  ;;  %v369_v53 = vld [vmem:[#allocation5 + $0x7c8] sm:$0xff]  ;;  %v368_v61 = vld [vmem:[#allocation5 + $0x7c0] sm:$0xff]  ;;  %v4502_v2 = vpack.c.bf16 %v196_v59, %v188_v58  ;;  %v195_v51 = vld [vmem:[#allocation5 + $0x258] sm:$0xff] }
  0xaa   :  { %4397 = vmatprep.subr.bf16.mxu1 %v4396_v63  ;;  %v4416_v60 = vpack.c.bf16 %v369_v53, %v361_v52  ;;  %v205_v62 = vld [vmem:[#allocation5 + $0x2a8] sm:$0xff]  ;;  %v4418_v3 = vpack.c.bf16 %v368_v61, %v360_v56  ;;  %v212_v6 = vld [vmem:[#allocation5 + $0x2e0] sm:$0xff]  ;;  %v4434_v53 = vpack.c.bf16 %v178_v47, %v170_v42  ;;  %v4436_v58 = vpack.c.bf16 %v195_v51, %v187_v50  ;;  %v194_v59 = vld [vmem:[#allocation5 + $0x250] sm:$0xff] }
  0xab   :  { %v213_v63 = vld [vmem:[#allocation5 + $0x2e8] sm:$0xff]  ;;  %4499 = vmatpush1.bf16.msra.mxu0 %v4498_v54  ;;  %v220_v18 = vld [vmem:[#allocation5 + $0x320] sm:$0xff]  ;;  %v186_v54 = vld [vmem:[#allocation5 + $0x210] sm:$0xff] }
  0xac   :  { %4501 = vmatprep.subr.bf16.mxu0 %v4500_v57  ;;  %v221_v12 = vld [vmem:[#allocation5 + $0x328] sm:$0xff]  ;;  %v228_v19 = vld [vmem:[#allocation5 + $0x360] sm:$0xff]  ;;  %v4438_v1 = vpack.c.bf16 %v194_v59, %v186_v54 }
  0xad   :  { %4399 = vmatpush1.bf16.msra.mxu1 %v4398_v4  ;;  %v4504_v4 = vpack.c.bf16 %v213_v63, %v205_v62  ;;  %v229_v13 = vld [vmem:[#allocation5 + $0x368] sm:$0xff]  ;;  %v4510_v27 = vpack.c.bf16 %v228_v19, %v220_v18  ;;  %v236_v31 = vld [vmem:[#allocation5 + $0x3a0] sm:$0xff]  ;;  %v203_v62 = vld [vmem:[#allocation5 + $0x298] sm:$0xff] }
  0xae   :  { %4401 = vmatprep.subr.bf16.mxu1 %v4400_v5  ;;  %v204_v5 = vld [vmem:[#allocation5 + $0x2a0] sm:$0xff]  ;;  %v4508_v22 = vpack.c.bf16 %v229_v13, %v221_v12  ;;  %v237_v23 = vld [vmem:[#allocation5 + $0x3a8] sm:$0xff]  ;;  %v211_v63 = vld [vmem:[#allocation5 + $0x2d8] sm:$0xff] }
  0xaf   :  { %4503 = vmatpush1.bf16.msra.mxu0 %v4502_v2  ;;  %v4506_v15 = vpack.c.bf16 %v212_v6, %v204_v5  ;;  %v245_v24 = vld [vmem:[#allocation5 + $0x3e8] sm:$0xff]  ;;  %v244_v32 = vld [vmem:[#allocation5 + $0x3e0] sm:$0xff]  ;;  %v202_v2 = vld [vmem:[#allocation5 + $0x290] sm:$0xff]  ;;  %v4440_v6 = vpack.c.bf16 %v211_v63, %v203_v62 }
  0xb0   :  { %4505 = vmatprep.subr.bf16.mxu0 %v4504_v4  ;;  %v261_v36 = vld [vmem:[#allocation5 + $0x468] sm:$0xff]  ;;  %v4514_v39 = vpack.c.bf16 %v244_v32, %v236_v31  ;;  %v252_v44 = vld [vmem:[#allocation5 + $0x420] sm:$0xff]  ;;  %v242_v32 = vld [vmem:[#allocation5 + $0x3d0] sm:$0xff] }
  0xb1   :  { %4403 = vmatpush1.bf16.msra.mxu1 %v4402_v14  ;;  %v6698_v14 = vld [vmem:[#allocation2] sm:$0xff]  ;;  %v260_v45 = vld [vmem:[#allocation5 + $0x460] sm:$0xff]  ;;  %v277_v49 = vld [vmem:[#allocation5 + $0x4e8] sm:$0xff] }
  0xb2   :  { %4405 = vmatprep.subr.bf16.mxu1 %v4404_v20  ;;  %v4424_v20 = vpack.c.bf16 %v147_v11, %v139_v10  ;;  %v4518_v52 = vpack.c.bf16 %v260_v45, %v252_v44  ;;  %v268_v56 = vld [vmem:[#allocation5 + $0x4a0] sm:$0xff]  ;;  %v293_v61 = vld [vmem:[#allocation5 + $0x568] sm:$0xff]  ;;  %v219_v10 = vld [vmem:[#allocation5 + $0x318] sm:$0xff] }
  0xb3   :  { %4507 = vmatpush1.bf16.msra.mxu0 %v4506_v15  ;;  %v276_v57 = vld [vmem:[#allocation5 + $0x4e0] sm:$0xff]  ;;  %v301_v8 = vld [vmem:[#allocation5 + $0x5a8] sm:$0xff]  ;;  %v227_v11 = vld [vmem:[#allocation5 + $0x358] sm:$0xff] }
  0xb4   :  { %4509 = vmatprep.subr.bf16.mxu0 %v4508_v22  ;;  %v4522_v0 = vpack.c.bf16 %v276_v57, %v268_v56  ;;  %v284_v4 = vld [vmem:[#allocation5 + $0x520] sm:$0xff]  ;;  %v309_v9 = vld [vmem:[#allocation5 + $0x5e8] sm:$0xff]  ;;  %v218_v15 = vld [vmem:[#allocation5 + $0x310] sm:$0xff]  ;;  %v4444_v19 = vpack.c.bf16 %v227_v11, %v219_v10 }
  0xb5   :  { %4407 = vmatpush1.bf16.msra.mxu1 %v4406_v30  ;;  %v4512_v30 = vpack.c.bf16 %v245_v24, %v237_v23  ;;  %v292_v5 = vld [vmem:[#allocation5 + $0x560] sm:$0xff]  ;;  %v317_v21 = vld [vmem:[#allocation5 + $0x628] sm:$0xff]  ;;  %v235_v23 = vld [vmem:[#allocation5 + $0x398] sm:$0xff] }
  0xb6   :  { %4409 = vmatprep.subr.bf16.mxu1 %v4408_v35  ;;  %v253_v35 = vld [vmem:[#allocation5 + $0x428] sm:$0xff]  ;;  %v4526_v12 = vpack.c.bf16 %v292_v5, %v284_v4  ;;  %v300_v17 = vld [vmem:[#allocation5 + $0x5a0] sm:$0xff]  ;;  %v243_v24 = vld [vmem:[#allocation5 + $0x3d8] sm:$0xff] }
  0xb7   :  { %4511 = vmatpush1.bf16.msra.mxu0 %v4510_v27  ;;  %v308_v18 = vld [vmem:[#allocation5 + $0x5e0] sm:$0xff]  ;;  %v325_v22 = vld [vmem:[#allocation5 + $0x668] sm:$0xff]  ;;  %v234_v27 = vld [vmem:[#allocation5 + $0x390] sm:$0xff]  ;;  %v4448_v31 = vpack.c.bf16 %v243_v24, %v235_v23 }
  0xb8   :  { %4513 = vmatprep.subr.bf16.mxu0 %v4512_v30  ;;  %v4530_v25 = vpack.c.bf16 %v308_v18, %v300_v17  ;;  %v316_v29 = vld [vmem:[#allocation5 + $0x620] sm:$0xff]  ;;  %v341_v34 = vld [vmem:[#allocation5 + $0x6e8] sm:$0xff]  ;;  %v4450_v38 = vpack.c.bf16 %v242_v32, %v234_v27  ;;  %v258_v45 = vld [vmem:[#allocation5 + $0x450] sm:$0xff] }
  0xb9   :  { %4411 = vmatpush1.bf16.msra.mxu1 %v4410_v43  ;;  %v4516_v43 = vpack.c.bf16 %v261_v36, %v253_v35  ;;  %v324_v30 = vld [vmem:[#allocation5 + $0x660] sm:$0xff]  ;;  %v251_v35 = vld [vmem:[#allocation5 + $0x418] sm:$0xff]  ;;  %v357_v47 = vld [vmem:[#allocation5 + $0x768] sm:$0xff] }
  0xba   :  { %4413 = vmatprep.subr.bf16.mxu1 %v4412_v48  ;;  %v269_v48 = vld [vmem:[#allocation5 + $0x4a8] sm:$0xff]  ;;  %v259_v36 = vld [vmem:[#allocation5 + $0x458] sm:$0xff]  ;;  %v4534_v37 = vpack.c.bf16 %v324_v30, %v316_v29  ;;  %v332_v42 = vld [vmem:[#allocation5 + $0x6a0] sm:$0xff] }
  0xbb   :  { %4515 = vmatpush1.bf16.msra.mxu0 %v4514_v39  ;;  %v250_v39 = vld [vmem:[#allocation5 + $0x410] sm:$0xff]  ;;  %v4452_v44 = vpack.c.bf16 %v259_v36, %v251_v35  ;;  %v348_v54 = vld [vmem:[#allocation5 + $0x720] sm:$0xff]  ;;  %v373_v59 = vld [vmem:[#allocation5 + $0x7e8] sm:$0xff] }
  0xbc   :  { %4517 = vmatprep.subr.bf16.mxu0 %v4516_v43  ;;  %v340_v43 = vld [vmem:[#allocation5 + $0x6e0] sm:$0xff]  ;;  %v4454_v51 = vpack.c.bf16 %v258_v45, %v250_v39  ;;  %v274_v57 = vld [vmem:[#allocation5 + $0x4d0] sm:$0xff]  ;;  %v709_v32 = vld [vmem:[#allocation7 + $0x148] sm:$0xff] }
  0xbd   :  { %4415 = vmatpush1.bf16.msra.mxu1 %v4414_v55  ;;  %v4520_v55 = vpack.c.bf16 %v277_v49, %v269_v48  ;;  %v267_v48 = vld [vmem:[#allocation5 + $0x498] sm:$0xff]  ;;  %v4538_v50 = vpack.c.bf16 %v340_v43, %v332_v42  ;;  %v290_v5 = vld [vmem:[#allocation5 + $0x550] sm:$0xff]  ;;  %v684_v27 = vld [vmem:[#allocation7 + $0x80] sm:$0xff] }
  0xbe   :  { %4417 = vmatprep.subr.bf16.mxu1 %v4416_v60  ;;  %v285_v60 = vld [vmem:[#allocation5 + $0x528] sm:$0xff]  ;;  %v275_v49 = vld [vmem:[#allocation5 + $0x4d8] sm:$0xff]  ;;  %v306_v18 = vld [vmem:[#allocation5 + $0x5d0] sm:$0xff] }
  0xbf   :  { %4519 = vmatpush1.bf16.msra.mxu0 %v4518_v52  ;;  %v266_v52 = vld [vmem:[#allocation5 + $0x490] sm:$0xff]  ;;  %v4456_v56 = vpack.c.bf16 %v275_v49, %v267_v48  ;;  %v700_v39 = vld [vmem:[#allocation7 + $0x100] sm:$0xff]  ;;  %v725_v45 = vld [vmem:[#allocation7 + $0x1c8] sm:$0xff] }
  0xc0   :  { %4521 = vmatprep.subr.bf16.mxu0 %v4520_v55  ;;  %v356_v55 = vld [vmem:[#allocation5 + $0x760] sm:$0xff]  ;;  %v4458_v63 = vpack.c.bf16 %v274_v57, %v266_v52  ;;  %v322_v30 = vld [vmem:[#allocation5 + $0x650] sm:$0xff]  ;;  %v741_v57 = vld [vmem:[#allocation7 + $0x248] sm:$0xff] }
  0xc1   :  { %4419 = vmatpush1.bf16.msra.mxu1 %v4418_v3  ;;  %v4524_v3 = vpack.c.bf16 %v293_v61, %v285_v60  ;;  %v283_v60 = vld [vmem:[#allocation5 + $0x518] sm:$0xff]  ;;  %v4542_v62 = vpack.c.bf16 %v356_v55, %v348_v54  ;;  %v338_v43 = vld [vmem:[#allocation5 + $0x6d0] sm:$0xff]  ;;  %v716_v52 = vld [vmem:[#allocation7 + $0x180] sm:$0xff] }
  0xc2   :  { %4421 = vmatprep.subr.bf16.mxu1 %v4420_v7  ;;  %v210_v7 = vld [vmem:[#allocation5 + $0x2d0] sm:$0xff]  ;;  %v291_v61 = vld [vmem:[#allocation5 + $0x558] sm:$0xff] }
  0xc3   :  { %4523 = vmatpush1.bf16.msra.mxu0 %v4522_v0  ;;  %v4442_v13 = vpack.c.bf16 %v210_v7, %v202_v2  ;;  %v282_v0 = vld [vmem:[#allocation5 + $0x510] sm:$0xff]  ;;  %v364_v2 = vld [vmem:[#allocation5 + $0x7a0] sm:$0xff]  ;;  %v4460_v4 = vpack.c.bf16 %v291_v61, %v283_v60  ;;  %v677_v7 = vld [vmem:[#allocation7 + $0x48] sm:$0xff] }
  0xc4   :  { %441 = vmatmul.mubr.f32.vlgmr.msra.gmra.mrb[0].mxu1 %v6698_v14  ;;  %4525 = vmatprep.subr.bf16.mxu0 %v4524_v3  ;;  %v372_v3 = vld [vmem:[#allocation5 + $0x7e0] sm:$0xff]  ;;  %v4462_v11 = vpack.c.bf16 %v290_v5, %v282_v0  ;;  %v354_v55 = vld [vmem:[#allocation5 + $0x750] sm:$0xff]  ;;  %v757_v5 = vld [vmem:[#allocation7 + $0x2c8] sm:$0xff] }
  0xc5   :  { %4423 = vmatpush1.bf16.msra.mxu1 %v4422_v16  ;;  %511 = vmatprep.mubr.f32.mxu1 %v6694_v41  ;;  %v4528_v16 = vpack.c.bf16 %v309_v9, %v301_v8  ;;  %v299_v8 = vld [vmem:[#allocation5 + $0x598] sm:$0xff]  ;;  %v4546_v10 = vpack.c.bf16 %v372_v3, %v364_v2  ;;  %v732_v0 = vld [vmem:[#allocation7 + $0x200] sm:$0xff]  ;;  %v370_v3 = vld [vmem:[#allocation5 + $0x7d0] sm:$0xff] }
  0xc6   :  { %4425 = vmatprep.subr.bf16.mxu1 %v4424_v20  ;;  %v226_v20 = vld [vmem:[#allocation5 + $0x350] sm:$0xff]  ;;  %v307_v9 = vld [vmem:[#allocation5 + $0x5d8] sm:$0xff] }
  0xc7   :  { %4527 = vmatpush1.bf16.msra.mxu0 %v4526_v12  ;;  %v4446_v26 = vpack.c.bf16 %v226_v20, %v218_v15  ;;  %v298_v12 = vld [vmem:[#allocation5 + $0x590] sm:$0xff]  ;;  %v668_v15 = vld [vmem:[#allocation7] sm:$0xff]  ;;  %v4464_v17 = vpack.c.bf16 %v307_v9, %v299_v8  ;;  %v693_v20 = vld [vmem:[#allocation7 + $0xc8] sm:$0xff] }
  0xc8   :  { %4529 = vmatprep.subr.bf16.mxu0 %v4528_v16  ;;  %v676_v16 = vld [vmem:[#allocation7 + $0x40] sm:$0xff]  ;;  %v4466_v24 = vpack.c.bf16 %v306_v18, %v298_v12  ;;  %v151_v18 = vld [vmem:[#allocation5 + $0xf8] sm:$0xff] }
  0xc9   :  { %4427 = vmatpush1.bf16.msra.mxu1 %v4426_v28  ;;  %v4532_v28 = vpack.c.bf16 %v325_v22, %v317_v21  ;;  %v315_v21 = vld [vmem:[#allocation5 + $0x618] sm:$0xff]  ;;  %v4614_v23 = vpack.c.bf16 %v676_v16, %v668_v15  ;;  %v756_v12 = vld [vmem:[#allocation7 + $0x2c0] sm:$0xff]  ;;  %v126_v15 = vld [vmem:[#allocation5 + $0x30] sm:$0xff] }
  0xca   :  { %4429 = vmatprep.subr.bf16.mxu1 %v4428_v33  ;;  %v333_v33 = vld [vmem:[#allocation5 + $0x6a8] sm:$0xff]  ;;  %v323_v22 = vld [vmem:[#allocation5 + $0x658] sm:$0xff]  ;;  %v134_v16 = vld [vmem:[#allocation5 + $0x70] sm:$0xff] }
  0xcb   :  { %4531 = vmatpush1.bf16.msra.mxu0 %v4530_v25  ;;  %v314_v25 = vld [vmem:[#allocation5 + $0x610] sm:$0xff]  ;;  %v4468_v29 = vpack.c.bf16 %v323_v22, %v315_v21  ;;  %v4550_v22 = vpack.c.bf16 %v134_v16, %v126_v15  ;;  %v853_v15 = vld [vmem:[#allocation7 + $0x5c8] sm:$0xff]  ;;  %v223_v16 = vld [vmem:[#allocation5 + $0x338] sm:$0xff] }
  0xcc   :  { %4533 = vmatprep.subr.bf16.mxu0 %v4532_v28  ;;  %v692_v28 = vld [vmem:[#allocation7 + $0xc0] sm:$0xff]  ;;  %v4470_v36 = vpack.c.bf16 %v322_v30, %v314_v25  ;;  %v789_v30 = vld [vmem:[#allocation7 + $0x3c8] sm:$0xff] }
  0xcd   :  { %4431 = vmatpush1.bf16.msra.mxu1 %v4430_v40  ;;  %v4536_v40 = vpack.c.bf16 %v341_v34, %v333_v33  ;;  %v331_v33 = vld [vmem:[#allocation5 + $0x698] sm:$0xff]  ;;  %v4618_v35 = vpack.c.bf16 %v692_v28, %v684_v27  ;;  %v772_v25 = vld [vmem:[#allocation7 + $0x340] sm:$0xff]  ;;  %v150_v27 = vld [vmem:[#allocation5 + $0xf0] sm:$0xff] }
  0xce   :  { %4433 = vmatprep.subr.bf16.mxu1 %v4432_v46  ;;  %v349_v46 = vld [vmem:[#allocation5 + $0x728] sm:$0xff]  ;;  %v339_v34 = vld [vmem:[#allocation5 + $0x6d8] sm:$0xff] }
  0xcf   :  { %4535 = vmatpush1.bf16.msra.mxu0 %v4534_v37  ;;  %v330_v37 = vld [vmem:[#allocation5 + $0x690] sm:$0xff]  ;;  %v4472_v42 = vpack.c.bf16 %v339_v34, %v331_v33 }
  0xd0   :  { %4537 = vmatprep.subr.bf16.mxu0 %v4536_v40  ;;  %v708_v40 = vld [vmem:[#allocation7 + $0x140] sm:$0xff]  ;;  %v4474_v49 = vpack.c.bf16 %v338_v43, %v330_v37  ;;  %v805_v43 = vld [vmem:[#allocation7 + $0x448] sm:$0xff] }
  0xd1   :  { %4435 = vmatpush1.bf16.msra.mxu1 %v4434_v53  ;;  %v4540_v53 = vpack.c.bf16 %v357_v47, %v349_v46  ;;  %v347_v46 = vld [vmem:[#allocation5 + $0x718] sm:$0xff]  ;;  %v4622_v48 = vpack.c.bf16 %v708_v40, %v700_v39  ;;  %v780_v37 = vld [vmem:[#allocation7 + $0x380] sm:$0xff]  ;;  %v166_v40 = vld [vmem:[#allocation5 + $0x170] sm:$0xff] }
  0xd2   :  { %4437 = vmatprep.subr.bf16.mxu1 %v4436_v58  ;;  %v365_v58 = vld [vmem:[#allocation5 + $0x7a8] sm:$0xff]  ;;  %v355_v47 = vld [vmem:[#allocation5 + $0x758] sm:$0xff] }
  0xd3   :  { %4539 = vmatpush1.bf16.msra.mxu0 %v4538_v50  ;;  %v346_v50 = vld [vmem:[#allocation5 + $0x710] sm:$0xff]  ;;  %v4476_v54 = vpack.c.bf16 %v355_v47, %v347_v46 }
  0xd4   :  { %4541 = vmatprep.subr.bf16.mxu0 %v4540_v53  ;;  %v724_v53 = vld [vmem:[#allocation7 + $0x1c0] sm:$0xff]  ;;  %v4478_v61 = vpack.c.bf16 %v354_v55, %v346_v50  ;;  %v191_v55 = vld [vmem:[#allocation5 + $0x238] sm:$0xff] }
  0xd5   :  { %4439 = vmatpush1.bf16.msra.mxu1 %v4438_v1  ;;  %v4544_v1 = vpack.c.bf16 %v373_v59, %v365_v58  ;;  %v363_v58 = vld [vmem:[#allocation5 + $0x798] sm:$0xff]  ;;  %v4626_v60 = vpack.c.bf16 %v724_v53, %v716_v52  ;;  %v796_v50 = vld [vmem:[#allocation7 + $0x400] sm:$0xff]  ;;  %v182_v52 = vld [vmem:[#allocation5 + $0x1f0] sm:$0xff] }
  0xd6   :  { %4441 = vmatprep.subr.bf16.mxu1 %v4440_v6  ;;  %v669_v6 = vld [vmem:[#allocation7 + $0x8] sm:$0xff]  ;;  %v371_v59 = vld [vmem:[#allocation5 + $0x7d8] sm:$0xff] }
  0xd7   :  { %4543 = vmatpush1.bf16.msra.mxu0 %v4542_v62  ;;  %v362_v62 = vld [vmem:[#allocation5 + $0x790] sm:$0xff]  ;;  %v4480_v2 = vpack.c.bf16 %v371_v59, %v363_v58  ;;  %v813_v53 = vld [vmem:[#allocation7 + $0x488] sm:$0xff] }
  0xd8   :  { %4545 = vmatprep.subr.bf16.mxu0 %v4544_v1  ;;  %v740_v1 = vld [vmem:[#allocation7 + $0x240] sm:$0xff]  ;;  %v4482_v9 = vpack.c.bf16 %v370_v3, %v362_v62  ;;  %v190_v59 = vld [vmem:[#allocation5 + $0x230] sm:$0xff]  ;;  %v207_v3 = vld [vmem:[#allocation5 + $0x2b8] sm:$0xff] }
  0xd9   :  { %4443 = vmatpush1.bf16.msra.mxu1 %v4442_v13  ;;  %v4612_v13 = vpack.c.bf16 %v677_v7, %v669_v6  ;;  %v127_v6 = vld [vmem:[#allocation5 + $0x38] sm:$0xff]  ;;  %v4630_v8 = vpack.c.bf16 %v740_v1, %v732_v0  ;;  %v820_v62 = vld [vmem:[#allocation7 + $0x4c0] sm:$0xff]  ;;  %v198_v0 = vld [vmem:[#allocation5 + $0x270] sm:$0xff] }
  0xda   :  { %4445 = vmatprep.subr.bf16.mxu1 %v4444_v19  ;;  %v685_v19 = vld [vmem:[#allocation7 + $0x88] sm:$0xff]  ;;  %v135_v7 = vld [vmem:[#allocation5 + $0x78] sm:$0xff] }
  0xdb   :  { %4547 = vmatpush1.bf16.msra.mxu0 %v4546_v10  ;;  %v829_v1 = vld [vmem:[#allocation7 + $0x508] sm:$0xff] }
  0xdc   :  { %4613 = vmatprep.subr.bf16.mxu0 %v4612_v13  ;;  %v4548_v13 = vpack.c.bf16 %v135_v7, %v127_v6  ;;  %v4566_v6 = vpack.c.bf16 %v198_v0, %v190_v59  ;;  %v206_v7 = vld [vmem:[#allocation5 + $0x2b0] sm:$0xff]  ;;  %v900_v59 = vld [vmem:[#allocation7 + $0x740] sm:$0xff]  ;;  %v287_v0 = vld [vmem:[#allocation5 + $0x538] sm:$0xff] }
  0xdd   :  { %4447 = vmatpush1.bf16.msra.mxu1 %v4446_v26  ;;  %v4616_v26 = vpack.c.bf16 %v693_v20, %v685_v19  ;;  %v765_v19 = vld [vmem:[#allocation7 + $0x308] sm:$0xff] }
  0xde   :  { %4449 = vmatprep.subr.bf16.mxu1 %v4448_v31  ;;  %v701_v31 = vld [vmem:[#allocation7 + $0x108] sm:$0xff]  ;;  %583 = vmatmul.mubr.f32.vlgmr.msra.gmra.mrb[0].mxu0 %v6698_v14 }
  0xdf   :  { %4615 = vmatpush1.bf16.msra.mxu0 %v4614_v23  ;;  %v773_v20 = vld [vmem:[#allocation7 + $0x348] sm:$0xff]  ;;  %v142_v23 = vld [vmem:[#allocation5 + $0xb0] sm:$0xff] }
  0xe0   :  { %4617 = vmatprep.subr.bf16.mxu0 %v4616_v26  ;;  %v4636_v28 = vpack.c.bf16 %v773_v20, %v765_v19  ;;  %v4554_v34 = vpack.c.bf16 %v150_v27, %v142_v23  ;;  %v222_v20 = vld [vmem:[#allocation5 + $0x330] sm:$0xff]  ;;  %v852_v23 = vld [vmem:[#allocation7 + $0x5c0] sm:$0xff]  ;;  %v869_v27 = vld [vmem:[#allocation7 + $0x648] sm:$0xff] }
  0xe1   :  { %4451 = vmatpush1.bf16.msra.mxu1 %v4450_v38  ;;  %v4620_v38 = vpack.c.bf16 %v709_v32, %v701_v31  ;;  %v159_v31 = vld [vmem:[#allocation5 + $0x138] sm:$0xff] }
  0xe2   :  { %4453 = vmatprep.subr.bf16.mxu1 %v4452_v44  ;;  %v717_v44 = vld [vmem:[#allocation7 + $0x188] sm:$0xff]  ;;  %v167_v32 = vld [vmem:[#allocation5 + $0x178] sm:$0xff] }
  0xe3   :  { %4619 = vmatpush1.bf16.msra.mxu0 %v4618_v35  ;;  %v158_v35 = vld [vmem:[#allocation5 + $0x130] sm:$0xff]  ;;  %v4556_v39 = vpack.c.bf16 %v167_v32, %v159_v31 }
  0xe4   :  { %4621 = vmatprep.subr.bf16.mxu0 %v4620_v38  ;;  %v788_v38 = vld [vmem:[#allocation7 + $0x3c0] sm:$0xff]  ;;  %v4558_v47 = vpack.c.bf16 %v166_v40, %v158_v35  ;;  %v238_v32 = vld [vmem:[#allocation5 + $0x3b0] sm:$0xff]  ;;  %v255_v40 = vld [vmem:[#allocation5 + $0x438] sm:$0xff] }
  0xe5   :  { %4455 = vmatpush1.bf16.msra.mxu1 %v4454_v51  ;;  %v4624_v51 = vpack.c.bf16 %v725_v45, %v717_v44  ;;  %v175_v44 = vld [vmem:[#allocation5 + $0x1b8] sm:$0xff]  ;;  %v4642_v46 = vpack.c.bf16 %v788_v38, %v780_v37  ;;  %v868_v35 = vld [vmem:[#allocation7 + $0x640] sm:$0xff]  ;;  %v246_v37 = vld [vmem:[#allocation5 + $0x3f0] sm:$0xff] }
  0xe6   :  { %4457 = vmatprep.subr.bf16.mxu1 %v4456_v56  ;;  %v733_v56 = vld [vmem:[#allocation7 + $0x208] sm:$0xff]  ;;  %v183_v45 = vld [vmem:[#allocation5 + $0x1f8] sm:$0xff] }
  0xe7   :  { %4623 = vmatpush1.bf16.msra.mxu0 %v4622_v48  ;;  %v174_v48 = vld [vmem:[#allocation5 + $0x1b0] sm:$0xff]  ;;  %v877_v38 = vld [vmem:[#allocation7 + $0x688] sm:$0xff] }
  0xe8   :  { %4625 = vmatprep.subr.bf16.mxu0 %v4624_v51  ;;  %v4560_v51 = vpack.c.bf16 %v183_v45, %v175_v44  ;;  %v4562_v58 = vpack.c.bf16 %v182_v52, %v174_v48  ;;  %v4578_v44 = vpack.c.bf16 %v246_v37, %v238_v32  ;;  %v254_v45 = vld [vmem:[#allocation5 + $0x430] sm:$0xff]  ;;  %v884_v48 = vld [vmem:[#allocation7 + $0x6c0] sm:$0xff]  ;;  %v271_v52 = vld [vmem:[#allocation5 + $0x4b8] sm:$0xff] }
  0xe9   :  { %4459 = vmatpush1.bf16.msra.mxu1 %v4458_v63  ;;  %v4628_v63 = vpack.c.bf16 %v741_v57, %v733_v56  ;;  %v199_v56 = vld [vmem:[#allocation5 + $0x278] sm:$0xff]  ;;  %v342_v32 = vld [vmem:[#allocation5 + $0x6f0] sm:$0xff] }
  0xea   :  { %4461 = vmatprep.subr.bf16.mxu1 %v4460_v4  ;;  %v749_v4 = vld [vmem:[#allocation7 + $0x288] sm:$0xff]  ;;  %v350_v37 = vld [vmem:[#allocation5 + $0x730] sm:$0xff] }
  0xeb   :  { %4627 = vmatpush1.bf16.msra.mxu0 %v4626_v60  ;;  %v4632_v10 = vpack.c.bf16 %v757_v5, %v749_v4  ;;  %v215_v4 = vld [vmem:[#allocation5 + $0x2f8] sm:$0xff] }
  0xec   :  { %4629 = vmatprep.subr.bf16.mxu0 %v4628_v63  ;;  %v4564_v63 = vpack.c.bf16 %v199_v56, %v191_v55  ;;  %v270_v56 = vld [vmem:[#allocation5 + $0x4b0] sm:$0xff] }
  0xed   :  { %4463 = vmatpush1.bf16.msra.mxu1 %v4462_v11  ;;  %v748_v11 = vld [vmem:[#allocation7 + $0x280] sm:$0xff] }
  0xee   :  { %4465 = vmatprep.subr.bf16.mxu1 %v4464_v17  ;;  %v143_v17 = vld [vmem:[#allocation5 + $0xb8] sm:$0xff]  ;;  %v4634_v21 = vpack.c.bf16 %v756_v12, %v748_v11  ;;  %v4568_v11 = vpack.c.bf16 %v215_v4, %v207_v3  ;;  %v214_v12 = vld [vmem:[#allocation5 + $0x2f0] sm:$0xff] }
  0xef   :  { %4631 = vmatpush1.bf16.msra.mxu0 %v4630_v8  ;;  %v4552_v26 = vpack.c.bf16 %v151_v18, %v143_v17  ;;  %v231_v17 = vld [vmem:[#allocation5 + $0x378] sm:$0xff]  ;;  %v4570_v19 = vpack.c.bf16 %v214_v12, %v206_v7  ;;  %v286_v4 = vld [vmem:[#allocation5 + $0x530] sm:$0xff]  ;;  %v916_v7 = vld [vmem:[#allocation7 + $0x7c0] sm:$0xff] }
  0xf0   :  { %4633 = vmatprep.subr.bf16.mxu0 %v4632_v10  ;;  %v836_v10 = vld [vmem:[#allocation7 + $0x540] sm:$0xff]  ;;  %v303_v12 = vld [vmem:[#allocation5 + $0x5b8] sm:$0xff] }
  0xf1   :  { %4467 = vmatpush1.bf16.msra.mxu1 %v4466_v24  ;;  %v764_v24 = vld [vmem:[#allocation7 + $0x300] sm:$0xff] }
  0xf2   :  { %4469 = vmatprep.subr.bf16.mxu1 %v4468_v29  ;;  %v781_v29 = vld [vmem:[#allocation7 + $0x388] sm:$0xff]  ;;  %v4638_v33 = vpack.c.bf16 %v772_v25, %v764_v24  ;;  %v4572_v24 = vpack.c.bf16 %v231_v17, %v223_v16  ;;  %v230_v25 = vld [vmem:[#allocation5 + $0x370] sm:$0xff] }
  0xf3   :  { %4635 = vmatpush1.bf16.msra.mxu0 %v4634_v21  ;;  %v4574_v31 = vpack.c.bf16 %v230_v25, %v222_v20  ;;  %v310_v20 = vld [vmem:[#allocation5 + $0x5f0] sm:$0xff] }
  0xf4   :  { %4637 = vmatprep.subr.bf16.mxu0 %v4636_v28  ;;  %v239_v28 = vld [vmem:[#allocation5 + $0x3b8] sm:$0xff]  ;;  %v318_v25 = vld [vmem:[#allocation5 + $0x630] sm:$0xff] }
  0xf5   :  { %4471 = vmatpush1.bf16.msra.mxu1 %v4470_v36  ;;  %v4640_v36 = vpack.c.bf16 %v789_v30, %v781_v29  ;;  %v247_v29 = vld [vmem:[#allocation5 + $0x3f8] sm:$0xff] }
  0xf6   :  { %4473 = vmatprep.subr.bf16.mxu1 %v4472_v42  ;;  %v797_v42 = vld [vmem:[#allocation7 + $0x408] sm:$0xff] }
  0xf7   :  { %4639 = vmatpush1.bf16.msra.mxu0 %v4638_v33 }
  0xf8   :  { %4641 = vmatprep.subr.bf16.mxu0 %v4640_v36  ;;  %v4576_v36 = vpack.c.bf16 %v247_v29, %v239_v28  ;;  %v343_v28 = vld [vmem:[#allocation5 + $0x6f8] sm:$0xff] }
  0xf9   :  { %4475 = vmatpush1.bf16.msra.mxu1 %v4474_v49  ;;  %v4644_v49 = vpack.c.bf16 %v805_v43, %v797_v42  ;;  %v263_v42 = vld [vmem:[#allocation5 + $0x478] sm:$0xff] }
  0xfa   :  { %4477 = vmatprep.subr.bf16.mxu1 %v4476_v54  ;;  %v821_v54 = vld [vmem:[#allocation7 + $0x4c8] sm:$0xff] }
  0xfb   :  { %4643 = vmatpush1.bf16.msra.mxu0 %v4642_v46  ;;  %v4648_v60 = vpack.c.bf16 %v821_v54, %v813_v53  ;;  %v279_v53 = vld [vmem:[#allocation5 + $0x4f8] sm:$0xff] }
  0xfc   :  { %4645 = vmatprep.subr.bf16.mxu0 %v4644_v49  ;;  %v4580_v49 = vpack.c.bf16 %v263_v42, %v255_v40  ;;  %v375_v40 = vld [vmem:[#allocation5 + $0x7f8] sm:$0xff] }
  0xfd   :  { %4479 = vmatpush1.bf16.msra.mxu1 %v4478_v61  ;;  %v812_v61 = vld [vmem:[#allocation7 + $0x480] sm:$0xff] }
  0xfe   :  { %4481 = vmatprep.subr.bf16.mxu1 %v4480_v2  ;;  %v837_v2 = vld [vmem:[#allocation7 + $0x548] sm:$0xff]  ;;  %v4650_v5 = vpack.c.bf16 %v820_v62, %v812_v61  ;;  %v278_v61 = vld [vmem:[#allocation5 + $0x4f0] sm:$0xff] }
  0xff   :  { %v4652_v8 = vpack.c.bf16 %v837_v2, %v829_v1  ;;  %v909_v62 = vld [vmem:[#allocation7 + $0x788] sm:$0xff]  ;;  %v295_v1 = vld [vmem:[#allocation5 + $0x578] sm:$0xff]  ;;  %v4586_v3 = vpack.c.bf16 %v278_v61, %v270_v56  ;;  %v694_v56 = vld [vmem:[#allocation7 + $0xd0] sm:$0xff] }
 0x100   :  { %v702_v61 = vld [vmem:[#allocation7 + $0x110] sm:$0xff] }
 0x101   :  { %4483 = vmatpush1.bf16.msra.mxu1 %v4482_v9  ;;  %v828_v9 = vld [vmem:[#allocation7 + $0x500] sm:$0xff] }
 0x102   :  { %4549 = vmatprep.subr.bf16.mxu1 %v4548_v13  ;;  %v845_v13 = vld [vmem:[#allocation7 + $0x588] sm:$0xff]  ;;  %v4654_v18 = vpack.c.bf16 %v836_v10, %v828_v9  ;;  %v294_v9 = vld [vmem:[#allocation5 + $0x570] sm:$0xff] }
 0x103   :  { %v4656_v21 = vpack.c.bf16 %v853_v15, %v845_v13  ;;  %v925_v10 = vld [vmem:[#allocation7 + $0x808] sm:$0xff]  ;;  %v311_v13 = vld [vmem:[#allocation5 + $0x5f8] sm:$0xff]  ;;  %v4590_v16 = vpack.c.bf16 %v294_v9, %v286_v4  ;;  %v726_v4 = vld [vmem:[#allocation7 + $0x1d0] sm:$0xff] }
 0x104   :  { %512 = vmatmul.mubr.f32.vlgmr.msra.gmra.mrb[2].mxu1 %v6698_v14  ;;  %v742_v9 = vld [vmem:[#allocation7 + $0x250] sm:$0xff] }
 0x105   :  { %4551 = vmatpush1.bf16.msra.mxu1 %v4550_v22  ;;  %653 = vmatprep.mubr.f32.mxu1 %v6694_v41  ;;  %v804_v41 = vld [vmem:[#allocation7 + $0x440] sm:$0xff] }
 0x106   :  { %4553 = vmatprep.subr.bf16.mxu1 %v4552_v26  ;;  %v4646_v57 = vpack.c.bf16 %v804_v41, %v796_v50  ;;  %v844_v22 = vld [vmem:[#allocation7 + $0x580] sm:$0xff]  ;;  %v861_v26 = vld [vmem:[#allocation7 + $0x608] sm:$0xff]  ;;  %v262_v50 = vld [vmem:[#allocation5 + $0x470] sm:$0xff] }
 0x107   :  { %v4658_v30 = vpack.c.bf16 %v852_v23, %v844_v22  ;;  %v4660_v33 = vpack.c.bf16 %v869_v27, %v861_v26  ;;  %v893_v41 = vld [vmem:[#allocation7 + $0x708] sm:$0xff]  ;;  %v4582_v55 = vpack.c.bf16 %v262_v50, %v254_v45  ;;  %v327_v22 = vld [vmem:[#allocation5 + $0x678] sm:$0xff]  ;;  %v326_v26 = vld [vmem:[#allocation5 + $0x670] sm:$0xff] }
 0x108   :  { %4647 = vmatpush1.bf16.msra.mxu0 %v4646_v57  ;;  %v335_v27 = vld [vmem:[#allocation5 + $0x6b8] sm:$0xff]  ;;  %v4598_v29 = vpack.c.bf16 %v326_v26, %v318_v25  ;;  %v374_v45 = vld [vmem:[#allocation5 + $0x7f0] sm:$0xff] }
 0x109   :  { %4555 = vmatpush1.bf16.msra.mxu1 %v4554_v34  ;;  %4649 = vmatprep.subr.bf16.mxu0 %v4648_v60  ;;  %v860_v34 = vld [vmem:[#allocation7 + $0x600] sm:$0xff]  ;;  %v4584_v60 = vpack.c.bf16 %v279_v53, %v271_v52  ;;  %v670_v50 = vld [vmem:[#allocation7 + $0x10] sm:$0xff]  ;;  %v695_v52 = vld [vmem:[#allocation7 + $0xd8] sm:$0xff] }
 0x10a   :  { %4557 = vmatprep.subr.bf16.mxu1 %v4556_v39  ;;  %v885_v39 = vld [vmem:[#allocation7 + $0x6c8] sm:$0xff]  ;;  %v4662_v43 = vpack.c.bf16 %v868_v35, %v860_v34  ;;  %v359_v34 = vld [vmem:[#allocation5 + $0x778] sm:$0xff] }
 0x10b   :  { %v4664_v46 = vpack.c.bf16 %v885_v39, %v877_v38  ;;  %v358_v38 = vld [vmem:[#allocation5 + $0x770] sm:$0xff]  ;;  %v367_v39 = vld [vmem:[#allocation5 + $0x7b8] sm:$0xff] }
 0x10c   :  { %4651 = vmatpush1.bf16.msra.mxu0 %v4650_v5  ;;  %v4606_v42 = vpack.c.bf16 %v358_v38, %v350_v37 }
 0x10d   :  { %4559 = vmatpush1.bf16.msra.mxu1 %v4558_v47  ;;  %4653 = vmatprep.subr.bf16.mxu0 %v4652_v8  ;;  %v876_v47 = vld [vmem:[#allocation7 + $0x680] sm:$0xff]  ;;  %v4588_v8 = vpack.c.bf16 %v295_v1, %v287_v0  ;;  %v727_v0 = vld [vmem:[#allocation7 + $0x1d8] sm:$0xff] }
 0x10e   :  { %4561 = vmatprep.subr.bf16.mxu1 %v4560_v51  ;;  %v901_v51 = vld [vmem:[#allocation7 + $0x748] sm:$0xff]  ;;  %v4666_v54 = vpack.c.bf16 %v884_v48, %v876_v47  ;;  %v679_v47 = vld [vmem:[#allocation7 + $0x58] sm:$0xff] }
 0x10f   :  { %v4668_v57 = vpack.c.bf16 %v901_v51, %v893_v41  ;;  %v678_v41 = vld [vmem:[#allocation7 + $0x50] sm:$0xff]  ;;  %v687_v51 = vld [vmem:[#allocation7 + $0x98] sm:$0xff] }
 0x110   :  { %4655 = vmatpush1.bf16.msra.mxu0 %v4654_v18  ;;  %v4592_v18 = vpack.c.bf16 %v311_v13, %v303_v12  ;;  %v4870_v53 = vpack.c.bf16 %v678_v41, %v670_v50 }
 0x111   :  { %4563 = vmatpush1.bf16.msra.mxu1 %v4562_v58  ;;  %4657 = vmatprep.subr.bf16.mxu0 %v4656_v21  ;;  %v892_v58 = vld [vmem:[#allocation7 + $0x700] sm:$0xff]  ;;  %v319_v21 = vld [vmem:[#allocation5 + $0x638] sm:$0xff] }
 0x112   :  { %4565 = vmatprep.subr.bf16.mxu1 %v4564_v63  ;;  %v917_v63 = vld [vmem:[#allocation7 + $0x7c8] sm:$0xff]  ;;  %v4670_v2 = vpack.c.bf16 %v900_v59, %v892_v58  ;;  %v711_v58 = vld [vmem:[#allocation7 + $0x158] sm:$0xff] }
 0x113   :  { %v4672_v5 = vpack.c.bf16 %v917_v63, %v909_v62  ;;  %v710_v62 = vld [vmem:[#allocation7 + $0x150] sm:$0xff]  ;;  %v719_v63 = vld [vmem:[#allocation7 + $0x198] sm:$0xff] }
 0x114   :  { %4659 = vmatpush1.bf16.msra.mxu0 %v4658_v30  ;;  %v4600_v30 = vpack.c.bf16 %v343_v28, %v335_v27  ;;  %v4878_v1 = vpack.c.bf16 %v710_v62, %v702_v61  ;;  %v782_v27 = vld [vmem:[#allocation7 + $0x390] sm:$0xff] }
 0x115   :  { %4567 = vmatpush1.bf16.msra.mxu1 %v4566_v6  ;;  %4661 = vmatprep.subr.bf16.mxu0 %v4660_v33  ;;  %v908_v6 = vld [vmem:[#allocation7 + $0x780] sm:$0xff]  ;;  %v351_v33 = vld [vmem:[#allocation5 + $0x738] sm:$0xff]  ;;  %v790_v28 = vld [vmem:[#allocation7 + $0x3d0] sm:$0xff] }
 0x116   :  { %4569 = vmatprep.subr.bf16.mxu1 %v4568_v11  ;;  %v933_v11 = vld [vmem:[#allocation7 + $0x848] sm:$0xff]  ;;  %v4674_v15 = vpack.c.bf16 %v916_v7, %v908_v6  ;;  %v743_v6 = vld [vmem:[#allocation7 + $0x258] sm:$0xff] }
 0x117   :  { %v4676_v17 = vpack.c.bf16 %v933_v11, %v925_v10  ;;  %v751_v10 = vld [vmem:[#allocation7 + $0x298] sm:$0xff] }
 0x118   :  { %4663 = vmatpush1.bf16.msra.mxu0 %v4662_v43  ;;  %v4608_v43 = vpack.c.bf16 %v375_v40, %v367_v39  ;;  %v759_v11 = vld [vmem:[#allocation7 + $0x2d8] sm:$0xff]  ;;  %v814_v39 = vld [vmem:[#allocation7 + $0x490] sm:$0xff] }
 0x119   :  { %4571 = vmatpush1.bf16.msra.mxu1 %v4570_v19  ;;  %4665 = vmatprep.subr.bf16.mxu0 %v4664_v46  ;;  %v302_v19 = vld [vmem:[#allocation5 + $0x5b0] sm:$0xff]  ;;  %v671_v46 = vld [vmem:[#allocation7 + $0x18] sm:$0xff]  ;;  %v4888_v13 = vpack.c.bf16 %v759_v11, %v751_v10 }
 0x11a   :  { %4573 = vmatprep.subr.bf16.mxu1 %v4572_v24  ;;  %v4594_v23 = vpack.c.bf16 %v310_v20, %v302_v19  ;;  %v4596_v24 = vpack.c.bf16 %v327_v22, %v319_v21  ;;  %v766_v21 = vld [vmem:[#allocation7 + $0x310] sm:$0xff] }
 0x11b   :  { %v774_v22 = vld [vmem:[#allocation7 + $0x350] sm:$0xff] }
 0x11c   :  { %4667 = vmatpush1.bf16.msra.mxu0 %v4666_v54  ;;  %v4872_v54 = vpack.c.bf16 %v695_v52, %v687_v51  ;;  %v4894_v25 = vpack.c.bf16 %v774_v22, %v766_v21  ;;  %v822_v40 = vld [vmem:[#allocation7 + $0x4d0] sm:$0xff]  ;;  %v941_v21 = vld [vmem:[#allocation7 + $0x888] sm:$0xff] }
 0x11d   :  { %4575 = vmatpush1.bf16.msra.mxu1 %v4574_v31  ;;  %4669 = vmatprep.subr.bf16.mxu0 %v4668_v57  ;;  %v334_v31 = vld [vmem:[#allocation5 + $0x6b0] sm:$0xff]  ;;  %v703_v57 = vld [vmem:[#allocation7 + $0x118] sm:$0xff] }
 0x11e   :  { %4577 = vmatprep.subr.bf16.mxu1 %v4576_v36  ;;  %v4602_v35 = vpack.c.bf16 %v342_v32, %v334_v31  ;;  %v4604_v36 = vpack.c.bf16 %v359_v34, %v351_v33  ;;  %v4898_v31 = vpack.c.bf16 %v790_v28, %v782_v27  ;;  %v798_v33 = vld [vmem:[#allocation7 + $0x410] sm:$0xff] }
 0x11f   :  { %v806_v34 = vld [vmem:[#allocation7 + $0x450] sm:$0xff] }
 0x120   :  { %4671 = vmatpush1.bf16.msra.mxu0 %v4670_v2  ;;  %v4880_v2 = vpack.c.bf16 %v727_v0, %v719_v63  ;;  %v4902_v37 = vpack.c.bf16 %v806_v34, %v798_v33  ;;  %v846_v51 = vld [vmem:[#allocation7 + $0x590] sm:$0xff] }
 0x121   :  { %4579 = vmatpush1.bf16.msra.mxu1 %v4578_v44  ;;  %4673 = vmatprep.subr.bf16.mxu0 %v4672_v5  ;;  %v366_v44 = vld [vmem:[#allocation5 + $0x7b0] sm:$0xff]  ;;  %v735_v5 = vld [vmem:[#allocation7 + $0x218] sm:$0xff] }
 0x122   :  { %4581 = vmatprep.subr.bf16.mxu1 %v4580_v49  ;;  %v4610_v48 = vpack.c.bf16 %v374_v45, %v366_v44  ;;  %v4868_v49 = vpack.c.bf16 %v679_v47, %v671_v46  ;;  %v4906_v44 = vpack.c.bf16 %v822_v40, %v814_v39  ;;  %v830_v46 = vld [vmem:[#allocation7 + $0x510] sm:$0xff]  ;;  %v959_v39 = vld [vmem:[#allocation7 + $0x918] sm:$0xff] }
 0x123   :  { %v838_v47 = vld [vmem:[#allocation7 + $0x550] sm:$0xff]  ;;  %v967_v40 = vld [vmem:[#allocation7 + $0x958] sm:$0xff] }
 0x124   :  { %4675 = vmatpush1.bf16.msra.mxu0 %v4674_v15  ;;  %v750_v15 = vld [vmem:[#allocation7 + $0x290] sm:$0xff]  ;;  %v4910_v50 = vpack.c.bf16 %v838_v47, %v830_v46  ;;  %v4940_v47 = vpack.c.bf16 %v967_v40, %v959_v39 }
 0x125   :  { %4583 = vmatpush1.bf16.msra.mxu1 %v4582_v55  ;;  %4677 = vmatprep.subr.bf16.mxu0 %v4676_v17  ;;  %v686_v55 = vld [vmem:[#allocation7 + $0x90] sm:$0xff]  ;;  %v767_v17 = vld [vmem:[#allocation7 + $0x318] sm:$0xff] }
 0x126   :  { %4585 = vmatprep.subr.bf16.mxu1 %v4584_v60  ;;  %v4874_v59 = vpack.c.bf16 %v694_v56, %v686_v55  ;;  %v4876_v60 = vpack.c.bf16 %v711_v58, %v703_v57  ;;  %v854_v52 = vld [vmem:[#allocation7 + $0x5d0] sm:$0xff] }
 0x127   :  { %v4914_v55 = vpack.c.bf16 %v854_v52, %v846_v51  ;;  %v862_v57 = vld [vmem:[#allocation7 + $0x610] sm:$0xff]  ;;  %v975_v51 = vld [vmem:[#allocation7 + $0x998] sm:$0xff] }
 0x128   :  { %v870_v58 = vld [vmem:[#allocation7 + $0x650] sm:$0xff]  ;;  %v983_v52 = vld [vmem:[#allocation7 + $0x9d8] sm:$0xff] }
 0x129   :  { %4587 = vmatpush1.bf16.msra.mxu1 %v4586_v3  ;;  %v718_v3 = vld [vmem:[#allocation7 + $0x190] sm:$0xff]  ;;  %v4918_v61 = vpack.c.bf16 %v870_v58, %v862_v57  ;;  %v4944_v58 = vpack.c.bf16 %v983_v52, %v975_v51 }
 0x12a   :  { %4589 = vmatprep.subr.bf16.mxu1 %v4588_v8  ;;  %v4882_v7 = vpack.c.bf16 %v726_v4, %v718_v3  ;;  %v734_v8 = vld [vmem:[#allocation7 + $0x210] sm:$0xff] }
 0x12b   :  { %v4886_v12 = vpack.c.bf16 %v742_v9, %v734_v8  ;;  %v878_v63 = vld [vmem:[#allocation7 + $0x690] sm:$0xff] }
 0x12c   :  { %v886_v0 = vld [vmem:[#allocation7 + $0x6d0] sm:$0xff] }
 0x12d   :  { %4591 = vmatpush1.bf16.msra.mxu1 %v4590_v16  ;;  %v758_v16 = vld [vmem:[#allocation7 + $0x2d0] sm:$0xff]  ;;  %v4922_v3 = vpack.c.bf16 %v886_v0, %v878_v63  ;;  %v991_v63 = vld [vmem:[#allocation7 + $0xa18] sm:$0xff] }
 0x12e   :  { %4593 = vmatprep.subr.bf16.mxu1 %v4592_v18  ;;  %v775_v18 = vld [vmem:[#allocation7 + $0x358] sm:$0xff]  ;;  %v4890_v19 = vpack.c.bf16 %v758_v16, %v750_v15  ;;  %v910_v10 = vld [vmem:[#allocation7 + $0x790] sm:$0xff] }
 0x12f   :  { %v4892_v20 = vpack.c.bf16 %v775_v18, %v767_v17  ;;  %v918_v11 = vld [vmem:[#allocation7 + $0x7d0] sm:$0xff]  ;;  %v924_v17 = vld [vmem:[#allocation7 + $0x800] sm:$0xff]  ;;  %v999_v0 = vld [vmem:[#allocation7 + $0xa58] sm:$0xff] }
 0x130   :  { %v4930_v15 = vpack.c.bf16 %v918_v11, %v910_v10  ;;  %v932_v18 = vld [vmem:[#allocation7 + $0x840] sm:$0xff]  ;;  %v1007_v10 = vld [vmem:[#allocation7 + $0xa98] sm:$0xff] }
 0x131   :  { %4595 = vmatpush1.bf16.msra.mxu1 %v4594_v23  ;;  %v783_v23 = vld [vmem:[#allocation7 + $0x398] sm:$0xff]  ;;  %v4678_v28 = vpack.c.bf16 %v932_v18, %v924_v17 }
 0x132   :  { %4597 = vmatprep.subr.bf16.mxu1 %v4596_v24  ;;  %v791_v24 = vld [vmem:[#allocation7 + $0x3d8] sm:$0xff] }
 0x133   :  { %v4896_v26 = vpack.c.bf16 %v791_v24, %v783_v23  ;;  %v949_v23 = vld [vmem:[#allocation7 + $0x8c8] sm:$0xff]  ;;  %v943_v24 = vld [vmem:[#allocation7 + $0x898] sm:$0xff] }
 0x134   :  { %v4680_v33 = vpack.c.bf16 %v949_v23, %v941_v21  ;;  %v1015_v11 = vld [vmem:[#allocation7 + $0xad8] sm:$0xff]  ;;  %v1021_v21 = vld [vmem:[#allocation7 + $0xb08] sm:$0xff] }
 0x135   :  { %4599 = vmatpush1.bf16.msra.mxu1 %v4598_v29  ;;  %v799_v29 = vld [vmem:[#allocation7 + $0x418] sm:$0xff]  ;;  %v4952_v18 = vpack.c.bf16 %v1015_v11, %v1007_v10 }
 0x136   :  { %4601 = vmatprep.subr.bf16.mxu1 %v4600_v30  ;;  %v807_v30 = vld [vmem:[#allocation7 + $0x458] sm:$0xff] }
 0x137   :  { %v4900_v32 = vpack.c.bf16 %v807_v30, %v799_v29  ;;  %v940_v30 = vld [vmem:[#allocation7 + $0x880] sm:$0xff]  ;;  %v1023_v23 = vld [vmem:[#allocation7 + $0xb18] sm:$0xff] }
 0x139   :  { %4603 = vmatpush1.bf16.msra.mxu1 %v4602_v35  ;;  %v815_v35 = vld [vmem:[#allocation7 + $0x498] sm:$0xff] }
 0x13a   :  { %4605 = vmatprep.subr.bf16.mxu1 %v4604_v36  ;;  %v823_v36 = vld [vmem:[#allocation7 + $0x4d8] sm:$0xff] }
 0x13b   :  { %v4904_v38 = vpack.c.bf16 %v823_v36, %v815_v35  ;;  %v942_v35 = vld [vmem:[#allocation7 + $0x890] sm:$0xff] }
 0x13c   :  { %v950_v36 = vld [vmem:[#allocation7 + $0x8d0] sm:$0xff] }
 0x13d   :  { %4607 = vmatpush1.bf16.msra.mxu1 %v4606_v42  ;;  %v831_v42 = vld [vmem:[#allocation7 + $0x518] sm:$0xff] }
 0x13e   :  { %4609 = vmatprep.subr.bf16.mxu1 %v4608_v43  ;;  %v839_v43 = vld [vmem:[#allocation7 + $0x558] sm:$0xff] }
 0x13f   :  { %v4908_v45 = vpack.c.bf16 %v839_v43, %v831_v42  ;;  %v4938_v43 = vpack.c.bf16 %v950_v36, %v942_v35  ;;  %v1037_v35 = vld [vmem:[#allocation7 + $0xb88] sm:$0xff] }
 0x140   :  { %v1045_v36 = vld [vmem:[#allocation7 + $0xbc8] sm:$0xff] }
 0x141   :  { %4611 = vmatpush1.bf16.msra.mxu1 %v4610_v48  ;;  %v847_v48 = vld [vmem:[#allocation7 + $0x598] sm:$0xff] }
 0x142   :  { %4869 = vmatprep.subr.bf16.mxu1 %v4868_v49  ;;  %v855_v49 = vld [vmem:[#allocation7 + $0x5d8] sm:$0xff] }
 0x143   :  { %v4912_v41 = vpack.c.bf16 %v855_v49, %v847_v48  ;;  %v958_v48 = vld [vmem:[#allocation7 + $0x910] sm:$0xff] }
 0x144   :  { %654 = vmatmul.mubr.f32.vlgmr.msra.gmra.mrb[4].mxu1 %v6698_v14  ;;  %v4884_v14 = vpack.c.bf16 %v743_v6, %v735_v5  ;;  %v894_v5 = vld [vmem:[#allocation7 + $0x710] sm:$0xff] }
 0x145   :  { %4871 = vmatpush1.bf16.msra.mxu1 %v4870_v53  ;;  %v863_v53 = vld [vmem:[#allocation7 + $0x618] sm:$0xff]  ;;  %v902_v6 = vld [vmem:[#allocation7 + $0x750] sm:$0xff] }
 0x146   :  { %4873 = vmatprep.subr.bf16.mxu1 %v4872_v54  ;;  %v871_v54 = vld [vmem:[#allocation7 + $0x658] sm:$0xff]  ;;  %v4926_v8 = vpack.c.bf16 %v902_v6, %v894_v5  ;;  %v966_v49 = vld [vmem:[#allocation7 + $0x950] sm:$0xff]  ;;  %v4948_v6 = vpack.c.bf16 %v999_v0, %v991_v63 }
 0x147   :  { %v4916_v56 = vpack.c.bf16 %v871_v54, %v863_v53  ;;  %v4942_v54 = vpack.c.bf16 %v966_v49, %v958_v48  ;;  %v1053_v48 = vld [vmem:[#allocation7 + $0xc08] sm:$0xff] }
 0x148   :  { %v1061_v49 = vld [vmem:[#allocation7 + $0xc48] sm:$0xff] }
 0x149   :  { %4875 = vmatpush1.bf16.msra.mxu1 %v4874_v59  ;;  %v879_v59 = vld [vmem:[#allocation7 + $0x698] sm:$0xff] }
 0x14a   :  { %4877 = vmatprep.subr.bf16.mxu1 %v4876_v60  ;;  %v887_v60 = vld [vmem:[#allocation7 + $0x6d8] sm:$0xff] }
 0x14b   :  { %v4920_v62 = vpack.c.bf16 %v887_v60, %v879_v59  ;;  %v974_v59 = vld [vmem:[#allocation7 + $0x990] sm:$0xff] }
 0x14c   :  { %v982_v60 = vld [vmem:[#allocation7 + $0x9d0] sm:$0xff] }
 0x14d   :  { %4879 = vmatpush1.bf16.msra.mxu1 %v4878_v1  ;;  %v895_v1 = vld [vmem:[#allocation7 + $0x718] sm:$0xff] }
 0x14e   :  { %4881 = vmatprep.subr.bf16.mxu1 %v4880_v2  ;;  %v903_v2 = vld [vmem:[#allocation7 + $0x758] sm:$0xff] }
 0x14f   :  { %v4924_v4 = vpack.c.bf16 %v903_v2, %v895_v1  ;;  %v4946_v2 = vpack.c.bf16 %v982_v60, %v974_v59  ;;  %v1069_v59 = vld [vmem:[#allocation7 + $0xc88] sm:$0xff] }
 0x150   :  { %v1077_v60 = vld [vmem:[#allocation7 + $0xcc8] sm:$0xff] }
 0x151   :  { %4883 = vmatpush1.bf16.msra.mxu1 %v4882_v7  ;;  %v911_v7 = vld [vmem:[#allocation7 + $0x798] sm:$0xff] }
 0x152   :  { %4885 = vmatprep.subr.bf16.mxu1 %v4884_v14  ;;  %v919_v14 = vld [vmem:[#allocation7 + $0x7d8] sm:$0xff] }
 0x153   :  { %v4928_v9 = vpack.c.bf16 %v919_v14, %v911_v7  ;;  %v990_v7 = vld [vmem:[#allocation7 + $0xa10] sm:$0xff] }
 0x154   :  { %v998_v14 = vld [vmem:[#allocation7 + $0xa50] sm:$0xff] }
 0x155   :  { %4887 = vmatpush1.bf16.msra.mxu1 %v4886_v12  ;;  %v927_v12 = vld [vmem:[#allocation7 + $0x818] sm:$0xff] }
 0x156   :  { %4889 = vmatprep.subr.bf16.mxu1 %v4888_v13  ;;  %v935_v13 = vld [vmem:[#allocation7 + $0x858] sm:$0xff] }
 0x157   :  { %v4932_v16 = vpack.c.bf16 %v935_v13, %v927_v12  ;;  %v4950_v13 = vpack.c.bf16 %v998_v14, %v990_v7  ;;  %v1085_v7 = vld [vmem:[#allocation7 + $0xd08] sm:$0xff] }
 0x158   :  { %v1093_v14 = vld [vmem:[#allocation7 + $0xd48] sm:$0xff] }
 0x159   :  { %4891 = vmatpush1.bf16.msra.mxu1 %v4890_v19  ;;  %v926_v19 = vld [vmem:[#allocation7 + $0x810] sm:$0xff] }
 0x15a   :  { %4893 = vmatprep.subr.bf16.mxu1 %v4892_v20  ;;  %v934_v20 = vld [vmem:[#allocation7 + $0x850] sm:$0xff] }
 0x15b   :  { %v4934_v29 = vpack.c.bf16 %v934_v20, %v926_v19  ;;  %v1006_v19 = vld [vmem:[#allocation7 + $0xa90] sm:$0xff] }
 0x15c   :  { %v1014_v20 = vld [vmem:[#allocation7 + $0xad0] sm:$0xff] }
 0x15d   :  { %4895 = vmatpush1.bf16.msra.mxu1 %v4894_v25  ;;  %v951_v25 = vld [vmem:[#allocation7 + $0x8d8] sm:$0xff] }
 0x15e   :  { %4897 = vmatprep.subr.bf16.mxu1 %v4896_v26  ;;  %v4936_v34 = vpack.c.bf16 %v951_v25, %v943_v24  ;;  %v1031_v24 = vld [vmem:[#allocation7 + $0xb58] sm:$0xff] }
 0x161   :  { %4899 = vmatpush1.bf16.msra.mxu1 %v4898_v31  ;;  %v948_v31 = vld [vmem:[#allocation7 + $0x8c0] sm:$0xff] }
 0x162   :  { %4901 = vmatprep.subr.bf16.mxu1 %v4900_v32  ;;  %v4682_v42 = vpack.c.bf16 %v948_v31, %v940_v30  ;;  %v4956_v31 = vpack.c.bf16 %v1031_v24, %v1023_v23 }
 0x165   :  { %4903 = vmatpush1.bf16.msra.mxu1 %v4902_v37  ;;  %v957_v37 = vld [vmem:[#allocation7 + $0x908] sm:$0xff] }
 0x166   :  { %4905 = vmatprep.subr.bf16.mxu1 %v4904_v38  ;;  %v965_v38 = vld [vmem:[#allocation7 + $0x948] sm:$0xff] }
 0x167   :  { %v4684_v46 = vpack.c.bf16 %v965_v38, %v957_v37  ;;  %v1039_v37 = vld [vmem:[#allocation7 + $0xb98] sm:$0xff] }
 0x168   :  { %v1047_v38 = vld [vmem:[#allocation7 + $0xbd8] sm:$0xff] }
 0x169   :  { %4907 = vmatpush1.bf16.msra.mxu1 %v4906_v44  ;;  %v956_v44 = vld [vmem:[#allocation7 + $0x900] sm:$0xff] }
 0x16a   :  { %4909 = vmatprep.subr.bf16.mxu1 %v4908_v45  ;;  %v964_v45 = vld [vmem:[#allocation7 + $0x940] sm:$0xff] }
 0x16b   :  { %v4686_v53 = vpack.c.bf16 %v964_v45, %v956_v44  ;;  %v4704_v44 = vpack.c.bf16 %v1045_v36, %v1037_v35  ;;  %v4960_v45 = vpack.c.bf16 %v1047_v38, %v1039_v37  ;;  %v1125_v35 = vld [vmem:[#allocation7 + $0xe48] sm:$0xff]  ;;  %v1119_v36 = vld [vmem:[#allocation7 + $0xe18] sm:$0xff] }
 0x16c   :  { %v1127_v37 = vld [vmem:[#allocation7 + $0xe58] sm:$0xff] }
 0x16d   :  { %4911 = vmatpush1.bf16.msra.mxu1 %v4910_v50  ;;  %v973_v50 = vld [vmem:[#allocation7 + $0x988] sm:$0xff] }
 0x16e   :  { %4913 = vmatprep.subr.bf16.mxu1 %v4912_v41  ;;  %v981_v41 = vld [vmem:[#allocation7 + $0x9c8] sm:$0xff] }
 0x16f   :  { %v4688_v57 = vpack.c.bf16 %v981_v41, %v973_v50  ;;  %v1055_v50 = vld [vmem:[#allocation7 + $0xc18] sm:$0xff] }
 0x170   :  { %v1063_v41 = vld [vmem:[#allocation7 + $0xc58] sm:$0xff] }
 0x171   :  { %4915 = vmatpush1.bf16.msra.mxu1 %v4914_v55  ;;  %v972_v55 = vld [vmem:[#allocation7 + $0x980] sm:$0xff] }
 0x172   :  { %4917 = vmatprep.subr.bf16.mxu1 %v4916_v56  ;;  %v980_v56 = vld [vmem:[#allocation7 + $0x9c0] sm:$0xff] }
 0x173   :  { %v4690_v1 = vpack.c.bf16 %v980_v56, %v972_v55  ;;  %v4708_v55 = vpack.c.bf16 %v1061_v49, %v1053_v48  ;;  %v4964_v56 = vpack.c.bf16 %v1063_v41, %v1055_v50  ;;  %v1133_v48 = vld [vmem:[#allocation7 + $0xe88] sm:$0xff]  ;;  %v1135_v50 = vld [vmem:[#allocation7 + $0xe98] sm:$0xff] }
 0x174   :  { %v1141_v49 = vld [vmem:[#allocation7 + $0xec8] sm:$0xff]  ;;  %v1143_v41 = vld [vmem:[#allocation7 + $0xed8] sm:$0xff] }
 0x175   :  { %4919 = vmatpush1.bf16.msra.mxu1 %v4918_v61  ;;  %v989_v61 = vld [vmem:[#allocation7 + $0xa08] sm:$0xff] }
 0x176   :  { %4921 = vmatprep.subr.bf16.mxu1 %v4920_v62  ;;  %v997_v62 = vld [vmem:[#allocation7 + $0xa48] sm:$0xff] }
 0x177   :  { %v4692_v5 = vpack.c.bf16 %v997_v62, %v989_v61  ;;  %v1071_v61 = vld [vmem:[#allocation7 + $0xc98] sm:$0xff] }
 0x178   :  { %v1079_v62 = vld [vmem:[#allocation7 + $0xcd8] sm:$0xff] }
 0x179   :  { %4923 = vmatpush1.bf16.msra.mxu1 %v4922_v3  ;;  %v988_v3 = vld [vmem:[#allocation7 + $0xa00] sm:$0xff] }
 0x17a   :  { %4925 = vmatprep.subr.bf16.mxu1 %v4924_v4  ;;  %v996_v4 = vld [vmem:[#allocation7 + $0xa40] sm:$0xff] }
 0x17b   :  { %v4694_v12 = vpack.c.bf16 %v996_v4, %v988_v3  ;;  %v4712_v3 = vpack.c.bf16 %v1077_v60, %v1069_v59  ;;  %v4968_v4 = vpack.c.bf16 %v1079_v62, %v1071_v61  ;;  %v1149_v59 = vld [vmem:[#allocation7 + $0xf08] sm:$0xff]  ;;  %v1151_v61 = vld [vmem:[#allocation7 + $0xf18] sm:$0xff] }
 0x17c   :  { %v1157_v60 = vld [vmem:[#allocation7 + $0xf48] sm:$0xff]  ;;  %v1159_v62 = vld [vmem:[#allocation7 + $0xf58] sm:$0xff] }
 0x17d   :  { %4927 = vmatpush1.bf16.msra.mxu1 %v4926_v8  ;;  %v1005_v8 = vld [vmem:[#allocation7 + $0xa88] sm:$0xff] }
 0x17e   :  { %4929 = vmatprep.subr.bf16.mxu1 %v4928_v9  ;;  %v1013_v9 = vld [vmem:[#allocation7 + $0xac8] sm:$0xff] }
 0x17f   :  { %v4696_v17 = vpack.c.bf16 %v1013_v9, %v1005_v8  ;;  %v1087_v8 = vld [vmem:[#allocation7 + $0xd18] sm:$0xff] }
 0x180   :  { %v1095_v9 = vld [vmem:[#allocation7 + $0xd58] sm:$0xff] }
 0x181   :  { %4931 = vmatpush1.bf16.msra.mxu1 %v4930_v15  ;;  %v1004_v15 = vld [vmem:[#allocation7 + $0xa80] sm:$0xff] }
 0x182   :  { %4933 = vmatprep.subr.bf16.mxu1 %v4932_v16  ;;  %v1012_v16 = vld [vmem:[#allocation7 + $0xac0] sm:$0xff] }
 0x183   :  { %v4698_v25 = vpack.c.bf16 %v1012_v16, %v1004_v15  ;;  %v4716_v15 = vpack.c.bf16 %v1093_v14, %v1085_v7  ;;  %v4972_v16 = vpack.c.bf16 %v1095_v9, %v1087_v8  ;;  %v1165_v7 = vld [vmem:[#allocation7 + $0xf88] sm:$0xff]  ;;  %v1167_v8 = vld [vmem:[#allocation7 + $0xf98] sm:$0xff] }
 0x184   :  { %v1173_v14 = vld [vmem:[#allocation7 + $0xfc8] sm:$0xff]  ;;  %v1175_v9 = vld [vmem:[#allocation7 + $0xfd8] sm:$0xff] }
 0x197   :  { %v442_v22 = vpop.f32.mrb[0].mxu1 }
 0x198   :  { %v444_v26 = vpop.f32.mrb[1].mxu1  ;;  %v6708_v32 = vmax.f32 %v442_v22, 0.0  ;;  %v1029_v22 = vld [vmem:[#allocation7 + $0xb48] sm:$0xff] }
 0x199   :  { %v6706_v27 = vmax.f32 %v444_v26, 0.0  ;;  %v4954_v26 = vpack.c.bf16 %v1014_v20, %v1006_v19  ;;  %v4700_v30 = vpack.c.bf16 %v1029_v22, %v1021_v21  ;;  %v1101_v19 = vld [vmem:[#allocation7 + $0xd88] sm:$0xff]  ;;  %v1103_v21 = vld [vmem:[#allocation7 + $0xd98] sm:$0xff] }
 0x19a   :  { %v1109_v20 = vld [vmem:[#allocation7 + $0xdc8] sm:$0xff]  ;;  %v1111_v22 = vld [vmem:[#allocation7 + $0xdd8] sm:$0xff] }
 0x19b   :  { %1756 = vmatprep.mubr.f32.mxu0 %v6706_v27  ;;  %2040 = vmatprep.mubr.f32.mxu1 %v6706_v27 }
 0x19c   :  { %1757 = vmatmul.mubr.f32.vlgmr.msra.gmra.mrb[2].mxu0 %v6708_v32  ;;  %2041 = vmatmul.mubr.f32.vlgmr.msra.gmra.mrb[6].mxu1 %v6708_v32 }
 0x19d   :  { %4679 = vmatpush1.bf16.msra.mxu0 %v4678_v28  ;;  %4935 = vmatpush1.bf16.msra.mxu1 %v4934_v29  ;;  %v1020_v28 = vld [vmem:[#allocation7 + $0xb00] sm:$0xff] }
 0x19e   :  { %4681 = vmatprep.subr.bf16.mxu0 %v4680_v33  ;;  %4937 = vmatprep.subr.bf16.mxu1 %v4936_v34  ;;  %v1028_v29 = vld [vmem:[#allocation7 + $0xb40] sm:$0xff]  ;;  %v1022_v33 = vld [vmem:[#allocation7 + $0xb10] sm:$0xff] }
 0x19f   :  { %v1030_v34 = vld [vmem:[#allocation7 + $0xb50] sm:$0xff]  ;;  %v4702_v39 = vpack.c.bf16 %v1028_v29, %v1020_v28  ;;  %v4720_v28 = vpack.c.bf16 %v1109_v20, %v1101_v19  ;;  %v4976_v29 = vpack.c.bf16 %v1111_v22, %v1103_v21  ;;  %v1181_v19 = vld [vmem:[#allocation7 + $0x1008] sm:$0xff]  ;;  %v1183_v21 = vld [vmem:[#allocation7 + $0x1018] sm:$0xff] }
 0x1a0   :  { %v4958_v40 = vpack.c.bf16 %v1030_v34, %v1022_v33  ;;  %v1117_v33 = vld [vmem:[#allocation7 + $0xe08] sm:$0xff]  ;;  %v1191_v22 = vld [vmem:[#allocation7 + $0x1058] sm:$0xff] }
 0x1a1   :  { %4683 = vmatpush1.bf16.msra.mxu0 %v4682_v42  ;;  %4939 = vmatpush1.bf16.msra.mxu1 %v4938_v43  ;;  %v1036_v42 = vld [vmem:[#allocation7 + $0xb80] sm:$0xff]  ;;  %v1189_v20 = vld [vmem:[#allocation7 + $0x1048] sm:$0xff] }
 0x1a2   :  { %4685 = vmatprep.subr.bf16.mxu0 %v4684_v46  ;;  %4941 = vmatprep.subr.bf16.mxu1 %v4940_v47  ;;  %v1044_v43 = vld [vmem:[#allocation7 + $0xbc0] sm:$0xff]  ;;  %v1038_v46 = vld [vmem:[#allocation7 + $0xb90] sm:$0xff] }
 0x1a3   :  { %v1046_v47 = vld [vmem:[#allocation7 + $0xbd0] sm:$0xff]  ;;  %v4706_v51 = vpack.c.bf16 %v1044_v43, %v1036_v42  ;;  %v1116_v42 = vld [vmem:[#allocation7 + $0xe00] sm:$0xff] }
 0x1a4   :  { %v4962_v52 = vpack.c.bf16 %v1046_v47, %v1038_v46  ;;  %v1124_v43 = vld [vmem:[#allocation7 + $0xe40] sm:$0xff]  ;;  %v1118_v46 = vld [vmem:[#allocation7 + $0xe10] sm:$0xff] }
 0x1a5   :  { %4687 = vmatpush1.bf16.msra.mxu0 %v4686_v53  ;;  %4943 = vmatpush1.bf16.msra.mxu1 %v4942_v54  ;;  %v1052_v53 = vld [vmem:[#allocation7 + $0xc00] sm:$0xff]  ;;  %v1126_v47 = vld [vmem:[#allocation7 + $0xe50] sm:$0xff] }
 0x1a6   :  { %4689 = vmatprep.subr.bf16.mxu0 %v4688_v57  ;;  %4945 = vmatprep.subr.bf16.mxu1 %v4944_v58  ;;  %v1060_v54 = vld [vmem:[#allocation7 + $0xc40] sm:$0xff]  ;;  %v1054_v57 = vld [vmem:[#allocation7 + $0xc10] sm:$0xff] }
 0x1a7   :  { %v1062_v58 = vld [vmem:[#allocation7 + $0xc50] sm:$0xff]  ;;  %v4710_v63 = vpack.c.bf16 %v1060_v54, %v1052_v53  ;;  %v1132_v53 = vld [vmem:[#allocation7 + $0xe80] sm:$0xff] }
 0x1a8   :  { %v4966_v0 = vpack.c.bf16 %v1062_v58, %v1054_v57  ;;  %v1140_v54 = vld [vmem:[#allocation7 + $0xec0] sm:$0xff]  ;;  %v1134_v57 = vld [vmem:[#allocation7 + $0xe90] sm:$0xff] }
 0x1a9   :  { %4691 = vmatpush1.bf16.msra.mxu0 %v4690_v1  ;;  %4947 = vmatpush1.bf16.msra.mxu1 %v4946_v2  ;;  %v1068_v1 = vld [vmem:[#allocation7 + $0xc80] sm:$0xff]  ;;  %v1142_v58 = vld [vmem:[#allocation7 + $0xed0] sm:$0xff] }
 0x1aa   :  { %4693 = vmatprep.subr.bf16.mxu0 %v4692_v5  ;;  %4949 = vmatprep.subr.bf16.mxu1 %v4948_v6  ;;  %v1076_v2 = vld [vmem:[#allocation7 + $0xcc0] sm:$0xff]  ;;  %v1070_v5 = vld [vmem:[#allocation7 + $0xc90] sm:$0xff] }
 0x1ab   :  { %v1078_v6 = vld [vmem:[#allocation7 + $0xcd0] sm:$0xff]  ;;  %v4714_v10 = vpack.c.bf16 %v1076_v2, %v1068_v1  ;;  %v1148_v1 = vld [vmem:[#allocation7 + $0xf00] sm:$0xff] }
 0x1ac   :  { %v4970_v11 = vpack.c.bf16 %v1078_v6, %v1070_v5  ;;  %v1156_v2 = vld [vmem:[#allocation7 + $0xf40] sm:$0xff]  ;;  %v1150_v5 = vld [vmem:[#allocation7 + $0xf10] sm:$0xff] }
 0x1ad   :  { %4695 = vmatpush1.bf16.msra.mxu0 %v4694_v12  ;;  %4951 = vmatpush1.bf16.msra.mxu1 %v4950_v13  ;;  %v1084_v12 = vld [vmem:[#allocation7 + $0xd00] sm:$0xff]  ;;  %v1158_v6 = vld [vmem:[#allocation7 + $0xf50] sm:$0xff] }
 0x1ae   :  { %4697 = vmatprep.subr.bf16.mxu0 %v4696_v17  ;;  %4953 = vmatprep.subr.bf16.mxu1 %v4952_v18  ;;  %v1092_v13 = vld [vmem:[#allocation7 + $0xd40] sm:$0xff]  ;;  %v1086_v17 = vld [vmem:[#allocation7 + $0xd10] sm:$0xff] }
 0x1af   :  { %v1094_v18 = vld [vmem:[#allocation7 + $0xd50] sm:$0xff]  ;;  %v4718_v23 = vpack.c.bf16 %v1092_v13, %v1084_v12  ;;  %v1164_v12 = vld [vmem:[#allocation7 + $0xf80] sm:$0xff] }
 0x1b0   :  { %v4974_v24 = vpack.c.bf16 %v1094_v18, %v1086_v17  ;;  %v1172_v13 = vld [vmem:[#allocation7 + $0xfc0] sm:$0xff]  ;;  %v1166_v17 = vld [vmem:[#allocation7 + $0xf90] sm:$0xff] }
 0x1b1   :  { %4699 = vmatpush1.bf16.msra.mxu0 %v4698_v25  ;;  %4955 = vmatpush1.bf16.msra.mxu1 %v4954_v26  ;;  %v1100_v25 = vld [vmem:[#allocation7 + $0xd80] sm:$0xff]  ;;  %v6714_v34 = vpop.f32.mrb[0].mxu0  ;;  %v1174_v18 = vld [vmem:[#allocation7 + $0xfd0] sm:$0xff] }
 0x1b2   :  { %4701 = vmatprep.subr.bf16.mxu0 %v4700_v30  ;;  %4957 = vmatprep.subr.bf16.mxu1 %v4956_v31  ;;  %v1108_v26 = vld [vmem:[#allocation7 + $0xdc0] sm:$0xff]  ;;  %v1102_v30 = vld [vmem:[#allocation7 + $0xd90] sm:$0xff]  ;;  %v6716_v38 = vpop.f32.mrb[1].mxu0 }
 0x1b3   :  { %v1110_v31 = vld [vmem:[#allocation7 + $0xdd0] sm:$0xff] }
 0x1b5   :  { %4703 = vmatpush1.bf16.msra.mxu0 %v4702_v39  ;;  %4959 = vmatpush1.bf16.msra.mxu1 %v4958_v40  ;;  %v4722_v39 = vpack.c.bf16 %v1108_v26, %v1100_v25  ;;  %v4978_v40 = vpack.c.bf16 %v1110_v31, %v1102_v30  ;;  %v1180_v25 = vld [vmem:[#allocation7 + $0x1000] sm:$0xff]  ;;  %v1182_v30 = vld [vmem:[#allocation7 + $0x1010] sm:$0xff] }
 0x1b6   :  { %4705 = vmatprep.subr.bf16.mxu0 %v4704_v44  ;;  %4961 = vmatprep.subr.bf16.mxu1 %v4960_v45  ;;  %v4724_v44 = vpack.c.bf16 %v1125_v35, %v1117_v33  ;;  %v4980_v45 = vpack.c.bf16 %v1127_v37, %v1119_v36  ;;  %v1188_v26 = vld [vmem:[#allocation7 + $0x1040] sm:$0xff]  ;;  %v1190_v31 = vld [vmem:[#allocation7 + $0x1050] sm:$0xff]  ;;  %v1197_v33 = vld [vmem:[#allocation7 + $0x1088] sm:$0xff] }
 0x1b7   :  { %v1205_v36 = vld [vmem:[#allocation7 + $0x10c8] sm:$0xff]  ;;  %v1199_v37 = vld [vmem:[#allocation7 + $0x1098] sm:$0xff] }
 0x1b9   :  { %4707 = vmatpush1.bf16.msra.mxu0 %v4706_v51  ;;  %4963 = vmatpush1.bf16.msra.mxu1 %v4962_v52  ;;  %v4726_v51 = vpack.c.bf16 %v1124_v43, %v1116_v42  ;;  %v4982_v52 = vpack.c.bf16 %v1126_v47, %v1118_v46  ;;  %v4742_v43 = vpack.c.bf16 %v1188_v26, %v1180_v25  ;;  %v1204_v46 = vld [vmem:[#allocation7 + $0x10c0] sm:$0xff]  ;;  %v1263_v25 = vld [vmem:[#allocation7 + $0x1298] sm:$0xff] }
 0x1ba   :  { %4709 = vmatprep.subr.bf16.mxu0 %v4708_v55  ;;  %4965 = vmatprep.subr.bf16.mxu1 %v4964_v56  ;;  %v4728_v55 = vpack.c.bf16 %v1141_v49, %v1133_v48  ;;  %v4984_v56 = vpack.c.bf16 %v1143_v41, %v1135_v50  ;;  %v4744_v48 = vpack.c.bf16 %v1205_v36, %v1197_v33  ;;  %v1198_v50 = vld [vmem:[#allocation7 + $0x1090] sm:$0xff]  ;;  %v1271_v26 = vld [vmem:[#allocation7 + $0x12d8] sm:$0xff] }
 0x1bb   :  { %v1206_v41 = vld [vmem:[#allocation7 + $0x10d0] sm:$0xff] }
 0x1bc   :  { %v1262_v36 = vld [vmem:[#allocation7 + $0x1290] sm:$0xff] }
 0x1bd   :  { %4711 = vmatpush1.bf16.msra.mxu0 %v4710_v63  ;;  %4967 = vmatpush1.bf16.msra.mxu1 %v4966_v0  ;;  %v4730_v63 = vpack.c.bf16 %v1140_v54, %v1132_v53  ;;  %v4986_v0 = vpack.c.bf16 %v1142_v58, %v1134_v57  ;;  %v1215_v53 = vld [vmem:[#allocation7 + $0x1118] sm:$0xff]  ;;  %v5002_v57 = vpack.c.bf16 %v1206_v41, %v1198_v50  ;;  %v1212_v58 = vld [vmem:[#allocation7 + $0x1100] sm:$0xff] }
 0x1be   :  { %4713 = vmatprep.subr.bf16.mxu0 %v4712_v3  ;;  %4969 = vmatprep.subr.bf16.mxu1 %v4968_v4  ;;  %v4732_v3 = vpack.c.bf16 %v1157_v60, %v1149_v59  ;;  %v4988_v4 = vpack.c.bf16 %v1159_v62, %v1151_v61  ;;  %v1223_v54 = vld [vmem:[#allocation7 + $0x1158] sm:$0xff]  ;;  %v1220_v59 = vld [vmem:[#allocation7 + $0x1140] sm:$0xff]  ;;  %v1214_v62 = vld [vmem:[#allocation7 + $0x1110] sm:$0xff] }
 0x1bf   :  { %v5004_v61 = vpack.c.bf16 %v1223_v54, %v1215_v53  ;;  %v1293_v53 = vld [vmem:[#allocation7 + $0x1388] sm:$0xff] }
 0x1c0   :  { %v1301_v54 = vld [vmem:[#allocation7 + $0x13c8] sm:$0xff] }
 0x1c1   :  { %4715 = vmatpush1.bf16.msra.mxu0 %v4714_v10  ;;  %4971 = vmatpush1.bf16.msra.mxu1 %v4970_v11  ;;  %v4734_v10 = vpack.c.bf16 %v1156_v2, %v1148_v1  ;;  %v4990_v11 = vpack.c.bf16 %v1158_v6, %v1150_v5  ;;  %v1237_v1 = vld [vmem:[#allocation7 + $0x11c8] sm:$0xff]  ;;  %v1239_v2 = vld [vmem:[#allocation7 + $0x11d8] sm:$0xff]  ;;  %v1228_v5 = vld [vmem:[#allocation7 + $0x1180] sm:$0xff] }
 0x1c2   :  { %4717 = vmatprep.subr.bf16.mxu0 %v4716_v15  ;;  %4973 = vmatprep.subr.bf16.mxu1 %v4972_v16  ;;  %v4736_v15 = vpack.c.bf16 %v1173_v14, %v1165_v7  ;;  %v4992_v16 = vpack.c.bf16 %v1175_v9, %v1167_v8  ;;  %v1236_v6 = vld [vmem:[#allocation7 + $0x11c0] sm:$0xff]  ;;  %v1230_v8 = vld [vmem:[#allocation7 + $0x1190] sm:$0xff] }
 0x1c3   :  { %v1238_v9 = vld [vmem:[#allocation7 + $0x11d0] sm:$0xff] }
 0x1c5   :  { %4719 = vmatpush1.bf16.msra.mxu0 %v4718_v23  ;;  %4975 = vmatpush1.bf16.msra.mxu1 %v4974_v24  ;;  %v4738_v23 = vpack.c.bf16 %v1172_v13, %v1164_v12  ;;  %v4994_v24 = vpack.c.bf16 %v1174_v18, %v1166_v17  ;;  %v1247_v12 = vld [vmem:[#allocation7 + $0x1218] sm:$0xff]  ;;  %v1244_v17 = vld [vmem:[#allocation7 + $0x1200] sm:$0xff] }
 0x1c6   :  { %4721 = vmatprep.subr.bf16.mxu0 %v4720_v28  ;;  %4977 = vmatprep.subr.bf16.mxu1 %v4976_v29  ;;  %v4740_v28 = vpack.c.bf16 %v1189_v20, %v1181_v19  ;;  %v4996_v29 = vpack.c.bf16 %v1191_v22, %v1183_v21  ;;  %v1255_v13 = vld [vmem:[#allocation7 + $0x1258] sm:$0xff]  ;;  %v1252_v18 = vld [vmem:[#allocation7 + $0x1240] sm:$0xff]  ;;  %v1246_v21 = vld [vmem:[#allocation7 + $0x1210] sm:$0xff] }
 0x1c7   :  { %v5012_v20 = vpack.c.bf16 %v1255_v13, %v1247_v12  ;;  %v1254_v22 = vld [vmem:[#allocation7 + $0x1250] sm:$0xff]  ;;  %v1325_v12 = vld [vmem:[#allocation7 + $0x1488] sm:$0xff] }
 0x1c8   :  { %v1333_v13 = vld [vmem:[#allocation7 + $0x14c8] sm:$0xff] }
 0x1c9   :  { %4723 = vmatpush1.bf16.msra.mxu0 %v4722_v39  ;;  %4979 = vmatpush1.bf16.msra.mxu1 %v4978_v40  ;;  %v1207_v39 = vld [vmem:[#allocation7 + $0x10d8] sm:$0xff] }
 0x1ca   :  { %4725 = vmatprep.subr.bf16.mxu0 %v4724_v44  ;;  %4981 = vmatprep.subr.bf16.mxu1 %v4980_v45  ;;  %v4998_v44 = vpack.c.bf16 %v1190_v31, %v1182_v30  ;;  %v1196_v45 = vld [vmem:[#allocation7 + $0x1080] sm:$0xff]  ;;  %v5000_v49 = vpack.c.bf16 %v1207_v39, %v1199_v37  ;;  %v1270_v37 = vld [vmem:[#allocation7 + $0x12d0] sm:$0xff]  ;;  %v1277_v39 = vld [vmem:[#allocation7 + $0x1308] sm:$0xff] }
 0x1cb   :  { %v1260_v30 = vld [vmem:[#allocation7 + $0x1280] sm:$0xff] }
 0x1cc   :  { %v1268_v31 = vld [vmem:[#allocation7 + $0x12c0] sm:$0xff] }
 0x1cd   :  { %4727 = vmatpush1.bf16.msra.mxu0 %v4726_v51  ;;  %4983 = vmatpush1.bf16.msra.mxu1 %v4982_v52  ;;  %v1213_v51 = vld [vmem:[#allocation7 + $0x1108] sm:$0xff] }
 0x1ce   :  { %4729 = vmatprep.subr.bf16.mxu0 %v4728_v55  ;;  %4985 = vmatprep.subr.bf16.mxu1 %v4984_v56  ;;  %v1221_v52 = vld [vmem:[#allocation7 + $0x1148] sm:$0xff]  ;;  %v6725_v55 = vmax.f32 %v6716_v38, 0.0  ;;  %v4746_v56 = vpack.c.bf16 %v1204_v46, %v1196_v45  ;;  %v1231_v38 = vld [vmem:[#allocation7 + $0x1198] sm:$0xff]  ;;  %v4762_v45 = vpack.c.bf16 %v1268_v31, %v1260_v30  ;;  %v5018_v46 = vpack.c.bf16 %v1270_v37, %v1262_v36 }
 0x1cf   :  { %v4748_v60 = vpack.c.bf16 %v1221_v52, %v1213_v51  ;;  %v5008_v14 = vpack.c.bf16 %v1239_v2, %v1231_v38  ;;  %v1278_v51 = vld [vmem:[#allocation7 + $0x1310] sm:$0xff]  ;;  %v1309_v38 = vld [vmem:[#allocation7 + $0x1408] sm:$0xff] }
 0x1d0   :  { %v1286_v52 = vld [vmem:[#allocation7 + $0x1350] sm:$0xff]  ;;  %v1317_v2 = vld [vmem:[#allocation7 + $0x1448] sm:$0xff] }
 0x1d1   :  { %4731 = vmatpush1.bf16.msra.mxu0 %v4730_v63  ;;  %4987 = vmatpush1.bf16.msra.mxu1 %v4986_v0  ;;  %v1222_v63 = vld [vmem:[#allocation7 + $0x1150] sm:$0xff]  ;;  %v1229_v0 = vld [vmem:[#allocation7 + $0x1188] sm:$0xff] }
 0x1d2   :  { %4733 = vmatprep.subr.bf16.mxu0 %v4732_v3  ;;  %4989 = vmatprep.subr.bf16.mxu1 %v4988_v4  ;;  %v4750_v3 = vpack.c.bf16 %v1220_v59, %v1212_v58  ;;  %v5006_v4 = vpack.c.bf16 %v1222_v63, %v1214_v62  ;;  %v4752_v7 = vpack.c.bf16 %v1237_v1, %v1229_v0  ;;  %v1294_v0 = vld [vmem:[#allocation7 + $0x1390] sm:$0xff] }
 0x1d3   :  { %v5022_v59 = vpack.c.bf16 %v1286_v52, %v1278_v51  ;;  %v4768_v62 = vpack.c.bf16 %v1301_v54, %v1293_v53  ;;  %v1302_v1 = vld [vmem:[#allocation7 + $0x13d0] sm:$0xff] }
 0x1d4   :  { %v1358_v53 = vld [vmem:[#allocation7 + $0x1590] sm:$0xff] }
 0x1d5   :  { %4735 = vmatpush1.bf16.msra.mxu0 %v4734_v10  ;;  %4991 = vmatpush1.bf16.msra.mxu1 %v4990_v11  ;;  %v1245_v10 = vld [vmem:[#allocation7 + $0x1208] sm:$0xff]  ;;  %v1366_v54 = vld [vmem:[#allocation7 + $0x15d0] sm:$0xff] }
 0x1d6   :  { %4737 = vmatprep.subr.bf16.mxu0 %v4736_v15  ;;  %4993 = vmatprep.subr.bf16.mxu1 %v4992_v16  ;;  %v1253_v11 = vld [vmem:[#allocation7 + $0x1248] sm:$0xff]  ;;  %v4754_v15 = vpack.c.bf16 %v1236_v6, %v1228_v5  ;;  %v5010_v16 = vpack.c.bf16 %v1238_v9, %v1230_v8  ;;  %v5026_v6 = vpack.c.bf16 %v1302_v1, %v1294_v0 }
 0x1d7   :  { %v513_v35 = vpop.f32.mrb[2].mxu1  ;;  %v4756_v19 = vpack.c.bf16 %v1253_v11, %v1245_v10  ;;  %v4772_v8 = vpack.c.bf16 %v1317_v2, %v1309_v38  ;;  %v1310_v10 = vld [vmem:[#allocation7 + $0x1410] sm:$0xff] }
 0x1d8   :  { %v515_v40 = vpop.f32.mrb[3].mxu1  ;;  %v6720_v47 = vmax.f32 %v513_v35, 0.0  ;;  %v5016_v35 = vpack.c.bf16 %v1271_v26, %v1263_v25  ;;  %v1318_v11 = vld [vmem:[#allocation7 + $0x1450] sm:$0xff]  ;;  %v1341_v25 = vld [vmem:[#allocation7 + $0x1508] sm:$0xff] }
 0x1d9   :  { %v6718_v42 = vmax.f32 %v515_v40, 0.0  ;;  %4739 = vmatpush1.bf16.msra.mxu0 %v4738_v23  ;;  %4995 = vmatpush1.bf16.msra.mxu1 %v4994_v24  ;;  %v1261_v23 = vld [vmem:[#allocation7 + $0x1288] sm:$0xff]  ;;  %v1374_v38 = vld [vmem:[#allocation7 + $0x1610] sm:$0xff] }
 0x1da   :  { %4741 = vmatprep.subr.bf16.mxu0 %v4740_v28  ;;  %4997 = vmatprep.subr.bf16.mxu1 %v4996_v29  ;;  %v1269_v24 = vld [vmem:[#allocation7 + $0x12c8] sm:$0xff]  ;;  %v4758_v28 = vpack.c.bf16 %v1252_v18, %v1244_v17  ;;  %v5014_v29 = vpack.c.bf16 %v1254_v22, %v1246_v21  ;;  %v5030_v18 = vpack.c.bf16 %v1318_v11, %v1310_v10  ;;  %v1382_v2 = vld [vmem:[#allocation7 + $0x1650] sm:$0xff] }
 0x1db   :  { %1827 = vmatprep.mubr.f32.mxu0 %v6718_v42  ;;  %2111 = vmatprep.mubr.f32.mxu1 %v6718_v42  ;;  %v4760_v33 = vpack.c.bf16 %v1269_v24, %v1261_v23  ;;  %v1285_v40 = vld [vmem:[#allocation7 + $0x1348] sm:$0xff]  ;;  %v4776_v21 = vpack.c.bf16 %v1333_v13, %v1325_v12  ;;  %v1326_v23 = vld [vmem:[#allocation7 + $0x1490] sm:$0xff] }
 0x1dc   :  { %1828 = vmatmul.mubr.f32.vlgmr.msra.gmra.mrb[2].mxu0 %v6720_v47  ;;  %2112 = vmatmul.mubr.f32.vlgmr.msra.gmra.mrb[6].mxu1 %v6720_v47  ;;  %v4764_v50 = vpack.c.bf16 %v1285_v40, %v1277_v39  ;;  %v1334_v24 = vld [vmem:[#allocation7 + $0x14d0] sm:$0xff]  ;;  %v1349_v26 = vld [vmem:[#allocation7 + $0x1548] sm:$0xff] }
 0x1dd   :  { %4743 = vmatpush1.bf16.msra.mxu0 %v4742_v43  ;;  %4999 = vmatpush1.bf16.msra.mxu1 %v4998_v44  ;;  %v1279_v43 = vld [vmem:[#allocation7 + $0x1318] sm:$0xff]  ;;  %v5034_v31 = vpack.c.bf16 %v1334_v24, %v1326_v23  ;;  %v4780_v36 = vpack.c.bf16 %v1349_v26, %v1341_v25  ;;  %v1342_v39 = vld [vmem:[#allocation7 + $0x1510] sm:$0xff] }
 0x1de   :  { %4745 = vmatprep.subr.bf16.mxu0 %v4744_v48  ;;  %5001 = vmatprep.subr.bf16.mxu1 %v5000_v49  ;;  %v1287_v44 = vld [vmem:[#allocation7 + $0x1358] sm:$0xff]  ;;  %v1276_v48 = vld [vmem:[#allocation7 + $0x1300] sm:$0xff]  ;;  %v1350_v40 = vld [vmem:[#allocation7 + $0x1550] sm:$0xff] }
 0x1df   :  { %1898 = vmatprep.mubr.f32.mxu0 %v6725_v55  ;;  %2182 = vmatprep.mubr.f32.mxu1 %v6725_v55  ;;  %v1284_v49 = vld [vmem:[#allocation7 + $0x1340] sm:$0xff]  ;;  %v5020_v41 = vpack.c.bf16 %v1287_v44, %v1279_v43  ;;  %v1357_v43 = vld [vmem:[#allocation7 + $0x1588] sm:$0xff]  ;;  %v1390_v12 = vld [vmem:[#allocation7 + $0x1690] sm:$0xff] }
 0x1e0   :  { %v4766_v58 = vpack.c.bf16 %v1284_v49, %v1276_v48  ;;  %v1365_v44 = vld [vmem:[#allocation7 + $0x15c8] sm:$0xff]  ;;  %v5038_v49 = vpack.c.bf16 %v1350_v40, %v1342_v39  ;;  %v1398_v13 = vld [vmem:[#allocation7 + $0x16d0] sm:$0xff] }
 0x1e1   :  { %4747 = vmatpush1.bf16.msra.mxu0 %v4746_v56  ;;  %5003 = vmatpush1.bf16.msra.mxu1 %v5002_v57  ;;  %v1295_v56 = vld [vmem:[#allocation7 + $0x1398] sm:$0xff]  ;;  %v4784_v51 = vpack.c.bf16 %v1365_v44, %v1357_v43  ;;  %v1406_v25 = vld [vmem:[#allocation7 + $0x1710] sm:$0xff] }
 0x1e2   :  { %4749 = vmatprep.subr.bf16.mxu0 %v4748_v60  ;;  %5005 = vmatprep.subr.bf16.mxu1 %v5004_v61  ;;  %v1303_v57 = vld [vmem:[#allocation7 + $0x13d8] sm:$0xff]  ;;  %v1292_v60 = vld [vmem:[#allocation7 + $0x1380] sm:$0xff]  ;;  %v1414_v26 = vld [vmem:[#allocation7 + $0x1750] sm:$0xff] }
 0x1e3   :  { %v1300_v61 = vld [vmem:[#allocation7 + $0x13c0] sm:$0xff]  ;;  %v5024_v63 = vpack.c.bf16 %v1303_v57, %v1295_v56  ;;  %v1373_v56 = vld [vmem:[#allocation7 + $0x1608] sm:$0xff]  ;;  %v1422_v43 = vld [vmem:[#allocation7 + $0x1790] sm:$0xff] }
 0x1e4   :  { %v4770_v5 = vpack.c.bf16 %v1300_v61, %v1292_v60  ;;  %v1381_v57 = vld [vmem:[#allocation7 + $0x1648] sm:$0xff]  ;;  %v5042_v61 = vpack.c.bf16 %v1366_v54, %v1358_v53  ;;  %v1430_v44 = vld [vmem:[#allocation7 + $0x17d0] sm:$0xff] }
 0x1e5   :  { %4751 = vmatpush1.bf16.msra.mxu0 %v4750_v3  ;;  %5007 = vmatpush1.bf16.msra.mxu1 %v5006_v4  ;;  %v1311_v3 = vld [vmem:[#allocation7 + $0x1418] sm:$0xff]  ;;  %v4788_v0 = vpack.c.bf16 %v1381_v57, %v1373_v56  ;;  %v1438_v56 = vld [vmem:[#allocation7 + $0x1810] sm:$0xff] }
 0x1e6   :  { %4753 = vmatprep.subr.bf16.mxu0 %v4752_v7  ;;  %5009 = vmatprep.subr.bf16.mxu1 %v5008_v14  ;;  %v1319_v4 = vld [vmem:[#allocation7 + $0x1458] sm:$0xff]  ;;  %v1308_v7 = vld [vmem:[#allocation7 + $0x1400] sm:$0xff]  ;;  %v1446_v57 = vld [vmem:[#allocation7 + $0x1850] sm:$0xff] }
 0x1e7   :  { %v1316_v14 = vld [vmem:[#allocation7 + $0x1440] sm:$0xff]  ;;  %v5028_v9 = vpack.c.bf16 %v1319_v4, %v1311_v3  ;;  %v1389_v3 = vld [vmem:[#allocation7 + $0x1688] sm:$0xff] }
 0x1e8   :  { %v4774_v17 = vpack.c.bf16 %v1316_v14, %v1308_v7  ;;  %v1397_v4 = vld [vmem:[#allocation7 + $0x16c8] sm:$0xff]  ;;  %v5046_v14 = vpack.c.bf16 %v1382_v2, %v1374_v38  ;;  %v5062_v38 = vpack.c.bf16 %v1446_v57, %v1438_v56  ;;  %v1452_v2 = vld [vmem:[#allocation7 + $0x1880] sm:$0xff] }
 0x1e9   :  { %4755 = vmatpush1.bf16.msra.mxu0 %v4754_v15  ;;  %5011 = vmatpush1.bf16.msra.mxu1 %v5010_v16  ;;  %v1327_v15 = vld [vmem:[#allocation7 + $0x1498] sm:$0xff]  ;;  %v4792_v10 = vpack.c.bf16 %v1397_v4, %v1389_v3  ;;  %v1460_v3 = vld [vmem:[#allocation7 + $0x18c0] sm:$0xff] }
 0x1ea   :  { %4757 = vmatprep.subr.bf16.mxu0 %v4756_v19  ;;  %5013 = vmatprep.subr.bf16.mxu1 %v5012_v20  ;;  %v1335_v16 = vld [vmem:[#allocation7 + $0x14d8] sm:$0xff]  ;;  %v1324_v19 = vld [vmem:[#allocation7 + $0x1480] sm:$0xff] }
 0x1eb   :  { %v1332_v20 = vld [vmem:[#allocation7 + $0x14c0] sm:$0xff]  ;;  %v5032_v22 = vpack.c.bf16 %v1335_v16, %v1327_v15  ;;  %v1405_v15 = vld [vmem:[#allocation7 + $0x1708] sm:$0xff] }
 0x1ec   :  { %v4778_v30 = vpack.c.bf16 %v1332_v20, %v1324_v19  ;;  %v1413_v16 = vld [vmem:[#allocation7 + $0x1748] sm:$0xff]  ;;  %v5050_v20 = vpack.c.bf16 %v1398_v13, %v1390_v12  ;;  %v1468_v13 = vld [vmem:[#allocation7 + $0x1900] sm:$0xff] }
 0x1ed   :  { %4759 = vmatpush1.bf16.msra.mxu0 %v4758_v28  ;;  %5015 = vmatpush1.bf16.msra.mxu1 %v5014_v29  ;;  %v1343_v28 = vld [vmem:[#allocation7 + $0x1518] sm:$0xff]  ;;  %v4796_v23 = vpack.c.bf16 %v1413_v16, %v1405_v15  ;;  %v1476_v15 = vld [vmem:[#allocation7 + $0x1940] sm:$0xff] }
 0x1ee   :  { %4761 = vmatprep.subr.bf16.mxu0 %v4760_v33  ;;  %5017 = vmatprep.subr.bf16.mxu1 %v5016_v35  ;;  %v1351_v29 = vld [vmem:[#allocation7 + $0x1558] sm:$0xff]  ;;  %v1340_v33 = vld [vmem:[#allocation7 + $0x1500] sm:$0xff] }
 0x1ef   :  { %v1348_v35 = vld [vmem:[#allocation7 + $0x1540] sm:$0xff]  ;;  %v5036_v37 = vpack.c.bf16 %v1351_v29, %v1343_v28  ;;  %v1421_v28 = vld [vmem:[#allocation7 + $0x1788] sm:$0xff] }
 0x1f0   :  { %v4782_v48 = vpack.c.bf16 %v1348_v35, %v1340_v33  ;;  %v1429_v29 = vld [vmem:[#allocation7 + $0x17c8] sm:$0xff]  ;;  %v5054_v35 = vpack.c.bf16 %v1414_v26, %v1406_v25  ;;  %v1484_v26 = vld [vmem:[#allocation7 + $0x1980] sm:$0xff] }
 0x1f1   :  { %4763 = vmatpush1.bf16.msra.mxu0 %v4762_v45  ;;  %5019 = vmatpush1.bf16.msra.mxu1 %v5018_v46  ;;  %v1359_v45 = vld [vmem:[#allocation7 + $0x1598] sm:$0xff]  ;;  %v4800_v39 = vpack.c.bf16 %v1429_v29, %v1421_v28  ;;  %v1492_v28 = vld [vmem:[#allocation7 + $0x19c0] sm:$0xff] }
 0x1f2   :  { %4765 = vmatprep.subr.bf16.mxu0 %v4764_v50  ;;  %5021 = vmatprep.subr.bf16.mxu1 %v5020_v41  ;;  %v1367_v46 = vld [vmem:[#allocation7 + $0x15d8] sm:$0xff]  ;;  %v1356_v50 = vld [vmem:[#allocation7 + $0x1580] sm:$0xff] }
 0x1f3   :  { %v1364_v41 = vld [vmem:[#allocation7 + $0x15c0] sm:$0xff]  ;;  %v5040_v52 = vpack.c.bf16 %v1367_v46, %v1359_v45  ;;  %v1437_v45 = vld [vmem:[#allocation7 + $0x1808] sm:$0xff] }
 0x1f4   :  { %v4786_v60 = vpack.c.bf16 %v1364_v41, %v1356_v50  ;;  %v1445_v46 = vld [vmem:[#allocation7 + $0x1848] sm:$0xff]  ;;  %v5058_v41 = vpack.c.bf16 %v1430_v44, %v1422_v43  ;;  %v1500_v44 = vld [vmem:[#allocation7 + $0x1a00] sm:$0xff] }
 0x1f5   :  { %4767 = vmatpush1.bf16.msra.mxu0 %v4766_v58  ;;  %5023 = vmatpush1.bf16.msra.mxu1 %v5022_v59  ;;  %v1375_v58 = vld [vmem:[#allocation7 + $0x1618] sm:$0xff]  ;;  %v4804_v53 = vpack.c.bf16 %v1445_v46, %v1437_v45  ;;  %v1508_v45 = vld [vmem:[#allocation7 + $0x1a40] sm:$0xff] }
 0x1f6   :  { %4769 = vmatprep.subr.bf16.mxu0 %v4768_v62  ;;  %5025 = vmatprep.subr.bf16.mxu1 %v5024_v63  ;;  %v1383_v59 = vld [vmem:[#allocation7 + $0x1658] sm:$0xff]  ;;  %v1372_v62 = vld [vmem:[#allocation7 + $0x1600] sm:$0xff] }
 0x1f7   :  { %v1380_v63 = vld [vmem:[#allocation7 + $0x1640] sm:$0xff]  ;;  %v5044_v1 = vpack.c.bf16 %v1383_v59, %v1375_v58  ;;  %v1453_v58 = vld [vmem:[#allocation7 + $0x1888] sm:$0xff] }
 0x1f8   :  { %v4790_v7 = vpack.c.bf16 %v1380_v63, %v1372_v62  ;;  %v1461_v59 = vld [vmem:[#allocation7 + $0x18c8] sm:$0xff]  ;;  %v6734_v63 = vmax.f32 %v6714_v34, 0.0  ;;  %v4810_v34 = vpack.c.bf16 %v1460_v3, %v1452_v2  ;;  %v1516_v57 = vld [vmem:[#allocation7 + $0x1a80] sm:$0xff]  ;;  %v1535_v2 = vld [vmem:[#allocation7 + $0x1b18] sm:$0xff] }
 0x1f9   :  { %4771 = vmatpush1.bf16.msra.mxu0 %v4770_v5  ;;  %5027 = vmatpush1.bf16.msra.mxu1 %v5026_v6  ;;  %v1391_v5 = vld [vmem:[#allocation7 + $0x1698] sm:$0xff]  ;;  %v4808_v4 = vpack.c.bf16 %v1461_v59, %v1453_v58  ;;  %v1524_v58 = vld [vmem:[#allocation7 + $0x1ac0] sm:$0xff] }
 0x1fa   :  { %4773 = vmatprep.subr.bf16.mxu0 %v4772_v8  ;;  %5029 = vmatprep.subr.bf16.mxu1 %v5028_v9  ;;  %v1399_v6 = vld [vmem:[#allocation7 + $0x16d8] sm:$0xff]  ;;  %v1388_v8 = vld [vmem:[#allocation7 + $0x1680] sm:$0xff] }
 0x1fb   :  { %v1396_v9 = vld [vmem:[#allocation7 + $0x16c0] sm:$0xff]  ;;  %v5048_v11 = vpack.c.bf16 %v1399_v6, %v1391_v5  ;;  %v1454_v6 = vld [vmem:[#allocation7 + $0x1890] sm:$0xff]  ;;  %v1543_v3 = vld [vmem:[#allocation7 + $0x1b58] sm:$0xff] }
 0x1fc   :  { %v4794_v19 = vpack.c.bf16 %v1396_v9, %v1388_v8  ;;  %v1477_v8 = vld [vmem:[#allocation7 + $0x1948] sm:$0xff]  ;;  %v1471_v9 = vld [vmem:[#allocation7 + $0x1918] sm:$0xff] }
 0x1fd   :  { %4775 = vmatpush1.bf16.msra.mxu0 %v4774_v17  ;;  %5031 = vmatpush1.bf16.msra.mxu1 %v5030_v18  ;;  %v1407_v17 = vld [vmem:[#allocation7 + $0x1718] sm:$0xff] }
 0x1fe   :  { %4777 = vmatprep.subr.bf16.mxu0 %v4776_v21  ;;  %5033 = vmatprep.subr.bf16.mxu1 %v5032_v22  ;;  %v1415_v18 = vld [vmem:[#allocation7 + $0x1758] sm:$0xff]  ;;  %v1404_v21 = vld [vmem:[#allocation7 + $0x1700] sm:$0xff] }
 0x1ff   :  { %v1412_v22 = vld [vmem:[#allocation7 + $0x1740] sm:$0xff]  ;;  %v5052_v24 = vpack.c.bf16 %v1415_v18, %v1407_v17  ;;  %v1470_v18 = vld [vmem:[#allocation7 + $0x1910] sm:$0xff] }
 0x200   :  { %v4798_v33 = vpack.c.bf16 %v1412_v22, %v1404_v21  ;;  %v1493_v21 = vld [vmem:[#allocation7 + $0x19c8] sm:$0xff]  ;;  %v1487_v22 = vld [vmem:[#allocation7 + $0x1998] sm:$0xff] }
 0x201   :  { %4779 = vmatpush1.bf16.msra.mxu0 %v4778_v30  ;;  %5035 = vmatpush1.bf16.msra.mxu1 %v5034_v31  ;;  %v1423_v30 = vld [vmem:[#allocation7 + $0x1798] sm:$0xff] }
 0x202   :  { %4781 = vmatprep.subr.bf16.mxu0 %v4780_v36  ;;  %5037 = vmatprep.subr.bf16.mxu1 %v5036_v37  ;;  %v1431_v31 = vld [vmem:[#allocation7 + $0x17d8] sm:$0xff]  ;;  %v1420_v36 = vld [vmem:[#allocation7 + $0x1780] sm:$0xff] }
 0x203   :  { %v1428_v37 = vld [vmem:[#allocation7 + $0x17c0] sm:$0xff]  ;;  %v5056_v40 = vpack.c.bf16 %v1431_v31, %v1423_v30  ;;  %v1486_v31 = vld [vmem:[#allocation7 + $0x1990] sm:$0xff] }
 0x204   :  { %v4802_v50 = vpack.c.bf16 %v1428_v37, %v1420_v36  ;;  %v1509_v36 = vld [vmem:[#allocation7 + $0x1a48] sm:$0xff]  ;;  %v1503_v37 = vld [vmem:[#allocation7 + $0x1a18] sm:$0xff] }
 0x205   :  { %4783 = vmatpush1.bf16.msra.mxu0 %v4782_v48  ;;  %5039 = vmatpush1.bf16.msra.mxu1 %v5038_v49  ;;  %v1439_v48 = vld [vmem:[#allocation7 + $0x1818] sm:$0xff] }
 0x206   :  { %4785 = vmatprep.subr.bf16.mxu0 %v4784_v51  ;;  %5041 = vmatprep.subr.bf16.mxu1 %v5040_v52  ;;  %v1447_v49 = vld [vmem:[#allocation7 + $0x1858] sm:$0xff]  ;;  %v1436_v51 = vld [vmem:[#allocation7 + $0x1800] sm:$0xff] }
 0x207   :  { %v1444_v52 = vld [vmem:[#allocation7 + $0x1840] sm:$0xff]  ;;  %v5060_v54 = vpack.c.bf16 %v1447_v49, %v1439_v48  ;;  %v1502_v49 = vld [vmem:[#allocation7 + $0x1a10] sm:$0xff] }
 0x209   :  { %4787 = vmatpush1.bf16.msra.mxu0 %v4786_v60  ;;  %5043 = vmatpush1.bf16.msra.mxu1 %v5042_v61  ;;  %v1455_v60 = vld [vmem:[#allocation7 + $0x1898] sm:$0xff] }
 0x20a   :  { %4789 = vmatprep.subr.bf16.mxu0 %v4788_v0  ;;  %5045 = vmatprep.subr.bf16.mxu1 %v5044_v1  ;;  %v1463_v61 = vld [vmem:[#allocation7 + $0x18d8] sm:$0xff]  ;;  %v4806_v1 = vpack.c.bf16 %v1444_v52, %v1436_v51  ;;  %v1525_v51 = vld [vmem:[#allocation7 + $0x1ac8] sm:$0xff] }
 0x20b   :  { %v5064_v5 = vpack.c.bf16 %v1463_v61, %v1455_v60  ;;  %v1519_v52 = vld [vmem:[#allocation7 + $0x1a98] sm:$0xff]  ;;  %v1518_v61 = vld [vmem:[#allocation7 + $0x1a90] sm:$0xff] }
 0x20d   :  { %4791 = vmatpush1.bf16.msra.mxu0 %v4790_v7  ;;  %5047 = vmatpush1.bf16.msra.mxu1 %v5046_v14  ;;  %v1462_v7 = vld [vmem:[#allocation7 + $0x18d0] sm:$0xff]  ;;  %v1469_v14 = vld [vmem:[#allocation7 + $0x1908] sm:$0xff] }
 0x20e   :  { %4793 = vmatprep.subr.bf16.mxu0 %v4792_v10  ;;  %5049 = vmatprep.subr.bf16.mxu1 %v5048_v11  ;;  %v1479_v10 = vld [vmem:[#allocation7 + $0x1958] sm:$0xff]  ;;  %v5066_v12 = vpack.c.bf16 %v1462_v7, %v1454_v6  ;;  %v4812_v16 = vpack.c.bf16 %v1477_v8, %v1469_v14  ;;  %v1532_v6 = vld [vmem:[#allocation7 + $0x1b00] sm:$0xff]  ;;  %v5084_v8 = vpack.c.bf16 %v1543_v3, %v1535_v2  ;;  %v1598_v2 = vld [vmem:[#allocation7 + $0x1d10] sm:$0xff] }
 0x20f   :  { %v5068_v17 = vpack.c.bf16 %v1479_v10, %v1471_v9  ;;  %v1540_v7 = vld [vmem:[#allocation7 + $0x1b40] sm:$0xff]  ;;  %v1534_v9 = vld [vmem:[#allocation7 + $0x1b10] sm:$0xff] }
 0x210   :  { %v1542_v10 = vld [vmem:[#allocation7 + $0x1b50] sm:$0xff] }
 0x211   :  { %4795 = vmatpush1.bf16.msra.mxu0 %v4794_v19  ;;  %5051 = vmatpush1.bf16.msra.mxu1 %v5050_v20  ;;  %v1478_v19 = vld [vmem:[#allocation7 + $0x1950] sm:$0xff]  ;;  %v1485_v20 = vld [vmem:[#allocation7 + $0x1988] sm:$0xff] }
 0x212   :  { %4797 = vmatprep.subr.bf16.mxu0 %v4796_v23  ;;  %5053 = vmatprep.subr.bf16.mxu1 %v5052_v24  ;;  %v1495_v23 = vld [vmem:[#allocation7 + $0x19d8] sm:$0xff]  ;;  %v4814_v24 = vpack.c.bf16 %v1476_v15, %v1468_v13  ;;  %v5070_v25 = vpack.c.bf16 %v1478_v19, %v1470_v18  ;;  %v4816_v29 = vpack.c.bf16 %v1493_v21, %v1485_v20  ;;  %v1548_v18 = vld [vmem:[#allocation7 + $0x1b80] sm:$0xff]  ;;  %v1606_v3 = vld [vmem:[#allocation7 + $0x1d50] sm:$0xff] }
 0x213   :  { %v5072_v30 = vpack.c.bf16 %v1495_v23, %v1487_v22  ;;  %v1551_v13 = vld [vmem:[#allocation7 + $0x1b98] sm:$0xff]  ;;  %v1556_v19 = vld [vmem:[#allocation7 + $0x1bc0] sm:$0xff]  ;;  %v1550_v22 = vld [vmem:[#allocation7 + $0x1b90] sm:$0xff] }
 0x214   :  { %v1559_v15 = vld [vmem:[#allocation7 + $0x1bd8] sm:$0xff]  ;;  %v1558_v23 = vld [vmem:[#allocation7 + $0x1bd0] sm:$0xff] }
 0x215   :  { %4799 = vmatpush1.bf16.msra.mxu0 %v4798_v33  ;;  %5055 = vmatpush1.bf16.msra.mxu1 %v5054_v35  ;;  %v1494_v33 = vld [vmem:[#allocation7 + $0x19d0] sm:$0xff]  ;;  %v1501_v35 = vld [vmem:[#allocation7 + $0x1a08] sm:$0xff]  ;;  %v5088_v21 = vpack.c.bf16 %v1559_v15, %v1551_v13 }
 0x216   :  { %4801 = vmatprep.subr.bf16.mxu0 %v4800_v39  ;;  %5057 = vmatprep.subr.bf16.mxu1 %v5056_v40  ;;  %v1511_v39 = vld [vmem:[#allocation7 + $0x1a58] sm:$0xff]  ;;  %v4818_v40 = vpack.c.bf16 %v1492_v28, %v1484_v26  ;;  %v5074_v43 = vpack.c.bf16 %v1494_v33, %v1486_v31  ;;  %v4820_v46 = vpack.c.bf16 %v1509_v36, %v1501_v35  ;;  %v1564_v31 = vld [vmem:[#allocation7 + $0x1c00] sm:$0xff]  ;;  %v1614_v13 = vld [vmem:[#allocation7 + $0x1d90] sm:$0xff] }
 0x217   :  { %v6731_v62 = vpop.f32.mrb[4].mxu1  ;;  %v5076_v48 = vpack.c.bf16 %v1511_v39, %v1503_v37  ;;  %v1567_v26 = vld [vmem:[#allocation7 + $0x1c18] sm:$0xff]  ;;  %v1572_v33 = vld [vmem:[#allocation7 + $0x1c40] sm:$0xff]  ;;  %v1566_v37 = vld [vmem:[#allocation7 + $0x1c10] sm:$0xff] }
 0x218   :  { %v657_v0 = vpop.f32.mrb[5].mxu1  ;;  %v1575_v28 = vld [vmem:[#allocation7 + $0x1c58] sm:$0xff]  ;;  %v1574_v39 = vld [vmem:[#allocation7 + $0x1c50] sm:$0xff] }
 0x219   :  { %4803 = vmatpush1.bf16.msra.mxu0 %v4802_v50  ;;  %5059 = vmatpush1.bf16.msra.mxu1 %v5058_v41  ;;  %v6736_v11 = vmax.f32 %v657_v0, 0.0  ;;  %v1510_v50 = vld [vmem:[#allocation7 + $0x1a50] sm:$0xff]  ;;  %v1517_v41 = vld [vmem:[#allocation7 + $0x1a88] sm:$0xff]  ;;  %v5092_v36 = vpack.c.bf16 %v1575_v28, %v1567_v26 }
 0x21a   :  { %4805 = vmatprep.subr.bf16.mxu0 %v4804_v53  ;;  %5061 = vmatprep.subr.bf16.mxu1 %v5060_v54  ;;  %v1527_v53 = vld [vmem:[#allocation7 + $0x1ad8] sm:$0xff]  ;;  %v4822_v54 = vpack.c.bf16 %v1508_v45, %v1500_v44  ;;  %v5078_v56 = vpack.c.bf16 %v1510_v50, %v1502_v49  ;;  %v4824_v59 = vpack.c.bf16 %v1525_v51, %v1517_v41  ;;  %v1526_v0 = vld [vmem:[#allocation7 + $0x1ad0] sm:$0xff]  ;;  %v1580_v49 = vld [vmem:[#allocation7 + $0x1c80] sm:$0xff] }
 0x21b   :  { %v5080_v60 = vpack.c.bf16 %v1527_v53, %v1519_v52  ;;  %v1583_v44 = vld [vmem:[#allocation7 + $0x1c98] sm:$0xff]  ;;  %v1588_v50 = vld [vmem:[#allocation7 + $0x1cc0] sm:$0xff]  ;;  %v1582_v52 = vld [vmem:[#allocation7 + $0x1c90] sm:$0xff] }
 0x21c   :  { %1899 = vmatmul.mubr.f32.vlgmr.msra.gmra.mrb[2].mxu0 %v6734_v63  ;;  %2183 = vmatmul.mubr.f32.vlgmr.msra.gmra.mrb[6].mxu1 %v6734_v63  ;;  %v1591_v45 = vld [vmem:[#allocation7 + $0x1cd8] sm:$0xff]  ;;  %v1590_v53 = vld [vmem:[#allocation7 + $0x1cd0] sm:$0xff] }
 0x21d   :  { %4807 = vmatpush1.bf16.msra.mxu0 %v4806_v1  ;;  %5063 = vmatpush1.bf16.msra.mxu1 %v5062_v38  ;;  %v1533_v1 = vld [vmem:[#allocation7 + $0x1b08] sm:$0xff]  ;;  %v5096_v51 = vpack.c.bf16 %v1591_v45, %v1583_v44  ;;  %v1622_v15 = vld [vmem:[#allocation7 + $0x1dd0] sm:$0xff] }
 0x21e   :  { %4809 = vmatprep.subr.bf16.mxu0 %v4808_v4  ;;  %5065 = vmatprep.subr.bf16.mxu1 %v5064_v5  ;;  %v1541_v38 = vld [vmem:[#allocation7 + $0x1b48] sm:$0xff]  ;;  %v4826_v4 = vpack.c.bf16 %v1524_v58, %v1516_v57  ;;  %v5082_v5 = vpack.c.bf16 %v1526_v0, %v1518_v61  ;;  %v1599_v57 = vld [vmem:[#allocation7 + $0x1d18] sm:$0xff]  ;;  %v1596_v61 = vld [vmem:[#allocation7 + $0x1d00] sm:$0xff] }
 0x21f   :  { %1969 = vmatprep.mubr.f32.mxu0 %v6736_v11  ;;  %2253 = vmatprep.mubr.f32.mxu1 %v6736_v11  ;;  %v4828_v14 = vpack.c.bf16 %v1541_v38, %v1533_v1  ;;  %v1607_v58 = vld [vmem:[#allocation7 + $0x1d58] sm:$0xff]  ;;  %v1604_v0 = vld [vmem:[#allocation7 + $0x1d40] sm:$0xff]  ;;  %v1630_v26 = vld [vmem:[#allocation7 + $0x1e10] sm:$0xff] }
 0x220   :  { %v5100_v38 = vpack.c.bf16 %v1607_v58, %v1599_v57  ;;  %v1638_v28 = vld [vmem:[#allocation7 + $0x1e50] sm:$0xff] }
 0x221   :  { %4811 = vmatpush1.bf16.msra.mxu0 %v4810_v34  ;;  %5067 = vmatpush1.bf16.msra.mxu1 %v5066_v12  ;;  %v1549_v34 = vld [vmem:[#allocation7 + $0x1b88] sm:$0xff]  ;;  %v1646_v44 = vld [vmem:[#allocation7 + $0x1e90] sm:$0xff] }
 0x222   :  { %4813 = vmatprep.subr.bf16.mxu0 %v4812_v16  ;;  %5069 = vmatprep.subr.bf16.mxu1 %v5068_v17  ;;  %v1557_v12 = vld [vmem:[#allocation7 + $0x1bc8] sm:$0xff]  ;;  %v4830_v16 = vpack.c.bf16 %v1540_v7, %v1532_v6  ;;  %v5086_v17 = vpack.c.bf16 %v1542_v10, %v1534_v9  ;;  %v1615_v6 = vld [vmem:[#allocation7 + $0x1d98] sm:$0xff]  ;;  %v1612_v9 = vld [vmem:[#allocation7 + $0x1d80] sm:$0xff] }
 0x223   :  { %v4832_v20 = vpack.c.bf16 %v1557_v12, %v1549_v34  ;;  %v1623_v7 = vld [vmem:[#allocation7 + $0x1dd8] sm:$0xff]  ;;  %v1620_v10 = vld [vmem:[#allocation7 + $0x1dc0] sm:$0xff]  ;;  %v1654_v45 = vld [vmem:[#allocation7 + $0x1ed0] sm:$0xff] }
 0x224   :  { %v5104_v12 = vpack.c.bf16 %v1623_v7, %v1615_v6  ;;  %v1662_v57 = vld [vmem:[#allocation7 + $0x1f10] sm:$0xff] }
 0x225   :  { %4815 = vmatpush1.bf16.msra.mxu0 %v4814_v24  ;;  %5071 = vmatpush1.bf16.msra.mxu1 %v5070_v25  ;;  %v1565_v24 = vld [vmem:[#allocation7 + $0x1c08] sm:$0xff]  ;;  %v1670_v58 = vld [vmem:[#allocation7 + $0x1f50] sm:$0xff] }
 0x226   :  { %4817 = vmatprep.subr.bf16.mxu0 %v4816_v29  ;;  %5073 = vmatprep.subr.bf16.mxu1 %v5072_v30  ;;  %v1573_v25 = vld [vmem:[#allocation7 + $0x1c48] sm:$0xff]  ;;  %v4834_v29 = vpack.c.bf16 %v1556_v19, %v1548_v18  ;;  %v5090_v30 = vpack.c.bf16 %v1558_v23, %v1550_v22  ;;  %v1631_v18 = vld [vmem:[#allocation7 + $0x1e18] sm:$0xff]  ;;  %v1628_v22 = vld [vmem:[#allocation7 + $0x1e00] sm:$0xff] }
 0x227   :  { %v4836_v35 = vpack.c.bf16 %v1573_v25, %v1565_v24  ;;  %v1639_v19 = vld [vmem:[#allocation7 + $0x1e58] sm:$0xff]  ;;  %v1636_v23 = vld [vmem:[#allocation7 + $0x1e40] sm:$0xff]  ;;  %v1678_v6 = vld [vmem:[#allocation7 + $0x1f90] sm:$0xff] }
 0x228   :  { %v5108_v25 = vpack.c.bf16 %v1639_v19, %v1631_v18  ;;  %v1686_v7 = vld [vmem:[#allocation7 + $0x1fd0] sm:$0xff] }
 0x229   :  { %4819 = vmatpush1.bf16.msra.mxu0 %v4818_v40  ;;  %5075 = vmatpush1.bf16.msra.mxu1 %v5074_v43  ;;  %v1581_v40 = vld [vmem:[#allocation7 + $0x1c88] sm:$0xff]  ;;  %v674_v18 = vld [vmem:[#allocation7 + $0x30] sm:$0xff] }
 0x22a   :  { %4821 = vmatprep.subr.bf16.mxu0 %v4820_v46  ;;  %5077 = vmatprep.subr.bf16.mxu1 %v5076_v48  ;;  %v1589_v43 = vld [vmem:[#allocation7 + $0x1cc8] sm:$0xff]  ;;  %v4838_v46 = vpack.c.bf16 %v1572_v33, %v1564_v31  ;;  %v5094_v48 = vpack.c.bf16 %v1574_v39, %v1566_v37  ;;  %v1647_v31 = vld [vmem:[#allocation7 + $0x1e98] sm:$0xff]  ;;  %v1644_v37 = vld [vmem:[#allocation7 + $0x1e80] sm:$0xff] }
 0x22b   :  { %v4840_v41 = vpack.c.bf16 %v1589_v43, %v1581_v40  ;;  %v1655_v33 = vld [vmem:[#allocation7 + $0x1ed8] sm:$0xff]  ;;  %v1652_v39 = vld [vmem:[#allocation7 + $0x1ec0] sm:$0xff]  ;;  %v682_v19 = vld [vmem:[#allocation7 + $0x70] sm:$0xff] }
 0x22c   :  { %v5112_v43 = vpack.c.bf16 %v1655_v33, %v1647_v31 }
 0x22d   :  { %4823 = vmatpush1.bf16.msra.mxu0 %v4822_v54  ;;  %5079 = vmatpush1.bf16.msra.mxu1 %v5078_v56  ;;  %v1597_v54 = vld [vmem:[#allocation7 + $0x1d08] sm:$0xff] }
 0x22e   :  { %4825 = vmatprep.subr.bf16.mxu0 %v4824_v59  ;;  %5081 = vmatprep.subr.bf16.mxu1 %v5080_v60  ;;  %v1605_v56 = vld [vmem:[#allocation7 + $0x1d48] sm:$0xff]  ;;  %v4842_v59 = vpack.c.bf16 %v1588_v50, %v1580_v49  ;;  %v5098_v60 = vpack.c.bf16 %v1590_v53, %v1582_v52  ;;  %v1663_v49 = vld [vmem:[#allocation7 + $0x1f18] sm:$0xff]  ;;  %v1660_v52 = vld [vmem:[#allocation7 + $0x1f00] sm:$0xff] }
 0x22f   :  { %v4844_v1 = vpack.c.bf16 %v1605_v56, %v1597_v54  ;;  %v1671_v50 = vld [vmem:[#allocation7 + $0x1f58] sm:$0xff]  ;;  %v1668_v53 = vld [vmem:[#allocation7 + $0x1f40] sm:$0xff] }
 0x230   :  { %v5116_v56 = vpack.c.bf16 %v1671_v50, %v1663_v49  ;;  %v714_v50 = vld [vmem:[#allocation7 + $0x170] sm:$0xff] }
 0x231   :  { %4827 = vmatpush1.bf16.msra.mxu0 %v4826_v4  ;;  %5083 = vmatpush1.bf16.msra.mxu1 %v5082_v5  ;;  %v1613_v4 = vld [vmem:[#allocation7 + $0x1d88] sm:$0xff] }
 0x232   :  { %4829 = vmatprep.subr.bf16.mxu0 %v4828_v14  ;;  %5085 = vmatprep.subr.bf16.mxu1 %v5084_v8  ;;  %v1621_v5 = vld [vmem:[#allocation7 + $0x1dc8] sm:$0xff]  ;;  %v4846_v14 = vpack.c.bf16 %v1604_v0, %v1596_v61  ;;  %v5102_v8 = vpack.c.bf16 %v1606_v3, %v1598_v2  ;;  %v1679_v61 = vld [vmem:[#allocation7 + $0x1f98] sm:$0xff]  ;;  %v1676_v2 = vld [vmem:[#allocation7 + $0x1f80] sm:$0xff] }
 0x233   :  { %v4848_v34 = vpack.c.bf16 %v1621_v5, %v1613_v4  ;;  %v1687_v0 = vld [vmem:[#allocation7 + $0x1fd8] sm:$0xff]  ;;  %v1684_v3 = vld [vmem:[#allocation7 + $0x1fc0] sm:$0xff] }
 0x234   :  { %v5120_v5 = vpack.c.bf16 %v1687_v0, %v1679_v61  ;;  %v730_v61 = vld [vmem:[#allocation7 + $0x1f0] sm:$0xff]  ;;  %v737_v0 = vld [vmem:[#allocation7 + $0x228] sm:$0xff] }
 0x235   :  { %4831 = vmatpush1.bf16.msra.mxu0 %v4830_v16  ;;  %5087 = vmatpush1.bf16.msra.mxu1 %v5086_v17  ;;  %v1629_v16 = vld [vmem:[#allocation7 + $0x1e08] sm:$0xff] }
 0x236   :  { %4833 = vmatprep.subr.bf16.mxu0 %v4832_v20  ;;  %5089 = vmatprep.subr.bf16.mxu1 %v5088_v21  ;;  %v1637_v17 = vld [vmem:[#allocation7 + $0x1e48] sm:$0xff]  ;;  %v4850_v20 = vpack.c.bf16 %v1620_v10, %v1612_v9  ;;  %v5106_v21 = vpack.c.bf16 %v1622_v15, %v1614_v13  ;;  %v675_v9 = vld [vmem:[#allocation7 + $0x38] sm:$0xff] }
 0x237   :  { %v4852_v24 = vpack.c.bf16 %v1637_v17, %v1629_v16  ;;  %v683_v10 = vld [vmem:[#allocation7 + $0x78] sm:$0xff]  ;;  %v672_v16 = vld [vmem:[#allocation7 + $0x20] sm:$0xff] }
 0x238   :  { %v5380_v15 = vpack.c.bf16 %v683_v10, %v675_v9  ;;  %v680_v17 = vld [vmem:[#allocation7 + $0x60] sm:$0xff]  ;;  %v746_v9 = vld [vmem:[#allocation7 + $0x270] sm:$0xff]  ;;  %v753_v10 = vld [vmem:[#allocation7 + $0x2a8] sm:$0xff] }
 0x239   :  { %4835 = vmatpush1.bf16.msra.mxu0 %v4834_v29  ;;  %5091 = vmatpush1.bf16.msra.mxu1 %v5090_v30  ;;  %v1645_v29 = vld [vmem:[#allocation7 + $0x1e88] sm:$0xff] }
 0x23a   :  { %4837 = vmatprep.subr.bf16.mxu0 %v4836_v35  ;;  %5093 = vmatprep.subr.bf16.mxu1 %v5092_v36  ;;  %v1653_v30 = vld [vmem:[#allocation7 + $0x1ec8] sm:$0xff]  ;;  %v4854_v35 = vpack.c.bf16 %v1636_v23, %v1628_v22  ;;  %v5110_v36 = vpack.c.bf16 %v1638_v28, %v1630_v26  ;;  %v691_v23 = vld [vmem:[#allocation7 + $0xb8] sm:$0xff]  ;;  %v5382_v26 = vpack.c.bf16 %v682_v19, %v674_v18  ;;  %v688_v28 = vld [vmem:[#allocation7 + $0xa0] sm:$0xff] }
 0x23b   :  { %v4856_v40 = vpack.c.bf16 %v1653_v30, %v1645_v29  ;;  %v697_v22 = vld [vmem:[#allocation7 + $0xe8] sm:$0xff]  ;;  %v696_v29 = vld [vmem:[#allocation7 + $0xe0] sm:$0xff]  ;;  %v690_v30 = vld [vmem:[#allocation7 + $0xb0] sm:$0xff] }
 0x23c   :  { %v752_v18 = vld [vmem:[#allocation7 + $0x2a0] sm:$0xff] }
 0x23d   :  { %4839 = vmatpush1.bf16.msra.mxu0 %v4838_v46  ;;  %5095 = vmatpush1.bf16.msra.mxu1 %v5094_v48  ;;  %v1661_v46 = vld [vmem:[#allocation7 + $0x1f08] sm:$0xff]  ;;  %v760_v19 = vld [vmem:[#allocation7 + $0x2e0] sm:$0xff] }
 0x23e   :  { %4841 = vmatprep.subr.bf16.mxu0 %v4840_v41  ;;  %5097 = vmatprep.subr.bf16.mxu1 %v5096_v51  ;;  %v1669_v48 = vld [vmem:[#allocation7 + $0x1f48] sm:$0xff]  ;;  %v4858_v41 = vpack.c.bf16 %v1652_v39, %v1644_v37  ;;  %v5114_v51 = vpack.c.bf16 %v1654_v45, %v1646_v44  ;;  %v715_v39 = vld [vmem:[#allocation7 + $0x178] sm:$0xff]  ;;  %v704_v45 = vld [vmem:[#allocation7 + $0x120] sm:$0xff] }
 0x23f   :  { %v4860_v54 = vpack.c.bf16 %v1669_v48, %v1661_v46  ;;  %v713_v37 = vld [vmem:[#allocation7 + $0x168] sm:$0xff]  ;;  %v712_v46 = vld [vmem:[#allocation7 + $0x160] sm:$0xff]  ;;  %v706_v48 = vld [vmem:[#allocation7 + $0x130] sm:$0xff] }
 0x241   :  { %4843 = vmatpush1.bf16.msra.mxu0 %v4842_v59  ;;  %5099 = vmatpush1.bf16.msra.mxu1 %v5098_v60  ;;  %v1677_v59 = vld [vmem:[#allocation7 + $0x1f88] sm:$0xff] }
 0x242   :  { %4845 = vmatprep.subr.bf16.mxu0 %v4844_v1  ;;  %5101 = vmatprep.subr.bf16.mxu1 %v5100_v38  ;;  %v1685_v60 = vld [vmem:[#allocation7 + $0x1fc8] sm:$0xff]  ;;  %v4862_v1 = vpack.c.bf16 %v1668_v53, %v1660_v52  ;;  %v5118_v38 = vpack.c.bf16 %v1670_v58, %v1662_v57  ;;  %v723_v52 = vld [vmem:[#allocation7 + $0x1b8] sm:$0xff]  ;;  %v728_v58 = vld [vmem:[#allocation7 + $0x1e0] sm:$0xff] }
 0x243   :  { %v4864_v4 = vpack.c.bf16 %v1685_v60, %v1677_v59  ;;  %v731_v53 = vld [vmem:[#allocation7 + $0x1f8] sm:$0xff]  ;;  %v722_v59 = vld [vmem:[#allocation7 + $0x1b0] sm:$0xff] }
 0x244   :  { %v5392_v60 = vpack.c.bf16 %v731_v53, %v723_v52  ;;  %v794_v52 = vld [vmem:[#allocation7 + $0x3f0] sm:$0xff]  ;;  %v801_v53 = vld [vmem:[#allocation7 + $0x428] sm:$0xff] }
 0x245   :  { %4847 = vmatpush1.bf16.msra.mxu0 %v4846_v14  ;;  %5103 = vmatpush1.bf16.msra.mxu1 %v5102_v8  ;;  %v673_v14 = vld [vmem:[#allocation7 + $0x28] sm:$0xff] }
 0x246   :  { %4849 = vmatprep.subr.bf16.mxu0 %v4848_v34  ;;  %5105 = vmatprep.subr.bf16.mxu1 %v5104_v12  ;;  %v681_v8 = vld [vmem:[#allocation7 + $0x68] sm:$0xff]  ;;  %v4866_v34 = vpack.c.bf16 %v1684_v3, %v1676_v2  ;;  %v5122_v12 = vpack.c.bf16 %v1686_v7, %v1678_v6  ;;  %v747_v2 = vld [vmem:[#allocation7 + $0x278] sm:$0xff]  ;;  %v736_v6 = vld [vmem:[#allocation7 + $0x220] sm:$0xff] }
 0x247   :  { %v5124_v13 = vpack.c.bf16 %v681_v8, %v673_v14  ;;  %v744_v7 = vld [vmem:[#allocation7 + $0x260] sm:$0xff]  ;;  %v738_v14 = vld [vmem:[#allocation7 + $0x230] sm:$0xff] }
 0x249   :  { %4851 = vmatpush1.bf16.msra.mxu0 %v4850_v20  ;;  %5107 = vmatpush1.bf16.msra.mxu1 %v5106_v21  ;;  %v689_v20 = vld [vmem:[#allocation7 + $0xa8] sm:$0xff]  ;;  %v6743_v21 = vmax.f32 %v6731_v62, 0.0  ;;  %v707_v62 = vld [vmem:[#allocation7 + $0x138] sm:$0xff] }
 0x24a   :  { %4853 = vmatprep.subr.bf16.mxu0 %v4852_v24  ;;  %5109 = vmatprep.subr.bf16.mxu1 %v5108_v25  ;;  %v699_v24 = vld [vmem:[#allocation7 + $0xf8] sm:$0xff]  ;;  %v5126_v25 = vpack.c.bf16 %v680_v17, %v672_v16  ;;  %v5128_v31 = vpack.c.bf16 %v697_v22, %v689_v20  ;;  %v5388_v49 = vpack.c.bf16 %v715_v39, %v707_v62  ;;  %v754_v20 = vld [vmem:[#allocation7 + $0x2b0] sm:$0xff]  ;;  %v785_v39 = vld [vmem:[#allocation7 + $0x3a8] sm:$0xff] }
 0x24b   :  { %v5384_v33 = vpack.c.bf16 %v699_v24, %v691_v23  ;;  %v5398_v16 = vpack.c.bf16 %v746_v9, %v738_v14  ;;  %v762_v23 = vld [vmem:[#allocation7 + $0x2f0] sm:$0xff]  ;;  %v769_v24 = vld [vmem:[#allocation7 + $0x328] sm:$0xff]  ;;  %v824_v9 = vld [vmem:[#allocation7 + $0x4e0] sm:$0xff] }
 0x24c   :  { %v778_v62 = vld [vmem:[#allocation7 + $0x370] sm:$0xff] }
 0x24d   :  { %4855 = vmatpush1.bf16.msra.mxu0 %v4854_v35  ;;  %5111 = vmatpush1.bf16.msra.mxu1 %v5110_v36  ;;  %v698_v35 = vld [vmem:[#allocation7 + $0xf0] sm:$0xff]  ;;  %v705_v36 = vld [vmem:[#allocation7 + $0x128] sm:$0xff] }
 0x24e   :  { %4857 = vmatprep.subr.bf16.mxu0 %v4856_v40  ;;  %5113 = vmatprep.subr.bf16.mxu1 %v5112_v43  ;;  %v5130_v40 = vpack.c.bf16 %v696_v29, %v688_v28  ;;  %v5386_v43 = vpack.c.bf16 %v698_v35, %v690_v30  ;;  %v5132_v44 = vpack.c.bf16 %v713_v37, %v705_v36  ;;  %v779_v28 = vld [vmem:[#allocation7 + $0x378] sm:$0xff]  ;;  %v776_v35 = vld [vmem:[#allocation7 + $0x360] sm:$0xff]  ;;  %v770_v36 = vld [vmem:[#allocation7 + $0x330] sm:$0xff] }
 0x24f   :  { %v5146_v29 = vpack.c.bf16 %v760_v19, %v752_v18  ;;  %v5402_v30 = vpack.c.bf16 %v762_v23, %v754_v20  ;;  %v840_v23 = vld [vmem:[#allocation7 + $0x560] sm:$0xff] }
 0x251   :  { %4859 = vmatpush1.bf16.msra.mxu0 %v4858_v41  ;;  %5115 = vmatpush1.bf16.msra.mxu1 %v5114_v51  ;;  %v721_v41 = vld [vmem:[#allocation7 + $0x1a8] sm:$0xff] }
 0x252   :  { %4861 = vmatprep.subr.bf16.mxu0 %v4860_v54  ;;  %5117 = vmatprep.subr.bf16.mxu1 %v5116_v56  ;;  %v729_v51 = vld [vmem:[#allocation7 + $0x1e8] sm:$0xff]  ;;  %v5134_v54 = vpack.c.bf16 %v712_v46, %v704_v45  ;;  %v5390_v56 = vpack.c.bf16 %v714_v50, %v706_v48  ;;  %v5406_v46 = vpack.c.bf16 %v778_v62, %v770_v36  ;;  %v792_v50 = vld [vmem:[#allocation7 + $0x3e0] sm:$0xff] }
 0x253   :  { %v5136_v57 = vpack.c.bf16 %v729_v51, %v721_v41  ;;  %v786_v41 = vld [vmem:[#allocation7 + $0x3b0] sm:$0xff]  ;;  %v856_v62 = vld [vmem:[#allocation7 + $0x5e0] sm:$0xff] }
 0x255   :  { %4863 = vmatpush1.bf16.msra.mxu0 %v4862_v1  ;;  %5119 = vmatpush1.bf16.msra.mxu1 %v5118_v38  ;;  %v745_v1 = vld [vmem:[#allocation7 + $0x268] sm:$0xff]  ;;  %v739_v38 = vld [vmem:[#allocation7 + $0x238] sm:$0xff] }
 0x256   :  { %4865 = vmatprep.subr.bf16.mxu0 %v4864_v4  ;;  %5121 = vmatprep.subr.bf16.mxu1 %v5120_v5  ;;  %v5394_v4 = vpack.c.bf16 %v730_v61, %v722_v59  ;;  %v5140_v5 = vpack.c.bf16 %v745_v1, %v737_v0  ;;  %v5396_v8 = vpack.c.bf16 %v747_v2, %v739_v38  ;;  %v808_v61 = vld [vmem:[#allocation7 + $0x460] sm:$0xff]  ;;  %v802_v0 = vld [vmem:[#allocation7 + $0x430] sm:$0xff]  ;;  %v817_v2 = vld [vmem:[#allocation7 + $0x4a8] sm:$0xff] }
 0x257   :  { %v810_v38 = vld [vmem:[#allocation7 + $0x470] sm:$0xff] }
 0x259   :  { %4867 = vmatpush1.bf16.msra.mxu0 %v4866_v34  ;;  %5123 = vmatpush1.bf16.msra.mxu1 %v5122_v12  ;;  %v761_v34 = vld [vmem:[#allocation7 + $0x2e8] sm:$0xff]  ;;  %v755_v12 = vld [vmem:[#allocation7 + $0x2b8] sm:$0xff] }
 0x25a   :  { %5125 = vmatprep.subr.bf16.mxu0 %v5124_v13  ;;  %5381 = vmatprep.subr.bf16.mxu1 %v5380_v15  ;;  %v763_v13 = vld [vmem:[#allocation7 + $0x2f8] sm:$0xff]  ;;  %v5142_v15 = vpack.c.bf16 %v744_v7, %v736_v6  ;;  %v5144_v17 = vpack.c.bf16 %v761_v34, %v753_v10  ;;  %v5414_v7 = vpack.c.bf16 %v810_v38, %v802_v0  ;;  %v818_v10 = vld [vmem:[#allocation7 + $0x4b0] sm:$0xff]  ;;  %v888_v38 = vld [vmem:[#allocation7 + $0x6e0] sm:$0xff] }
 0x25b   :  { %v5400_v22 = vpack.c.bf16 %v763_v13, %v755_v12  ;;  %v826_v12 = vld [vmem:[#allocation7 + $0x4f0] sm:$0xff]  ;;  %v833_v13 = vld [vmem:[#allocation7 + $0x528] sm:$0xff] }
 0x25c   :  { %1970 = vmatmul.mubr.f32.vlgmr.msra.gmra.mrb[2].mxu0 %v6743_v21  ;;  %2254 = vmatmul.mubr.f32.vlgmr.msra.gmra.mrb[6].mxu1 %v6743_v21  ;;  %v5418_v19 = vpack.c.bf16 %v826_v12, %v818_v10  ;;  %v904_v12 = vld [vmem:[#allocation7 + $0x760] sm:$0xff] }
 0x25d   :  { %5127 = vmatpush1.bf16.msra.mxu0 %v5126_v25  ;;  %2324 = vmatprep.mubr.f32.mxu0 %v6706_v27  ;;  %v777_v25 = vld [vmem:[#allocation7 + $0x368] sm:$0xff] }
 0x25e   :  { %5383 = vmatpush1.bf16.msra.mxu1 %v5382_v26  ;;  %2608 = vmatprep.mubr.f32.mxu1 %v6706_v27  ;;  %v720_v27 = vld [vmem:[#allocation7 + $0x1a0] sm:$0xff]  ;;  %v771_v26 = vld [vmem:[#allocation7 + $0x338] sm:$0xff] }
 0x25f   :  { %5129 = vmatprep.subr.bf16.mxu0 %v5128_v31  ;;  %5385 = vmatprep.subr.bf16.mxu1 %v5384_v33  ;;  %v5138_v3 = vpack.c.bf16 %v728_v58, %v720_v27  ;;  %v5148_v31 = vpack.c.bf16 %v777_v25, %v769_v24  ;;  %v768_v33 = vld [vmem:[#allocation7 + $0x320] sm:$0xff]  ;;  %v5404_v37 = vpack.c.bf16 %v779_v28, %v771_v26  ;;  %v834_v24 = vld [vmem:[#allocation7 + $0x530] sm:$0xff]  ;;  %v849_v28 = vld [vmem:[#allocation7 + $0x5a8] sm:$0xff] }
 0x260   :  { %v5150_v45 = vpack.c.bf16 %v776_v35, %v768_v33  ;;  %v5410_v58 = vpack.c.bf16 %v794_v52, %v786_v41  ;;  %v842_v26 = vld [vmem:[#allocation7 + $0x570] sm:$0xff]  ;;  %v872_v52 = vld [vmem:[#allocation7 + $0x660] sm:$0xff] }
 0x261   :  { %5131 = vmatpush1.bf16.msra.mxu0 %v5130_v40  ;;  %v793_v40 = vld [vmem:[#allocation7 + $0x3e8] sm:$0xff]  ;;  %v5422_v35 = vpack.c.bf16 %v842_v26, %v834_v24  ;;  %v920_v26 = vld [vmem:[#allocation7 + $0x7e0] sm:$0xff] }
 0x262   :  { %5387 = vmatpush1.bf16.msra.mxu1 %v5386_v43  ;;  %5133 = vmatprep.subr.bf16.mxu0 %v5132_v44  ;;  %v787_v43 = vld [vmem:[#allocation7 + $0x3b8] sm:$0xff]  ;;  %v5152_v48 = vpack.c.bf16 %v793_v40, %v785_v39  ;;  %v850_v39 = vld [vmem:[#allocation7 + $0x5b0] sm:$0xff] }
 0x263   :  { %5389 = vmatprep.subr.bf16.mxu1 %v5388_v49  ;;  %v795_v44 = vld [vmem:[#allocation7 + $0x3f8] sm:$0xff]  ;;  %v784_v49 = vld [vmem:[#allocation7 + $0x3a0] sm:$0xff] }
 0x264   :  { %v5408_v51 = vpack.c.bf16 %v795_v44, %v787_v43  ;;  %v5154_v27 = vpack.c.bf16 %v792_v50, %v784_v49  ;;  %v858_v43 = vld [vmem:[#allocation7 + $0x5f0] sm:$0xff]  ;;  %v865_v44 = vld [vmem:[#allocation7 + $0x628] sm:$0xff] }
 0x265   :  { %5135 = vmatpush1.bf16.msra.mxu0 %v5134_v54  ;;  %v809_v54 = vld [vmem:[#allocation7 + $0x468] sm:$0xff]  ;;  %v5426_v50 = vpack.c.bf16 %v858_v43, %v850_v39  ;;  %v936_v43 = vld [vmem:[#allocation7 + $0x860] sm:$0xff] }
 0x266   :  { %5391 = vmatpush1.bf16.msra.mxu1 %v5390_v56  ;;  %5137 = vmatprep.subr.bf16.mxu0 %v5136_v57  ;;  %v803_v56 = vld [vmem:[#allocation7 + $0x438] sm:$0xff]  ;;  %v5156_v59 = vpack.c.bf16 %v809_v54, %v801_v53  ;;  %v866_v53 = vld [vmem:[#allocation7 + $0x630] sm:$0xff] }
 0x267   :  { %5393 = vmatprep.subr.bf16.mxu1 %v5392_v60  ;;  %v811_v57 = vld [vmem:[#allocation7 + $0x478] sm:$0xff]  ;;  %v800_v60 = vld [vmem:[#allocation7 + $0x420] sm:$0xff] }
 0x268   :  { %v5412_v1 = vpack.c.bf16 %v811_v57, %v803_v56  ;;  %v5158_v6 = vpack.c.bf16 %v808_v61, %v800_v60  ;;  %v874_v56 = vld [vmem:[#allocation7 + $0x670] sm:$0xff]  ;;  %v881_v57 = vld [vmem:[#allocation7 + $0x6a8] sm:$0xff] }
 0x269   :  { %5139 = vmatpush1.bf16.msra.mxu0 %v5138_v3  ;;  %v825_v3 = vld [vmem:[#allocation7 + $0x4e8] sm:$0xff]  ;;  %v5430_v61 = vpack.c.bf16 %v874_v56, %v866_v53  ;;  %v944_v53 = vld [vmem:[#allocation7 + $0x8a0] sm:$0xff]  ;;  %v946_v56 = vld [vmem:[#allocation7 + $0x8b0] sm:$0xff] }
 0x26a   :  { %5395 = vmatpush1.bf16.msra.mxu1 %v5394_v4  ;;  %5141 = vmatprep.subr.bf16.mxu0 %v5140_v5  ;;  %v819_v4 = vld [vmem:[#allocation7 + $0x4b8] sm:$0xff]  ;;  %v5160_v14 = vpack.c.bf16 %v825_v3, %v817_v2  ;;  %v882_v2 = vld [vmem:[#allocation7 + $0x6b0] sm:$0xff] }
 0x26b   :  { %5397 = vmatprep.subr.bf16.mxu1 %v5396_v8  ;;  %v827_v5 = vld [vmem:[#allocation7 + $0x4f8] sm:$0xff]  ;;  %v816_v8 = vld [vmem:[#allocation7 + $0x4a0] sm:$0xff] }
 0x26c   :  { %v5416_v34 = vpack.c.bf16 %v827_v5, %v819_v4  ;;  %v5162_v18 = vpack.c.bf16 %v824_v9, %v816_v8  ;;  %v890_v4 = vld [vmem:[#allocation7 + $0x6f0] sm:$0xff]  ;;  %v897_v5 = vld [vmem:[#allocation7 + $0x728] sm:$0xff] }
 0x26d   :  { %5143 = vmatpush1.bf16.msra.mxu0 %v5142_v15  ;;  %v841_v15 = vld [vmem:[#allocation7 + $0x568] sm:$0xff]  ;;  %v5434_v9 = vpack.c.bf16 %v890_v4, %v882_v2  ;;  %v968_v4 = vld [vmem:[#allocation7 + $0x960] sm:$0xff] }
 0x26e   :  { %5399 = vmatpush1.bf16.msra.mxu1 %v5398_v16  ;;  %5145 = vmatprep.subr.bf16.mxu0 %v5144_v17  ;;  %v835_v16 = vld [vmem:[#allocation7 + $0x538] sm:$0xff]  ;;  %v5164_v20 = vpack.c.bf16 %v841_v15, %v833_v13  ;;  %v898_v13 = vld [vmem:[#allocation7 + $0x730] sm:$0xff] }
 0x26f   :  { %5401 = vmatprep.subr.bf16.mxu1 %v5400_v22  ;;  %v843_v17 = vld [vmem:[#allocation7 + $0x578] sm:$0xff]  ;;  %v832_v22 = vld [vmem:[#allocation7 + $0x520] sm:$0xff] }
 0x270   :  { %v5420_v25 = vpack.c.bf16 %v843_v17, %v835_v16  ;;  %v5166_v33 = vpack.c.bf16 %v840_v23, %v832_v22  ;;  %v906_v16 = vld [vmem:[#allocation7 + $0x770] sm:$0xff]  ;;  %v913_v17 = vld [vmem:[#allocation7 + $0x7a8] sm:$0xff] }
 0x271   :  { %5147 = vmatpush1.bf16.msra.mxu0 %v5146_v29  ;;  %v857_v29 = vld [vmem:[#allocation7 + $0x5e8] sm:$0xff]  ;;  %v5438_v23 = vpack.c.bf16 %v906_v16, %v898_v13  ;;  %v976_v13 = vld [vmem:[#allocation7 + $0x9a0] sm:$0xff]  ;;  %v978_v16 = vld [vmem:[#allocation7 + $0x9b0] sm:$0xff] }
 0x272   :  { %5403 = vmatpush1.bf16.msra.mxu1 %v5402_v30  ;;  %5149 = vmatprep.subr.bf16.mxu0 %v5148_v31  ;;  %v851_v30 = vld [vmem:[#allocation7 + $0x5b8] sm:$0xff]  ;;  %v5168_v36 = vpack.c.bf16 %v857_v29, %v849_v28  ;;  %v914_v28 = vld [vmem:[#allocation7 + $0x7b0] sm:$0xff] }
 0x273   :  { %5405 = vmatprep.subr.bf16.mxu1 %v5404_v37  ;;  %v859_v31 = vld [vmem:[#allocation7 + $0x5f8] sm:$0xff]  ;;  %v848_v37 = vld [vmem:[#allocation7 + $0x5a0] sm:$0xff] }
 0x274   :  { %v5424_v40 = vpack.c.bf16 %v859_v31, %v851_v30  ;;  %v5170_v49 = vpack.c.bf16 %v856_v62, %v848_v37  ;;  %v922_v30 = vld [vmem:[#allocation7 + $0x7f0] sm:$0xff]  ;;  %v929_v31 = vld [vmem:[#allocation7 + $0x828] sm:$0xff] }
 0x275   :  { %5151 = vmatpush1.bf16.msra.mxu0 %v5150_v45  ;;  %v873_v45 = vld [vmem:[#allocation7 + $0x668] sm:$0xff]  ;;  %v5442_v62 = vpack.c.bf16 %v922_v30, %v914_v28  ;;  %v1000_v28 = vld [vmem:[#allocation7 + $0xa60] sm:$0xff] }
 0x276   :  { %5407 = vmatpush1.bf16.msra.mxu1 %v5406_v46  ;;  %5153 = vmatprep.subr.bf16.mxu0 %v5152_v48  ;;  %v867_v46 = vld [vmem:[#allocation7 + $0x638] sm:$0xff]  ;;  %v5172_v41 = vpack.c.bf16 %v873_v45, %v865_v44  ;;  %v930_v45 = vld [vmem:[#allocation7 + $0x830] sm:$0xff] }
 0x277   :  { %5409 = vmatprep.subr.bf16.mxu1 %v5408_v51  ;;  %v875_v48 = vld [vmem:[#allocation7 + $0x678] sm:$0xff]  ;;  %v864_v51 = vld [vmem:[#allocation7 + $0x620] sm:$0xff] }
 0x278   :  { %v5428_v54 = vpack.c.bf16 %v875_v48, %v867_v46  ;;  %v5174_v60 = vpack.c.bf16 %v872_v52, %v864_v51  ;;  %v938_v46 = vld [vmem:[#allocation7 + $0x870] sm:$0xff]  ;;  %v945_v48 = vld [vmem:[#allocation7 + $0x8a8] sm:$0xff]  ;;  %v955_v51 = vld [vmem:[#allocation7 + $0x8f8] sm:$0xff] }
 0x279   :  { %5155 = vmatpush1.bf16.msra.mxu0 %v5154_v27  ;;  %v889_v27 = vld [vmem:[#allocation7 + $0x6e8] sm:$0xff]  ;;  %v5446_v52 = vpack.c.bf16 %v938_v46, %v930_v45  ;;  %v1010_v45 = vld [vmem:[#allocation7 + $0xab0] sm:$0xff] }
 0x27a   :  { %5411 = vmatpush1.bf16.msra.mxu1 %v5410_v58  ;;  %5157 = vmatprep.subr.bf16.mxu0 %v5156_v59  ;;  %v883_v58 = vld [vmem:[#allocation7 + $0x6b8] sm:$0xff]  ;;  %v5176_v0 = vpack.c.bf16 %v889_v27, %v881_v57  ;;  %v954_v27 = vld [vmem:[#allocation7 + $0x8f0] sm:$0xff] }
 0x27b   :  { %5413 = vmatprep.subr.bf16.mxu1 %v5412_v1  ;;  %v891_v59 = vld [vmem:[#allocation7 + $0x6f8] sm:$0xff]  ;;  %v880_v1 = vld [vmem:[#allocation7 + $0x6a0] sm:$0xff] }
 0x27c   :  { %v5432_v3 = vpack.c.bf16 %v891_v59, %v883_v58  ;;  %v5178_v8 = vpack.c.bf16 %v888_v38, %v880_v1  ;;  %v961_v58 = vld [vmem:[#allocation7 + $0x928] sm:$0xff]  ;;  %v5450_v38 = vpack.c.bf16 %v954_v27, %v946_v56  ;;  %v1024_v56 = vld [vmem:[#allocation7 + $0xb20] sm:$0xff]  ;;  %v1026_v27 = vld [vmem:[#allocation7 + $0xb30] sm:$0xff] }
 0x27d   :  { %5159 = vmatpush1.bf16.msra.mxu0 %v5158_v6  ;;  %v905_v6 = vld [vmem:[#allocation7 + $0x768] sm:$0xff] }
 0x27e   :  { %5415 = vmatpush1.bf16.msra.mxu1 %v5414_v7  ;;  %5161 = vmatprep.subr.bf16.mxu0 %v5160_v14  ;;  %v899_v7 = vld [vmem:[#allocation7 + $0x738] sm:$0xff]  ;;  %v5180_v10 = vpack.c.bf16 %v905_v6, %v897_v5  ;;  %v969_v59 = vld [vmem:[#allocation7 + $0x968] sm:$0xff]  ;;  %v962_v5 = vld [vmem:[#allocation7 + $0x930] sm:$0xff] }
 0x27f   :  { %5417 = vmatprep.subr.bf16.mxu1 %v5416_v34  ;;  %v907_v14 = vld [vmem:[#allocation7 + $0x778] sm:$0xff]  ;;  %v896_v34 = vld [vmem:[#allocation7 + $0x720] sm:$0xff]  ;;  %v5196_v2 = vpack.c.bf16 %v969_v59, %v961_v58  ;;  %v1034_v59 = vld [vmem:[#allocation7 + $0xb70] sm:$0xff] }
 0x280   :  { %v5436_v15 = vpack.c.bf16 %v907_v14, %v899_v7  ;;  %v5182_v22 = vpack.c.bf16 %v904_v12, %v896_v34  ;;  %v970_v7 = vld [vmem:[#allocation7 + $0x970] sm:$0xff]  ;;  %v977_v14 = vld [vmem:[#allocation7 + $0x9a8] sm:$0xff] }
 0x281   :  { %5163 = vmatpush1.bf16.msra.mxu0 %v5162_v18  ;;  %v921_v18 = vld [vmem:[#allocation7 + $0x7e8] sm:$0xff]  ;;  %v5454_v34 = vpack.c.bf16 %v970_v7, %v962_v5  ;;  %v1048_v5 = vld [vmem:[#allocation7 + $0xbe0] sm:$0xff] }
 0x282   :  { %5419 = vmatpush1.bf16.msra.mxu1 %v5418_v19  ;;  %5165 = vmatprep.subr.bf16.mxu0 %v5164_v20  ;;  %v915_v19 = vld [vmem:[#allocation7 + $0x7b8] sm:$0xff]  ;;  %v5184_v24 = vpack.c.bf16 %v921_v18, %v913_v17  ;;  %v993_v18 = vld [vmem:[#allocation7 + $0xa28] sm:$0xff] }
 0x283   :  { %5421 = vmatprep.subr.bf16.mxu1 %v5420_v25  ;;  %v923_v20 = vld [vmem:[#allocation7 + $0x7f8] sm:$0xff]  ;;  %v912_v25 = vld [vmem:[#allocation7 + $0x7a0] sm:$0xff] }
 0x284   :  { %v5440_v29 = vpack.c.bf16 %v923_v20, %v915_v19  ;;  %v5186_v37 = vpack.c.bf16 %v920_v26, %v912_v25  ;;  %v1001_v19 = vld [vmem:[#allocation7 + $0xa68] sm:$0xff]  ;;  %v995_v20 = vld [vmem:[#allocation7 + $0xa38] sm:$0xff]  ;;  %v992_v26 = vld [vmem:[#allocation7 + $0xa20] sm:$0xff] }
 0x285   :  { %5167 = vmatpush1.bf16.msra.mxu0 %v5166_v33  ;;  %v937_v33 = vld [vmem:[#allocation7 + $0x868] sm:$0xff]  ;;  %v5204_v25 = vpack.c.bf16 %v1001_v19, %v993_v18  ;;  %v1066_v18 = vld [vmem:[#allocation7 + $0xc70] sm:$0xff] }
 0x286   :  { %5423 = vmatpush1.bf16.msra.mxu1 %v5422_v35  ;;  %5169 = vmatprep.subr.bf16.mxu0 %v5168_v36  ;;  %v931_v35 = vld [vmem:[#allocation7 + $0x838] sm:$0xff]  ;;  %v5188_v39 = vpack.c.bf16 %v937_v33, %v929_v31  ;;  %v1002_v31 = vld [vmem:[#allocation7 + $0xa70] sm:$0xff]  ;;  %v1009_v33 = vld [vmem:[#allocation7 + $0xaa8] sm:$0xff] }
 0x287   :  { %5425 = vmatprep.subr.bf16.mxu1 %v5424_v40  ;;  %v939_v36 = vld [vmem:[#allocation7 + $0x878] sm:$0xff]  ;;  %v928_v40 = vld [vmem:[#allocation7 + $0x820] sm:$0xff]  ;;  %v1073_v19 = vld [vmem:[#allocation7 + $0xca8] sm:$0xff] }
 0x288   :  { %v5444_v44 = vpack.c.bf16 %v939_v36, %v931_v35  ;;  %v1017_v35 = vld [vmem:[#allocation7 + $0xae8] sm:$0xff]  ;;  %v1011_v36 = vld [vmem:[#allocation7 + $0xab8] sm:$0xff] }
 0x289   :  { %5171 = vmatpush1.bf16.msra.mxu0 %v5170_v49  ;;  %v953_v49 = vld [vmem:[#allocation7 + $0x8e8] sm:$0xff] }
 0x28a   :  { %5427 = vmatpush1.bf16.msra.mxu1 %v5426_v50  ;;  %5173 = vmatprep.subr.bf16.mxu0 %v5172_v41  ;;  %v5190_v50 = vpack.c.bf16 %v936_v43, %v928_v40  ;;  %v947_v41 = vld [vmem:[#allocation7 + $0x8b8] sm:$0xff]  ;;  %v5192_v57 = vpack.c.bf16 %v953_v49, %v945_v48  ;;  %v5208_v40 = vpack.c.bf16 %v1017_v35, %v1009_v33  ;;  %v1008_v43 = vld [vmem:[#allocation7 + $0xaa0] sm:$0xff]  ;;  %v1018_v48 = vld [vmem:[#allocation7 + $0xaf0] sm:$0xff] }
 0x28b   :  { %5429 = vmatprep.subr.bf16.mxu1 %v5428_v54  ;;  %v952_v54 = vld [vmem:[#allocation7 + $0x8e0] sm:$0xff]  ;;  %v1025_v49 = vld [vmem:[#allocation7 + $0xb28] sm:$0xff]  ;;  %v1082_v33 = vld [vmem:[#allocation7 + $0xcf0] sm:$0xff] }
 0x28c   :  { %v5194_v1 = vpack.c.bf16 %v952_v54, %v944_v53  ;;  %v5466_v53 = vpack.c.bf16 %v1018_v48, %v1010_v45  ;;  %v1089_v35 = vld [vmem:[#allocation7 + $0xd28] sm:$0xff]  ;;  %v1096_v45 = vld [vmem:[#allocation7 + $0xd60] sm:$0xff] }
 0x28d   :  { %5175 = vmatpush1.bf16.msra.mxu0 %v5174_v60  ;;  %v5448_v60 = vpack.c.bf16 %v955_v51, %v947_v41  ;;  %v1027_v41 = vld [vmem:[#allocation7 + $0xb38] sm:$0xff] }
 0x28e   :  { %5431 = vmatpush1.bf16.msra.mxu1 %v5430_v61  ;;  %5177 = vmatprep.subr.bf16.mxu0 %v5176_v0  ;;  %v963_v61 = vld [vmem:[#allocation7 + $0x938] sm:$0xff] }
 0x28f   :  { %5433 = vmatprep.subr.bf16.mxu1 %v5432_v3  ;;  %v971_v0 = vld [vmem:[#allocation7 + $0x978] sm:$0xff]  ;;  %v960_v3 = vld [vmem:[#allocation7 + $0x920] sm:$0xff] }
 0x290   :  { %v5452_v6 = vpack.c.bf16 %v971_v0, %v963_v61  ;;  %v1035_v51 = vld [vmem:[#allocation7 + $0xb78] sm:$0xff]  ;;  %v1049_v61 = vld [vmem:[#allocation7 + $0xbe8] sm:$0xff] }
 0x291   :  { %5179 = vmatpush1.bf16.msra.mxu0 %v5178_v8  ;;  %v985_v8 = vld [vmem:[#allocation7 + $0x9e8] sm:$0xff]  ;;  %v5468_v58 = vpack.c.bf16 %v1035_v51, %v1027_v41  ;;  %v1043_v0 = vld [vmem:[#allocation7 + $0xbb8] sm:$0xff] }
 0x292   :  { %5435 = vmatpush1.bf16.msra.mxu1 %v5434_v9  ;;  %5181 = vmatprep.subr.bf16.mxu0 %v5180_v10  ;;  %v979_v9 = vld [vmem:[#allocation7 + $0x9b8] sm:$0xff]  ;;  %v5198_v10 = vpack.c.bf16 %v968_v4, %v960_v3  ;;  %v5200_v12 = vpack.c.bf16 %v985_v8, %v977_v14  ;;  %v1040_v4 = vld [vmem:[#allocation7 + $0xba0] sm:$0xff]  ;;  %v1050_v14 = vld [vmem:[#allocation7 + $0xbf0] sm:$0xff] }
 0x293   :  { %5437 = vmatprep.subr.bf16.mxu1 %v5436_v15  ;;  %v984_v15 = vld [vmem:[#allocation7 + $0x9e0] sm:$0xff]  ;;  %v1057_v8 = vld [vmem:[#allocation7 + $0xc28] sm:$0xff]  ;;  %v1107_v51 = vld [vmem:[#allocation7 + $0xdb8] sm:$0xff] }
 0x294   :  { %v1113_v41 = vld [vmem:[#allocation7 + $0xde8] sm:$0xff] }
 0x295   :  { %5183 = vmatpush1.bf16.msra.mxu0 %v5182_v22  ;;  %v1003_v22 = vld [vmem:[#allocation7 + $0xa78] sm:$0xff] }
 0x296   :  { %5439 = vmatpush1.bf16.msra.mxu1 %v5438_v23  ;;  %5185 = vmatprep.subr.bf16.mxu0 %v5184_v24  ;;  %v5202_v23 = vpack.c.bf16 %v984_v15, %v976_v13  ;;  %v5460_v30 = vpack.c.bf16 %v1003_v22, %v995_v20  ;;  %v1056_v15 = vld [vmem:[#allocation7 + $0xc20] sm:$0xff]  ;;  %v1081_v20 = vld [vmem:[#allocation7 + $0xce8] sm:$0xff]  ;;  %v1075_v22 = vld [vmem:[#allocation7 + $0xcb8] sm:$0xff] }
 0x297   :  { %5441 = vmatprep.subr.bf16.mxu1 %v5440_v29  ;;  %v994_v29 = vld [vmem:[#allocation7 + $0xa30] sm:$0xff] }
 0x299   :  { %5187 = vmatpush1.bf16.msra.mxu0 %v5186_v37  ;;  %v1019_v37 = vld [vmem:[#allocation7 + $0xaf8] sm:$0xff] }
 0x29a   :  { %5443 = vmatpush1.bf16.msra.mxu1 %v5442_v62  ;;  %5189 = vmatprep.subr.bf16.mxu0 %v5188_v39  ;;  %v5206_v62 = vpack.c.bf16 %v1000_v28, %v992_v26  ;;  %v5462_v39 = vpack.c.bf16 %v1002_v31, %v994_v29  ;;  %v5464_v46 = vpack.c.bf16 %v1019_v37, %v1011_v36  ;;  %v1072_v28 = vld [vmem:[#allocation7 + $0xca0] sm:$0xff]  ;;  %v1097_v36 = vld [vmem:[#allocation7 + $0xd68] sm:$0xff]  ;;  %v1091_v37 = vld [vmem:[#allocation7 + $0xd38] sm:$0xff] }
 0x29b   :  { %5445 = vmatprep.subr.bf16.mxu1 %v5444_v44  ;;  %v1016_v44 = vld [vmem:[#allocation7 + $0xae0] sm:$0xff]  ;;  %v5224_v26 = vpack.c.bf16 %v1081_v20, %v1073_v19  ;;  %v1146_v19 = vld [vmem:[#allocation7 + $0xef0] sm:$0xff]  ;;  %v1153_v20 = vld [vmem:[#allocation7 + $0xf28] sm:$0xff] }
 0x29c   :  { %2325 = vmatmul.mubr.f32.vlgmr.msra.gmra.mrb[4].mxu0 %v6708_v32  ;;  %v1080_v29 = vld [vmem:[#allocation7 + $0xce0] sm:$0xff] }
 0x29d   :  { %2609 = vmatmul.mubr.f32.vlgmr.msra.gmra.mrb[8].mxu1 %v6708_v32  ;;  %5191 = vmatpush1.bf16.msra.mxu0 %v5190_v50  ;;  %v987_v32 = vld [vmem:[#allocation7 + $0x9f8] sm:$0xff]  ;;  %v1033_v50 = vld [vmem:[#allocation7 + $0xb68] sm:$0xff] }
 0x29e   :  { %2395 = vmatprep.mubr.f32.mxu0 %v6718_v42  ;;  %5447 = vmatpush1.bf16.msra.mxu1 %v5446_v52  ;;  %v5456_v17 = vpack.c.bf16 %v987_v32, %v979_v9  ;;  %v5210_v52 = vpack.c.bf16 %v1016_v44, %v1008_v43  ;;  %v5212_v54 = vpack.c.bf16 %v1033_v50, %v1025_v49  ;;  %v1065_v9 = vld [vmem:[#allocation7 + $0xc68] sm:$0xff]  ;;  %v1059_v32 = vld [vmem:[#allocation7 + $0xc38] sm:$0xff]  ;;  %v1088_v44 = vld [vmem:[#allocation7 + $0xd20] sm:$0xff] }
 0x29f   :  { %2679 = vmatprep.mubr.f32.mxu1 %v6718_v42  ;;  %5193 = vmatprep.subr.bf16.mxu0 %v5192_v57  ;;  %v986_v42 = vld [vmem:[#allocation7 + $0x9f0] sm:$0xff]  ;;  %v1032_v57 = vld [vmem:[#allocation7 + $0xb60] sm:$0xff]  ;;  %v5220_v13 = vpack.c.bf16 %v1065_v9, %v1057_v8  ;;  %v5228_v43 = vpack.c.bf16 %v1097_v36, %v1089_v35  ;;  %v1105_v50 = vld [vmem:[#allocation7 + $0xda8] sm:$0xff] }
 0x2a0   :  { %5449 = vmatprep.subr.bf16.mxu1 %v5448_v60  ;;  %v5458_v24 = vpack.c.bf16 %v986_v42, %v978_v16  ;;  %v1041_v60 = vld [vmem:[#allocation7 + $0xba8] sm:$0xff]  ;;  %v1064_v16 = vld [vmem:[#allocation7 + $0xc60] sm:$0xff]  ;;  %v1098_v49 = vld [vmem:[#allocation7 + $0xd70] sm:$0xff] }
 0x2a1   :  { %5195 = vmatpush1.bf16.msra.mxu0 %v5194_v1  ;;  %v1051_v1 = vld [vmem:[#allocation7 + $0xbf8] sm:$0xff]  ;;  %v5216_v3 = vpack.c.bf16 %v1049_v61, %v1041_v60  ;;  %v1114_v60 = vld [vmem:[#allocation7 + $0xdf0] sm:$0xff]  ;;  %v1121_v61 = vld [vmem:[#allocation7 + $0xe28] sm:$0xff] }
 0x2a2   :  { %5451 = vmatpush1.bf16.msra.mxu1 %v5450_v38  ;;  %5197 = vmatprep.subr.bf16.mxu0 %v5196_v2  ;;  %v5214_v38 = vpack.c.bf16 %v1032_v57, %v1024_v56  ;;  %v5470_v2 = vpack.c.bf16 %v1034_v59, %v1026_v27  ;;  %v5472_v7 = vpack.c.bf16 %v1051_v1, %v1043_v0  ;;  %v1104_v57 = vld [vmem:[#allocation7 + $0xda0] sm:$0xff]  ;;  %v1129_v0 = vld [vmem:[#allocation7 + $0xe68] sm:$0xff]  ;;  %v1123_v1 = vld [vmem:[#allocation7 + $0xe38] sm:$0xff] }
 0x2a3   :  { %5453 = vmatprep.subr.bf16.mxu1 %v5452_v6  ;;  %v1042_v6 = vld [vmem:[#allocation7 + $0xbb0] sm:$0xff]  ;;  %v5232_v56 = vpack.c.bf16 %v1113_v41, %v1105_v50  ;;  %v1112_v27 = vld [vmem:[#allocation7 + $0xde0] sm:$0xff]  ;;  %v1137_v9 = vld [vmem:[#allocation7 + $0xea8] sm:$0xff] }
 0x2a4   :  { %v1130_v8 = vld [vmem:[#allocation7 + $0xe70] sm:$0xff]  ;;  %v1169_v36 = vld [vmem:[#allocation7 + $0xfa8] sm:$0xff] }
 0x2a5   :  { %5199 = vmatpush1.bf16.msra.mxu0 %v5198_v10  ;;  %v1067_v10 = vld [vmem:[#allocation7 + $0xc78] sm:$0xff]  ;;  %v1162_v35 = vld [vmem:[#allocation7 + $0xf70] sm:$0xff]  ;;  %v1185_v41 = vld [vmem:[#allocation7 + $0x1028] sm:$0xff] }
 0x2a6   :  { %5455 = vmatpush1.bf16.msra.mxu1 %v5454_v34  ;;  %5201 = vmatprep.subr.bf16.mxu0 %v5200_v12  ;;  %v5218_v34 = vpack.c.bf16 %v1048_v5, %v1040_v4  ;;  %v5474_v12 = vpack.c.bf16 %v1050_v14, %v1042_v6  ;;  %v5476_v42 = vpack.c.bf16 %v1067_v10, %v1059_v32  ;;  %v1120_v5 = vld [vmem:[#allocation7 + $0xe20] sm:$0xff]  ;;  %v1145_v32 = vld [vmem:[#allocation7 + $0xee8] sm:$0xff]  ;;  %v1139_v10 = vld [vmem:[#allocation7 + $0xeb8] sm:$0xff] }
 0x2a7   :  { %5457 = vmatprep.subr.bf16.mxu1 %v5456_v17  ;;  %v1058_v17 = vld [vmem:[#allocation7 + $0xc30] sm:$0xff]  ;;  %v5236_v4 = vpack.c.bf16 %v1129_v0, %v1121_v61  ;;  %v1128_v6 = vld [vmem:[#allocation7 + $0xe60] sm:$0xff]  ;;  %v1201_v0 = vld [vmem:[#allocation7 + $0x10a8] sm:$0xff] }
 0x2a8   :  { %v1178_v50 = vld [vmem:[#allocation7 + $0xff0] sm:$0xff] }
 0x2a9   :  { %5203 = vmatpush1.bf16.msra.mxu0 %v5202_v23  ;;  %v1083_v23 = vld [vmem:[#allocation7 + $0xcf8] sm:$0xff]  ;;  %v1194_v61 = vld [vmem:[#allocation7 + $0x1070] sm:$0xff] }
 0x2aa   :  { %5459 = vmatpush1.bf16.msra.mxu1 %v5458_v24  ;;  %5205 = vmatprep.subr.bf16.mxu0 %v5204_v25  ;;  %v5222_v24 = vpack.c.bf16 %v1064_v16, %v1056_v15  ;;  %v5478_v25 = vpack.c.bf16 %v1066_v18, %v1058_v17  ;;  %v5480_v31 = vpack.c.bf16 %v1083_v23, %v1075_v22  ;;  %v1136_v16 = vld [vmem:[#allocation7 + $0xea0] sm:$0xff]  ;;  %v1161_v22 = vld [vmem:[#allocation7 + $0xf68] sm:$0xff]  ;;  %v1155_v23 = vld [vmem:[#allocation7 + $0xf38] sm:$0xff] }
 0x2ab   :  { %5461 = vmatprep.subr.bf16.mxu1 %v5460_v30  ;;  %v1074_v30 = vld [vmem:[#allocation7 + $0xcb0] sm:$0xff]  ;;  %v5240_v15 = vpack.c.bf16 %v1145_v32, %v1137_v9  ;;  %v1144_v17 = vld [vmem:[#allocation7 + $0xee0] sm:$0xff]  ;;  %v1217_v9 = vld [vmem:[#allocation7 + $0x1128] sm:$0xff] }
 0x2ac   :  { %v1225_v32 = vld [vmem:[#allocation7 + $0x1168] sm:$0xff] }
 0x2ad   :  { %5207 = vmatpush1.bf16.msra.mxu0 %v5206_v62  ;;  %v1099_v62 = vld [vmem:[#allocation7 + $0xd78] sm:$0xff] }
 0x2ae   :  { %5463 = vmatpush1.bf16.msra.mxu1 %v5462_v39  ;;  %5209 = vmatprep.subr.bf16.mxu0 %v5208_v40  ;;  %v5226_v39 = vpack.c.bf16 %v1080_v29, %v1072_v28  ;;  %v5482_v40 = vpack.c.bf16 %v1082_v33, %v1074_v30  ;;  %v5484_v48 = vpack.c.bf16 %v1099_v62, %v1091_v37  ;;  %v1152_v29 = vld [vmem:[#allocation7 + $0xf20] sm:$0xff]  ;;  %v1177_v37 = vld [vmem:[#allocation7 + $0xfe8] sm:$0xff]  ;;  %v1171_v62 = vld [vmem:[#allocation7 + $0xfb8] sm:$0xff] }
 0x2af   :  { %5465 = vmatprep.subr.bf16.mxu1 %v5464_v46  ;;  %v1090_v46 = vld [vmem:[#allocation7 + $0xd30] sm:$0xff]  ;;  %v5244_v28 = vpack.c.bf16 %v1161_v22, %v1153_v20  ;;  %v1160_v30 = vld [vmem:[#allocation7 + $0xf60] sm:$0xff]  ;;  %v1233_v22 = vld [vmem:[#allocation7 + $0x11a8] sm:$0xff] }
 0x2b0   :  { %v1226_v20 = vld [vmem:[#allocation7 + $0x1170] sm:$0xff] }
 0x2b1   :  { %5211 = vmatpush1.bf16.msra.mxu0 %v5210_v52  ;;  %v1115_v52 = vld [vmem:[#allocation7 + $0xdf8] sm:$0xff] }
 0x2b2   :  { %5467 = vmatpush1.bf16.msra.mxu1 %v5466_v53  ;;  %5213 = vmatprep.subr.bf16.mxu0 %v5212_v54  ;;  %v5230_v53 = vpack.c.bf16 %v1096_v45, %v1088_v44  ;;  %v5486_v54 = vpack.c.bf16 %v1098_v49, %v1090_v46  ;;  %v5488_v59 = vpack.c.bf16 %v1115_v52, %v1107_v51  ;;  %v1168_v45 = vld [vmem:[#allocation7 + $0xfa0] sm:$0xff]  ;;  %v1193_v51 = vld [vmem:[#allocation7 + $0x1068] sm:$0xff]  ;;  %v1187_v52 = vld [vmem:[#allocation7 + $0x1038] sm:$0xff] }
 0x2b3   :  { %5469 = vmatprep.subr.bf16.mxu1 %v5468_v58  ;;  %v1106_v58 = vld [vmem:[#allocation7 + $0xdb0] sm:$0xff]  ;;  %v5248_v44 = vpack.c.bf16 %v1177_v37, %v1169_v36  ;;  %v1176_v46 = vld [vmem:[#allocation7 + $0xfe0] sm:$0xff]  ;;  %v1257_v36 = vld [vmem:[#allocation7 + $0x1268] sm:$0xff] }
 0x2b4   :  { %v1251_v37 = vld [vmem:[#allocation7 + $0x1238] sm:$0xff] }
 0x2b5   :  { %5215 = vmatpush1.bf16.msra.mxu0 %v5214_v38  ;;  %v1131_v38 = vld [vmem:[#allocation7 + $0xe78] sm:$0xff] }
 0x2b6   :  { %5471 = vmatpush1.bf16.msra.mxu1 %v5470_v2  ;;  %5217 = vmatprep.subr.bf16.mxu0 %v5216_v3  ;;  %v5234_v2 = vpack.c.bf16 %v1112_v27, %v1104_v57  ;;  %v5490_v3 = vpack.c.bf16 %v1114_v60, %v1106_v58  ;;  %v5492_v14 = vpack.c.bf16 %v1131_v38, %v1123_v1  ;;  %v1184_v27 = vld [vmem:[#allocation7 + $0x1020] sm:$0xff]  ;;  %v1186_v60 = vld [vmem:[#allocation7 + $0x1030] sm:$0xff]  ;;  %v1209_v1 = vld [vmem:[#allocation7 + $0x10e8] sm:$0xff] }
 0x2b7   :  { %5473 = vmatprep.subr.bf16.mxu1 %v5472_v7  ;;  %v1122_v7 = vld [vmem:[#allocation7 + $0xe30] sm:$0xff]  ;;  %v5252_v57 = vpack.c.bf16 %v1193_v51, %v1185_v41  ;;  %v1192_v58 = vld [vmem:[#allocation7 + $0x1060] sm:$0xff]  ;;  %v1273_v41 = vld [vmem:[#allocation7 + $0x12e8] sm:$0xff] }
 0x2b8   :  { %v5254_v38 = vpack.c.bf16 %v1192_v58, %v1184_v27  ;;  %v1267_v51 = vld [vmem:[#allocation7 + $0x12b8] sm:$0xff]  ;;  %v1272_v27 = vld [vmem:[#allocation7 + $0x12e0] sm:$0xff]  ;;  %v1266_v58 = vld [vmem:[#allocation7 + $0x12b0] sm:$0xff] }
 0x2b9   :  { %5219 = vmatpush1.bf16.msra.mxu0 %v5218_v34  ;;  %v1147_v34 = vld [vmem:[#allocation7 + $0xef8] sm:$0xff] }
 0x2ba   :  { %5475 = vmatpush1.bf16.msra.mxu1 %v5474_v12  ;;  %5221 = vmatprep.subr.bf16.mxu0 %v5220_v13  ;;  %v5238_v12 = vpack.c.bf16 %v1128_v6, %v1120_v5  ;;  %v5494_v13 = vpack.c.bf16 %v1130_v8, %v1122_v7  ;;  %v5496_v18 = vpack.c.bf16 %v1147_v34, %v1139_v10  ;;  %v1200_v5 = vld [vmem:[#allocation7 + $0x10a0] sm:$0xff]  ;;  %v1202_v7 = vld [vmem:[#allocation7 + $0x10b0] sm:$0xff]  ;;  %v1219_v34 = vld [vmem:[#allocation7 + $0x1138] sm:$0xff] }
 0x2bb   :  { %5477 = vmatprep.subr.bf16.mxu1 %v5476_v42  ;;  %v1138_v42 = vld [vmem:[#allocation7 + $0xeb0] sm:$0xff]  ;;  %v1208_v6 = vld [vmem:[#allocation7 + $0x10e0] sm:$0xff] }
 0x2bc   :  { %v1210_v8 = vld [vmem:[#allocation7 + $0x10f0] sm:$0xff] }
 0x2bd   :  { %5223 = vmatpush1.bf16.msra.mxu0 %v5222_v24  ;;  %v1163_v24 = vld [vmem:[#allocation7 + $0xf78] sm:$0xff] }
 0x2be   :  { %5479 = vmatpush1.bf16.msra.mxu1 %v5478_v25  ;;  %5225 = vmatprep.subr.bf16.mxu0 %v5224_v26  ;;  %v5242_v25 = vpack.c.bf16 %v1144_v17, %v1136_v16  ;;  %v5498_v26 = vpack.c.bf16 %v1146_v19, %v1138_v42  ;;  %v5500_v33 = vpack.c.bf16 %v1163_v24, %v1155_v23  ;;  %v1216_v17 = vld [vmem:[#allocation7 + $0x1120] sm:$0xff]  ;;  %v1241_v23 = vld [vmem:[#allocation7 + $0x11e8] sm:$0xff]  ;;  %v1235_v24 = vld [vmem:[#allocation7 + $0x11b8] sm:$0xff] }
 0x2bf   :  { %5481 = vmatprep.subr.bf16.mxu1 %v5480_v31  ;;  %v1154_v31 = vld [vmem:[#allocation7 + $0xf30] sm:$0xff]  ;;  %v5260_v16 = vpack.c.bf16 %v1225_v32, %v1217_v9  ;;  %v1224_v42 = vld [vmem:[#allocation7 + $0x1160] sm:$0xff]  ;;  %v1297_v9 = vld [vmem:[#allocation7 + $0x13a8] sm:$0xff] }
 0x2c0   :  { %v1305_v32 = vld [vmem:[#allocation7 + $0x13e8] sm:$0xff] }
 0x2c1   :  { %5227 = vmatpush1.bf16.msra.mxu0 %v5226_v39  ;;  %v1179_v39 = vld [vmem:[#allocation7 + $0xff8] sm:$0xff] }
 0x2c2   :  { %5483 = vmatpush1.bf16.msra.mxu1 %v5482_v40  ;;  %5229 = vmatprep.subr.bf16.mxu0 %v5228_v43  ;;  %v5246_v40 = vpack.c.bf16 %v1160_v30, %v1152_v29  ;;  %v5502_v43 = vpack.c.bf16 %v1162_v35, %v1154_v31  ;;  %v5504_v49 = vpack.c.bf16 %v1179_v39, %v1171_v62  ;;  %v1232_v29 = vld [vmem:[#allocation7 + $0x11a0] sm:$0xff]  ;;  %v1234_v31 = vld [vmem:[#allocation7 + $0x11b0] sm:$0xff]  ;;  %v1249_v35 = vld [vmem:[#allocation7 + $0x1228] sm:$0xff] }
 0x2c3   :  { %5485 = vmatprep.subr.bf16.mxu1 %v5484_v48  ;;  %v1170_v48 = vld [vmem:[#allocation7 + $0xfb0] sm:$0xff]  ;;  %v1240_v30 = vld [vmem:[#allocation7 + $0x11e0] sm:$0xff]  ;;  %v1259_v62 = vld [vmem:[#allocation7 + $0x1278] sm:$0xff] }
 0x2c4   :  { %v5266_v39 = vpack.c.bf16 %v1240_v30, %v1232_v29  ;;  %v1320_v29 = vld [vmem:[#allocation7 + $0x1460] sm:$0xff]  ;;  %v1314_v30 = vld [vmem:[#allocation7 + $0x1430] sm:$0xff] }
 0x2c5   :  { %5231 = vmatpush1.bf16.msra.mxu0 %v5230_v53  ;;  %v1195_v53 = vld [vmem:[#allocation7 + $0x1078] sm:$0xff] }
 0x2c6   :  { %5487 = vmatpush1.bf16.msra.mxu1 %v5486_v54  ;;  %5233 = vmatprep.subr.bf16.mxu0 %v5232_v56  ;;  %v5250_v54 = vpack.c.bf16 %v1176_v46, %v1168_v45  ;;  %v5506_v56 = vpack.c.bf16 %v1178_v50, %v1170_v48  ;;  %v1256_v45 = vld [vmem:[#allocation7 + $0x1260] sm:$0xff]  ;;  %v1250_v46 = vld [vmem:[#allocation7 + $0x1230] sm:$0xff]  ;;  %v5524_v48 = vpack.c.bf16 %v1259_v62, %v1251_v37  ;;  %v1265_v50 = vld [vmem:[#allocation7 + $0x12a8] sm:$0xff] }
 0x2c7   :  { %5489 = vmatprep.subr.bf16.mxu1 %v5488_v59  ;;  %v5508_v59 = vpack.c.bf16 %v1195_v53, %v1187_v52  ;;  %v1275_v52 = vld [vmem:[#allocation7 + $0x12f8] sm:$0xff] }
 0x2c8   :  { %v1339_v37 = vld [vmem:[#allocation7 + $0x14f8] sm:$0xff] }
 0x2c9   :  { %5235 = vmatpush1.bf16.msra.mxu0 %v5234_v2  ;;  %v1203_v2 = vld [vmem:[#allocation7 + $0x10b8] sm:$0xff] }
 0x2ca   :  { %5491 = vmatpush1.bf16.msra.mxu1 %v5490_v3  ;;  %5237 = vmatprep.subr.bf16.mxu0 %v5236_v4  ;;  %v1211_v3 = vld [vmem:[#allocation7 + $0x10f8] sm:$0xff]  ;;  %v5510_v4 = vpack.c.bf16 %v1194_v61, %v1186_v60  ;;  %v1274_v60 = vld [vmem:[#allocation7 + $0x12f0] sm:$0xff]  ;;  %v1281_v61 = vld [vmem:[#allocation7 + $0x1328] sm:$0xff] }
 0x2cb   :  { %5493 = vmatprep.subr.bf16.mxu1 %v5492_v14  ;;  %v5256_v14 = vpack.c.bf16 %v1209_v1, %v1201_v0  ;;  %v5512_v10 = vpack.c.bf16 %v1211_v3, %v1203_v2  ;;  %v1289_v0 = vld [vmem:[#allocation7 + $0x1368] sm:$0xff]  ;;  %v1283_v1 = vld [vmem:[#allocation7 + $0x1338] sm:$0xff]  ;;  %v5530_v3 = vpack.c.bf16 %v1274_v60, %v1266_v58 }
 0x2cc   :  { %v1361_v60 = vld [vmem:[#allocation7 + $0x15a8] sm:$0xff] }
 0x2cd   :  { %5239 = vmatpush1.bf16.msra.mxu0 %v5238_v12  ;;  %v1227_v12 = vld [vmem:[#allocation7 + $0x1178] sm:$0xff] }
 0x2ce   :  { %5495 = vmatpush1.bf16.msra.mxu1 %v5494_v13  ;;  %5241 = vmatprep.subr.bf16.mxu0 %v5240_v15  ;;  %v5258_v13 = vpack.c.bf16 %v1208_v6, %v1200_v5  ;;  %v5514_v15 = vpack.c.bf16 %v1210_v8, %v1202_v7  ;;  %v5516_v19 = vpack.c.bf16 %v1227_v12, %v1219_v34  ;;  %v1280_v5 = vld [vmem:[#allocation7 + $0x1320] sm:$0xff]  ;;  %v1282_v7 = vld [vmem:[#allocation7 + $0x1330] sm:$0xff]  ;;  %v1307_v34 = vld [vmem:[#allocation7 + $0x13f8] sm:$0xff] }
 0x2cf   :  { %5497 = vmatprep.subr.bf16.mxu1 %v5496_v18  ;;  %v1218_v18 = vld [vmem:[#allocation7 + $0x1130] sm:$0xff]  ;;  %v1288_v6 = vld [vmem:[#allocation7 + $0x1360] sm:$0xff] }
 0x2d0   :  { %v1290_v8 = vld [vmem:[#allocation7 + $0x1370] sm:$0xff]  ;;  %v5278_v12 = vpack.c.bf16 %v1288_v6, %v1280_v5  ;;  %v1368_v5 = vld [vmem:[#allocation7 + $0x15e0] sm:$0xff] }
 0x2d1   :  { %5243 = vmatpush1.bf16.msra.mxu0 %v5242_v25  ;;  %v5262_v25 = vpack.c.bf16 %v1224_v42, %v1216_v17  ;;  %v1304_v17 = vld [vmem:[#allocation7 + $0x13e0] sm:$0xff]  ;;  %v1298_v42 = vld [vmem:[#allocation7 + $0x13b0] sm:$0xff] }
 0x2d2   :  { %5499 = vmatpush1.bf16.msra.mxu1 %v5498_v26  ;;  %5245 = vmatprep.subr.bf16.mxu0 %v5244_v28  ;;  %v5518_v26 = vpack.c.bf16 %v1226_v20, %v1218_v18  ;;  %v5264_v28 = vpack.c.bf16 %v1241_v23, %v1233_v22  ;;  %v1313_v20 = vld [vmem:[#allocation7 + $0x1428] sm:$0xff]  ;;  %v1315_v23 = vld [vmem:[#allocation7 + $0x1438] sm:$0xff]  ;;  %v1362_v6 = vld [vmem:[#allocation7 + $0x15b0] sm:$0xff] }
 0x2d3   :  { %5501 = vmatprep.subr.bf16.mxu1 %v5500_v33  ;;  %v1321_v22 = vld [vmem:[#allocation7 + $0x1468] sm:$0xff] }
 0x2d5   :  { %5247 = vmatpush1.bf16.msra.mxu0 %v5246_v40 }
 0x2d6   :  { %5503 = vmatpush1.bf16.msra.mxu1 %v5502_v43  ;;  %5249 = vmatprep.subr.bf16.mxu0 %v5248_v44  ;;  %v5268_v43 = vpack.c.bf16 %v1257_v36, %v1249_v35  ;;  %v1248_v44 = vld [vmem:[#allocation7 + $0x1220] sm:$0xff]  ;;  %v1337_v35 = vld [vmem:[#allocation7 + $0x14e8] sm:$0xff]  ;;  %v1331_v36 = vld [vmem:[#allocation7 + $0x14b8] sm:$0xff] }
 0x2d7   :  { %5505 = vmatprep.subr.bf16.mxu1 %v5504_v49  ;;  %v1258_v49 = vld [vmem:[#allocation7 + $0x1270] sm:$0xff]  ;;  %v5270_v53 = vpack.c.bf16 %v1256_v45, %v1248_v44  ;;  %v1336_v44 = vld [vmem:[#allocation7 + $0x14e0] sm:$0xff] }
 0x2d8   :  { %v1330_v45 = vld [vmem:[#allocation7 + $0x14b0] sm:$0xff] }
 0x2d9   :  { %5251 = vmatpush1.bf16.msra.mxu0 %v5250_v54  ;;  %v5526_v54 = vpack.c.bf16 %v1258_v49, %v1250_v46  ;;  %v5544_v46 = vpack.c.bf16 %v1339_v37, %v1331_v36  ;;  %v1345_v49 = vld [vmem:[#allocation7 + $0x1528] sm:$0xff]  ;;  %v1419_v36 = vld [vmem:[#allocation7 + $0x1778] sm:$0xff] }
 0x2da   :  { %5507 = vmatpush1.bf16.msra.mxu1 %v5506_v56  ;;  %5253 = vmatprep.subr.bf16.mxu0 %v5252_v57  ;;  %v5272_v56 = vpack.c.bf16 %v1273_v41, %v1265_v50  ;;  %v1264_v57 = vld [vmem:[#allocation7 + $0x12a0] sm:$0xff]  ;;  %v1353_v50 = vld [vmem:[#allocation7 + $0x1568] sm:$0xff]  ;;  %v1347_v41 = vld [vmem:[#allocation7 + $0x1538] sm:$0xff] }
 0x2db   :  { %5509 = vmatprep.subr.bf16.mxu1 %v5508_v59  ;;  %v5528_v59 = vpack.c.bf16 %v1275_v52, %v1267_v51  ;;  %v5274_v2 = vpack.c.bf16 %v1272_v27, %v1264_v57  ;;  %v1355_v51 = vld [vmem:[#allocation7 + $0x1578] sm:$0xff]  ;;  %v1352_v57 = vld [vmem:[#allocation7 + $0x1560] sm:$0xff]  ;;  %v1346_v27 = vld [vmem:[#allocation7 + $0x1530] sm:$0xff] }
 0x2dc   :  { %2396 = vmatmul.mubr.f32.vlgmr.msra.gmra.mrb[4].mxu0 %v6720_v47  ;;  %v5548_v58 = vpack.c.bf16 %v1355_v51, %v1347_v41  ;;  %v1435_v41 = vld [vmem:[#allocation7 + $0x17f8] sm:$0xff] }
 0x2dd   :  { %2680 = vmatmul.mubr.f32.vlgmr.msra.gmra.mrb[8].mxu1 %v6720_v47  ;;  %5255 = vmatpush1.bf16.msra.mxu0 %v5254_v38  ;;  %v1243_v47 = vld [vmem:[#allocation7 + $0x11f8] sm:$0xff] }
 0x2de   :  { %2466 = vmatprep.mubr.f32.mxu0 %v6725_v55  ;;  %5511 = vmatpush1.bf16.msra.mxu1 %v5510_v4  ;;  %v5520_v33 = vpack.c.bf16 %v1243_v47, %v1235_v24  ;;  %v1291_v38 = vld [vmem:[#allocation7 + $0x1378] sm:$0xff]  ;;  %v5276_v4 = vpack.c.bf16 %v1289_v0, %v1281_v61  ;;  %v1369_v61 = vld [vmem:[#allocation7 + $0x15e8] sm:$0xff] }
 0x2df   :  { %2750 = vmatprep.mubr.f32.mxu1 %v6725_v55  ;;  %5257 = vmatprep.subr.bf16.mxu0 %v5256_v14  ;;  %v1242_v55 = vld [vmem:[#allocation7 + $0x11f0] sm:$0xff]  ;;  %v5532_v14 = vpack.c.bf16 %v1291_v38, %v1283_v1  ;;  %v1323_v24 = vld [vmem:[#allocation7 + $0x1478] sm:$0xff] }
 0x2e0   :  { %5513 = vmatprep.subr.bf16.mxu1 %v5512_v10  ;;  %v5522_v40 = vpack.c.bf16 %v1242_v55, %v1234_v31  ;;  %v1299_v10 = vld [vmem:[#allocation7 + $0x13b8] sm:$0xff]  ;;  %v5540_v31 = vpack.c.bf16 %v1323_v24, %v1315_v23  ;;  %v1329_v55 = vld [vmem:[#allocation7 + $0x14a8] sm:$0xff] }
 0x2e1   :  { %5259 = vmatpush1.bf16.msra.mxu0 %v5258_v13  ;;  %v5534_v13 = vpack.c.bf16 %v1290_v8, %v1282_v7  ;;  %v5536_v18 = vpack.c.bf16 %v1307_v34, %v1299_v10  ;;  %v1363_v0 = vld [vmem:[#allocation7 + $0x15b8] sm:$0xff]  ;;  %v1377_v8 = vld [vmem:[#allocation7 + $0x1628] sm:$0xff] }
 0x2e2   :  { %5515 = vmatpush1.bf16.msra.mxu1 %v5514_v15  ;;  %5261 = vmatprep.subr.bf16.mxu0 %v5260_v16  ;;  %v5280_v15 = vpack.c.bf16 %v1305_v32, %v1297_v9  ;;  %v1296_v16 = vld [vmem:[#allocation7 + $0x13a0] sm:$0xff]  ;;  %v1371_v1 = vld [vmem:[#allocation7 + $0x15f8] sm:$0xff]  ;;  %v1385_v9 = vld [vmem:[#allocation7 + $0x1668] sm:$0xff] }
 0x2e3   :  { %5517 = vmatprep.subr.bf16.mxu1 %v5516_v19  ;;  %v1306_v19 = vld [vmem:[#allocation7 + $0x13f0] sm:$0xff]  ;;  %v5282_v47 = vpack.c.bf16 %v1304_v17, %v1296_v16  ;;  %v5552_v7 = vpack.c.bf16 %v1371_v1, %v1363_v0  ;;  %v1379_v32 = vld [vmem:[#allocation7 + $0x1638] sm:$0xff]  ;;  %v1384_v16 = vld [vmem:[#allocation7 + $0x1660] sm:$0xff] }
 0x2e4   :  { %v1387_v10 = vld [vmem:[#allocation7 + $0x1678] sm:$0xff]  ;;  %v1378_v17 = vld [vmem:[#allocation7 + $0x1630] sm:$0xff] }
 0x2e5   :  { %5263 = vmatpush1.bf16.msra.mxu0 %v5262_v25  ;;  %v5538_v25 = vpack.c.bf16 %v1306_v19, %v1298_v42  ;;  %v5556_v42 = vpack.c.bf16 %v1387_v10, %v1379_v32  ;;  %v1393_v19 = vld [vmem:[#allocation7 + $0x16a8] sm:$0xff]  ;;  %v1403_v23 = vld [vmem:[#allocation7 + $0x16f8] sm:$0xff] }
 0x2e6   :  { %5519 = vmatpush1.bf16.msra.mxu1 %v5518_v26  ;;  %5265 = vmatprep.subr.bf16.mxu0 %v5264_v28  ;;  %v5284_v26 = vpack.c.bf16 %v1321_v22, %v1313_v20  ;;  %v1312_v28 = vld [vmem:[#allocation7 + $0x1420] sm:$0xff]  ;;  %v1401_v20 = vld [vmem:[#allocation7 + $0x16e8] sm:$0xff]  ;;  %v1395_v22 = vld [vmem:[#allocation7 + $0x16b8] sm:$0xff] }
 0x2e7   :  { %5521 = vmatprep.subr.bf16.mxu1 %v5520_v33  ;;  %v1322_v33 = vld [vmem:[#allocation7 + $0x1470] sm:$0xff]  ;;  %v5286_v62 = vpack.c.bf16 %v1320_v29, %v1312_v28  ;;  %v1400_v28 = vld [vmem:[#allocation7 + $0x16e0] sm:$0xff]  ;;  %v1451_v0 = vld [vmem:[#allocation7 + $0x1878] sm:$0xff] }
 0x2e8   :  { %v1394_v29 = vld [vmem:[#allocation7 + $0x16b0] sm:$0xff]  ;;  %v1459_v32 = vld [vmem:[#allocation7 + $0x18b8] sm:$0xff] }
 0x2e9   :  { %5267 = vmatpush1.bf16.msra.mxu0 %v5266_v39  ;;  %v5542_v39 = vpack.c.bf16 %v1322_v33, %v1314_v30  ;;  %v5560_v30 = vpack.c.bf16 %v1403_v23, %v1395_v22  ;;  %v1409_v33 = vld [vmem:[#allocation7 + $0x1728] sm:$0xff]  ;;  %v1467_v10 = vld [vmem:[#allocation7 + $0x18f8] sm:$0xff] }
 0x2ea   :  { %5523 = vmatpush1.bf16.msra.mxu1 %v5522_v40  ;;  %5269 = vmatprep.subr.bf16.mxu0 %v5268_v43  ;;  %v5288_v40 = vpack.c.bf16 %v1337_v35, %v1329_v55  ;;  %v1328_v43 = vld [vmem:[#allocation7 + $0x14a0] sm:$0xff]  ;;  %v1417_v55 = vld [vmem:[#allocation7 + $0x1768] sm:$0xff]  ;;  %v1411_v35 = vld [vmem:[#allocation7 + $0x1738] sm:$0xff] }
 0x2eb   :  { %5525 = vmatprep.subr.bf16.mxu1 %v5524_v48  ;;  %v1338_v48 = vld [vmem:[#allocation7 + $0x14f0] sm:$0xff]  ;;  %v5290_v52 = vpack.c.bf16 %v1336_v44, %v1328_v43  ;;  %v1416_v43 = vld [vmem:[#allocation7 + $0x1760] sm:$0xff]  ;;  %v1483_v22 = vld [vmem:[#allocation7 + $0x1978] sm:$0xff] }
 0x2ec   :  { %v1410_v44 = vld [vmem:[#allocation7 + $0x1730] sm:$0xff] }
 0x2ed   :  { %5271 = vmatpush1.bf16.msra.mxu0 %v5270_v53  ;;  %v5546_v53 = vpack.c.bf16 %v1338_v48, %v1330_v45  ;;  %v5564_v45 = vpack.c.bf16 %v1419_v36, %v1411_v35  ;;  %v1425_v48 = vld [vmem:[#allocation7 + $0x17a8] sm:$0xff] }
 0x2ee   :  { %5527 = vmatpush1.bf16.msra.mxu1 %v5526_v54  ;;  %5273 = vmatprep.subr.bf16.mxu0 %v5272_v56  ;;  %v5292_v54 = vpack.c.bf16 %v1353_v50, %v1345_v49  ;;  %v1344_v56 = vld [vmem:[#allocation7 + $0x1520] sm:$0xff]  ;;  %v1433_v49 = vld [vmem:[#allocation7 + $0x17e8] sm:$0xff]  ;;  %v1427_v50 = vld [vmem:[#allocation7 + $0x17b8] sm:$0xff] }
 0x2ef   :  { %5529 = vmatprep.subr.bf16.mxu1 %v5528_v59  ;;  %v1354_v59 = vld [vmem:[#allocation7 + $0x1570] sm:$0xff]  ;;  %v5294_v38 = vpack.c.bf16 %v1352_v57, %v1344_v56  ;;  %v1432_v56 = vld [vmem:[#allocation7 + $0x17e0] sm:$0xff] }
 0x2f0   :  { %v1426_v57 = vld [vmem:[#allocation7 + $0x17b0] sm:$0xff] }
 0x2f1   :  { %5275 = vmatpush1.bf16.msra.mxu0 %v5274_v2  ;;  %v5550_v2 = vpack.c.bf16 %v1354_v59, %v1346_v27  ;;  %v5568_v27 = vpack.c.bf16 %v1435_v41, %v1427_v50  ;;  %v1441_v59 = vld [vmem:[#allocation7 + $0x1828] sm:$0xff] }
 0x2f2   :  { %5531 = vmatpush1.bf16.msra.mxu1 %v5530_v3  ;;  %5277 = vmatprep.subr.bf16.mxu0 %v5276_v4  ;;  %v5296_v3 = vpack.c.bf16 %v1369_v61, %v1361_v60  ;;  %v1360_v4 = vld [vmem:[#allocation7 + $0x15a0] sm:$0xff]  ;;  %v1449_v60 = vld [vmem:[#allocation7 + $0x1868] sm:$0xff]  ;;  %v1443_v61 = vld [vmem:[#allocation7 + $0x1838] sm:$0xff] }
 0x2f3   :  { %5533 = vmatprep.subr.bf16.mxu1 %v5532_v14  ;;  %v1370_v14 = vld [vmem:[#allocation7 + $0x15f0] sm:$0xff]  ;;  %v5298_v34 = vpack.c.bf16 %v1368_v5, %v1360_v4  ;;  %v1448_v4 = vld [vmem:[#allocation7 + $0x1860] sm:$0xff]  ;;  %v5572_v5 = vpack.c.bf16 %v1451_v0, %v1443_v61 }
 0x2f5   :  { %5279 = vmatpush1.bf16.msra.mxu0 %v5278_v12  ;;  %v5554_v12 = vpack.c.bf16 %v1370_v14, %v1362_v6  ;;  %v1442_v6 = vld [vmem:[#allocation7 + $0x1830] sm:$0xff]  ;;  %v1457_v14 = vld [vmem:[#allocation7 + $0x18a8] sm:$0xff] }
 0x2f6   :  { %5535 = vmatpush1.bf16.msra.mxu1 %v5534_v13  ;;  %5281 = vmatprep.subr.bf16.mxu0 %v5280_v15  ;;  %v5300_v13 = vpack.c.bf16 %v1385_v9, %v1377_v8  ;;  %v1376_v15 = vld [vmem:[#allocation7 + $0x1620] sm:$0xff]  ;;  %v1465_v8 = vld [vmem:[#allocation7 + $0x18e8] sm:$0xff] }
 0x2f7   :  { %5537 = vmatprep.subr.bf16.mxu1 %v5536_v18  ;;  %v1386_v18 = vld [vmem:[#allocation7 + $0x1670] sm:$0xff]  ;;  %v5302_v24 = vpack.c.bf16 %v1384_v16, %v1376_v15  ;;  %v5320_v16 = vpack.c.bf16 %v1465_v8, %v1457_v14  ;;  %v1547_v14 = vld [vmem:[#allocation7 + $0x1b78] sm:$0xff] }
 0x2f8   :  { %v1458_v15 = vld [vmem:[#allocation7 + $0x18b0] sm:$0xff] }
 0x2f9   :  { %5283 = vmatpush1.bf16.msra.mxu0 %v5282_v47  ;;  %v5558_v47 = vpack.c.bf16 %v1386_v18, %v1378_v17  ;;  %v1466_v17 = vld [vmem:[#allocation7 + $0x18f0] sm:$0xff]  ;;  %v1481_v18 = vld [vmem:[#allocation7 + $0x1968] sm:$0xff] }
 0x2fa   :  { %5539 = vmatpush1.bf16.msra.mxu1 %v5538_v25  ;;  %5285 = vmatprep.subr.bf16.mxu0 %v5284_v26  ;;  %v5304_v25 = vpack.c.bf16 %v1401_v20, %v1393_v19  ;;  %v1392_v26 = vld [vmem:[#allocation7 + $0x16a0] sm:$0xff]  ;;  %v5576_v19 = vpack.c.bf16 %v1467_v10, %v1459_v32  ;;  %v1475_v20 = vld [vmem:[#allocation7 + $0x1938] sm:$0xff] }
 0x2fb   :  { %5541 = vmatprep.subr.bf16.mxu1 %v5540_v31  ;;  %v1402_v31 = vld [vmem:[#allocation7 + $0x16f0] sm:$0xff]  ;;  %v5306_v37 = vpack.c.bf16 %v1400_v28, %v1392_v26  ;;  %v1480_v26 = vld [vmem:[#allocation7 + $0x1960] sm:$0xff] }
 0x2fc   :  { %v1474_v28 = vld [vmem:[#allocation7 + $0x1930] sm:$0xff]  ;;  %v1536_v10 = vld [vmem:[#allocation7 + $0x1b20] sm:$0xff] }
 0x2fd   :  { %5287 = vmatpush1.bf16.msra.mxu0 %v5286_v62  ;;  %v5562_v62 = vpack.c.bf16 %v1402_v31, %v1394_v29  ;;  %v5580_v29 = vpack.c.bf16 %v1483_v22, %v1475_v20  ;;  %v1489_v31 = vld [vmem:[#allocation7 + $0x19a8] sm:$0xff]  ;;  %v1555_v22 = vld [vmem:[#allocation7 + $0x1bb8] sm:$0xff] }
 0x2fe   :  { %5543 = vmatpush1.bf16.msra.mxu1 %v5542_v39  ;;  %5289 = vmatprep.subr.bf16.mxu0 %v5288_v40  ;;  %v5308_v39 = vpack.c.bf16 %v1417_v55, %v1409_v33  ;;  %v1408_v40 = vld [vmem:[#allocation7 + $0x1720] sm:$0xff]  ;;  %v1497_v33 = vld [vmem:[#allocation7 + $0x19e8] sm:$0xff]  ;;  %v1491_v55 = vld [vmem:[#allocation7 + $0x19b8] sm:$0xff] }
 0x2ff   :  { %5545 = vmatprep.subr.bf16.mxu1 %v5544_v46  ;;  %v1418_v46 = vld [vmem:[#allocation7 + $0x1770] sm:$0xff]  ;;  %v5310_v51 = vpack.c.bf16 %v1416_v43, %v1408_v40 }
 0x300   :  { %v1490_v40 = vld [vmem:[#allocation7 + $0x19b0] sm:$0xff] }
 0x301   :  { %5291 = vmatpush1.bf16.msra.mxu0 %v5290_v52  ;;  %v5566_v52 = vpack.c.bf16 %v1418_v46, %v1410_v44  ;;  %v1505_v44 = vld [vmem:[#allocation7 + $0x1a28] sm:$0xff]  ;;  %v1507_v46 = vld [vmem:[#allocation7 + $0x1a38] sm:$0xff] }
 0x302   :  { %5547 = vmatpush1.bf16.msra.mxu1 %v5546_v53  ;;  %5293 = vmatprep.subr.bf16.mxu0 %v5292_v54  ;;  %v5312_v53 = vpack.c.bf16 %v1433_v49, %v1425_v48  ;;  %v1424_v54 = vld [vmem:[#allocation7 + $0x17a0] sm:$0xff]  ;;  %v1515_v48 = vld [vmem:[#allocation7 + $0x1a78] sm:$0xff] }
 0x303   :  { %5549 = vmatprep.subr.bf16.mxu1 %v5548_v58  ;;  %v1434_v58 = vld [vmem:[#allocation7 + $0x17f0] sm:$0xff]  ;;  %v5314_v1 = vpack.c.bf16 %v1432_v56, %v1424_v54  ;;  %v5588_v54 = vpack.c.bf16 %v1515_v48, %v1507_v46  ;;  %v1593_v46 = vld [vmem:[#allocation7 + $0x1ce8] sm:$0xff]  ;;  %v1587_v48 = vld [vmem:[#allocation7 + $0x1cb8] sm:$0xff] }
 0x304   :  { %v1514_v56 = vld [vmem:[#allocation7 + $0x1a70] sm:$0xff] }
 0x305   :  { %5295 = vmatpush1.bf16.msra.mxu0 %v5294_v38  ;;  %v5570_v38 = vpack.c.bf16 %v1434_v58, %v1426_v57  ;;  %v1521_v57 = vld [vmem:[#allocation7 + $0x1aa8] sm:$0xff]  ;;  %v1523_v58 = vld [vmem:[#allocation7 + $0x1ab8] sm:$0xff] }
 0x306   :  { %5551 = vmatpush1.bf16.msra.mxu1 %v5550_v2  ;;  %5297 = vmatprep.subr.bf16.mxu0 %v5296_v3  ;;  %v5316_v2 = vpack.c.bf16 %v1449_v60, %v1441_v59  ;;  %v1440_v3 = vld [vmem:[#allocation7 + $0x1820] sm:$0xff]  ;;  %v1531_v59 = vld [vmem:[#allocation7 + $0x1af8] sm:$0xff] }
 0x307   :  { %5553 = vmatprep.subr.bf16.mxu1 %v5552_v7  ;;  %v1450_v7 = vld [vmem:[#allocation7 + $0x1870] sm:$0xff]  ;;  %v5318_v9 = vpack.c.bf16 %v1448_v4, %v1440_v3  ;;  %v5592_v3 = vpack.c.bf16 %v1531_v59, %v1523_v58  ;;  %v1609_v58 = vld [vmem:[#allocation7 + $0x1d68] sm:$0xff]  ;;  %v1603_v59 = vld [vmem:[#allocation7 + $0x1d38] sm:$0xff] }
 0x308   :  { %v1530_v4 = vld [vmem:[#allocation7 + $0x1af0] sm:$0xff] }
 0x309   :  { %5299 = vmatpush1.bf16.msra.mxu0 %v5298_v34  ;;  %v5574_v34 = vpack.c.bf16 %v1450_v7, %v1442_v6  ;;  %v1545_v6 = vld [vmem:[#allocation7 + $0x1b68] sm:$0xff]  ;;  %v1539_v7 = vld [vmem:[#allocation7 + $0x1b38] sm:$0xff] }
 0x30a   :  { %5555 = vmatpush1.bf16.msra.mxu1 %v5554_v12  ;;  %5301 = vmatprep.subr.bf16.mxu0 %v5300_v13  ;;  %v1456_v12 = vld [vmem:[#allocation7 + $0x18a0] sm:$0xff] }
 0x30b   :  { %5557 = vmatprep.subr.bf16.mxu1 %v5556_v42  ;;  %v1464_v13 = vld [vmem:[#allocation7 + $0x18e0] sm:$0xff]  ;;  %v1473_v42 = vld [vmem:[#allocation7 + $0x1928] sm:$0xff] }
 0x30c   :  { %v5322_v23 = vpack.c.bf16 %v1464_v13, %v1456_v12  ;;  %v1538_v12 = vld [vmem:[#allocation7 + $0x1b30] sm:$0xff] }
 0x30d   :  { %5303 = vmatpush1.bf16.msra.mxu0 %v5302_v24  ;;  %v5578_v24 = vpack.c.bf16 %v1466_v17, %v1458_v15  ;;  %v1546_v17 = vld [vmem:[#allocation7 + $0x1b70] sm:$0xff] }
 0x30e   :  { %5559 = vmatpush1.bf16.msra.mxu1 %v5558_v47  ;;  %5305 = vmatprep.subr.bf16.mxu0 %v5304_v25  ;;  %v5324_v47 = vpack.c.bf16 %v1481_v18, %v1473_v42  ;;  %v1472_v25 = vld [vmem:[#allocation7 + $0x1920] sm:$0xff]  ;;  %v1553_v42 = vld [vmem:[#allocation7 + $0x1ba8] sm:$0xff] }
 0x30f   :  { %5561 = vmatprep.subr.bf16.mxu1 %v5560_v30  ;;  %v1482_v30 = vld [vmem:[#allocation7 + $0x1970] sm:$0xff]  ;;  %v5326_v35 = vpack.c.bf16 %v1480_v26, %v1472_v25  ;;  %v1561_v18 = vld [vmem:[#allocation7 + $0x1be8] sm:$0xff]  ;;  %v1552_v26 = vld [vmem:[#allocation7 + $0x1ba0] sm:$0xff] }
 0x310   :  { %v5582_v36 = vpack.c.bf16 %v1482_v30, %v1474_v28  ;;  %v5344_v25 = vpack.c.bf16 %v1561_v18, %v1553_v42  ;;  %v1560_v28 = vld [vmem:[#allocation7 + $0x1be0] sm:$0xff]  ;;  %v1626_v42 = vld [vmem:[#allocation7 + $0x1df0] sm:$0xff]  ;;  %v1633_v18 = vld [vmem:[#allocation7 + $0x1e28] sm:$0xff] }
 0x311   :  { %5307 = vmatpush1.bf16.msra.mxu0 %v5306_v37  ;;  %v5328_v37 = vpack.c.bf16 %v1497_v33, %v1489_v31  ;;  %v1562_v31 = vld [vmem:[#allocation7 + $0x1bf0] sm:$0xff]  ;;  %v1569_v33 = vld [vmem:[#allocation7 + $0x1c28] sm:$0xff] }
 0x312   :  { %5563 = vmatpush1.bf16.msra.mxu1 %v5562_v62  ;;  %5309 = vmatprep.subr.bf16.mxu0 %v5308_v39  ;;  %v1488_v62 = vld [vmem:[#allocation7 + $0x19a0] sm:$0xff] }
 0x313   :  { %5565 = vmatprep.subr.bf16.mxu1 %v5564_v45  ;;  %v1496_v39 = vld [vmem:[#allocation7 + $0x19e0] sm:$0xff]  ;;  %v1513_v45 = vld [vmem:[#allocation7 + $0x1a68] sm:$0xff] }
 0x314   :  { %v5330_v49 = vpack.c.bf16 %v1496_v39, %v1488_v62  ;;  %v5332_v41 = vpack.c.bf16 %v1513_v45, %v1505_v44  ;;  %v1568_v39 = vld [vmem:[#allocation7 + $0x1c20] sm:$0xff]  ;;  %v1578_v44 = vld [vmem:[#allocation7 + $0x1c70] sm:$0xff]  ;;  %v1585_v45 = vld [vmem:[#allocation7 + $0x1ca8] sm:$0xff] }
 0x315   :  { %5311 = vmatpush1.bf16.msra.mxu0 %v5310_v51  ;;  %v1504_v51 = vld [vmem:[#allocation7 + $0x1a20] sm:$0xff] }
 0x316   :  { %5567 = vmatpush1.bf16.msra.mxu1 %v5566_v52  ;;  %5313 = vmatprep.subr.bf16.mxu0 %v5312_v53  ;;  %v1512_v52 = vld [vmem:[#allocation7 + $0x1a60] sm:$0xff]  ;;  %v1506_v53 = vld [vmem:[#allocation7 + $0x1a30] sm:$0xff] }
 0x317   :  { %5569 = vmatprep.subr.bf16.mxu1 %v5568_v27  ;;  %v1529_v27 = vld [vmem:[#allocation7 + $0x1ae8] sm:$0xff]  ;;  %v5334_v60 = vpack.c.bf16 %v1512_v52, %v1504_v51  ;;  %v5590_v61 = vpack.c.bf16 %v1514_v56, %v1506_v53  ;;  %v5352_v51 = vpack.c.bf16 %v1593_v46, %v1585_v45  ;;  %v1584_v52 = vld [vmem:[#allocation7 + $0x1ca0] sm:$0xff]  ;;  %v1658_v45 = vld [vmem:[#allocation7 + $0x1ef0] sm:$0xff] }
 0x318   :  { %v5336_v0 = vpack.c.bf16 %v1529_v27, %v1521_v57  ;;  %v1592_v53 = vld [vmem:[#allocation7 + $0x1ce0] sm:$0xff]  ;;  %v1594_v57 = vld [vmem:[#allocation7 + $0x1cf0] sm:$0xff]  ;;  %v1601_v27 = vld [vmem:[#allocation7 + $0x1d28] sm:$0xff] }
 0x319   :  { %5315 = vmatpush1.bf16.msra.mxu0 %v5314_v1  ;;  %v1520_v1 = vld [vmem:[#allocation7 + $0x1aa0] sm:$0xff]  ;;  %v1665_v46 = vld [vmem:[#allocation7 + $0x1f28] sm:$0xff] }
 0x31a   :  { %5571 = vmatpush1.bf16.msra.mxu1 %v5570_v38  ;;  %5317 = vmatprep.subr.bf16.mxu0 %v5316_v2  ;;  %v1528_v38 = vld [vmem:[#allocation7 + $0x1ae0] sm:$0xff]  ;;  %v1522_v2 = vld [vmem:[#allocation7 + $0x1ab0] sm:$0xff] }
 0x31b   :  { %5573 = vmatprep.subr.bf16.mxu1 %v5572_v5  ;;  %v1537_v5 = vld [vmem:[#allocation7 + $0x1b28] sm:$0xff]  ;;  %v5338_v8 = vpack.c.bf16 %v1528_v38, %v1520_v1  ;;  %v5356_v1 = vpack.c.bf16 %v1609_v58, %v1601_v27  ;;  %v1600_v38 = vld [vmem:[#allocation7 + $0x1d20] sm:$0xff]  ;;  %v1674_v27 = vld [vmem:[#allocation7 + $0x1f70] sm:$0xff] }
 0x31c   :  { %2467 = vmatmul.mubr.f32.vlgmr.msra.gmra.mrb[4].mxu0 %v6734_v63  ;;  %v5340_v32 = vpack.c.bf16 %v1545_v6, %v1537_v5  ;;  %v1610_v5 = vld [vmem:[#allocation7 + $0x1d70] sm:$0xff]  ;;  %v1617_v6 = vld [vmem:[#allocation7 + $0x1da8] sm:$0xff] }
 0x31d   :  { %2751 = vmatmul.mubr.f32.vlgmr.msra.gmra.mrb[8].mxu1 %v6734_v63  ;;  %5319 = vmatpush1.bf16.msra.mxu0 %v5318_v9  ;;  %v1499_v63 = vld [vmem:[#allocation7 + $0x19f8] sm:$0xff]  ;;  %v5594_v9 = vpack.c.bf16 %v1530_v4, %v1522_v2  ;;  %v1608_v2 = vld [vmem:[#allocation7 + $0x1d60] sm:$0xff]  ;;  %v1681_v58 = vld [vmem:[#allocation7 + $0x1fa8] sm:$0xff] }
 0x31e   :  { %2537 = vmatprep.mubr.f32.mxu0 %v6736_v11  ;;  %5575 = vmatpush1.bf16.msra.mxu1 %v5574_v34  ;;  %v5584_v43 = vpack.c.bf16 %v1499_v63, %v1491_v55  ;;  %v1544_v34 = vld [vmem:[#allocation7 + $0x1b60] sm:$0xff]  ;;  %v1577_v55 = vld [vmem:[#allocation7 + $0x1c68] sm:$0xff]  ;;  %v1571_v63 = vld [vmem:[#allocation7 + $0x1c38] sm:$0xff] }
 0x31f   :  { %2821 = vmatprep.mubr.f32.mxu1 %v6736_v11  ;;  %5321 = vmatprep.subr.bf16.mxu0 %v5320_v16  ;;  %v1498_v11 = vld [vmem:[#allocation7 + $0x19f0] sm:$0xff]  ;;  %v5596_v16 = vpack.c.bf16 %v1547_v14, %v1539_v7  ;;  %v5348_v62 = vpack.c.bf16 %v1577_v55, %v1569_v33  ;;  %v1625_v7 = vld [vmem:[#allocation7 + $0x1de8] sm:$0xff]  ;;  %v1619_v14 = vld [vmem:[#allocation7 + $0x1db8] sm:$0xff] }
 0x320   :  { %5577 = vmatprep.subr.bf16.mxu1 %v5576_v19  ;;  %v5586_v50 = vpack.c.bf16 %v1498_v11, %v1490_v40  ;;  %v1576_v40 = vld [vmem:[#allocation7 + $0x1c60] sm:$0xff]  ;;  %v1642_v33 = vld [vmem:[#allocation7 + $0x1e70] sm:$0xff]  ;;  %v1649_v55 = vld [vmem:[#allocation7 + $0x1ea8] sm:$0xff] }
 0x321   :  { %5323 = vmatpush1.bf16.msra.mxu0 %v5322_v23  ;;  %v1563_v23 = vld [vmem:[#allocation7 + $0x1bf8] sm:$0xff] }
 0x322   :  { %5579 = vmatpush1.bf16.msra.mxu1 %v5578_v24  ;;  %5325 = vmatprep.subr.bf16.mxu0 %v5324_v47  ;;  %v5342_v24 = vpack.c.bf16 %v1544_v34, %v1536_v10  ;;  %v5598_v47 = vpack.c.bf16 %v1546_v17, %v1538_v12  ;;  %v5600_v30 = vpack.c.bf16 %v1563_v23, %v1555_v22  ;;  %v1616_v34 = vld [vmem:[#allocation7 + $0x1da0] sm:$0xff]  ;;  %v1641_v22 = vld [vmem:[#allocation7 + $0x1e68] sm:$0xff]  ;;  %v1635_v23 = vld [vmem:[#allocation7 + $0x1e38] sm:$0xff] }
 0x323   :  { %5581 = vmatprep.subr.bf16.mxu1 %v5580_v29  ;;  %v1554_v29 = vld [vmem:[#allocation7 + $0x1bb0] sm:$0xff]  ;;  %v5360_v10 = vpack.c.bf16 %v1625_v7, %v1617_v6  ;;  %v1624_v12 = vld [vmem:[#allocation7 + $0x1de0] sm:$0xff]  ;;  %v2837_v7 = vld [vmem:[#allocation8 + $0x8] sm:$0xff] }
 0x324   :  { %v1690_v6 = vld [vmem:[#allocation7 + $0x1ff0] sm:$0xff] }
 0x325   :  { %5327 = vmatpush1.bf16.msra.mxu0 %v5326_v35  ;;  %v1579_v35 = vld [vmem:[#allocation7 + $0x1c78] sm:$0xff] }
 0x326   :  { %5583 = vmatpush1.bf16.msra.mxu1 %v5582_v36  ;;  %5329 = vmatprep.subr.bf16.mxu0 %v5328_v37  ;;  %v5346_v36 = vpack.c.bf16 %v1560_v28, %v1552_v26  ;;  %v5602_v37 = vpack.c.bf16 %v1562_v31, %v1554_v29  ;;  %v5604_v11 = vpack.c.bf16 %v1579_v35, %v1571_v63  ;;  %v1632_v28 = vld [vmem:[#allocation7 + $0x1e20] sm:$0xff]  ;;  %v1657_v63 = vld [vmem:[#allocation7 + $0x1ee8] sm:$0xff]  ;;  %v1651_v35 = vld [vmem:[#allocation7 + $0x1eb8] sm:$0xff] }
 0x327   :  { %5585 = vmatprep.subr.bf16.mxu1 %v5584_v43  ;;  %v1570_v43 = vld [vmem:[#allocation7 + $0x1c30] sm:$0xff]  ;;  %v5364_v26 = vpack.c.bf16 %v1641_v22, %v1633_v18  ;;  %v1640_v29 = vld [vmem:[#allocation7 + $0x1e60] sm:$0xff]  ;;  %v2845_v22 = vld [vmem:[#allocation8 + $0x48] sm:$0xff] }
 0x328   :  { %v2842_v18 = vld [vmem:[#allocation8 + $0x30] sm:$0xff] }
 0x329   :  { %5331 = vmatpush1.bf16.msra.mxu0 %v5330_v49  ;;  %v1595_v49 = vld [vmem:[#allocation7 + $0x1cf8] sm:$0xff] }
 0x32a   :  { %5587 = vmatpush1.bf16.msra.mxu1 %v5586_v50  ;;  %5333 = vmatprep.subr.bf16.mxu0 %v5332_v41  ;;  %v5350_v50 = vpack.c.bf16 %v1576_v40, %v1568_v39  ;;  %v5606_v41 = vpack.c.bf16 %v1578_v44, %v1570_v43  ;;  %v5608_v56 = vpack.c.bf16 %v1595_v49, %v1587_v48  ;;  %v1648_v40 = vld [vmem:[#allocation7 + $0x1ea0] sm:$0xff]  ;;  %v1673_v48 = vld [vmem:[#allocation7 + $0x1f68] sm:$0xff]  ;;  %v1667_v49 = vld [vmem:[#allocation7 + $0x1f38] sm:$0xff] }
 0x32b   :  { %5589 = vmatprep.subr.bf16.mxu1 %v5588_v54  ;;  %v1586_v54 = vld [vmem:[#allocation7 + $0x1cb0] sm:$0xff]  ;;  %v5368_v39 = vpack.c.bf16 %v1657_v63, %v1649_v55  ;;  %v1656_v43 = vld [vmem:[#allocation7 + $0x1ee0] sm:$0xff]  ;;  %v2853_v55 = vld [vmem:[#allocation8 + $0x88] sm:$0xff] }
 0x32c   :  { %v2857_v63 = vld [vmem:[#allocation8 + $0xa8] sm:$0xff] }
 0x32d   :  { %5335 = vmatpush1.bf16.msra.mxu0 %v5334_v60  ;;  %v1611_v60 = vld [vmem:[#allocation7 + $0x1d78] sm:$0xff] }
 0x32e   :  { %5591 = vmatpush1.bf16.msra.mxu1 %v5590_v61  ;;  %5337 = vmatprep.subr.bf16.mxu0 %v5336_v0  ;;  %v5354_v61 = vpack.c.bf16 %v1592_v53, %v1584_v52  ;;  %v5610_v0 = vpack.c.bf16 %v1594_v57, %v1586_v54  ;;  %v5612_v4 = vpack.c.bf16 %v1611_v60, %v1603_v59  ;;  %v1664_v53 = vld [vmem:[#allocation7 + $0x1f20] sm:$0xff]  ;;  %v1689_v59 = vld [vmem:[#allocation7 + $0x1fe8] sm:$0xff]  ;;  %v1683_v60 = vld [vmem:[#allocation7 + $0x1fb8] sm:$0xff] }
 0x32f   :  { %v6761_v13 = vpop.f32.mrb[2].mxu0  ;;  %v6763_v15 = vpop.f32.mrb[6].mxu1  ;;  %5593 = vmatprep.subr.bf16.mxu1 %v5592_v3  ;;  %v1602_v3 = vld [vmem:[#allocation7 + $0x1d30] sm:$0xff]  ;;  %v5372_v52 = vpack.c.bf16 %v1673_v48, %v1665_v46  ;;  %v1672_v54 = vld [vmem:[#allocation7 + $0x1f60] sm:$0xff]  ;;  %v2861_v48 = vld [vmem:[#allocation8 + $0xc8] sm:$0xff] }
 0x330   :  { %v6765_v19 = vpop.f32.mrb[3].mxu0  ;;  %v6767_v20 = vpop.f32.mrb[7].mxu1 }
 0x331   :  { %5339 = vmatpush1.bf16.msra.mxu0 %v5338_v8  ;;  %v1627_v8 = vld [vmem:[#allocation7 + $0x1df8] sm:$0xff] }
 0x332   :  { %5595 = vmatpush1.bf16.msra.mxu1 %v5594_v9  ;;  %5341 = vmatprep.subr.bf16.mxu0 %v5340_v32  ;;  %v5358_v9 = vpack.c.bf16 %v1608_v2, %v1600_v38  ;;  %v5614_v32 = vpack.c.bf16 %v1610_v5, %v1602_v3  ;;  %v5616_v17 = vpack.c.bf16 %v1627_v8, %v1619_v14  ;;  %v1680_v2 = vld [vmem:[#allocation7 + $0x1fa0] sm:$0xff]  ;;  %v2841_v14 = vld [vmem:[#allocation8 + $0x28] sm:$0xff]  ;;  %v2839_v8 = vld [vmem:[#allocation8 + $0x18] sm:$0xff] }
 0x333   :  { %5597 = vmatprep.subr.bf16.mxu1 %v5596_v16  ;;  %v1618_v16 = vld [vmem:[#allocation7 + $0x1db0] sm:$0xff]  ;;  %v5376_v38 = vpack.c.bf16 %v1689_v59, %v1681_v58  ;;  %v1688_v3 = vld [vmem:[#allocation7 + $0x1fe0] sm:$0xff]  ;;  %v2869_v58 = vld [vmem:[#allocation8 + $0x108] sm:$0xff] }
 0x334   :  { %v2873_v59 = vld [vmem:[#allocation8 + $0x128] sm:$0xff] }
 0x335   :  { %5343 = vmatpush1.bf16.msra.mxu0 %v5342_v24  ;;  %v1643_v24 = vld [vmem:[#allocation7 + $0x1e78] sm:$0xff] }
 0x336   :  { %5599 = vmatpush1.bf16.msra.mxu1 %v5598_v47  ;;  %5345 = vmatprep.subr.bf16.mxu0 %v5344_v25  ;;  %v5362_v47 = vpack.c.bf16 %v1624_v12, %v1616_v34  ;;  %v5618_v25 = vpack.c.bf16 %v1626_v42, %v1618_v16  ;;  %v5620_v31 = vpack.c.bf16 %v1643_v24, %v1635_v23  ;;  %v2836_v12 = vld [vmem:[#allocation8] sm:$0xff]  ;;  %v2838_v42 = vld [vmem:[#allocation8 + $0x10] sm:$0xff]  ;;  %v2849_v23 = vld [vmem:[#allocation8 + $0x68] sm:$0xff] }
 0x337   :  { %5601 = vmatprep.subr.bf16.mxu1 %v5600_v30  ;;  %v1634_v30 = vld [vmem:[#allocation7 + $0x1e30] sm:$0xff]  ;;  %v5636_v34 = vpack.c.bf16 %v2841_v14, %v2837_v7  ;;  %v2840_v16 = vld [vmem:[#allocation8 + $0x20] sm:$0xff]  ;;  %v2877_v7 = vld [vmem:[#allocation8 + $0x148] sm:$0xff] }
 0x338   :  { %v5638_v24 = vpack.c.bf16 %v2840_v16, %v2836_v12  ;;  %v2881_v14 = vld [vmem:[#allocation8 + $0x168] sm:$0xff]  ;;  %v2876_v12 = vld [vmem:[#allocation8 + $0x140] sm:$0xff] }
 0x339   :  { %5347 = vmatpush1.bf16.msra.mxu0 %v5346_v36  ;;  %v1659_v36 = vld [vmem:[#allocation7 + $0x1ef8] sm:$0xff]  ;;  %v2880_v16 = vld [vmem:[#allocation8 + $0x160] sm:$0xff] }
 0x33a   :  { %5603 = vmatpush1.bf16.msra.mxu1 %v5602_v37  ;;  %5349 = vmatprep.subr.bf16.mxu0 %v5348_v62  ;;  %v5366_v37 = vpack.c.bf16 %v1640_v29, %v1632_v28  ;;  %v5622_v62 = vpack.c.bf16 %v1642_v33, %v1634_v30  ;;  %v5624_v44 = vpack.c.bf16 %v1659_v36, %v1651_v35  ;;  %v2844_v28 = vld [vmem:[#allocation8 + $0x40] sm:$0xff]  ;;  %v2846_v30 = vld [vmem:[#allocation8 + $0x50] sm:$0xff]  ;;  %v2829_v35 = vmax.f32 %v6765_v19, 0.0 }
 0x33b   :  { %5605 = vmatprep.subr.bf16.mxu1 %v5604_v11  ;;  %v1650_v11 = vld [vmem:[#allocation7 + $0x1eb0] sm:$0xff]  ;;  %v2848_v29 = vld [vmem:[#allocation8 + $0x60] sm:$0xff] }
 0x33c   :  { %v2850_v33 = vld [vmem:[#allocation8 + $0x70] sm:$0xff] }
 0x33d   :  { %5351 = vmatpush1.bf16.msra.mxu0 %v5350_v50  ;;  %v1675_v50 = vld [vmem:[#allocation7 + $0x1f78] sm:$0xff]  ;;  %v2858_v19 = vld [vmem:[#allocation8 + $0xb0] sm:$0xff] }
 0x33e   :  { %5607 = vmatpush1.bf16.msra.mxu1 %v5606_v41  ;;  %5353 = vmatprep.subr.bf16.mxu0 %v5352_v51  ;;  %v5370_v41 = vpack.c.bf16 %v1656_v43, %v1648_v40  ;;  %v5626_v51 = vpack.c.bf16 %v1658_v45, %v1650_v11  ;;  %v5628_v57 = vpack.c.bf16 %v1675_v50, %v1667_v49  ;;  %v2852_v11 = vld [vmem:[#allocation8 + $0x80] sm:$0xff]  ;;  %v2854_v45 = vld [vmem:[#allocation8 + $0x90] sm:$0xff]  ;;  %v2865_v49 = vld [vmem:[#allocation8 + $0xe8] sm:$0xff] }
 0x33f   :  { %5609 = vmatprep.subr.bf16.mxu1 %v5608_v56  ;;  %v1666_v56 = vld [vmem:[#allocation7 + $0x1f30] sm:$0xff]  ;;  %v5898_v40 = vpack.c.bf16 %v2850_v33, %v2846_v30  ;;  %v5644_v43 = vpack.c.bf16 %v2857_v63, %v2853_v55  ;;  %v2863_v50 = vld [vmem:[#allocation8 + $0xd8] sm:$0xff]  ;;  %v2888_v30 = vld [vmem:[#allocation8 + $0x1a0] sm:$0xff] }
 0x340   :  { %v2890_v55 = vld [vmem:[#allocation8 + $0x1b0] sm:$0xff]  ;;  %v2893_v63 = vld [vmem:[#allocation8 + $0x1c8] sm:$0xff] }
 0x341   :  { %5355 = vmatpush1.bf16.msra.mxu0 %v5354_v61  ;;  %v1691_v61 = vld [vmem:[#allocation7 + $0x1ff8] sm:$0xff] }
 0x342   :  { %5611 = vmatpush1.bf16.msra.mxu1 %v5610_v0  ;;  %5357 = vmatprep.subr.bf16.mxu0 %v5356_v1  ;;  %v5374_v0 = vpack.c.bf16 %v1672_v54, %v1664_v53  ;;  %v5630_v1 = vpack.c.bf16 %v1674_v27, %v1666_v56  ;;  %v5632_v5 = vpack.c.bf16 %v1691_v61, %v1683_v60  ;;  %v2860_v53 = vld [vmem:[#allocation8 + $0xc0] sm:$0xff]  ;;  %v2862_v56 = vld [vmem:[#allocation8 + $0xd0] sm:$0xff]  ;;  %v2871_v60 = vld [vmem:[#allocation8 + $0x118] sm:$0xff] }
 0x343   :  { %5613 = vmatprep.subr.bf16.mxu1 %v5612_v4  ;;  %v1682_v4 = vld [vmem:[#allocation7 + $0x1fb0] sm:$0xff]  ;;  %v2864_v54 = vld [vmem:[#allocation8 + $0xe0] sm:$0xff]  ;;  %v2875_v61 = vld [vmem:[#allocation8 + $0x138] sm:$0xff] }
 0x344   :  { %v2866_v27 = vld [vmem:[#allocation8 + $0xf0] sm:$0xff] }
 0x345   :  { %5359 = vmatpush1.bf16.msra.mxu0 %v5358_v9  ;;  %v2843_v9 = vld [vmem:[#allocation8 + $0x38] sm:$0xff] }
 0x346   :  { %5615 = vmatpush1.bf16.msra.mxu1 %v5614_v32  ;;  %5361 = vmatprep.subr.bf16.mxu0 %v5360_v10  ;;  %v5378_v32 = vpack.c.bf16 %v1688_v3, %v1680_v2  ;;  %v5634_v10 = vpack.c.bf16 %v1690_v6, %v1682_v4  ;;  %v2868_v2 = vld [vmem:[#allocation8 + $0x100] sm:$0xff]  ;;  %v2870_v4 = vld [vmem:[#allocation8 + $0x110] sm:$0xff] }
 0x347   :  { %5617 = vmatprep.subr.bf16.mxu1 %v5616_v17  ;;  %v5892_v17 = vpack.c.bf16 %v2843_v9, %v2839_v8  ;;  %v2872_v3 = vld [vmem:[#allocation8 + $0x120] sm:$0xff]  ;;  %v2874_v6 = vld [vmem:[#allocation8 + $0x130] sm:$0xff]  ;;  %v2879_v8 = vld [vmem:[#allocation8 + $0x158] sm:$0xff] }
 0x348   :  { %v2883_v9 = vld [vmem:[#allocation8 + $0x178] sm:$0xff] }
 0x349   :  { %5363 = vmatpush1.bf16.msra.mxu0 %v5362_v47  ;;  %v2847_v47 = vld [vmem:[#allocation8 + $0x58] sm:$0xff] }
 0x34a   :  { %5619 = vmatpush1.bf16.msra.mxu1 %v5618_v25  ;;  %5365 = vmatprep.subr.bf16.mxu0 %v5364_v26  ;;  %v2851_v25 = vld [vmem:[#allocation8 + $0x78] sm:$0xff]  ;;  %v5894_v26 = vpack.c.bf16 %v2842_v18, %v2838_v42  ;;  %v5912_v42 = vpack.c.bf16 %v2883_v9, %v2879_v8  ;;  %v2882_v18 = vld [vmem:[#allocation8 + $0x170] sm:$0xff] }
 0x34b   :  { %5621 = vmatprep.subr.bf16.mxu1 %v5620_v31  ;;  %v5640_v31 = vpack.c.bf16 %v2849_v23, %v2845_v22  ;;  %v5896_v36 = vpack.c.bf16 %v2851_v25, %v2847_v47  ;;  %v2885_v22 = vld [vmem:[#allocation8 + $0x188] sm:$0xff]  ;;  %v2891_v47 = vld [vmem:[#allocation8 + $0x1b8] sm:$0xff]  ;;  %v5658_v25 = vpack.c.bf16 %v2880_v16, %v2876_v12  ;;  %v2920_v12 = vld [vmem:[#allocation8 + $0x2a0] sm:$0xff] }
 0x34c   :  { %v2889_v23 = vld [vmem:[#allocation8 + $0x1a8] sm:$0xff]  ;;  %v2923_v8 = vld [vmem:[#allocation8 + $0x2b8] sm:$0xff]  ;;  %v2918_v16 = vld [vmem:[#allocation8 + $0x290] sm:$0xff] }
 0x34d   :  { %5367 = vmatpush1.bf16.msra.mxu0 %v5366_v37  ;;  %v2855_v37 = vld [vmem:[#allocation8 + $0x98] sm:$0xff] }
 0x34e   :  { %5623 = vmatpush1.bf16.msra.mxu1 %v5622_v62  ;;  %5369 = vmatprep.subr.bf16.mxu0 %v5368_v39  ;;  %v2859_v62 = vld [vmem:[#allocation8 + $0xb8] sm:$0xff]  ;;  %v5642_v39 = vpack.c.bf16 %v2848_v29, %v2844_v28  ;;  %v5660_v28 = vpack.c.bf16 %v2889_v23, %v2885_v22  ;;  %v2884_v29 = vld [vmem:[#allocation8 + $0x180] sm:$0xff]  ;;  %v2929_v22 = vld [vmem:[#allocation8 + $0x2e8] sm:$0xff] }
 0x34f   :  { %5625 = vmatprep.subr.bf16.mxu1 %v5624_v44  ;;  %v2856_v44 = vld [vmem:[#allocation8 + $0xa0] sm:$0xff]  ;;  %v5900_v46 = vpack.c.bf16 %v2859_v62, %v2855_v37  ;;  %v2899_v37 = vld [vmem:[#allocation8 + $0x1f8] sm:$0xff]  ;;  %v5662_v62 = vpack.c.bf16 %v2888_v30, %v2884_v29  ;;  %v2926_v30 = vld [vmem:[#allocation8 + $0x2d0] sm:$0xff] }
 0x350   :  { %v2927_v23 = vld [vmem:[#allocation8 + $0x2d8] sm:$0xff]  ;;  %v2928_v29 = vld [vmem:[#allocation8 + $0x2e0] sm:$0xff] }
 0x351   :  { %5371 = vmatpush1.bf16.msra.mxu0 %v5370_v41  ;;  %v2867_v41 = vld [vmem:[#allocation8 + $0xf8] sm:$0xff] }
 0x352   :  { %5627 = vmatpush1.bf16.msra.mxu1 %v5626_v51  ;;  %5373 = vmatprep.subr.bf16.mxu0 %v5372_v52  ;;  %v5902_v51 = vpack.c.bf16 %v2858_v19, %v2854_v45  ;;  %v5648_v52 = vpack.c.bf16 %v2865_v49, %v2861_v48  ;;  %v2901_v19 = vld [vmem:[#allocation8 + $0x208] sm:$0xff]  ;;  %v2903_v49 = vld [vmem:[#allocation8 + $0x218] sm:$0xff] }
 0x353   :  { %5629 = vmatprep.subr.bf16.mxu1 %v5628_v57  ;;  %v5904_v57 = vpack.c.bf16 %v2867_v41, %v2863_v50  ;;  %v2905_v48 = vld [vmem:[#allocation8 + $0x228] sm:$0xff]  ;;  %v2907_v50 = vld [vmem:[#allocation8 + $0x238] sm:$0xff] }
 0x355   :  { %5375 = vmatpush1.bf16.msra.mxu0 %v5374_v0  ;;  %v5650_v0 = vpack.c.bf16 %v2864_v54, %v2860_v53  ;;  %v2904_v53 = vld [vmem:[#allocation8 + $0x220] sm:$0xff]  ;;  %v2902_v54 = vld [vmem:[#allocation8 + $0x210] sm:$0xff] }
 0x356   :  { %5631 = vmatpush1.bf16.msra.mxu1 %v5630_v1  ;;  %5377 = vmatprep.subr.bf16.mxu0 %v5376_v38  ;;  %v5906_v1 = vpack.c.bf16 %v2866_v27, %v2862_v56  ;;  %v5652_v38 = vpack.c.bf16 %v2873_v59, %v2869_v58  ;;  %v5924_v56 = vpack.c.bf16 %v2907_v50, %v2903_v49  ;;  %v2909_v27 = vld [vmem:[#allocation8 + $0x248] sm:$0xff]  ;;  %v2911_v59 = vld [vmem:[#allocation8 + $0x258] sm:$0xff] }
 0x357   :  { %5633 = vmatprep.subr.bf16.mxu1 %v5632_v5  ;;  %v5908_v5 = vpack.c.bf16 %v2875_v61, %v2871_v60  ;;  %v2913_v58 = vld [vmem:[#allocation8 + $0x268] sm:$0xff]  ;;  %v2915_v60 = vld [vmem:[#allocation8 + $0x278] sm:$0xff] }
 0x358   :  { %v2947_v49 = vld [vmem:[#allocation8 + $0x378] sm:$0xff] }
 0x359   :  { %5379 = vmatpush1.bf16.msra.mxu0 %v5378_v32  ;;  %v5654_v32 = vpack.c.bf16 %v2872_v3, %v2868_v2  ;;  %v2912_v2 = vld [vmem:[#allocation8 + $0x260] sm:$0xff]  ;;  %v2910_v3 = vld [vmem:[#allocation8 + $0x250] sm:$0xff] }
 0x35a   :  { %5635 = vmatpush1.bf16.msra.mxu1 %v5634_v10  ;;  %5637 = vmatprep.subr.bf16.mxu0 %v5636_v34  ;;  %v5910_v10 = vpack.c.bf16 %v2874_v6, %v2870_v4  ;;  %v5656_v34 = vpack.c.bf16 %v2881_v14, %v2877_v7  ;;  %v5928_v4 = vpack.c.bf16 %v2915_v60, %v2911_v59  ;;  %v2917_v6 = vld [vmem:[#allocation8 + $0x288] sm:$0xff]  ;;  %v2919_v14 = vld [vmem:[#allocation8 + $0x298] sm:$0xff] }
 0x35b   :  { %5893 = vmatprep.subr.bf16.mxu1 %v5892_v17  ;;  %v2878_v17 = vld [vmem:[#allocation8 + $0x150] sm:$0xff]  ;;  %v2921_v7 = vld [vmem:[#allocation8 + $0x2a8] sm:$0xff]  ;;  %v2955_v59 = vld [vmem:[#allocation8 + $0x3b8] sm:$0xff] }
 0x35c   :  { %2538 = vmatmul.mubr.f32.vlgmr.msra.gmra.mrb[4].mxu0 %v6743_v21 }
 0x35d   :  { %2822 = vmatmul.mubr.f32.vlgmr.msra.gmra.mrb[8].mxu1 %v6743_v21  ;;  %5639 = vmatpush1.bf16.msra.mxu0 %v5638_v24  ;;  %v5646_v21 = vpack.c.bf16 %v2856_v44, %v2852_v11  ;;  %v2887_v24 = vld [vmem:[#allocation8 + $0x198] sm:$0xff]  ;;  %v2896_v11 = vld [vmem:[#allocation8 + $0x1e0] sm:$0xff]  ;;  %v2894_v44 = vld [vmem:[#allocation8 + $0x1d0] sm:$0xff] }
 0x35e   :  { %3412 = vmatprep.mubr.f32.mxu0 %v2829_v35  ;;  %5895 = vmatpush1.bf16.msra.mxu1 %v5894_v26  ;;  %v5914_v26 = vpack.c.bf16 %v2882_v18, %v2878_v17  ;;  %v5916_v33 = vpack.c.bf16 %v2891_v47, %v2887_v24  ;;  %v5932_v17 = vpack.c.bf16 %v2923_v8, %v2919_v14  ;;  %v2925_v18 = vld [vmem:[#allocation8 + $0x2c8] sm:$0xff]  ;;  %v2931_v24 = vld [vmem:[#allocation8 + $0x2f8] sm:$0xff] }
 0x35f   :  { %3696 = vmatprep.mubr.f32.mxu1 %v2829_v35  ;;  %5641 = vmatprep.subr.bf16.mxu0 %v5640_v31  ;;  %v2886_v31 = vld [vmem:[#allocation8 + $0x190] sm:$0xff]  ;;  %v2897_v35 = vld [vmem:[#allocation8 + $0x1e8] sm:$0xff]  ;;  %v2963_v14 = vld [vmem:[#allocation8 + $0x3f8] sm:$0xff] }
 0x360   :  { %5897 = vmatprep.subr.bf16.mxu1 %v5896_v36  ;;  %v2895_v36 = vld [vmem:[#allocation8 + $0x1d8] sm:$0xff] }
 0x361   :  { %5643 = vmatpush1.bf16.msra.mxu0 %v5642_v39  ;;  %v5918_v39 = vpack.c.bf16 %v2890_v55, %v2886_v31  ;;  %v5920_v45 = vpack.c.bf16 %v2899_v37, %v2895_v36  ;;  %v5936_v31 = vpack.c.bf16 %v2931_v24, %v2927_v23  ;;  %v2933_v55 = vld [vmem:[#allocation8 + $0x308] sm:$0xff]  ;;  %v2939_v36 = vld [vmem:[#allocation8 + $0x338] sm:$0xff] }
 0x362   :  { %5899 = vmatpush1.bf16.msra.mxu1 %v5898_v40  ;;  %5645 = vmatprep.subr.bf16.mxu0 %v5644_v43  ;;  %v5664_v40 = vpack.c.bf16 %v2897_v35, %v2893_v63  ;;  %v2892_v43 = vld [vmem:[#allocation8 + $0x1c0] sm:$0xff]  ;;  %v2937_v63 = vld [vmem:[#allocation8 + $0x328] sm:$0xff]  ;;  %v2935_v35 = vld [vmem:[#allocation8 + $0x318] sm:$0xff] }
 0x363   :  { %5901 = vmatprep.subr.bf16.mxu1 %v5900_v46  ;;  %v2898_v46 = vld [vmem:[#allocation8 + $0x1f0] sm:$0xff]  ;;  %v5666_v41 = vpack.c.bf16 %v2896_v11, %v2892_v43  ;;  %v2936_v43 = vld [vmem:[#allocation8 + $0x320] sm:$0xff]  ;;  %v2971_v23 = vld [vmem:[#allocation8 + $0x438] sm:$0xff] }
 0x364   :  { %v2934_v11 = vld [vmem:[#allocation8 + $0x310] sm:$0xff] }
 0x365   :  { %5647 = vmatpush1.bf16.msra.mxu0 %v5646_v21  ;;  %v5922_v21 = vpack.c.bf16 %v2898_v46, %v2894_v44  ;;  %v5940_v44 = vpack.c.bf16 %v2939_v36, %v2935_v35  ;;  %v2941_v46 = vld [vmem:[#allocation8 + $0x348] sm:$0xff]  ;;  %v2975_v35 = vld [vmem:[#allocation8 + $0x458] sm:$0xff] }
 0x366   :  { %5903 = vmatpush1.bf16.msra.mxu1 %v5902_v51  ;;  %5649 = vmatprep.subr.bf16.mxu0 %v5648_v52  ;;  %v5668_v51 = vpack.c.bf16 %v2905_v48, %v2901_v19  ;;  %v2900_v52 = vld [vmem:[#allocation8 + $0x200] sm:$0xff]  ;;  %v2945_v19 = vld [vmem:[#allocation8 + $0x368] sm:$0xff]  ;;  %v2943_v48 = vld [vmem:[#allocation8 + $0x358] sm:$0xff] }
 0x367   :  { %5905 = vmatprep.subr.bf16.mxu1 %v5904_v57  ;;  %v2906_v57 = vld [vmem:[#allocation8 + $0x230] sm:$0xff]  ;;  %v5670_v61 = vpack.c.bf16 %v2904_v53, %v2900_v52  ;;  %v2944_v52 = vld [vmem:[#allocation8 + $0x360] sm:$0xff]  ;;  %v2979_v36 = vld [vmem:[#allocation8 + $0x478] sm:$0xff] }
 0x368   :  { %v2942_v53 = vld [vmem:[#allocation8 + $0x350] sm:$0xff] }
 0x369   :  { %5651 = vmatpush1.bf16.msra.mxu0 %v5650_v0  ;;  %v5926_v0 = vpack.c.bf16 %v2906_v57, %v2902_v54  ;;  %v5944_v54 = vpack.c.bf16 %v2947_v49, %v2943_v48  ;;  %v2949_v57 = vld [vmem:[#allocation8 + $0x388] sm:$0xff]  ;;  %v5960_v48 = vpack.c.bf16 %v2979_v36, %v2975_v35  ;;  %v2983_v49 = vld [vmem:[#allocation8 + $0x498] sm:$0xff] }
 0x36a   :  { %5907 = vmatpush1.bf16.msra.mxu1 %v5906_v1  ;;  %5653 = vmatprep.subr.bf16.mxu0 %v5652_v38  ;;  %v5672_v1 = vpack.c.bf16 %v2913_v58, %v2909_v27  ;;  %v2908_v38 = vld [vmem:[#allocation8 + $0x240] sm:$0xff]  ;;  %v2953_v27 = vld [vmem:[#allocation8 + $0x3a8] sm:$0xff]  ;;  %v2951_v58 = vld [vmem:[#allocation8 + $0x398] sm:$0xff] }
 0x36b   :  { %5909 = vmatprep.subr.bf16.mxu1 %v5908_v5  ;;  %v2914_v5 = vld [vmem:[#allocation8 + $0x270] sm:$0xff]  ;;  %v5674_v9 = vpack.c.bf16 %v2912_v2, %v2908_v38  ;;  %v2952_v38 = vld [vmem:[#allocation8 + $0x3a0] sm:$0xff] }
 0x36c   :  { %v2950_v2 = vld [vmem:[#allocation8 + $0x390] sm:$0xff] }
 0x36d   :  { %5655 = vmatpush1.bf16.msra.mxu0 %v5654_v32  ;;  %v5930_v32 = vpack.c.bf16 %v2914_v5, %v2910_v3  ;;  %v5948_v3 = vpack.c.bf16 %v2955_v59, %v2951_v58  ;;  %v2957_v5 = vld [vmem:[#allocation8 + $0x3c8] sm:$0xff]  ;;  %v2995_v58 = vld [vmem:[#allocation8 + $0x4f8] sm:$0xff] }
 0x36e   :  { %5911 = vmatpush1.bf16.msra.mxu1 %v5910_v10  ;;  %5657 = vmatprep.subr.bf16.mxu0 %v5656_v34  ;;  %v5676_v10 = vpack.c.bf16 %v2921_v7, %v2917_v6  ;;  %v2916_v34 = vld [vmem:[#allocation8 + $0x280] sm:$0xff]  ;;  %v2961_v6 = vld [vmem:[#allocation8 + $0x3e8] sm:$0xff]  ;;  %v2959_v7 = vld [vmem:[#allocation8 + $0x3d8] sm:$0xff] }
 0x36f   :  { %5913 = vmatprep.subr.bf16.mxu1 %v5912_v42  ;;  %v2922_v42 = vld [vmem:[#allocation8 + $0x2b0] sm:$0xff]  ;;  %v5678_v47 = vpack.c.bf16 %v2920_v12, %v2916_v34  ;;  %v2960_v34 = vld [vmem:[#allocation8 + $0x3e0] sm:$0xff] }
 0x370   :  { %v2958_v12 = vld [vmem:[#allocation8 + $0x3d0] sm:$0xff] }
 0x371   :  { %5659 = vmatpush1.bf16.msra.mxu0 %v5658_v25  ;;  %v5934_v25 = vpack.c.bf16 %v2922_v42, %v2918_v16  ;;  %v5952_v16 = vpack.c.bf16 %v2963_v14, %v2959_v7  ;;  %v2965_v42 = vld [vmem:[#allocation8 + $0x408] sm:$0xff]  ;;  %v3003_v7 = vld [vmem:[#allocation8 + $0x538] sm:$0xff] }
 0x372   :  { %5915 = vmatpush1.bf16.msra.mxu1 %v5914_v26  ;;  %5661 = vmatprep.subr.bf16.mxu0 %v5660_v28  ;;  %v5680_v26 = vpack.c.bf16 %v2929_v22, %v2925_v18  ;;  %v2924_v28 = vld [vmem:[#allocation8 + $0x2c0] sm:$0xff]  ;;  %v2969_v18 = vld [vmem:[#allocation8 + $0x428] sm:$0xff]  ;;  %v2967_v22 = vld [vmem:[#allocation8 + $0x418] sm:$0xff] }
 0x373   :  { %5917 = vmatprep.subr.bf16.mxu1 %v5916_v33  ;;  %v2930_v33 = vld [vmem:[#allocation8 + $0x2f0] sm:$0xff]  ;;  %v5682_v37 = vpack.c.bf16 %v2928_v29, %v2924_v28  ;;  %v2968_v28 = vld [vmem:[#allocation8 + $0x420] sm:$0xff]  ;;  %v5956_v29 = vpack.c.bf16 %v2971_v23, %v2967_v22  ;;  %v3011_v22 = vld [vmem:[#allocation8 + $0x578] sm:$0xff] }
 0x375   :  { %5663 = vmatpush1.bf16.msra.mxu0 %v5662_v62  ;;  %v5938_v62 = vpack.c.bf16 %v2930_v33, %v2926_v30  ;;  %v2966_v30 = vld [vmem:[#allocation8 + $0x410] sm:$0xff]  ;;  %v2973_v33 = vld [vmem:[#allocation8 + $0x448] sm:$0xff] }
 0x376   :  { %5919 = vmatpush1.bf16.msra.mxu1 %v5918_v39  ;;  %5665 = vmatprep.subr.bf16.mxu0 %v5664_v40  ;;  %v5684_v39 = vpack.c.bf16 %v2937_v63, %v2933_v55  ;;  %v2932_v40 = vld [vmem:[#allocation8 + $0x300] sm:$0xff]  ;;  %v2977_v55 = vld [vmem:[#allocation8 + $0x468] sm:$0xff] }
 0x377   :  { %5921 = vmatprep.subr.bf16.mxu1 %v5920_v45  ;;  %v2938_v45 = vld [vmem:[#allocation8 + $0x330] sm:$0xff]  ;;  %v5686_v50 = vpack.c.bf16 %v2936_v43, %v2932_v40  ;;  %v2976_v40 = vld [vmem:[#allocation8 + $0x460] sm:$0xff] }
 0x378   :  { %v2974_v43 = vld [vmem:[#allocation8 + $0x450] sm:$0xff] }
 0x379   :  { %5667 = vmatpush1.bf16.msra.mxu0 %v5666_v41  ;;  %v5942_v41 = vpack.c.bf16 %v2938_v45, %v2934_v11  ;;  %v5704_v11 = vpack.c.bf16 %v2977_v55, %v2973_v33  ;;  %v2981_v45 = vld [vmem:[#allocation8 + $0x488] sm:$0xff]  ;;  %v3015_v55 = vld [vmem:[#allocation8 + $0x598] sm:$0xff] }
 0x37a   :  { %5923 = vmatpush1.bf16.msra.mxu1 %v5922_v21  ;;  %5669 = vmatprep.subr.bf16.mxu0 %v5668_v51  ;;  %v5688_v21 = vpack.c.bf16 %v2945_v19, %v2941_v46  ;;  %v2940_v51 = vld [vmem:[#allocation8 + $0x340] sm:$0xff]  ;;  %v2985_v46 = vld [vmem:[#allocation8 + $0x4a8] sm:$0xff]  ;;  %v2831_v19 = vmax.f32 %v6767_v20, 0.0 }
 0x37b   :  { %5925 = vmatprep.subr.bf16.mxu1 %v5924_v56  ;;  %v2946_v56 = vld [vmem:[#allocation8 + $0x370] sm:$0xff]  ;;  %v5690_v60 = vpack.c.bf16 %v2944_v52, %v2940_v51  ;;  %v2980_v51 = vld [vmem:[#allocation8 + $0x480] sm:$0xff]  ;;  %v2993_v20 = vld [vmem:[#allocation8 + $0x4e8] sm:$0xff] }
 0x37c   :  { %v2984_v52 = vld [vmem:[#allocation8 + $0x4a0] sm:$0xff]  ;;  %v3017_v33 = vld [vmem:[#allocation8 + $0x5a8] sm:$0xff] }
 0x37d   :  { %5671 = vmatpush1.bf16.msra.mxu0 %v5670_v61  ;;  %v5946_v61 = vpack.c.bf16 %v2946_v56, %v2942_v53  ;;  %v2982_v53 = vld [vmem:[#allocation8 + $0x490] sm:$0xff]  ;;  %v5710_v59 = vpack.c.bf16 %v2984_v52, %v2980_v51 }
 0x37e   :  { %5927 = vmatpush1.bf16.msra.mxu1 %v5926_v0  ;;  %5673 = vmatprep.subr.bf16.mxu0 %v5672_v1  ;;  %v5692_v0 = vpack.c.bf16 %v2953_v27, %v2949_v57  ;;  %v2948_v1 = vld [vmem:[#allocation8 + $0x380] sm:$0xff]  ;;  %v2986_v56 = vld [vmem:[#allocation8 + $0x4b0] sm:$0xff]  ;;  %v2989_v57 = vld [vmem:[#allocation8 + $0x4c8] sm:$0xff] }
 0x37f   :  { %5929 = vmatprep.subr.bf16.mxu1 %v5928_v4  ;;  %v2954_v4 = vld [vmem:[#allocation8 + $0x3b0] sm:$0xff]  ;;  %v5694_v8 = vpack.c.bf16 %v2952_v38, %v2948_v1  ;;  %v2991_v27 = vld [vmem:[#allocation8 + $0x4d8] sm:$0xff]  ;;  %v2992_v1 = vld [vmem:[#allocation8 + $0x4e0] sm:$0xff] }
 0x380   :  { %v2990_v38 = vld [vmem:[#allocation8 + $0x4d0] sm:$0xff] }
 0x381   :  { %5675 = vmatpush1.bf16.msra.mxu0 %v5674_v9  ;;  %v5950_v9 = vpack.c.bf16 %v2954_v4, %v2950_v2  ;;  %v5968_v2 = vpack.c.bf16 %v2995_v58, %v2991_v27  ;;  %v2997_v4 = vld [vmem:[#allocation8 + $0x508] sm:$0xff]  ;;  %v3026_v52 = vld [vmem:[#allocation8 + $0x5f0] sm:$0xff] }
 0x382   :  { %5931 = vmatpush1.bf16.msra.mxu1 %v5930_v32  ;;  %5677 = vmatprep.subr.bf16.mxu0 %v5676_v10  ;;  %v5696_v32 = vpack.c.bf16 %v2961_v6, %v2957_v5  ;;  %v2956_v10 = vld [vmem:[#allocation8 + $0x3c0] sm:$0xff]  ;;  %v3001_v5 = vld [vmem:[#allocation8 + $0x528] sm:$0xff]  ;;  %v2999_v6 = vld [vmem:[#allocation8 + $0x518] sm:$0xff] }
 0x383   :  { %5933 = vmatprep.subr.bf16.mxu1 %v5932_v17  ;;  %v2962_v17 = vld [vmem:[#allocation8 + $0x3f0] sm:$0xff]  ;;  %v5698_v24 = vpack.c.bf16 %v2960_v34, %v2956_v10  ;;  %v3000_v10 = vld [vmem:[#allocation8 + $0x520] sm:$0xff] }
 0x384   :  { %v2998_v34 = vld [vmem:[#allocation8 + $0x510] sm:$0xff] }
 0x385   :  { %5679 = vmatpush1.bf16.msra.mxu0 %v5678_v47  ;;  %v5954_v47 = vpack.c.bf16 %v2962_v17, %v2958_v12  ;;  %v5972_v12 = vpack.c.bf16 %v3003_v7, %v2999_v6  ;;  %v3005_v17 = vld [vmem:[#allocation8 + $0x548] sm:$0xff] }
 0x386   :  { %5935 = vmatpush1.bf16.msra.mxu1 %v5934_v25  ;;  %5681 = vmatprep.subr.bf16.mxu0 %v5680_v26  ;;  %v5700_v25 = vpack.c.bf16 %v2969_v18, %v2965_v42  ;;  %v2964_v26 = vld [vmem:[#allocation8 + $0x400] sm:$0xff]  ;;  %v3009_v42 = vld [vmem:[#allocation8 + $0x568] sm:$0xff]  ;;  %v3007_v18 = vld [vmem:[#allocation8 + $0x558] sm:$0xff] }
 0x387   :  { %5937 = vmatprep.subr.bf16.mxu1 %v5936_v31  ;;  %v2970_v31 = vld [vmem:[#allocation8 + $0x430] sm:$0xff]  ;;  %v5702_v63 = vpack.c.bf16 %v2968_v28, %v2964_v26  ;;  %v3008_v26 = vld [vmem:[#allocation8 + $0x560] sm:$0xff] }
 0x388   :  { %v3006_v28 = vld [vmem:[#allocation8 + $0x550] sm:$0xff] }
 0x389   :  { %5683 = vmatpush1.bf16.msra.mxu0 %v5682_v37  ;;  %v2828_v37 = vmax.f32 %v6761_v13, 0.0 }
 0x38a   :  { %5939 = vmatpush1.bf16.msra.mxu1 %v5938_v62  ;;  %5685 = vmatprep.subr.bf16.mxu0 %v5684_v39  ;;  %v5958_v62 = vpack.c.bf16 %v2970_v31, %v2966_v30  ;;  %v2972_v39 = vld [vmem:[#allocation8 + $0x440] sm:$0xff]  ;;  %v3010_v30 = vld [vmem:[#allocation8 + $0x570] sm:$0xff]  ;;  %v3013_v31 = vld [vmem:[#allocation8 + $0x588] sm:$0xff] }
 0x38b   :  { %5941 = vmatprep.subr.bf16.mxu1 %v5940_v44  ;;  %v2978_v44 = vld [vmem:[#allocation8 + $0x470] sm:$0xff]  ;;  %v5706_v13 = vpack.c.bf16 %v2976_v40, %v2972_v39  ;;  %v5978_v36 = vpack.c.bf16 %v3010_v30, %v3006_v28  ;;  %v3016_v39 = vld [vmem:[#allocation8 + $0x5a0] sm:$0xff]  ;;  %v3053_v28 = vld [vmem:[#allocation8 + $0x6c8] sm:$0xff] }
 0x38c   :  { %v3014_v40 = vld [vmem:[#allocation8 + $0x590] sm:$0xff]  ;;  %v3055_v30 = vld [vmem:[#allocation8 + $0x6d8] sm:$0xff] }
 0x38d   :  { %5687 = vmatpush1.bf16.msra.mxu0 %v5686_v50  ;;  %v2987_v50 = vld [vmem:[#allocation8 + $0x4b8] sm:$0xff] }
 0x38e   :  { %5943 = vmatpush1.bf16.msra.mxu1 %v5942_v41  ;;  %5689 = vmatprep.subr.bf16.mxu0 %v5688_v21  ;;  %v5962_v41 = vpack.c.bf16 %v2978_v44, %v2974_v43  ;;  %v5708_v21 = vpack.c.bf16 %v2985_v46, %v2981_v45  ;;  %v3021_v44 = vld [vmem:[#allocation8 + $0x5c8] sm:$0xff]  ;;  %v3023_v46 = vld [vmem:[#allocation8 + $0x5d8] sm:$0xff] }
 0x38f   :  { %5945 = vmatprep.subr.bf16.mxu1 %v5944_v54  ;;  %v5964_v54 = vpack.c.bf16 %v2987_v50, %v2983_v49  ;;  %v3025_v45 = vld [vmem:[#allocation8 + $0x5e8] sm:$0xff] }
 0x390   :  { %v5728_v50 = vpack.c.bf16 %v3025_v45, %v3021_v44  ;;  %v3067_v44 = vld [vmem:[#allocation8 + $0x738] sm:$0xff] }
 0x391   :  { %5691 = vmatpush1.bf16.msra.mxu0 %v5690_v60  ;;  %v5966_v60 = vpack.c.bf16 %v2986_v56, %v2982_v53  ;;  %v3029_v53 = vld [vmem:[#allocation8 + $0x608] sm:$0xff]  ;;  %v3031_v56 = vld [vmem:[#allocation8 + $0x618] sm:$0xff] }
 0x392   :  { %5947 = vmatpush1.bf16.msra.mxu1 %v5946_v61  ;;  %5693 = vmatprep.subr.bf16.mxu0 %v5692_v0  ;;  %v5712_v61 = vpack.c.bf16 %v2993_v20, %v2989_v57  ;;  %v2988_v0 = vld [vmem:[#allocation8 + $0x4c0] sm:$0xff]  ;;  %v3035_v57 = vld [vmem:[#allocation8 + $0x638] sm:$0xff] }
 0x393   :  { %5949 = vmatprep.subr.bf16.mxu1 %v5948_v3  ;;  %v2994_v3 = vld [vmem:[#allocation8 + $0x4f0] sm:$0xff]  ;;  %v5714_v14 = vpack.c.bf16 %v2992_v1, %v2988_v0  ;;  %v5988_v0 = vpack.c.bf16 %v3035_v57, %v3031_v56 }
 0x394   :  { %v3034_v1 = vld [vmem:[#allocation8 + $0x630] sm:$0xff] }
 0x395   :  { %5695 = vmatpush1.bf16.msra.mxu0 %v5694_v8  ;;  %v5970_v8 = vpack.c.bf16 %v2994_v3, %v2990_v38  ;;  %v3037_v38 = vld [vmem:[#allocation8 + $0x648] sm:$0xff]  ;;  %v3039_v3 = vld [vmem:[#allocation8 + $0x658] sm:$0xff] }
 0x396   :  { %5951 = vmatpush1.bf16.msra.mxu1 %v5950_v9  ;;  %5697 = vmatprep.subr.bf16.mxu0 %v5696_v32  ;;  %v5716_v9 = vpack.c.bf16 %v3001_v5, %v2997_v4  ;;  %v2996_v32 = vld [vmem:[#allocation8 + $0x500] sm:$0xff]  ;;  %v3043_v4 = vld [vmem:[#allocation8 + $0x678] sm:$0xff] }
 0x397   :  { %5953 = vmatprep.subr.bf16.mxu1 %v5952_v16  ;;  %v3002_v16 = vld [vmem:[#allocation8 + $0x530] sm:$0xff]  ;;  %v5718_v23 = vpack.c.bf16 %v3000_v10, %v2996_v32  ;;  %v5992_v32 = vpack.c.bf16 %v3043_v4, %v3039_v3 }
 0x398   :  { %v3042_v10 = vld [vmem:[#allocation8 + $0x670] sm:$0xff] }
 0x399   :  { %5699 = vmatpush1.bf16.msra.mxu0 %v5698_v24  ;;  %v5974_v24 = vpack.c.bf16 %v3002_v16, %v2998_v34  ;;  %v3045_v34 = vld [vmem:[#allocation8 + $0x688] sm:$0xff]  ;;  %v3047_v16 = vld [vmem:[#allocation8 + $0x698] sm:$0xff] }
 0x39a   :  { %5955 = vmatpush1.bf16.msra.mxu1 %v5954_v47  ;;  %5701 = vmatprep.subr.bf16.mxu0 %v5700_v25  ;;  %v5720_v47 = vpack.c.bf16 %v3009_v42, %v3005_v17  ;;  %v3004_v25 = vld [vmem:[#allocation8 + $0x540] sm:$0xff]  ;;  %v3051_v17 = vld [vmem:[#allocation8 + $0x6b8] sm:$0xff] }
 0x39b   :  { %5957 = vmatprep.subr.bf16.mxu1 %v5956_v29  ;;  %v5976_v29 = vpack.c.bf16 %v3011_v22, %v3007_v18  ;;  %v5722_v35 = vpack.c.bf16 %v3008_v26, %v3004_v25  ;;  %v5996_v25 = vpack.c.bf16 %v3051_v17, %v3047_v16  ;;  %v3050_v26 = vld [vmem:[#allocation8 + $0x6b0] sm:$0xff] }
 0x39c   :  { %3413 = vmatmul.mubr.f32.vlgmr.msra.gmra.mrb[6].mxu0 %v2828_v37 }
 0x39d   :  { %3697 = vmatmul.mubr.f32.vlgmr.msra.gmra.mrb[10].mxu1 %v2828_v37  ;;  %5703 = vmatpush1.bf16.msra.mxu0 %v5702_v63  ;;  %v3019_v63 = vld [vmem:[#allocation8 + $0x5b8] sm:$0xff]  ;;  %v5724_v37 = vpack.c.bf16 %v3017_v33, %v3013_v31 }
 0x39e   :  { %3483 = vmatprep.mubr.f32.mxu0 %v2831_v19  ;;  %5959 = vmatpush1.bf16.msra.mxu1 %v5958_v62  ;;  %v3012_v62 = vld [vmem:[#allocation8 + $0x580] sm:$0xff]  ;;  %v5980_v43 = vpack.c.bf16 %v3019_v63, %v3015_v55  ;;  %v3059_v31 = vld [vmem:[#allocation8 + $0x6f8] sm:$0xff] }
 0x39f   :  { %3767 = vmatprep.mubr.f32.mxu1 %v2831_v19  ;;  %5705 = vmatprep.subr.bf16.mxu0 %v5704_v11  ;;  %v3018_v11 = vld [vmem:[#allocation8 + $0x5b0] sm:$0xff]  ;;  %v3027_v19 = vld [vmem:[#allocation8 + $0x5f8] sm:$0xff] }
 0x3a0   :  { %5961 = vmatprep.subr.bf16.mxu1 %v5960_v48  ;;  %v5726_v48 = vpack.c.bf16 %v3016_v39, %v3012_v62  ;;  %v5982_v49 = vpack.c.bf16 %v3018_v11, %v3014_v40  ;;  %v5984_v51 = vpack.c.bf16 %v3027_v19, %v3023_v46  ;;  %v6000_v62 = vpack.c.bf16 %v3059_v31, %v3055_v30  ;;  %v3058_v39 = vld [vmem:[#allocation8 + $0x6f0] sm:$0xff]  ;;  %v3061_v40 = vld [vmem:[#allocation8 + $0x708] sm:$0xff]  ;;  %v3063_v11 = vld [vmem:[#allocation8 + $0x718] sm:$0xff] }
 0x3a1   :  { %5707 = vmatpush1.bf16.msra.mxu0 %v5706_v13  ;;  %v3020_v13 = vld [vmem:[#allocation8 + $0x5c0] sm:$0xff] }
 0x3a2   :  { %5963 = vmatpush1.bf16.msra.mxu1 %v5962_v41  ;;  %5709 = vmatprep.subr.bf16.mxu0 %v5708_v21  ;;  %v3024_v41 = vld [vmem:[#allocation8 + $0x5e0] sm:$0xff]  ;;  %v3022_v21 = vld [vmem:[#allocation8 + $0x5d0] sm:$0xff] }
 0x3a3   :  { %5965 = vmatprep.subr.bf16.mxu1 %v5964_v54  ;;  %v3033_v54 = vld [vmem:[#allocation8 + $0x628] sm:$0xff]  ;;  %v5730_v20 = vpack.c.bf16 %v3024_v41, %v3020_v13  ;;  %v5986_v27 = vpack.c.bf16 %v3026_v52, %v3022_v21  ;;  %v6004_v13 = vpack.c.bf16 %v3067_v44, %v3063_v11  ;;  %v3066_v41 = vld [vmem:[#allocation8 + $0x730] sm:$0xff]  ;;  %v3071_v52 = vld [vmem:[#allocation8 + $0x758] sm:$0xff]  ;;  %v2830_v11 = vmax.f32 %v6763_v15, 0.0 }
 0x3a4   :  { %v5732_v58 = vpack.c.bf16 %v3033_v54, %v3029_v53  ;;  %v3069_v21 = vld [vmem:[#allocation8 + $0x748] sm:$0xff]  ;;  %v3075_v53 = vld [vmem:[#allocation8 + $0x778] sm:$0xff] }
 0x3a5   :  { %5711 = vmatpush1.bf16.msra.mxu0 %v5710_v59  ;;  %v3028_v59 = vld [vmem:[#allocation8 + $0x600] sm:$0xff] }
 0x3a6   :  { %5967 = vmatpush1.bf16.msra.mxu1 %v5966_v60  ;;  %5713 = vmatprep.subr.bf16.mxu0 %v5712_v61  ;;  %v3032_v60 = vld [vmem:[#allocation8 + $0x620] sm:$0xff]  ;;  %v3030_v61 = vld [vmem:[#allocation8 + $0x610] sm:$0xff] }
 0x3a7   :  { %5969 = vmatprep.subr.bf16.mxu1 %v5968_v2  ;;  %v3041_v2 = vld [vmem:[#allocation8 + $0x668] sm:$0xff]  ;;  %v5734_v5 = vpack.c.bf16 %v3032_v60, %v3028_v59  ;;  %v5990_v6 = vpack.c.bf16 %v3034_v1, %v3030_v61  ;;  %v6008_v59 = vpack.c.bf16 %v3075_v53, %v3071_v52  ;;  %v3074_v60 = vld [vmem:[#allocation8 + $0x770] sm:$0xff]  ;;  %v3079_v1 = vld [vmem:[#allocation8 + $0x798] sm:$0xff] }
 0x3a8   :  { %v5736_v7 = vpack.c.bf16 %v3041_v2, %v3037_v38  ;;  %v3077_v61 = vld [vmem:[#allocation8 + $0x788] sm:$0xff]  ;;  %v3083_v38 = vld [vmem:[#allocation8 + $0x7b8] sm:$0xff] }
 0x3a9   :  { %5715 = vmatpush1.bf16.msra.mxu0 %v5714_v14  ;;  %v3036_v14 = vld [vmem:[#allocation8 + $0x640] sm:$0xff] }
 0x3aa   :  { %5971 = vmatpush1.bf16.msra.mxu1 %v5970_v8  ;;  %5717 = vmatprep.subr.bf16.mxu0 %v5716_v9  ;;  %v3040_v8 = vld [vmem:[#allocation8 + $0x660] sm:$0xff]  ;;  %v3038_v9 = vld [vmem:[#allocation8 + $0x650] sm:$0xff] }
 0x3ab   :  { %5973 = vmatprep.subr.bf16.mxu1 %v5972_v12  ;;  %v3049_v12 = vld [vmem:[#allocation8 + $0x6a8] sm:$0xff]  ;;  %v5738_v42 = vpack.c.bf16 %v3040_v8, %v3036_v14  ;;  %v5994_v18 = vpack.c.bf16 %v3042_v10, %v3038_v9  ;;  %v6012_v14 = vpack.c.bf16 %v3083_v38, %v3079_v1  ;;  %v3082_v8 = vld [vmem:[#allocation8 + $0x7b0] sm:$0xff]  ;;  %v3087_v10 = vld [vmem:[#allocation8 + $0x7d8] sm:$0xff] }
 0x3ac   :  { %v5740_v22 = vpack.c.bf16 %v3049_v12, %v3045_v34  ;;  %v3085_v9 = vld [vmem:[#allocation8 + $0x7c8] sm:$0xff]  ;;  %v3091_v34 = vld [vmem:[#allocation8 + $0x7f8] sm:$0xff] }
 0x3ad   :  { %5719 = vmatpush1.bf16.msra.mxu0 %v5718_v23  ;;  %v3044_v23 = vld [vmem:[#allocation8 + $0x680] sm:$0xff] }
 0x3ae   :  { %5975 = vmatpush1.bf16.msra.mxu1 %v5974_v24  ;;  %5721 = vmatprep.subr.bf16.mxu0 %v5720_v47  ;;  %v3048_v24 = vld [vmem:[#allocation8 + $0x6a0] sm:$0xff]  ;;  %v3046_v47 = vld [vmem:[#allocation8 + $0x690] sm:$0xff] }
 0x3af   :  { %5977 = vmatprep.subr.bf16.mxu1 %v5976_v29  ;;  %v3057_v29 = vld [vmem:[#allocation8 + $0x6e8] sm:$0xff]  ;;  %v5742_v33 = vpack.c.bf16 %v3048_v24, %v3044_v23  ;;  %v5998_v55 = vpack.c.bf16 %v3050_v26, %v3046_v47  ;;  %v6016_v23 = vpack.c.bf16 %v3091_v34, %v3087_v10  ;;  %v3090_v24 = vld [vmem:[#allocation8 + $0x7f0] sm:$0xff]  ;;  %v3095_v26 = vld [vmem:[#allocation8 + $0x818] sm:$0xff] }
 0x3b0   :  { %v5744_v63 = vpack.c.bf16 %v3057_v29, %v3053_v28  ;;  %v3093_v47 = vld [vmem:[#allocation8 + $0x808] sm:$0xff]  ;;  %v3099_v28 = vld [vmem:[#allocation8 + $0x838] sm:$0xff] }
 0x3b1   :  { %5723 = vmatpush1.bf16.msra.mxu0 %v5722_v35  ;;  %v3052_v35 = vld [vmem:[#allocation8 + $0x6c0] sm:$0xff] }
 0x3b2   :  { %5979 = vmatpush1.bf16.msra.mxu1 %v5978_v36  ;;  %5725 = vmatprep.subr.bf16.mxu0 %v5724_v37  ;;  %v3056_v36 = vld [vmem:[#allocation8 + $0x6e0] sm:$0xff]  ;;  %v3054_v37 = vld [vmem:[#allocation8 + $0x6d0] sm:$0xff] }
 0x3b3   :  { %5981 = vmatprep.subr.bf16.mxu1 %v5980_v43  ;;  %v3065_v43 = vld [vmem:[#allocation8 + $0x728] sm:$0xff]  ;;  %v5746_v45 = vpack.c.bf16 %v3056_v36, %v3052_v35  ;;  %v6002_v46 = vpack.c.bf16 %v3058_v39, %v3054_v37  ;;  %v6020_v35 = vpack.c.bf16 %v3099_v28, %v3095_v26  ;;  %v3098_v36 = vld [vmem:[#allocation8 + $0x830] sm:$0xff]  ;;  %v3103_v39 = vld [vmem:[#allocation8 + $0x858] sm:$0xff] }
 0x3b4   :  { %v5748_v19 = vpack.c.bf16 %v3065_v43, %v3061_v40  ;;  %v3101_v37 = vld [vmem:[#allocation8 + $0x848] sm:$0xff]  ;;  %v3107_v40 = vld [vmem:[#allocation8 + $0x878] sm:$0xff] }
 0x3b5   :  { %5727 = vmatpush1.bf16.msra.mxu0 %v5726_v48  ;;  %v3060_v48 = vld [vmem:[#allocation8 + $0x700] sm:$0xff] }
 0x3b6   :  { %5983 = vmatpush1.bf16.msra.mxu1 %v5982_v49  ;;  %5729 = vmatprep.subr.bf16.mxu0 %v5728_v50  ;;  %v3064_v49 = vld [vmem:[#allocation8 + $0x720] sm:$0xff]  ;;  %v3062_v50 = vld [vmem:[#allocation8 + $0x710] sm:$0xff] }
 0x3b7   :  { %5985 = vmatprep.subr.bf16.mxu1 %v5984_v51  ;;  %v3073_v51 = vld [vmem:[#allocation8 + $0x768] sm:$0xff]  ;;  %v5750_v54 = vpack.c.bf16 %v3064_v49, %v3060_v48  ;;  %v6006_v56 = vpack.c.bf16 %v3066_v41, %v3062_v50  ;;  %v3102_v48 = vld [vmem:[#allocation8 + $0x850] sm:$0xff]  ;;  %v6024_v49 = vpack.c.bf16 %v3107_v40, %v3103_v39 }
 0x3b8   :  { %v5752_v57 = vpack.c.bf16 %v3073_v51, %v3069_v21  ;;  %v3106_v50 = vld [vmem:[#allocation8 + $0x870] sm:$0xff]  ;;  %v3113_v41 = vld [vmem:[#allocation8 + $0x8a8] sm:$0xff]  ;;  %v3111_v21 = vld [vmem:[#allocation8 + $0x898] sm:$0xff] }
 0x3b9   :  { %5731 = vmatpush1.bf16.msra.mxu0 %v5730_v20  ;;  %v3068_v20 = vld [vmem:[#allocation8 + $0x740] sm:$0xff]  ;;  %v3115_v51 = vld [vmem:[#allocation8 + $0x8b8] sm:$0xff]  ;;  %v6026_v15 = vpack.c.bf16 %v3106_v50, %v3102_v48  ;;  %v3153_v48 = vld [vmem:[#allocation8 + $0x9e8] sm:$0xff] }
 0x3ba   :  { %5987 = vmatpush1.bf16.msra.mxu1 %v5986_v27  ;;  %5733 = vmatprep.subr.bf16.mxu0 %v5732_v58  ;;  %v3072_v27 = vld [vmem:[#allocation8 + $0x760] sm:$0xff]  ;;  %v3070_v58 = vld [vmem:[#allocation8 + $0x750] sm:$0xff]  ;;  %v3155_v50 = vld [vmem:[#allocation8 + $0x9f8] sm:$0xff] }
 0x3bb   :  { %5989 = vmatprep.subr.bf16.mxu1 %v5988_v0  ;;  %v3081_v0 = vld [vmem:[#allocation8 + $0x7a8] sm:$0xff]  ;;  %v5754_v2 = vpack.c.bf16 %v3072_v27, %v3068_v20  ;;  %v6010_v3 = vpack.c.bf16 %v3074_v60, %v3070_v58  ;;  %v6028_v20 = vpack.c.bf16 %v3115_v51, %v3111_v21  ;;  %v3114_v27 = vld [vmem:[#allocation8 + $0x8b0] sm:$0xff]  ;;  %v3119_v60 = vld [vmem:[#allocation8 + $0x8d8] sm:$0xff] }
 0x3bc   :  { %v5756_v4 = vpack.c.bf16 %v3081_v0, %v3077_v61  ;;  %v3117_v58 = vld [vmem:[#allocation8 + $0x8c8] sm:$0xff]  ;;  %v3123_v61 = vld [vmem:[#allocation8 + $0x8f8] sm:$0xff]  ;;  %v3148_v51 = vld [vmem:[#allocation8 + $0x9c0] sm:$0xff] }
 0x3bd   :  { %5735 = vmatpush1.bf16.msra.mxu0 %v5734_v5  ;;  %v3076_v5 = vld [vmem:[#allocation8 + $0x780] sm:$0xff] }
 0x3be   :  { %5991 = vmatpush1.bf16.msra.mxu1 %v5990_v6  ;;  %5737 = vmatprep.subr.bf16.mxu0 %v5736_v7  ;;  %v3080_v6 = vld [vmem:[#allocation8 + $0x7a0] sm:$0xff]  ;;  %v3078_v7 = vld [vmem:[#allocation8 + $0x790] sm:$0xff] }
 0x3bf   :  { %5993 = vmatprep.subr.bf16.mxu1 %v5992_v32  ;;  %v3089_v32 = vld [vmem:[#allocation8 + $0x7e8] sm:$0xff]  ;;  %v5758_v12 = vpack.c.bf16 %v3080_v6, %v3076_v5  ;;  %v6014_v16 = vpack.c.bf16 %v3082_v8, %v3078_v7  ;;  %v6032_v5 = vpack.c.bf16 %v3123_v61, %v3119_v60  ;;  %v3122_v6 = vld [vmem:[#allocation8 + $0x8f0] sm:$0xff]  ;;  %v3127_v8 = vld [vmem:[#allocation8 + $0x918] sm:$0xff] }
 0x3c0   :  { %v5760_v17 = vpack.c.bf16 %v3089_v32, %v3085_v9  ;;  %v3125_v7 = vld [vmem:[#allocation8 + $0x908] sm:$0xff]  ;;  %v3131_v9 = vld [vmem:[#allocation8 + $0x938] sm:$0xff]  ;;  %v3156_v61 = vld [vmem:[#allocation8 + $0xa00] sm:$0xff] }
 0x3c1   :  { %5739 = vmatpush1.bf16.msra.mxu0 %v5738_v42  ;;  %v3084_v42 = vld [vmem:[#allocation8 + $0x7c0] sm:$0xff] }
 0x3c2   :  { %5995 = vmatpush1.bf16.msra.mxu1 %v5994_v18  ;;  %5741 = vmatprep.subr.bf16.mxu0 %v5740_v22  ;;  %v3088_v18 = vld [vmem:[#allocation8 + $0x7e0] sm:$0xff]  ;;  %v3086_v22 = vld [vmem:[#allocation8 + $0x7d0] sm:$0xff] }
 0x3c3   :  { %5997 = vmatprep.subr.bf16.mxu1 %v5996_v25  ;;  %v3097_v25 = vld [vmem:[#allocation8 + $0x828] sm:$0xff]  ;;  %v5762_v29 = vpack.c.bf16 %v3088_v18, %v3084_v42  ;;  %v6018_v30 = vpack.c.bf16 %v3090_v24, %v3086_v22  ;;  %v6036_v42 = vpack.c.bf16 %v3131_v9, %v3127_v8  ;;  %v3130_v18 = vld [vmem:[#allocation8 + $0x930] sm:$0xff]  ;;  %v3135_v24 = vld [vmem:[#allocation8 + $0x958] sm:$0xff] }
 0x3c4   :  { %v5764_v31 = vpack.c.bf16 %v3097_v25, %v3093_v47  ;;  %v3133_v22 = vld [vmem:[#allocation8 + $0x948] sm:$0xff]  ;;  %v3139_v47 = vld [vmem:[#allocation8 + $0x978] sm:$0xff]  ;;  %v3164_v9 = vld [vmem:[#allocation8 + $0xa40] sm:$0xff] }
 0x3c5   :  { %5743 = vmatpush1.bf16.msra.mxu0 %v5742_v33  ;;  %v3092_v33 = vld [vmem:[#allocation8 + $0x800] sm:$0xff] }
 0x3c6   :  { %5999 = vmatpush1.bf16.msra.mxu1 %v5998_v55  ;;  %5745 = vmatprep.subr.bf16.mxu0 %v5744_v63  ;;  %v3096_v55 = vld [vmem:[#allocation8 + $0x820] sm:$0xff]  ;;  %v3094_v63 = vld [vmem:[#allocation8 + $0x810] sm:$0xff] }
 0x3c7   :  { %6001 = vmatprep.subr.bf16.mxu1 %v6000_v62  ;;  %v3105_v62 = vld [vmem:[#allocation8 + $0x868] sm:$0xff]  ;;  %v5766_v43 = vpack.c.bf16 %v3096_v55, %v3092_v33  ;;  %v6022_v44 = vpack.c.bf16 %v3098_v36, %v3094_v63  ;;  %v6040_v33 = vpack.c.bf16 %v3139_v47, %v3135_v24  ;;  %v3138_v55 = vld [vmem:[#allocation8 + $0x970] sm:$0xff]  ;;  %v3143_v36 = vld [vmem:[#allocation8 + $0x998] sm:$0xff] }
 0x3c8   :  { %v3141_v63 = vld [vmem:[#allocation8 + $0x988] sm:$0xff]  ;;  %v3172_v47 = vld [vmem:[#allocation8 + $0xa80] sm:$0xff] }
 0x3c9   :  { %5747 = vmatpush1.bf16.msra.mxu0 %v5746_v45  ;;  %v5768_v45 = vpack.c.bf16 %v3105_v62, %v3101_v37  ;;  %v3147_v37 = vld [vmem:[#allocation8 + $0x9b8] sm:$0xff] }
 0x3ca   :  { %6003 = vmatpush1.bf16.msra.mxu1 %v6002_v46  ;;  %5749 = vmatprep.subr.bf16.mxu0 %v5748_v19  ;;  %v3100_v46 = vld [vmem:[#allocation8 + $0x840] sm:$0xff] }
 0x3cb   :  { %6005 = vmatprep.subr.bf16.mxu1 %v6004_v13  ;;  %v3104_v19 = vld [vmem:[#allocation8 + $0x860] sm:$0xff]  ;;  %v3109_v13 = vld [vmem:[#allocation8 + $0x888] sm:$0xff] }
 0x3cc   :  { %v5770_v52 = vpack.c.bf16 %v3104_v19, %v3100_v46  ;;  %v5772_v53 = vpack.c.bf16 %v3113_v41, %v3109_v13  ;;  %v3146_v46 = vld [vmem:[#allocation8 + $0x9b0] sm:$0xff]  ;;  %v3149_v19 = vld [vmem:[#allocation8 + $0x9c8] sm:$0xff] }
 0x3cd   :  { %5751 = vmatpush1.bf16.msra.mxu0 %v5750_v54  ;;  %v3108_v54 = vld [vmem:[#allocation8 + $0x880] sm:$0xff]  ;;  %v5792_v21 = vpack.c.bf16 %v3153_v48, %v3149_v19 }
 0x3ce   :  { %6007 = vmatpush1.bf16.msra.mxu1 %v6006_v56  ;;  %5753 = vmatprep.subr.bf16.mxu0 %v5752_v57  ;;  %v3112_v56 = vld [vmem:[#allocation8 + $0x8a0] sm:$0xff]  ;;  %v3110_v57 = vld [vmem:[#allocation8 + $0x890] sm:$0xff] }
 0x3cf   :  { %6009 = vmatprep.subr.bf16.mxu1 %v6008_v59  ;;  %v3121_v59 = vld [vmem:[#allocation8 + $0x8e8] sm:$0xff]  ;;  %v5774_v0 = vpack.c.bf16 %v3112_v56, %v3108_v54  ;;  %v6030_v1 = vpack.c.bf16 %v3114_v27, %v3110_v57  ;;  %v3154_v54 = vld [vmem:[#allocation8 + $0x9f0] sm:$0xff]  ;;  %v3163_v27 = vld [vmem:[#allocation8 + $0xa38] sm:$0xff] }
 0x3d0   :  { %v5776_v38 = vpack.c.bf16 %v3121_v59, %v3117_v58  ;;  %v3157_v56 = vld [vmem:[#allocation8 + $0xa08] sm:$0xff] }
 0x3d1   :  { %5755 = vmatpush1.bf16.msra.mxu0 %v5754_v2  ;;  %v3116_v2 = vld [vmem:[#allocation8 + $0x8c0] sm:$0xff]  ;;  %v3161_v57 = vld [vmem:[#allocation8 + $0xa28] sm:$0xff] }
 0x3d2   :  { %6011 = vmatpush1.bf16.msra.mxu1 %v6010_v3  ;;  %5757 = vmatprep.subr.bf16.mxu0 %v5756_v4  ;;  %v3120_v3 = vld [vmem:[#allocation8 + $0x8e0] sm:$0xff]  ;;  %v3118_v4 = vld [vmem:[#allocation8 + $0x8d0] sm:$0xff]  ;;  %v5796_v60 = vpack.c.bf16 %v3161_v57, %v3157_v56 }
 0x3d3   :  { %6013 = vmatprep.subr.bf16.mxu1 %v6012_v14  ;;  %v3129_v14 = vld [vmem:[#allocation8 + $0x928] sm:$0xff]  ;;  %v5778_v32 = vpack.c.bf16 %v3120_v3, %v3116_v2  ;;  %v6034_v10 = vpack.c.bf16 %v3122_v6, %v3118_v4  ;;  %v3162_v2 = vld [vmem:[#allocation8 + $0xa30] sm:$0xff]  ;;  %v3171_v6 = vld [vmem:[#allocation8 + $0xa78] sm:$0xff] }
 0x3d4   :  { %v5780_v34 = vpack.c.bf16 %v3129_v14, %v3125_v7  ;;  %v3165_v3 = vld [vmem:[#allocation8 + $0xa48] sm:$0xff] }
 0x3d5   :  { %5759 = vmatpush1.bf16.msra.mxu0 %v5758_v12  ;;  %v3124_v12 = vld [vmem:[#allocation8 + $0x900] sm:$0xff]  ;;  %v3169_v4 = vld [vmem:[#allocation8 + $0xa68] sm:$0xff] }
 0x3d6   :  { %6015 = vmatpush1.bf16.msra.mxu1 %v6014_v16  ;;  %5761 = vmatprep.subr.bf16.mxu0 %v5760_v17  ;;  %v3128_v16 = vld [vmem:[#allocation8 + $0x920] sm:$0xff]  ;;  %v3126_v17 = vld [vmem:[#allocation8 + $0x910] sm:$0xff]  ;;  %v5800_v8 = vpack.c.bf16 %v3169_v4, %v3165_v3 }
 0x3d7   :  { %6017 = vmatprep.subr.bf16.mxu1 %v6016_v23  ;;  %v3137_v23 = vld [vmem:[#allocation8 + $0x968] sm:$0xff]  ;;  %v5782_v25 = vpack.c.bf16 %v3128_v16, %v3124_v12  ;;  %v6038_v26 = vpack.c.bf16 %v3130_v18, %v3126_v17  ;;  %v3170_v12 = vld [vmem:[#allocation8 + $0xa70] sm:$0xff]  ;;  %v3179_v18 = vld [vmem:[#allocation8 + $0xab8] sm:$0xff] }
 0x3d8   :  { %v5784_v28 = vpack.c.bf16 %v3137_v23, %v3133_v22  ;;  %v3173_v16 = vld [vmem:[#allocation8 + $0xa88] sm:$0xff] }
 0x3d9   :  { %5763 = vmatpush1.bf16.msra.mxu0 %v5762_v29  ;;  %v3132_v29 = vld [vmem:[#allocation8 + $0x940] sm:$0xff]  ;;  %v3177_v17 = vld [vmem:[#allocation8 + $0xaa8] sm:$0xff] }
 0x3da   :  { %6019 = vmatpush1.bf16.msra.mxu1 %v6018_v30  ;;  %5765 = vmatprep.subr.bf16.mxu0 %v5764_v31  ;;  %v3136_v30 = vld [vmem:[#allocation8 + $0x960] sm:$0xff]  ;;  %v3134_v31 = vld [vmem:[#allocation8 + $0x950] sm:$0xff]  ;;  %v5804_v24 = vpack.c.bf16 %v3177_v17, %v3173_v16 }
 0x3db   :  { %6021 = vmatprep.subr.bf16.mxu1 %v6020_v35  ;;  %v3145_v35 = vld [vmem:[#allocation8 + $0x9a8] sm:$0xff]  ;;  %v5786_v62 = vpack.c.bf16 %v3136_v30, %v3132_v29  ;;  %v6042_v39 = vpack.c.bf16 %v3138_v55, %v3134_v31  ;;  %v3178_v29 = vld [vmem:[#allocation8 + $0xab0] sm:$0xff]  ;;  %v3187_v55 = vld [vmem:[#allocation8 + $0xaf8] sm:$0xff] }
 0x3dc   :  { %3484 = vmatmul.mubr.f32.vlgmr.msra.gmra.mrb[6].mxu0 %v2830_v11  ;;  %v5788_v40 = vpack.c.bf16 %v3145_v35, %v3141_v63  ;;  %v3181_v30 = vld [vmem:[#allocation8 + $0xac8] sm:$0xff] }
 0x3dd   :  { %3768 = vmatmul.mubr.f32.vlgmr.msra.gmra.mrb[10].mxu1 %v2830_v11  ;;  %5767 = vmatpush1.bf16.msra.mxu0 %v5766_v43  ;;  %v3140_v43 = vld [vmem:[#allocation8 + $0x980] sm:$0xff]  ;;  %v3185_v31 = vld [vmem:[#allocation8 + $0xae8] sm:$0xff] }
 0x3de   :  { %6023 = vmatpush1.bf16.msra.mxu1 %v6022_v44  ;;  %5769 = vmatprep.subr.bf16.mxu0 %v5768_v45  ;;  %v3144_v11 = vld [vmem:[#allocation8 + $0x9a0] sm:$0xff]  ;;  %v3142_v44 = vld [vmem:[#allocation8 + $0x990] sm:$0xff]  ;;  %v6044_v45 = vpack.c.bf16 %v3147_v37, %v3143_v36  ;;  %v5808_v36 = vpack.c.bf16 %v3185_v31, %v3181_v30 }
 0x3df   :  { %6025 = vmatprep.subr.bf16.mxu1 %v6024_v49  ;;  %v3151_v49 = vld [vmem:[#allocation8 + $0x9d8] sm:$0xff]  ;;  %v5790_v13 = vpack.c.bf16 %v3144_v11, %v3140_v43  ;;  %v6046_v41 = vpack.c.bf16 %v3146_v46, %v3142_v44  ;;  %v3180_v37 = vld [vmem:[#allocation8 + $0xac0] sm:$0xff]  ;;  %v3186_v43 = vld [vmem:[#allocation8 + $0xaf0] sm:$0xff] }
 0x3e0   :  { %v3189_v11 = vld [vmem:[#allocation8 + $0xb08] sm:$0xff]  ;;  %v3195_v46 = vld [vmem:[#allocation8 + $0xb38] sm:$0xff] }
 0x3e1   :  { %5771 = vmatpush1.bf16.msra.mxu0 %v5770_v52  ;;  %v3152_v52 = vld [vmem:[#allocation8 + $0x9e0] sm:$0xff]  ;;  %v3193_v44 = vld [vmem:[#allocation8 + $0xb28] sm:$0xff] }
 0x3e2   :  { %6027 = vmatpush1.bf16.msra.mxu1 %v6026_v15  ;;  %5773 = vmatprep.subr.bf16.mxu0 %v5772_v53  ;;  %v3150_v15 = vld [vmem:[#allocation8 + $0x9d0] sm:$0xff]  ;;  %v6048_v53 = vpack.c.bf16 %v3155_v50, %v3151_v49  ;;  %v5794_v58 = vpack.c.bf16 %v3152_v52, %v3148_v51  ;;  %v5812_v49 = vpack.c.bf16 %v3193_v44, %v3189_v11  ;;  %v3188_v50 = vld [vmem:[#allocation8 + $0xb00] sm:$0xff]  ;;  %v3197_v52 = vld [vmem:[#allocation8 + $0xb48] sm:$0xff] }
 0x3e3   :  { %6029 = vmatprep.subr.bf16.mxu1 %v6028_v20  ;;  %v3159_v20 = vld [vmem:[#allocation8 + $0xa18] sm:$0xff]  ;;  %v6050_v59 = vpack.c.bf16 %v3154_v54, %v3150_v15  ;;  %v3194_v51 = vld [vmem:[#allocation8 + $0xb30] sm:$0xff]  ;;  %v3201_v15 = vld [vmem:[#allocation8 + $0xb68] sm:$0xff] }
 0x3e4   :  { %v3203_v54 = vld [vmem:[#allocation8 + $0xb78] sm:$0xff]  ;;  %v3233_v11 = vld [vmem:[#allocation8 + $0xc68] sm:$0xff] }
 0x3e5   :  { %5775 = vmatpush1.bf16.msra.mxu0 %v5774_v0  ;;  %v3160_v0 = vld [vmem:[#allocation8 + $0xa20] sm:$0xff]  ;;  %v3231_v44 = vld [vmem:[#allocation8 + $0xc58] sm:$0xff] }
 0x3e6   :  { %6031 = vmatpush1.bf16.msra.mxu1 %v6030_v1  ;;  %5777 = vmatprep.subr.bf16.mxu0 %v5776_v38  ;;  %v3158_v1 = vld [vmem:[#allocation8 + $0xa10] sm:$0xff]  ;;  %v6052_v38 = vpack.c.bf16 %v3163_v27, %v3159_v20  ;;  %v5798_v7 = vpack.c.bf16 %v3160_v0, %v3156_v61  ;;  %v5816_v20 = vpack.c.bf16 %v3201_v15, %v3197_v52  ;;  %v3196_v27 = vld [vmem:[#allocation8 + $0xb40] sm:$0xff]  ;;  %v3205_v0 = vld [vmem:[#allocation8 + $0xb88] sm:$0xff] }
 0x3e7   :  { %6033 = vmatprep.subr.bf16.mxu1 %v6032_v5  ;;  %v3167_v5 = vld [vmem:[#allocation8 + $0xa58] sm:$0xff]  ;;  %v6054_v14 = vpack.c.bf16 %v3162_v2, %v3158_v1  ;;  %v3202_v61 = vld [vmem:[#allocation8 + $0xb70] sm:$0xff]  ;;  %v3209_v1 = vld [vmem:[#allocation8 + $0xba8] sm:$0xff] }
 0x3e8   :  { %v3211_v2 = vld [vmem:[#allocation8 + $0xbb8] sm:$0xff]  ;;  %v3237_v52 = vld [vmem:[#allocation8 + $0xc88] sm:$0xff] }
 0x3e9   :  { %5779 = vmatpush1.bf16.msra.mxu0 %v5778_v32  ;;  %v3168_v32 = vld [vmem:[#allocation8 + $0xa60] sm:$0xff] }
 0x3ea   :  { %6035 = vmatpush1.bf16.msra.mxu1 %v6034_v10  ;;  %5781 = vmatprep.subr.bf16.mxu0 %v5780_v34  ;;  %v3166_v10 = vld [vmem:[#allocation8 + $0xa50] sm:$0xff]  ;;  %v6056_v34 = vpack.c.bf16 %v3171_v6, %v3167_v5  ;;  %v5802_v22 = vpack.c.bf16 %v3168_v32, %v3164_v9  ;;  %v5820_v5 = vpack.c.bf16 %v3209_v1, %v3205_v0  ;;  %v3204_v6 = vld [vmem:[#allocation8 + $0xb80] sm:$0xff]  ;;  %v3213_v32 = vld [vmem:[#allocation8 + $0xbc8] sm:$0xff] }
 0x3eb   :  { %6037 = vmatprep.subr.bf16.mxu1 %v6036_v42  ;;  %v3175_v42 = vld [vmem:[#allocation8 + $0xa98] sm:$0xff]  ;;  %v6058_v23 = vpack.c.bf16 %v3170_v12, %v3166_v10  ;;  %v3210_v9 = vld [vmem:[#allocation8 + $0xbb0] sm:$0xff]  ;;  %v3217_v10 = vld [vmem:[#allocation8 + $0xbe8] sm:$0xff] }
 0x3ec   :  { %v3219_v12 = vld [vmem:[#allocation8 + $0xbf8] sm:$0xff]  ;;  %v3238_v1 = vld [vmem:[#allocation8 + $0xc90] sm:$0xff] }
 0x3ed   :  { %5783 = vmatpush1.bf16.msra.mxu0 %v5782_v25  ;;  %v3176_v25 = vld [vmem:[#allocation8 + $0xaa0] sm:$0xff] }
 0x3ee   :  { %6039 = vmatpush1.bf16.msra.mxu1 %v6038_v26  ;;  %5785 = vmatprep.subr.bf16.mxu0 %v5784_v28  ;;  %v3174_v26 = vld [vmem:[#allocation8 + $0xa90] sm:$0xff]  ;;  %v6060_v28 = vpack.c.bf16 %v3179_v18, %v3175_v42  ;;  %v5806_v63 = vpack.c.bf16 %v3176_v25, %v3172_v47  ;;  %v5824_v42 = vpack.c.bf16 %v3217_v10, %v3213_v32  ;;  %v3212_v18 = vld [vmem:[#allocation8 + $0xbc0] sm:$0xff]  ;;  %v3221_v25 = vld [vmem:[#allocation8 + $0xc08] sm:$0xff] }
 0x3ef   :  { %6041 = vmatprep.subr.bf16.mxu1 %v6040_v33  ;;  %v3183_v33 = vld [vmem:[#allocation8 + $0xad8] sm:$0xff]  ;;  %v6062_v35 = vpack.c.bf16 %v3178_v29, %v3174_v26  ;;  %v3218_v47 = vld [vmem:[#allocation8 + $0xbf0] sm:$0xff]  ;;  %v3225_v26 = vld [vmem:[#allocation8 + $0xc28] sm:$0xff] }
 0x3f0   :  { %v3227_v29 = vld [vmem:[#allocation8 + $0xc38] sm:$0xff]  ;;  %v3246_v10 = vld [vmem:[#allocation8 + $0xcd0] sm:$0xff] }
 0x3f1   :  { %5787 = vmatpush1.bf16.msra.mxu0 %v5786_v62  ;;  %v3184_v62 = vld [vmem:[#allocation8 + $0xae0] sm:$0xff] }
 0x3f2   :  { %6043 = vmatpush1.bf16.msra.mxu1 %v6042_v39  ;;  %5789 = vmatprep.subr.bf16.mxu0 %v5788_v40  ;;  %v3182_v39 = vld [vmem:[#allocation8 + $0xad0] sm:$0xff]  ;;  %v6064_v40 = vpack.c.bf16 %v3187_v55, %v3183_v33  ;;  %v5810_v19 = vpack.c.bf16 %v3184_v62, %v3180_v37  ;;  %v5828_v33 = vpack.c.bf16 %v3225_v26, %v3221_v25 }
 0x3f3   :  { %6045 = vmatprep.subr.bf16.mxu1 %v6044_v45  ;;  %v3191_v45 = vld [vmem:[#allocation8 + $0xb18] sm:$0xff]  ;;  %v6066_v48 = vpack.c.bf16 %v3186_v43, %v3182_v39  ;;  %v3226_v37 = vld [vmem:[#allocation8 + $0xc30] sm:$0xff]  ;;  %v3229_v39 = vld [vmem:[#allocation8 + $0xc48] sm:$0xff] }
 0x3f4   :  { %v5832_v15 = vpack.c.bf16 %v3233_v11, %v3229_v39  ;;  %v3254_v26 = vld [vmem:[#allocation8 + $0xd10] sm:$0xff]  ;;  %v3269_v11 = vld [vmem:[#allocation8 + $0xd88] sm:$0xff] }
 0x3f5   :  { %5791 = vmatpush1.bf16.msra.mxu0 %v5790_v13  ;;  %v3192_v13 = vld [vmem:[#allocation8 + $0xb20] sm:$0xff]  ;;  %v3262_v39 = vld [vmem:[#allocation8 + $0xd50] sm:$0xff] }
 0x3f6   :  { %6047 = vmatpush1.bf16.msra.mxu1 %v6046_v41  ;;  %5793 = vmatprep.subr.bf16.mxu0 %v5792_v21  ;;  %v3190_v41 = vld [vmem:[#allocation8 + $0xb10] sm:$0xff]  ;;  %v6068_v21 = vpack.c.bf16 %v3195_v46, %v3191_v45  ;;  %v5814_v56 = vpack.c.bf16 %v3192_v13, %v3188_v50  ;;  %v3235_v45 = vld [vmem:[#allocation8 + $0xc78] sm:$0xff]  ;;  %v3228_v50 = vld [vmem:[#allocation8 + $0xc40] sm:$0xff] }
 0x3f7   :  { %6049 = vmatprep.subr.bf16.mxu1 %v6048_v53  ;;  %v3199_v53 = vld [vmem:[#allocation8 + $0xb58] sm:$0xff]  ;;  %v6070_v57 = vpack.c.bf16 %v3194_v51, %v3190_v41  ;;  %v3232_v13 = vld [vmem:[#allocation8 + $0xc60] sm:$0xff]  ;;  %v3234_v51 = vld [vmem:[#allocation8 + $0xc70] sm:$0xff] }
 0x3f9   :  { %5795 = vmatpush1.bf16.msra.mxu0 %v5794_v58  ;;  %v3200_v58 = vld [vmem:[#allocation8 + $0xb60] sm:$0xff] }
 0x3fa   :  { %6051 = vmatpush1.bf16.msra.mxu1 %v6050_v59  ;;  %5797 = vmatprep.subr.bf16.mxu0 %v5796_v60  ;;  %v3198_v59 = vld [vmem:[#allocation8 + $0xb50] sm:$0xff]  ;;  %v6072_v60 = vpack.c.bf16 %v3203_v54, %v3199_v53  ;;  %v5818_v3 = vpack.c.bf16 %v3200_v58, %v3196_v27  ;;  %v6088_v53 = vpack.c.bf16 %v3235_v45, %v3231_v44  ;;  %v3241_v54 = vld [vmem:[#allocation8 + $0xca8] sm:$0xff]  ;;  %v3271_v45 = vld [vmem:[#allocation8 + $0xd98] sm:$0xff] }
 0x3fb   :  { %6053 = vmatprep.subr.bf16.mxu1 %v6052_v38  ;;  %v3207_v38 = vld [vmem:[#allocation8 + $0xb98] sm:$0xff]  ;;  %v6074_v4 = vpack.c.bf16 %v3202_v61, %v3198_v59  ;;  %v5834_v27 = vpack.c.bf16 %v3232_v13, %v3228_v50  ;;  %v3236_v59 = vld [vmem:[#allocation8 + $0xc80] sm:$0xff]  ;;  %v5836_v61 = vpack.c.bf16 %v3241_v54, %v3237_v52  ;;  %v3273_v44 = vld [vmem:[#allocation8 + $0xda8] sm:$0xff] }
 0x3fc   :  { %v3272_v50 = vld [vmem:[#allocation8 + $0xda0] sm:$0xff]  ;;  %v5852_v13 = vpack.c.bf16 %v3273_v44, %v3269_v11  ;;  %v3277_v52 = vld [vmem:[#allocation8 + $0xdc8] sm:$0xff]  ;;  %v3283_v54 = vld [vmem:[#allocation8 + $0xdf8] sm:$0xff] }
 0x3fd   :  { %5799 = vmatpush1.bf16.msra.mxu0 %v5798_v7  ;;  %v3208_v7 = vld [vmem:[#allocation8 + $0xba0] sm:$0xff]  ;;  %v3315_v11 = vld [vmem:[#allocation8 + $0xef8] sm:$0xff] }
 0x3fe   :  { %6055 = vmatpush1.bf16.msra.mxu1 %v6054_v14  ;;  %5801 = vmatprep.subr.bf16.mxu0 %v5800_v8  ;;  %v3206_v14 = vld [vmem:[#allocation8 + $0xb90] sm:$0xff]  ;;  %v6076_v8 = vpack.c.bf16 %v3211_v2, %v3207_v38  ;;  %v5822_v16 = vpack.c.bf16 %v3208_v7, %v3204_v6  ;;  %v3245_v2 = vld [vmem:[#allocation8 + $0xcc8] sm:$0xff] }
 0x3ff   :  { %6057 = vmatprep.subr.bf16.mxu1 %v6056_v34  ;;  %v3215_v34 = vld [vmem:[#allocation8 + $0xbd8] sm:$0xff]  ;;  %v6078_v17 = vpack.c.bf16 %v3210_v9, %v3206_v14  ;;  %v3242_v38 = vld [vmem:[#allocation8 + $0xcb0] sm:$0xff]  ;;  %v3244_v14 = vld [vmem:[#allocation8 + $0xcc0] sm:$0xff] }
 0x400   :  { %v6094_v7 = vpack.c.bf16 %v3242_v38, %v3238_v1  ;;  %v3289_v1 = vld [vmem:[#allocation8 + $0xe28] sm:$0xff]  ;;  %v3287_v38 = vld [vmem:[#allocation8 + $0xe18] sm:$0xff] }
 0x401   :  { %5803 = vmatpush1.bf16.msra.mxu0 %v5802_v22  ;;  %v3216_v22 = vld [vmem:[#allocation8 + $0xbe0] sm:$0xff] }
 0x402   :  { %6059 = vmatpush1.bf16.msra.mxu1 %v6058_v23  ;;  %5805 = vmatprep.subr.bf16.mxu0 %v5804_v24  ;;  %v3214_v23 = vld [vmem:[#allocation8 + $0xbd0] sm:$0xff]  ;;  %v6080_v24 = vpack.c.bf16 %v3219_v12, %v3215_v34  ;;  %v5826_v30 = vpack.c.bf16 %v3216_v22, %v3212_v18  ;;  %v3253_v12 = vld [vmem:[#allocation8 + $0xd08] sm:$0xff] }
 0x403   :  { %6061 = vmatprep.subr.bf16.mxu1 %v6060_v28  ;;  %v3223_v28 = vld [vmem:[#allocation8 + $0xc18] sm:$0xff]  ;;  %v6082_v31 = vpack.c.bf16 %v3218_v47, %v3214_v23  ;;  %v3250_v34 = vld [vmem:[#allocation8 + $0xcf0] sm:$0xff]  ;;  %v3252_v23 = vld [vmem:[#allocation8 + $0xd00] sm:$0xff] }
 0x404   :  { %v6084_v55 = vpack.c.bf16 %v3227_v29, %v3223_v28  ;;  %v6098_v22 = vpack.c.bf16 %v3250_v34, %v3246_v10  ;;  %v3258_v28 = vld [vmem:[#allocation8 + $0xd30] sm:$0xff]  ;;  %v3261_v29 = vld [vmem:[#allocation8 + $0xd48] sm:$0xff]  ;;  %v3295_v34 = vld [vmem:[#allocation8 + $0xe58] sm:$0xff] }
 0x405   :  { %5807 = vmatpush1.bf16.msra.mxu0 %v5806_v63  ;;  %v3220_v63 = vld [vmem:[#allocation8 + $0xc00] sm:$0xff]  ;;  %v3297_v10 = vld [vmem:[#allocation8 + $0xe68] sm:$0xff] }
 0x406   :  { %6063 = vmatpush1.bf16.msra.mxu1 %v6062_v35  ;;  %5809 = vmatprep.subr.bf16.mxu0 %v5808_v36  ;;  %v3224_v35 = vld [vmem:[#allocation8 + $0xc20] sm:$0xff]  ;;  %v3222_v36 = vld [vmem:[#allocation8 + $0xc10] sm:$0xff] }
 0x407   :  { %6065 = vmatprep.subr.bf16.mxu1 %v6064_v40 }
 0x409   :  { %5811 = vmatpush1.bf16.msra.mxu0 %v5810_v19 }
 0x40a   :  { %6067 = vmatpush1.bf16.msra.mxu1 %v6066_v48  ;;  %5813 = vmatprep.subr.bf16.mxu0 %v5812_v49  ;;  %v5830_v48 = vpack.c.bf16 %v3224_v35, %v3220_v63  ;;  %v6086_v49 = vpack.c.bf16 %v3226_v37, %v3222_v36  ;;  %v6102_v63 = vpack.c.bf16 %v3258_v28, %v3254_v26  ;;  %v3260_v35 = vld [vmem:[#allocation8 + $0xd40] sm:$0xff]  ;;  %v3305_v26 = vld [vmem:[#allocation8 + $0xea8] sm:$0xff]  ;;  %v3303_v28 = vld [vmem:[#allocation8 + $0xe98] sm:$0xff] }
 0x40b   :  { %6069 = vmatprep.subr.bf16.mxu1 %v6068_v21  ;;  %v3230_v21 = vld [vmem:[#allocation8 + $0xc50] sm:$0xff]  ;;  %v3264_v36 = vld [vmem:[#allocation8 + $0xd60] sm:$0xff] }
 0x40c   :  { %v6090_v58 = vpack.c.bf16 %v3234_v51, %v3230_v21  ;;  %v3270_v21 = vld [vmem:[#allocation8 + $0xd90] sm:$0xff] }
 0x40d   :  { %5815 = vmatpush1.bf16.msra.mxu0 %v5814_v56  ;;  %v3239_v56 = vld [vmem:[#allocation8 + $0xc98] sm:$0xff]  ;;  %v3274_v51 = vld [vmem:[#allocation8 + $0xdb0] sm:$0xff] }
 0x40e   :  { %6071 = vmatpush1.bf16.msra.mxu1 %v6070_v57  ;;  %5817 = vmatprep.subr.bf16.mxu0 %v5816_v20  ;;  %v3243_v57 = vld [vmem:[#allocation8 + $0xcb8] sm:$0xff] }
 0x40f   :  { %6073 = vmatprep.subr.bf16.mxu1 %v6072_v60  ;;  %v3240_v60 = vld [vmem:[#allocation8 + $0xca0] sm:$0xff]  ;;  %v6092_v0 = vpack.c.bf16 %v3243_v57, %v3239_v56  ;;  %v6110_v57 = vpack.c.bf16 %v3274_v51, %v3270_v21  ;;  %v3321_v21 = vld [vmem:[#allocation8 + $0xf28] sm:$0xff]  ;;  %v3319_v51 = vld [vmem:[#allocation8 + $0xf18] sm:$0xff] }
 0x410   :  { %v5838_v6 = vpack.c.bf16 %v3240_v60, %v3236_v59  ;;  %v3278_v60 = vld [vmem:[#allocation8 + $0xdd0] sm:$0xff] }
 0x411   :  { %5819 = vmatpush1.bf16.msra.mxu0 %v5818_v3  ;;  %v3249_v3 = vld [vmem:[#allocation8 + $0xce8] sm:$0xff] }
 0x412   :  { %6075 = vmatpush1.bf16.msra.mxu1 %v6074_v4  ;;  %5821 = vmatprep.subr.bf16.mxu0 %v5820_v5  ;;  %v3247_v4 = vld [vmem:[#allocation8 + $0xcd8] sm:$0xff]  ;;  %v5840_v9 = vpack.c.bf16 %v3249_v3, %v3245_v2 }
 0x413   :  { %6077 = vmatprep.subr.bf16.mxu1 %v6076_v8  ;;  %v3251_v5 = vld [vmem:[#allocation8 + $0xcf8] sm:$0xff]  ;;  %v3248_v8 = vld [vmem:[#allocation8 + $0xce0] sm:$0xff] }
 0x414   :  { %v6096_v32 = vpack.c.bf16 %v3251_v5, %v3247_v4  ;;  %v5842_v18 = vpack.c.bf16 %v3248_v8, %v3244_v14  ;;  %v3291_v2 = vld [vmem:[#allocation8 + $0xe38] sm:$0xff]  ;;  %v3284_v5 = vld [vmem:[#allocation8 + $0xe00] sm:$0xff]  ;;  %v3286_v8 = vld [vmem:[#allocation8 + $0xe10] sm:$0xff] }
 0x415   :  { %5823 = vmatpush1.bf16.msra.mxu0 %v5822_v16  ;;  %v3257_v16 = vld [vmem:[#allocation8 + $0xd28] sm:$0xff]  ;;  %v6116_v14 = vpack.c.bf16 %v3291_v2, %v3287_v38  ;;  %v3324_v2 = vld [vmem:[#allocation8 + $0xf40] sm:$0xff] }
 0x416   :  { %6079 = vmatpush1.bf16.msra.mxu1 %v6078_v17  ;;  %5825 = vmatprep.subr.bf16.mxu0 %v5824_v42  ;;  %v3255_v17 = vld [vmem:[#allocation8 + $0xd18] sm:$0xff]  ;;  %v5844_v47 = vpack.c.bf16 %v3257_v16, %v3253_v12 }
 0x417   :  { %6081 = vmatprep.subr.bf16.mxu1 %v6080_v24  ;;  %v3259_v42 = vld [vmem:[#allocation8 + $0xd38] sm:$0xff]  ;;  %v3256_v24 = vld [vmem:[#allocation8 + $0xd20] sm:$0xff] }
 0x418   :  { %v6100_v25 = vpack.c.bf16 %v3259_v42, %v3255_v17  ;;  %v3299_v12 = vld [vmem:[#allocation8 + $0xe78] sm:$0xff]  ;;  %v3292_v42 = vld [vmem:[#allocation8 + $0xe40] sm:$0xff] }
 0x419   :  { %5827 = vmatpush1.bf16.msra.mxu0 %v5826_v30  ;;  %v3265_v30 = vld [vmem:[#allocation8 + $0xd68] sm:$0xff] }
 0x41a   :  { %6083 = vmatpush1.bf16.msra.mxu1 %v6082_v31  ;;  %5829 = vmatprep.subr.bf16.mxu0 %v5828_v33  ;;  %v3263_v31 = vld [vmem:[#allocation8 + $0xd58] sm:$0xff]  ;;  %v5848_v37 = vpack.c.bf16 %v3265_v30, %v3261_v29 }
 0x41b   :  { %6085 = vmatprep.subr.bf16.mxu1 %v6084_v55  ;;  %v3267_v33 = vld [vmem:[#allocation8 + $0xd78] sm:$0xff]  ;;  %v5846_v55 = vpack.c.bf16 %v3256_v24, %v3252_v23  ;;  %v6120_v23 = vpack.c.bf16 %v3299_v12, %v3295_v34  ;;  %v3294_v24 = vld [vmem:[#allocation8 + $0xe50] sm:$0xff]  ;;  %v3332_v12 = vld [vmem:[#allocation8 + $0xf80] sm:$0xff] }
 0x41c   :  { %v3307_v29 = vld [vmem:[#allocation8 + $0xeb8] sm:$0xff] }
 0x42f   :  { %v2539_v62 = vpop.f32.mrb[4].mxu0 }
 0x430   :  { %v6775_v40 = vpop.f32.mrb[8].mxu1  ;;  %v2541_v43 = vpop.f32.mrb[5].mxu0  ;;  %v2832_v41 = vmax.f32 %v2539_v62, 0.0  ;;  %v6104_v62 = vpack.c.bf16 %v3267_v33, %v3263_v31  ;;  %v3300_v33 = vld [vmem:[#allocation8 + $0xe80] sm:$0xff] }
 0x431   :  { %v2833_v46 = vmax.f32 %v2541_v43, 0.0  ;;  %v2825_v19 = vpop.f32.mrb[9].mxu1  ;;  %v3266_v43 = vld [vmem:[#allocation8 + $0xd70] sm:$0xff] }
 0x432   :  { %v2835_v20 = vmax.f32 %v2825_v19, 0.0  ;;  %v5850_v19 = vpack.c.bf16 %v3264_v36, %v3260_v35  ;;  %v6124_v35 = vpack.c.bf16 %v3307_v29, %v3303_v28  ;;  %v3302_v36 = vld [vmem:[#allocation8 + $0xe90] sm:$0xff]  ;;  %v3340_v29 = vld [vmem:[#allocation8 + $0xfc0] sm:$0xff] }
 0x433   :  { %3554 = vmatprep.mubr.f32.mxu0 %v2833_v46  ;;  %3838 = vmatprep.mubr.f32.mxu1 %v2833_v46  ;;  %v3275_v46 = vld [vmem:[#allocation8 + $0xdb8] sm:$0xff] }
 0x434   :  { %3555 = vmatmul.mubr.f32.vlgmr.msra.gmra.mrb[6].mxu0 %v2832_v41  ;;  %3839 = vmatmul.mubr.f32.vlgmr.msra.gmra.mrb[10].mxu1 %v2832_v41  ;;  %v6108_v41 = vpack.c.bf16 %v3275_v46, %v3271_v45  ;;  %v3308_v46 = vld [vmem:[#allocation8 + $0xec0] sm:$0xff] }
 0x435   :  { %5831 = vmatpush1.bf16.msra.mxu0 %v5830_v48  ;;  %6087 = vmatpush1.bf16.msra.mxu1 %v6086_v49  ;;  %v6106_v48 = vpack.c.bf16 %v3266_v43, %v3262_v39  ;;  %v3268_v49 = vld [vmem:[#allocation8 + $0xd80] sm:$0xff]  ;;  %v3313_v39 = vld [vmem:[#allocation8 + $0xee8] sm:$0xff]  ;;  %v3311_v43 = vld [vmem:[#allocation8 + $0xed8] sm:$0xff] }
 0x436   :  { %3625 = vmatprep.mubr.f32.mxu0 %v2835_v20  ;;  %3909 = vmatprep.mubr.f32.mxu1 %v2835_v20  ;;  %v5854_v56 = vpack.c.bf16 %v3272_v50, %v3268_v49  ;;  %v3276_v20 = vld [vmem:[#allocation8 + $0xdc0] sm:$0xff]  ;;  %v6128_v49 = vpack.c.bf16 %v3315_v11, %v3311_v43  ;;  %v3310_v50 = vld [vmem:[#allocation8 + $0xed0] sm:$0xff] }
 0x437   :  { %5833 = vmatprep.subr.bf16.mxu0 %v5832_v15  ;;  %6089 = vmatprep.subr.bf16.mxu1 %v6088_v53  ;;  %v3281_v15 = vld [vmem:[#allocation8 + $0xde8] sm:$0xff]  ;;  %v3279_v53 = vld [vmem:[#allocation8 + $0xdd8] sm:$0xff]  ;;  %v3920_v43 = vld [vmem:[#allocation10] sm:$0xff] }
 0x438   :  { %v6112_v59 = vpack.c.bf16 %v3283_v54, %v3279_v53  ;;  %v3316_v54 = vld [vmem:[#allocation8 + $0xf00] sm:$0xff]  ;;  %v3922_v11 = vld [vmem:[#allocation10 + $0x10] sm:$0xff] }
 0x439   :  { %5835 = vmatpush1.bf16.msra.mxu0 %v5834_v27  ;;  %6091 = vmatpush1.bf16.msra.mxu1 %v6090_v58  ;;  %v3280_v27 = vld [vmem:[#allocation8 + $0xde0] sm:$0xff]  ;;  %v5856_v58 = vpack.c.bf16 %v3281_v15, %v3277_v52  ;;  %v3323_v52 = vld [vmem:[#allocation8 + $0xf38] sm:$0xff] }
 0x43a   :  { %5837 = vmatprep.subr.bf16.mxu0 %v5836_v61  ;;  %6093 = vmatprep.subr.bf16.mxu1 %v6092_v0  ;;  %v3282_v61 = vld [vmem:[#allocation8 + $0xdf0] sm:$0xff]  ;;  %v3285_v0 = vld [vmem:[#allocation8 + $0xe08] sm:$0xff]  ;;  %v5858_v3 = vpack.c.bf16 %v3280_v27, %v3276_v20  ;;  %v6132_v20 = vpack.c.bf16 %v3323_v52, %v3319_v51  ;;  %v3928_v52 = vld [vmem:[#allocation10 + $0x40] sm:$0xff] }
 0x43b   :  { %v6114_v4 = vpack.c.bf16 %v3282_v61, %v3278_v60  ;;  %v3318_v27 = vld [vmem:[#allocation8 + $0xf10] sm:$0xff]  ;;  %v3329_v60 = vld [vmem:[#allocation8 + $0xf68] sm:$0xff]  ;;  %v3327_v61 = vld [vmem:[#allocation8 + $0xf58] sm:$0xff] }
 0x43d   :  { %5839 = vmatpush1.bf16.msra.mxu0 %v5838_v6  ;;  %6095 = vmatpush1.bf16.msra.mxu1 %v6094_v7  ;;  %v3288_v6 = vld [vmem:[#allocation8 + $0xe20] sm:$0xff]  ;;  %v5860_v7 = vpack.c.bf16 %v3289_v1, %v3285_v0  ;;  %v3331_v0 = vld [vmem:[#allocation8 + $0xf78] sm:$0xff] }
 0x43e   :  { %5841 = vmatprep.subr.bf16.mxu0 %v5840_v9  ;;  %6097 = vmatprep.subr.bf16.mxu1 %v6096_v32  ;;  %v3290_v9 = vld [vmem:[#allocation8 + $0xe30] sm:$0xff]  ;;  %v3293_v32 = vld [vmem:[#allocation8 + $0xe48] sm:$0xff]  ;;  %v5862_v16 = vpack.c.bf16 %v3288_v6, %v3284_v5  ;;  %v6136_v5 = vpack.c.bf16 %v3331_v0, %v3327_v61  ;;  %v3936_v61 = vld [vmem:[#allocation10 + $0x80] sm:$0xff] }
 0x43f   :  { %v6118_v17 = vpack.c.bf16 %v3290_v9, %v3286_v8  ;;  %v3326_v6 = vld [vmem:[#allocation8 + $0xf50] sm:$0xff]  ;;  %v3337_v8 = vld [vmem:[#allocation8 + $0xfa8] sm:$0xff]  ;;  %v3335_v9 = vld [vmem:[#allocation8 + $0xf98] sm:$0xff] }
 0x440   :  { %v3938_v0 = vld [vmem:[#allocation10 + $0x90] sm:$0xff] }
 0x441   :  { %5843 = vmatpush1.bf16.msra.mxu0 %v5842_v18  ;;  %6099 = vmatpush1.bf16.msra.mxu1 %v6098_v22  ;;  %v3296_v18 = vld [vmem:[#allocation8 + $0xe60] sm:$0xff]  ;;  %v5864_v22 = vpack.c.bf16 %v3297_v10, %v3293_v32  ;;  %v3339_v32 = vld [vmem:[#allocation8 + $0xfb8] sm:$0xff] }
 0x442   :  { %5845 = vmatprep.subr.bf16.mxu0 %v5844_v47  ;;  %6101 = vmatprep.subr.bf16.mxu1 %v6100_v25  ;;  %v3298_v47 = vld [vmem:[#allocation8 + $0xe70] sm:$0xff]  ;;  %v3301_v25 = vld [vmem:[#allocation8 + $0xe88] sm:$0xff]  ;;  %v5866_v30 = vpack.c.bf16 %v3296_v18, %v3292_v42  ;;  %v6140_v42 = vpack.c.bf16 %v3339_v32, %v3335_v9  ;;  %v3944_v9 = vld [vmem:[#allocation10 + $0xc0] sm:$0xff] }
 0x443   :  { %v6122_v31 = vpack.c.bf16 %v3298_v47, %v3294_v24  ;;  %v3334_v18 = vld [vmem:[#allocation8 + $0xf90] sm:$0xff]  ;;  %v3345_v24 = vld [vmem:[#allocation8 + $0xfe8] sm:$0xff]  ;;  %v3343_v47 = vld [vmem:[#allocation8 + $0xfd8] sm:$0xff] }
 0x444   :  { %v3946_v32 = vld [vmem:[#allocation10 + $0xd0] sm:$0xff] }
 0x445   :  { %5847 = vmatpush1.bf16.msra.mxu0 %v5846_v55  ;;  %6103 = vmatpush1.bf16.msra.mxu1 %v6102_v63  ;;  %v3304_v55 = vld [vmem:[#allocation8 + $0xea0] sm:$0xff]  ;;  %v5868_v63 = vpack.c.bf16 %v3305_v26, %v3301_v25  ;;  %v3347_v25 = vld [vmem:[#allocation8 + $0xff8] sm:$0xff] }
 0x446   :  { %5849 = vmatprep.subr.bf16.mxu0 %v5848_v37  ;;  %6105 = vmatprep.subr.bf16.mxu1 %v6104_v62  ;;  %v3306_v37 = vld [vmem:[#allocation8 + $0xeb0] sm:$0xff]  ;;  %v3309_v62 = vld [vmem:[#allocation8 + $0xec8] sm:$0xff]  ;;  %v5870_v44 = vpack.c.bf16 %v3304_v55, %v3300_v33  ;;  %v3344_v33 = vld [vmem:[#allocation8 + $0xfe0] sm:$0xff] }
 0x447   :  { %v6126_v45 = vpack.c.bf16 %v3306_v37, %v3302_v36  ;;  %v3342_v55 = vld [vmem:[#allocation8 + $0xfd0] sm:$0xff]  ;;  %v3923_v36 = vld [vmem:[#allocation10 + $0x18] sm:$0xff]  ;;  %v5890_v37 = vpack.c.bf16 %v3344_v33, %v3340_v29 }
 0x448   :  { %v3958_v33 = vld [vmem:[#allocation10 + $0x130] sm:$0xff] }
 0x449   :  { %5851 = vmatpush1.bf16.msra.mxu0 %v5850_v19  ;;  %6107 = vmatpush1.bf16.msra.mxu1 %v6106_v48  ;;  %v3312_v19 = vld [vmem:[#allocation8 + $0xee0] sm:$0xff]  ;;  %v5872_v48 = vpack.c.bf16 %v3313_v39, %v3309_v62 }
 0x44a   :  { %5853 = vmatprep.subr.bf16.mxu0 %v5852_v13  ;;  %6109 = vmatprep.subr.bf16.mxu1 %v6108_v41  ;;  %v3314_v13 = vld [vmem:[#allocation8 + $0xef0] sm:$0xff]  ;;  %v3317_v41 = vld [vmem:[#allocation8 + $0xf08] sm:$0xff]  ;;  %v5874_v15 = vpack.c.bf16 %v3312_v19, %v3308_v46  ;;  %v6150_v46 = vpack.c.bf16 %v3922_v11, %v3920_v43  ;;  %v2834_v19 = vmax.f32 %v6775_v40, 0.0  ;;  %v3967_v43 = vld [vmem:[#allocation10 + $0x178] sm:$0xff] }
 0x44b   :  { %v6130_v53 = vpack.c.bf16 %v3314_v13, %v3310_v50  ;;  %v3926_v50 = vld [vmem:[#allocation10 + $0x30] sm:$0xff]  ;;  %v3929_v13 = vld [vmem:[#allocation10 + $0x48] sm:$0xff] }
 0x44d   :  { %5855 = vmatpush1.bf16.msra.mxu0 %v5854_v56  ;;  %6111 = vmatpush1.bf16.msra.mxu1 %v6110_v57  ;;  %v3320_v56 = vld [vmem:[#allocation8 + $0xf20] sm:$0xff]  ;;  %v5876_v57 = vpack.c.bf16 %v3321_v21, %v3317_v41  ;;  %v3931_v41 = vld [vmem:[#allocation10 + $0x58] sm:$0xff] }
 0x44e   :  { %5857 = vmatprep.subr.bf16.mxu0 %v5856_v58  ;;  %6113 = vmatprep.subr.bf16.mxu1 %v6112_v59  ;;  %v3322_v58 = vld [vmem:[#allocation8 + $0xf30] sm:$0xff]  ;;  %v3325_v59 = vld [vmem:[#allocation8 + $0xf48] sm:$0xff]  ;;  %v5878_v1 = vpack.c.bf16 %v3320_v56, %v3316_v54  ;;  %v6156_v51 = vpack.c.bf16 %v3931_v41, %v3929_v13  ;;  %v3935_v54 = vld [vmem:[#allocation10 + $0x78] sm:$0xff] }
 0x44f   :  { %v6134_v38 = vpack.c.bf16 %v3322_v58, %v3318_v27  ;;  %v3937_v27 = vld [vmem:[#allocation10 + $0x88] sm:$0xff]  ;;  %v3939_v58 = vld [vmem:[#allocation10 + $0x98] sm:$0xff]  ;;  %v3968_v13 = vld [vmem:[#allocation10 + $0x180] sm:$0xff] }
 0x450   :  { %v3970_v41 = vld [vmem:[#allocation10 + $0x190] sm:$0xff] }
 0x451   :  { %5859 = vmatpush1.bf16.msra.mxu0 %v5858_v3  ;;  %6115 = vmatpush1.bf16.msra.mxu1 %v6114_v4  ;;  %v3328_v3 = vld [vmem:[#allocation8 + $0xf60] sm:$0xff]  ;;  %v5880_v4 = vpack.c.bf16 %v3329_v60, %v3325_v59  ;;  %v6164_v60 = vpack.c.bf16 %v3939_v58, %v3937_v27  ;;  %v3978_v58 = vld [vmem:[#allocation10 + $0x1d0] sm:$0xff] }
 0x452   :  { %5861 = vmatprep.subr.bf16.mxu0 %v5860_v7  ;;  %6117 = vmatprep.subr.bf16.mxu1 %v6116_v14  ;;  %v3330_v7 = vld [vmem:[#allocation8 + $0xf70] sm:$0xff]  ;;  %v3333_v14 = vld [vmem:[#allocation8 + $0xf88] sm:$0xff]  ;;  %v5882_v10 = vpack.c.bf16 %v3328_v3, %v3324_v2  ;;  %v6166_v2 = vpack.c.bf16 %v3938_v0, %v3936_v61  ;;  %v3976_v27 = vld [vmem:[#allocation10 + $0x1c0] sm:$0xff] }
 0x453   :  { %v6138_v34 = vpack.c.bf16 %v3330_v7, %v3326_v6  ;;  %v3945_v6 = vld [vmem:[#allocation10 + $0xc8] sm:$0xff]  ;;  %v3947_v7 = vld [vmem:[#allocation10 + $0xd8] sm:$0xff] }
 0x454   :  { %v3983_v61 = vld [vmem:[#allocation10 + $0x1f8] sm:$0xff] }
 0x455   :  { %5863 = vmatpush1.bf16.msra.mxu0 %v5862_v16  ;;  %6119 = vmatpush1.bf16.msra.mxu1 %v6118_v17  ;;  %v3336_v16 = vld [vmem:[#allocation8 + $0xfa0] sm:$0xff]  ;;  %v5884_v17 = vpack.c.bf16 %v3337_v8, %v3333_v14  ;;  %v6172_v8 = vpack.c.bf16 %v3947_v7, %v3945_v6  ;;  %v4209_v7 = vld [vmem:[#allocation11 + $0x88] sm:$0xff] }
 0x456   :  { %5865 = vmatprep.subr.bf16.mxu0 %v5864_v22  ;;  %6121 = vmatprep.subr.bf16.mxu1 %v6120_v23  ;;  %v3338_v22 = vld [vmem:[#allocation8 + $0xfb0] sm:$0xff]  ;;  %v3341_v23 = vld [vmem:[#allocation8 + $0xfc8] sm:$0xff]  ;;  %v5886_v26 = vpack.c.bf16 %v3336_v16, %v3332_v12  ;;  %v6174_v12 = vpack.c.bf16 %v3946_v32, %v3944_v9  ;;  %v4208_v6 = vld [vmem:[#allocation11 + $0x80] sm:$0xff] }
 0x457   :  { %v6142_v28 = vpack.c.bf16 %v3338_v22, %v3334_v18  ;;  %v3953_v18 = vld [vmem:[#allocation10 + $0x108] sm:$0xff]  ;;  %v3955_v22 = vld [vmem:[#allocation10 + $0x118] sm:$0xff]  ;;  %v4210_v32 = vld [vmem:[#allocation11 + $0x90] sm:$0xff] }
 0x458   :  { %v4193_v9 = vld [vmem:[#allocation11 + $0x8] sm:$0xff] }
 0x459   :  { %5867 = vmatpush1.bf16.msra.mxu0 %v5866_v30  ;;  %6123 = vmatpush1.bf16.msra.mxu1 %v6122_v31  ;;  %v5888_v30 = vpack.c.bf16 %v3345_v24, %v3341_v23  ;;  %v6144_v31 = vpack.c.bf16 %v3347_v25, %v3343_v47  ;;  %v6180_v24 = vpack.c.bf16 %v3955_v22, %v3953_v18  ;;  %v3952_v47 = vld [vmem:[#allocation10 + $0x100] sm:$0xff]  ;;  %v3954_v25 = vld [vmem:[#allocation10 + $0x110] sm:$0xff]  ;;  %v4213_v18 = vld [vmem:[#allocation11 + $0xa8] sm:$0xff] }
 0x45a   :  { %5869 = vmatprep.subr.bf16.mxu0 %v5868_v63  ;;  %6125 = vmatprep.subr.bf16.mxu1 %v6124_v35  ;;  %v3346_v63 = vld [vmem:[#allocation8 + $0xff0] sm:$0xff]  ;;  %v3921_v35 = vld [vmem:[#allocation10 + $0x8] sm:$0xff]  ;;  %v6182_v29 = vpack.c.bf16 %v3954_v25, %v3952_v47 }
 0x45b   :  { %v6146_v62 = vpack.c.bf16 %v3346_v63, %v3342_v55  ;;  %v6148_v39 = vpack.c.bf16 %v3923_v36, %v3921_v35  ;;  %v3961_v55 = vld [vmem:[#allocation10 + $0x148] sm:$0xff]  ;;  %v3963_v63 = vld [vmem:[#allocation10 + $0x158] sm:$0xff]  ;;  %v4214_v25 = vld [vmem:[#allocation11 + $0xb0] sm:$0xff] }
 0x45c   :  { %v6188_v36 = vpack.c.bf16 %v3963_v63, %v3961_v55  ;;  %v4197_v47 = vld [vmem:[#allocation11 + $0x28] sm:$0xff] }
 0x45d   :  { %5871 = vmatpush1.bf16.msra.mxu0 %v5870_v44  ;;  %6127 = vmatpush1.bf16.msra.mxu1 %v6126_v45  ;;  %v3925_v44 = vld [vmem:[#allocation10 + $0x28] sm:$0xff]  ;;  %v3927_v45 = vld [vmem:[#allocation10 + $0x38] sm:$0xff] }
 0x45e   :  { %5873 = vmatprep.subr.bf16.mxu0 %v5872_v48  ;;  %6129 = vmatprep.subr.bf16.mxu1 %v6128_v49  ;;  %v6152_v48 = vpack.c.bf16 %v3927_v45, %v3925_v44  ;;  %v3924_v49 = vld [vmem:[#allocation10 + $0x20] sm:$0xff]  ;;  %v4217_v55 = vld [vmem:[#allocation11 + $0xc8] sm:$0xff] }
 0x45f   :  { %v6154_v21 = vpack.c.bf16 %v3926_v50, %v3924_v49  ;;  %v3964_v45 = vld [vmem:[#allocation10 + $0x160] sm:$0xff] }
 0x461   :  { %5875 = vmatpush1.bf16.msra.mxu0 %v5874_v15  ;;  %6131 = vmatpush1.bf16.msra.mxu1 %v6130_v53  ;;  %v3930_v15 = vld [vmem:[#allocation10 + $0x50] sm:$0xff]  ;;  %v3933_v53 = vld [vmem:[#allocation10 + $0x68] sm:$0xff] }
 0x462   :  { %5877 = vmatprep.subr.bf16.mxu0 %v5876_v57  ;;  %6133 = vmatprep.subr.bf16.mxu1 %v6132_v20  ;;  %v6158_v56 = vpack.c.bf16 %v3930_v15, %v3928_v52  ;;  %v6160_v40 = vpack.c.bf16 %v3935_v54, %v3933_v53  ;;  %v3932_v57 = vld [vmem:[#allocation10 + $0x60] sm:$0xff]  ;;  %v3934_v20 = vld [vmem:[#allocation10 + $0x70] sm:$0xff]  ;;  %v6198_v52 = vpack.c.bf16 %v3970_v41, %v3968_v13  ;;  %v4205_v13 = vld [vmem:[#allocation11 + $0x68] sm:$0xff] }
 0x463   :  { %v6162_v59 = vpack.c.bf16 %v3934_v20, %v3932_v57  ;;  %v3972_v53 = vld [vmem:[#allocation10 + $0x1a0] sm:$0xff]  ;;  %v3974_v54 = vld [vmem:[#allocation10 + $0x1b0] sm:$0xff] }
 0x464   :  { %v6202_v57 = vpack.c.bf16 %v3974_v54, %v3972_v53  ;;  %v3989_v53 = vld [vmem:[#allocation10 + $0x228] sm:$0xff]  ;;  %v3991_v54 = vld [vmem:[#allocation10 + $0x238] sm:$0xff] }
 0x465   :  { %5879 = vmatpush1.bf16.msra.mxu0 %v5878_v1  ;;  %6135 = vmatpush1.bf16.msra.mxu1 %v6134_v38  ;;  %v3941_v1 = vld [vmem:[#allocation10 + $0xa8] sm:$0xff]  ;;  %v3943_v38 = vld [vmem:[#allocation10 + $0xb8] sm:$0xff] }
 0x466   :  { %5881 = vmatprep.subr.bf16.mxu0 %v5880_v4  ;;  %6137 = vmatprep.subr.bf16.mxu1 %v6136_v5  ;;  %v6168_v3 = vpack.c.bf16 %v3943_v38, %v3941_v1  ;;  %v3940_v4 = vld [vmem:[#allocation10 + $0xa0] sm:$0xff]  ;;  %v3942_v5 = vld [vmem:[#allocation10 + $0xb0] sm:$0xff] }
 0x467   :  { %v6170_v14 = vpack.c.bf16 %v3942_v5, %v3940_v4  ;;  %v3980_v1 = vld [vmem:[#allocation10 + $0x1e0] sm:$0xff]  ;;  %v3982_v38 = vld [vmem:[#allocation10 + $0x1f0] sm:$0xff]  ;;  %v3987_v4 = vld [vmem:[#allocation10 + $0x218] sm:$0xff] }
 0x469   :  { %5883 = vmatpush1.bf16.msra.mxu0 %v5882_v10  ;;  %6139 = vmatpush1.bf16.msra.mxu1 %v6138_v34  ;;  %v3949_v10 = vld [vmem:[#allocation10 + $0xe8] sm:$0xff]  ;;  %v3951_v34 = vld [vmem:[#allocation10 + $0xf8] sm:$0xff] }
 0x46a   :  { %5885 = vmatprep.subr.bf16.mxu0 %v5884_v17  ;;  %6141 = vmatprep.subr.bf16.mxu1 %v6140_v42  ;;  %v6176_v16 = vpack.c.bf16 %v3951_v34, %v3949_v10  ;;  %v3948_v17 = vld [vmem:[#allocation10 + $0xe0] sm:$0xff]  ;;  %v3950_v42 = vld [vmem:[#allocation10 + $0xf0] sm:$0xff]  ;;  %v4211_v10 = vld [vmem:[#allocation11 + $0x98] sm:$0xff] }
 0x46b   :  { %v6178_v23 = vpack.c.bf16 %v3950_v42, %v3948_v17  ;;  %v4195_v17 = vld [vmem:[#allocation11 + $0x18] sm:$0xff]  ;;  %v4212_v42 = vld [vmem:[#allocation11 + $0xa0] sm:$0xff] }
 0x46d   :  { %5887 = vmatpush1.bf16.msra.mxu0 %v5886_v26  ;;  %6143 = vmatpush1.bf16.msra.mxu1 %v6142_v28  ;;  %v3957_v26 = vld [vmem:[#allocation10 + $0x128] sm:$0xff]  ;;  %v3959_v28 = vld [vmem:[#allocation10 + $0x138] sm:$0xff] }
 0x46e   :  { %5889 = vmatprep.subr.bf16.mxu0 %v5888_v30  ;;  %6145 = vmatprep.subr.bf16.mxu1 %v6144_v31  ;;  %v6184_v30 = vpack.c.bf16 %v3959_v28, %v3957_v26  ;;  %v3956_v31 = vld [vmem:[#allocation10 + $0x120] sm:$0xff]  ;;  %v4215_v26 = vld [vmem:[#allocation11 + $0xb8] sm:$0xff] }
 0x46f   :  { %v6186_v35 = vpack.c.bf16 %v3958_v33, %v3956_v31  ;;  %v4199_v31 = vld [vmem:[#allocation11 + $0x38] sm:$0xff]  ;;  %v4216_v33 = vld [vmem:[#allocation11 + $0xc0] sm:$0xff] }
 0x471   :  { %5891 = vmatpush1.bf16.msra.mxu0 %v5890_v37  ;;  %6147 = vmatpush1.bf16.msra.mxu1 %v6146_v62  ;;  %v3960_v37 = vld [vmem:[#allocation10 + $0x140] sm:$0xff]  ;;  %v3962_v62 = vld [vmem:[#allocation10 + $0x150] sm:$0xff] }
 0x472   :  { %6149 = vmatprep.subr.bf16.mxu0 %v6148_v39  ;;  %v3965_v39 = vld [vmem:[#allocation10 + $0x168] sm:$0xff]  ;;  %v6190_v11 = vpack.c.bf16 %v3962_v62, %v3960_v37  ;;  %v4218_v62 = vld [vmem:[#allocation11 + $0xd0] sm:$0xff] }
 0x473   :  { %v6192_v44 = vpack.c.bf16 %v3967_v43, %v3965_v39  ;;  %v4201_v37 = vld [vmem:[#allocation11 + $0x48] sm:$0xff]  ;;  %v4219_v39 = vld [vmem:[#allocation11 + $0xd8] sm:$0xff] }
 0x474   :  { %3626 = vmatmul.mubr.f32.vlgmr.msra.gmra.mrb[6].mxu0 %v2834_v19  ;;  %3910 = vmatmul.mubr.f32.vlgmr.msra.gmra.mrb[10].mxu1 %v2834_v19  ;;  %v3969_v19 = vld [vmem:[#allocation10 + $0x188] sm:$0xff] }
 0x475   :  { %6151 = vmatpush1.bf16.msra.mxu0 %v6150_v46  ;;  %v3966_v46 = vld [vmem:[#allocation10 + $0x170] sm:$0xff] }
 0x476   :  { %6153 = vmatprep.subr.bf16.mxu0 %v6152_v48  ;;  %v3971_v48 = vld [vmem:[#allocation10 + $0x198] sm:$0xff]  ;;  %v6194_v49 = vpack.c.bf16 %v3966_v46, %v3964_v45  ;;  %v4220_v46 = vld [vmem:[#allocation11 + $0xe0] sm:$0xff] }
 0x477   :  { %v6196_v50 = vpack.c.bf16 %v3971_v48, %v3969_v19  ;;  %v4203_v45 = vld [vmem:[#allocation11 + $0x58] sm:$0xff]  ;;  %v4221_v19 = vld [vmem:[#allocation11 + $0xe8] sm:$0xff] }
 0x479   :  { %6155 = vmatpush1.bf16.msra.mxu0 %v6154_v21  ;;  %v3973_v21 = vld [vmem:[#allocation10 + $0x1a8] sm:$0xff] }
 0x47a   :  { %6157 = vmatprep.subr.bf16.mxu0 %v6156_v51  ;;  %v3975_v51 = vld [vmem:[#allocation10 + $0x1b8] sm:$0xff] }
 0x47b   :  { %v6200_v15 = vpack.c.bf16 %v3975_v51, %v3973_v21  ;;  %v3984_v21 = vld [vmem:[#allocation10 + $0x200] sm:$0xff]  ;;  %v3986_v51 = vld [vmem:[#allocation10 + $0x210] sm:$0xff] }
 0x47d   :  { %6159 = vmatpush1.bf16.msra.mxu0 %v6158_v56  ;;  %v3977_v56 = vld [vmem:[#allocation10 + $0x1c8] sm:$0xff] }
 0x47e   :  { %6161 = vmatprep.subr.bf16.mxu0 %v6160_v40  ;;  %v3979_v40 = vld [vmem:[#allocation10 + $0x1d8] sm:$0xff] }
 0x47f   :  { %v6204_v20 = vpack.c.bf16 %v3979_v40, %v3977_v56 }
 0x481   :  { %6163 = vmatpush1.bf16.msra.mxu0 %v6162_v59  ;;  %v6206_v59 = vpack.c.bf16 %v3978_v58, %v3976_v27  ;;  %v6216_v58 = vpack.c.bf16 %v3991_v54, %v3989_v53  ;;  %v4024_v53 = vld [vmem:[#allocation10 + $0x340] sm:$0xff]  ;;  %v4026_v54 = vld [vmem:[#allocation10 + $0x350] sm:$0xff] }
 0x482   :  { %6165 = vmatprep.subr.bf16.mxu0 %v6164_v60  ;;  %v3981_v60 = vld [vmem:[#allocation10 + $0x1e8] sm:$0xff] }
 0x483   :  { %v6208_v0 = vpack.c.bf16 %v3983_v61, %v3981_v60  ;;  %v3990_v60 = vld [vmem:[#allocation10 + $0x230] sm:$0xff] }
 0x485   :  { %6167 = vmatpush1.bf16.msra.mxu0 %v6166_v2  ;;  %v6210_v2 = vpack.c.bf16 %v3982_v38, %v3980_v1  ;;  %v3995_v1 = vld [vmem:[#allocation10 + $0x258] sm:$0xff] }
 0x486   :  { %6169 = vmatprep.subr.bf16.mxu0 %v6168_v3  ;;  %v3985_v3 = vld [vmem:[#allocation10 + $0x208] sm:$0xff] }
 0x487   :  { %v6212_v5 = vpack.c.bf16 %v3987_v4, %v3985_v3  ;;  %v3992_v3 = vld [vmem:[#allocation10 + $0x240] sm:$0xff]  ;;  %v3994_v4 = vld [vmem:[#allocation10 + $0x250] sm:$0xff] }
 0x489   :  { %6171 = vmatpush1.bf16.msra.mxu0 %v6170_v14  ;;  %v4192_v14 = vld [vmem:[#allocation11] sm:$0xff] }
 0x48a   :  { %6173 = vmatprep.subr.bf16.mxu0 %v6172_v8  ;;  %v6276_v8 = vpack.c.bf16 %v4209_v7, %v4208_v6  ;;  %v6278_v34 = vpack.c.bf16 %v4193_v9, %v4192_v14  ;;  %v3999_v6 = vld [vmem:[#allocation10 + $0x278] sm:$0xff]  ;;  %v6222_v7 = vpack.c.bf16 %v3994_v4, %v3992_v3  ;;  %v3998_v9 = vld [vmem:[#allocation10 + $0x270] sm:$0xff] }
 0x48b   :  { %v4039_v3 = vld [vmem:[#allocation10 + $0x3b8] sm:$0xff] }
 0x48c   :  { %6277 = vmatprep.subr.bf16.mxu1 %v6276_v8  ;;  %v3996_v8 = vld [vmem:[#allocation10 + $0x260] sm:$0xff] }
 0x48d   :  { %6175 = vmatpush1.bf16.msra.mxu0 %v6174_v12  ;;  %v6280_v12 = vpack.c.bf16 %v4211_v10, %v4210_v32  ;;  %6279 = vmatpush3.bf16.msra.mxu1 %v6278_v34  ;;  %v4001_v32 = vld [vmem:[#allocation10 + $0x288] sm:$0xff]  ;;  %v4003_v10 = vld [vmem:[#allocation10 + $0x298] sm:$0xff]  ;;  %v6226_v34 = vpack.c.bf16 %v3998_v9, %v3996_v8 }
 0x48e   :  { %6177 = vmatprep.subr.bf16.mxu0 %v6176_v16  ;;  %v4194_v16 = vld [vmem:[#allocation11 + $0x10] sm:$0xff]  ;;  %v4043_v8 = vld [vmem:[#allocation10 + $0x3d8] sm:$0xff] }
 0x48f   :  { %v6282_v22 = vpack.c.bf16 %v4195_v17, %v4194_v16  ;;  %6281 = vmatprep.subr.bf16.mxu1 %v6280_v12  ;;  %v6228_v12 = vpack.c.bf16 %v4003_v10, %v4001_v32  ;;  %v4000_v16 = vld [vmem:[#allocation10 + $0x280] sm:$0xff]  ;;  %v4002_v17 = vld [vmem:[#allocation10 + $0x290] sm:$0xff] }
 0x490   :  { %v4040_v10 = vld [vmem:[#allocation10 + $0x3c0] sm:$0xff] }
 0x491   :  { %6179 = vmatpush1.bf16.msra.mxu0 %v6178_v23  ;;  %v6284_v23 = vpack.c.bf16 %v4213_v18, %v4212_v42  ;;  %6283 = vmatpush3.bf16.msra.mxu1 %v6282_v22  ;;  %v4005_v42 = vld [vmem:[#allocation10 + $0x2a8] sm:$0xff]  ;;  %v4007_v18 = vld [vmem:[#allocation10 + $0x2b8] sm:$0xff]  ;;  %v6230_v22 = vpack.c.bf16 %v4002_v17, %v4000_v16 }
 0x492   :  { %6181 = vmatprep.subr.bf16.mxu0 %v6180_v24  ;;  %v4196_v24 = vld [vmem:[#allocation11 + $0x20] sm:$0xff]  ;;  %v4047_v16 = vld [vmem:[#allocation10 + $0x3f8] sm:$0xff] }
 0x493   :  { %v6286_v28 = vpack.c.bf16 %v4197_v47, %v4196_v24  ;;  %6285 = vmatprep.subr.bf16.mxu1 %v6284_v23  ;;  %v6232_v23 = vpack.c.bf16 %v4007_v18, %v4005_v42  ;;  %v4004_v24 = vld [vmem:[#allocation10 + $0x2a0] sm:$0xff]  ;;  %v4006_v47 = vld [vmem:[#allocation10 + $0x2b0] sm:$0xff] }
 0x494   :  { %v4044_v18 = vld [vmem:[#allocation10 + $0x3e0] sm:$0xff] }
 0x495   :  { %6183 = vmatpush1.bf16.msra.mxu0 %v6182_v29  ;;  %v6288_v29 = vpack.c.bf16 %v4215_v26, %v4214_v25  ;;  %6287 = vmatpush3.bf16.msra.mxu1 %v6286_v28  ;;  %v4009_v25 = vld [vmem:[#allocation10 + $0x2c8] sm:$0xff]  ;;  %v4011_v26 = vld [vmem:[#allocation10 + $0x2d8] sm:$0xff]  ;;  %v6234_v28 = vpack.c.bf16 %v4006_v47, %v4004_v24  ;;  %v4222_v47 = vld [vmem:[#allocation11 + $0xf0] sm:$0xff] }
 0x496   :  { %6185 = vmatprep.subr.bf16.mxu0 %v6184_v30  ;;  %v4198_v30 = vld [vmem:[#allocation11 + $0x30] sm:$0xff] }
 0x497   :  { %v6290_v63 = vpack.c.bf16 %v4199_v31, %v4198_v30  ;;  %6289 = vmatprep.subr.bf16.mxu1 %v6288_v29  ;;  %v6236_v29 = vpack.c.bf16 %v4011_v26, %v4009_v25  ;;  %v4008_v30 = vld [vmem:[#allocation10 + $0x2c0] sm:$0xff]  ;;  %v4010_v31 = vld [vmem:[#allocation10 + $0x2d0] sm:$0xff]  ;;  %v4223_v25 = vld [vmem:[#allocation11 + $0xf8] sm:$0xff] }
 0x498   :  { %v6304_v26 = vpack.c.bf16 %v4223_v25, %v4222_v47 }
 0x499   :  { %6187 = vmatpush1.bf16.msra.mxu0 %v6186_v35  ;;  %v6292_v35 = vpack.c.bf16 %v4217_v55, %v4216_v33  ;;  %6291 = vmatpush3.bf16.msra.mxu1 %v6290_v63  ;;  %v4013_v33 = vld [vmem:[#allocation10 + $0x2e8] sm:$0xff]  ;;  %v4015_v55 = vld [vmem:[#allocation10 + $0x2f8] sm:$0xff]  ;;  %v6238_v63 = vpack.c.bf16 %v4010_v31, %v4008_v30 }
 0x49a   :  { %6189 = vmatprep.subr.bf16.mxu0 %v6188_v36  ;;  %v4200_v36 = vld [vmem:[#allocation11 + $0x40] sm:$0xff] }
 0x49b   :  { %v6294_v43 = vpack.c.bf16 %v4201_v37, %v4200_v36  ;;  %6293 = vmatprep.subr.bf16.mxu1 %v6292_v35  ;;  %v6240_v35 = vpack.c.bf16 %v4015_v55, %v4013_v33  ;;  %v4012_v36 = vld [vmem:[#allocation10 + $0x2e0] sm:$0xff]  ;;  %v4014_v37 = vld [vmem:[#allocation10 + $0x2f0] sm:$0xff] }
 0x49d   :  { %6191 = vmatpush1.bf16.msra.mxu0 %v6190_v11  ;;  %v6296_v11 = vpack.c.bf16 %v4219_v39, %v4218_v62  ;;  %6295 = vmatpush3.bf16.msra.mxu1 %v6294_v43  ;;  %v4017_v62 = vld [vmem:[#allocation10 + $0x308] sm:$0xff]  ;;  %v4019_v39 = vld [vmem:[#allocation10 + $0x318] sm:$0xff]  ;;  %v6242_v43 = vpack.c.bf16 %v4014_v37, %v4012_v36  ;;  %v4320_v36 = vld [vmem:[#allocation13] ss:$0 sm:$0xff] }
 0x49e   :  { %6193 = vmatprep.subr.bf16.mxu0 %v6192_v44  ;;  %v4202_v44 = vld [vmem:[#allocation11 + $0x50] sm:$0xff] }
 0x49f   :  { %v6298_v48 = vpack.c.bf16 %v4203_v45, %v4202_v44  ;;  %6297 = vmatprep.subr.bf16.mxu1 %v6296_v11  ;;  %v6244_v11 = vpack.c.bf16 %v4019_v39, %v4017_v62  ;;  %v4016_v44 = vld [vmem:[#allocation10 + $0x300] sm:$0xff]  ;;  %v4018_v45 = vld [vmem:[#allocation10 + $0x310] sm:$0xff] }
 0x4a1   :  { %6195 = vmatpush1.bf16.msra.mxu0 %v6194_v49  ;;  %v6300_v49 = vpack.c.bf16 %v4221_v19, %v4220_v46  ;;  %6299 = vmatpush3.bf16.msra.mxu1 %v6298_v48  ;;  %v4021_v46 = vld [vmem:[#allocation10 + $0x328] sm:$0xff]  ;;  %v4023_v19 = vld [vmem:[#allocation10 + $0x338] sm:$0xff]  ;;  %v6246_v48 = vpack.c.bf16 %v4018_v45, %v4016_v44 }
 0x4a2   :  { %6197 = vmatprep.subr.bf16.mxu0 %v6196_v50  ;;  %v4204_v50 = vld [vmem:[#allocation11 + $0x60] sm:$0xff] }
 0x4a3   :  { %v6302_v41 = vpack.c.bf16 %v4205_v13, %v4204_v50  ;;  %6301 = vmatprep.subr.bf16.mxu1 %v6300_v49  ;;  %v6248_v49 = vpack.c.bf16 %v4023_v19, %v4021_v46  ;;  %v4020_v50 = vld [vmem:[#allocation10 + $0x320] sm:$0xff]  ;;  %v4022_v13 = vld [vmem:[#allocation10 + $0x330] sm:$0xff] }
 0x4a5   :  { %6199 = vmatpush1.bf16.msra.mxu0 %v6198_v52  ;;  %6303 = vmatpush3.bf16.msra.mxu1 %v6302_v41  ;;  %v4025_v41 = vld [vmem:[#allocation10 + $0x348] sm:$0xff] }
 0x4a6   :  { %6201 = vmatprep.subr.bf16.mxu0 %v6200_v15  ;;  %6305 = vmatprep.subr.bf16.mxu1 %v6304_v26 }
 0x4a9   :  { %6203 = vmatpush1.bf16.msra.mxu0 %v6202_v57 }
 0x4aa   :  { %6205 = vmatprep.subr.bf16.mxu0 %v6204_v20  ;;  %v6214_v20 = vpack.c.bf16 %v3986_v51, %v3984_v21  ;;  %v4027_v21 = vld [vmem:[#allocation10 + $0x358] sm:$0xff]  ;;  %v6250_v51 = vpack.c.bf16 %v4022_v13, %v4020_v50 }
 0x4ad   :  { %6207 = vmatpush1.bf16.msra.mxu0 %v6206_v59  ;;  %v3988_v59 = vld [vmem:[#allocation10 + $0x220] sm:$0xff] }
 0x4ae   :  { %6209 = vmatprep.subr.bf16.mxu0 %v6208_v0  ;;  %v3993_v0 = vld [vmem:[#allocation10 + $0x248] sm:$0xff]  ;;  %v6218_v38 = vpack.c.bf16 %v3990_v60, %v3988_v59  ;;  %v4035_v60 = vld [vmem:[#allocation10 + $0x398] sm:$0xff] }
 0x4af   :  { %v4033_v59 = vld [vmem:[#allocation10 + $0x388] sm:$0xff] }
 0x4b1   :  { %6211 = vmatpush1.bf16.msra.mxu0 %v6210_v2  ;;  %v6220_v2 = vpack.c.bf16 %v3995_v1, %v3993_v0  ;;  %v6260_v0 = vpack.c.bf16 %v4035_v60, %v4033_v59  ;;  %v4032_v1 = vld [vmem:[#allocation10 + $0x380] sm:$0xff] }
 0x4b2   :  { %6213 = vmatprep.subr.bf16.mxu0 %v6212_v5  ;;  %v3997_v5 = vld [vmem:[#allocation10 + $0x268] sm:$0xff] }
 0x4b3   :  { %v6224_v14 = vpack.c.bf16 %v3999_v6, %v3997_v5  ;;  %v4036_v6 = vld [vmem:[#allocation10 + $0x3a0] sm:$0xff] }
 0x547   :  { %v3627_v52 = vpop.f32.mrb[6].mxu0  ;;  %v6778_v15 = vpop.f32.mrb[10].mxu1 }
 0x548   :  { %v3629_v56 = vpop.f32.mrb[7].mxu0  ;;  %v3913_v40 = vpop.f32.mrb[11].mxu1  ;;  %v3916_v27 = vmax.f32 %v3627_v52, 0.0  ;;  %v6252_v52 = vpack.c.bf16 %v4027_v21, %v4025_v41  ;;  %v3918_v24 = vmax.f32 %v6778_v15, 0.0 }
 0x549   :  { %v3917_v57 = vmax.f32 %v3629_v56, 0.0  ;;  %v3919_v61 = vmax.f32 %v3913_v40, 0.0  ;;  %v4029_v56 = vld [vmem:[#allocation10 + $0x368] sm:$0xff]  ;;  %v4031_v40 = vld [vmem:[#allocation10 + $0x378] sm:$0xff] }
 0x54b   :  { %4112 = vmatprep.mubr.f32.mxu0 %v3917_v57  ;;  %v6254_v57 = vpack.c.bf16 %v4026_v54, %v4024_v53 }
 0x54c   :  { %4113 = vmatmul.mubr.f32.vlgmr.msra.gmra.mrb[8].mxu0 %v3916_v27  ;;  %v4028_v27 = vld [vmem:[#allocation10 + $0x360] sm:$0xff] }
 0x54d   :  { %6215 = vmatpush1.bf16.msra.mxu0 %v6214_v20  ;;  %4183 = vmatprep.mubr.f32.mxu0 %v3919_v61  ;;  %v6256_v20 = vpack.c.bf16 %v4031_v40, %v4029_v56 }
 0x54e   :  { %6217 = vmatprep.subr.bf16.mxu0 %v6216_v58  ;;  %v4030_v58 = vld [vmem:[#allocation10 + $0x370] sm:$0xff] }
 0x54f   :  { %v6258_v61 = vpack.c.bf16 %v4030_v58, %v4028_v27 }
 0x551   :  { %6219 = vmatpush1.bf16.msra.mxu0 %v6218_v38  ;;  %v4034_v38 = vld [vmem:[#allocation10 + $0x390] sm:$0xff] }
 0x552   :  { %6221 = vmatprep.subr.bf16.mxu0 %v6220_v2  ;;  %v4037_v2 = vld [vmem:[#allocation10 + $0x3a8] sm:$0xff]  ;;  %v6262_v4 = vpack.c.bf16 %v4034_v38, %v4032_v1 }
 0x553   :  { %v6264_v5 = vpack.c.bf16 %v4039_v3, %v4037_v2 }
 0x555   :  { %6223 = vmatpush1.bf16.msra.mxu0 %v6222_v7  ;;  %v4038_v7 = vld [vmem:[#allocation10 + $0x3b0] sm:$0xff] }
 0x556   :  { %6225 = vmatprep.subr.bf16.mxu0 %v6224_v14  ;;  %v4041_v14 = vld [vmem:[#allocation10 + $0x3c8] sm:$0xff]  ;;  %v6266_v9 = vpack.c.bf16 %v4038_v7, %v4036_v6 }
 0x557   :  { %v6268_v32 = vpack.c.bf16 %v4043_v8, %v4041_v14 }
 0x559   :  { %6227 = vmatpush1.bf16.msra.mxu0 %v6226_v34  ;;  %v4042_v34 = vld [vmem:[#allocation10 + $0x3d0] sm:$0xff] }
 0x55a   :  { %6229 = vmatprep.subr.bf16.mxu0 %v6228_v12  ;;  %v4045_v12 = vld [vmem:[#allocation10 + $0x3e8] sm:$0xff]  ;;  %v6270_v17 = vpack.c.bf16 %v4042_v34, %v4040_v10 }
 0x55b   :  { %v6272_v42 = vpack.c.bf16 %v4047_v16, %v4045_v12 }
 0x55d   :  { %6231 = vmatpush1.bf16.msra.mxu0 %v6230_v22  ;;  %v4046_v22 = vld [vmem:[#allocation10 + $0x3f0] sm:$0xff] }
 0x55e   :  { %6233 = vmatprep.subr.bf16.mxu0 %v6232_v23  ;;  %v6274_v23 = vpack.c.bf16 %v4046_v22, %v4044_v18 }
 0x561   :  { %6235 = vmatpush1.bf16.msra.mxu0 %v6234_v28  ;;  %v4206_v28 = vld [vmem:[#allocation11 + $0x70] sm:$0xff] }
 0x562   :  { %6237 = vmatprep.subr.bf16.mxu0 %v6236_v29  ;;  %v4207_v29 = vld [vmem:[#allocation11 + $0x78] sm:$0xff] }
 0x563   :  { %v6306_v30 = vpack.c.bf16 %v4207_v29, %v4206_v28 }
 0x565   :  { %6239 = vmatpush1.bf16.msra.mxu0 %v6238_v63  ;;  %6307 = vmatpush3.bf16.msra.mxu1 %v6306_v30 }
 0x566   :  { %6241 = vmatprep.subr.bf16.mxu0 %v6240_v35 }
 0x569   :  { %6243 = vmatpush1.bf16.msra.mxu0 %v6242_v43 }
 0x56a   :  { %6245 = vmatprep.subr.bf16.mxu0 %v6244_v11 }
 0x56d   :  { %6247 = vmatpush1.bf16.msra.mxu0 %v6246_v48 }
 0x56e   :  { %6249 = vmatprep.subr.bf16.mxu0 %v6248_v49 }
 0x571   :  { %6251 = vmatpush1.bf16.msra.mxu0 %v6250_v51 }
 0x572   :  { %6253 = vmatprep.subr.bf16.mxu0 %v6252_v52 }
 0x575   :  { %6255 = vmatpush1.bf16.msra.mxu0 %v6254_v57 }
 0x576   :  { %6257 = vmatprep.subr.bf16.mxu0 %v6256_v20 }
 0x579   :  { %6259 = vmatpush1.bf16.msra.mxu0 %v6258_v61 }
 0x57a   :  { %6261 = vmatprep.subr.bf16.mxu0 %v6260_v0 }
 0x57d   :  { %6263 = vmatpush1.bf16.msra.mxu0 %v6262_v4 }
 0x57e   :  { %6265 = vmatprep.subr.bf16.mxu0 %v6264_v5 }
 0x581   :  { %6267 = vmatpush1.bf16.msra.mxu0 %v6266_v9 }
 0x582   :  { %6269 = vmatprep.subr.bf16.mxu0 %v6268_v32 }
 0x585   :  { %6271 = vmatpush1.bf16.msra.mxu0 %v6270_v17 }
 0x586   :  { %6273 = vmatprep.subr.bf16.mxu0 %v6272_v42 }
 0x589   :  { %6275 = vmatpush1.bf16.msra.mxu0 %v6274_v23 }
 0x58c   :  { %4184 = vmatmul.mubr.f32.vlgmr.msra.gmra.mrb[8].mxu0 %v3918_v24 }
 0x65f   :  { %v4185_v31 = vpop.f32.mrb[8].mxu0 }
 0x660   :  { %v4187_v33 = vpop.f32.mrb[9].mxu0  ;;  %v4190_v63 = vmax.f32 %v4185_v31, 0.0 }
 0x661   :  { %v4191_v55 = vmax.f32 %v4187_v33, 0.0 }
 0x663   :  { %4295 = vmatprep.mubr.f32.mxu1 %v4191_v55 }
 0x664   :  { %4296 = vmatmul.mubr.f32.vlgmr.msra.gmra.mrb[12].mxu1 %v4190_v63 }
 0x737   :  { %v4353_v35 = vpop.f32.mrb[12].mxu1 }
 0x738   :  { %v4354_v37 = vpop.f32.mrb[13].mxu1 }
 0x739   :  { %v4355_v15 = vadd.f32 %v4354_v37, %v4353_v35 }
 0x73b   :  { %v4298_v62 = vadd.f32 %v4355_v15, %v4320_v36 }
 0x73d   :  { %4301 = vst [vmem:[#allocation14] sm:$0xff] %v4298_v62 }
 0x73e   :  { %6527 = shalt.err (!%p6524_p4)
}
 0x73f   :  { %s6528_s21 = scalar_lea.hbm %s6800_s7, 128 }
 0x740   :  { %p6529_p5 = scmp.ne.s32.totalorder %s6800_s7, %s6528_s21  ;;  %p6532_p6 = scmp.lt.u32.totalorder %s6528_s21, %s6800_s7 }
 0x742   :  { %p6534_p7 = pnand %p6532_p6, %p6529_p5 }
 0x744   :  { %6537 = shalt.err (!%p6534_p7)
}
 0x745   :  { %4311 = dma.vmem_to_hbm [thread:$0]  %s4309_s0, 128, %s6800_s7, [#allocation4]  }
 0x746   :  { %6546 = dma.done.wait [#allocation4], 128  }
 0x747   :  { %6547 = vsyncadd [#allocation4], 4294967168 }
 0x748   :  { %4315 = vsyncpa [#allocation3], 1 }
 0x749   :  { %4316 = vsyncpa [#allocation6], 1 }
 0x74a   :  { %4317 = vsyncpa [#allocation9], 1 }
 0x74b   :  { %4318 = vsyncpa [#allocation12], 1 }
 0x74c   :  { %4319 = vsyncpa [#allocation4], 1 }

</bundles_post_ra>
